<compile_context>
chip_gen: v7x
topology: tpu7x:2x2x1
jax: 0.10.0
libtpu: 0.0.40
codegen_flags: <defaults>
</compile_context>

<pallas_src>
import functools

import jax
import jax.numpy as jnp
import numpy as np
from jax.experimental import pallas as pl
from jax.experimental.pallas import tpu as pltpu

EPS = 1e-5
LANE = 128
_VMEM_LIMIT = 48 * 1024 * 1024  # below v7x physical (64 MiB), above defaults


def _round_up(x, m):
    return (x + m - 1) // m * m


def _pad_to(a, shape):
    return jnp.pad(a, [(0, t - s) for s, t in zip(a.shape, shape)])


def _compiler_params():
    return pltpu.CompilerParams(
        dimension_semantics=("parallel",),
        vmem_limit_bytes=_VMEM_LIMIT)


def _partial_stats(y, ref_shape):
    """(8, C) block whose row-sum equals y's per-channel sum (row 0 holds it)."""
    rows = jax.lax.broadcasted_iota(jnp.int32, ref_shape, 0)
    return jnp.where(rows == 0, jnp.sum(y, axis=0, keepdims=True), 0.0)


# ---------------------------------------------------------------------------
# Pass 1: 1x1 conv (matmul) + per-tile batch-stat accumulation.
# ---------------------------------------------------------------------------
def _matmul_stats_kernel(x_ref, w_ref, y_ref, sum_ref, sq_ref):
    y = jnp.dot(x_ref[...], w_ref[...], preferred_element_type=jnp.float32)
    y_ref[...] = y
    sum_ref[...] = _partial_stats(y, sum_ref.shape)
    sq_ref[...] = _partial_stats(y * y, sq_ref.shape)


def _matmul_stats(x2d, w, *, tile, n_tiles):
    m_pad, k = x2d.shape
    c = w.shape[1]
    y, ssum, ssq = pl.pallas_call(
        _matmul_stats_kernel,
        grid=(n_tiles,),
        in_specs=[
            pl.BlockSpec((tile, k), lambda i: (i, 0)),   # row tile (pipelined)
            pl.BlockSpec((k, c), lambda i: (0, 0)),      # weights (resident)
        ],
        out_specs=[
            pl.BlockSpec((tile, c), lambda i: (i, 0)),
            pl.BlockSpec((8, c), lambda i: (i, 0)),
            pl.BlockSpec((8, c), lambda i: (i, 0)),
        ],
        out_shape=(
            jax.ShapeDtypeStruct((m_pad, c), jnp.float32),
            jax.ShapeDtypeStruct((n_tiles * 8, c), jnp.float32),
            jax.ShapeDtypeStruct((n_tiles * 8, c), jnp.float32),
        ),
        compiler_params=_compiler_params(),
    )(x2d, w)
    return y, jnp.sum(ssum, axis=0), jnp.sum(ssq, axis=0)


# ---------------------------------------------------------------------------
# Pass 2: bn+relu of previous pre-activation fused into the 3x3 conv.
# One image per grid step; zero-bordered halo tile built in a VMEM scratch.
# ---------------------------------------------------------------------------
def _make_conv3x3_stats_kernel(hh, ww, c):
    def kernel(y1_ref, w2_ref, sc_ref, sh_ref, y2_ref, sum_ref, sq_ref,
               halo_ref):
        h = jnp.maximum(y1_ref[0] * sc_ref[...] + sh_ref[...], 0.0)
        h = h.astype(jnp.bfloat16)                       # MXU operand
        halo_ref[...] = jnp.zeros_like(halo_ref)         # padding = 1 border
        halo_ref[1:hh + 1, 1:ww + 1, :] = h
        acc = jnp.zeros((hh * ww, c), jnp.float32)
        for k in range(9):                               # 9 shifted taps
            dy, dx = divmod(k, 3)
            win = halo_ref[dy:dy + hh, dx:dx + ww, :].reshape(hh * ww, c)
            acc = acc + jnp.dot(win, w2_ref[k],
                                preferred_element_type=jnp.float32)
        y2_ref[...] = acc[None]
        sum_ref[...] = _partial_stats(acc, sum_ref.shape)
        sq_ref[...] = _partial_stats(acc * acc, sq_ref.shape)
    return kernel


def _conv3x3_stats(y1_img, w2, scale, shift):
    n, hh, ww, c = y1_img.shape
    kernel = _make_conv3x3_stats_kernel(hh, ww, c)
    y2, ssum, ssq = pl.pallas_call(
        kernel,
        grid=(n,),
        in_specs=[
            pl.BlockSpec((1, hh, ww, c), lambda i: (i, 0, 0, 0)),
            pl.BlockSpec(w2.shape, lambda i: (0, 0, 0)),
            pl.BlockSpec((1, c), lambda i: (0, 0)),
            pl.BlockSpec((1, c), lambda i: (0, 0)),
        ],
        out_specs=[
            pl.BlockSpec((1, hh * ww, c), lambda i: (i, 0, 0)),
            pl.BlockSpec((8, c), lambda i: (i, 0)),
            pl.BlockSpec((8, c), lambda i: (i, 0)),
        ],
        out_shape=(
            jax.ShapeDtypeStruct((n, hh * ww, c), jnp.float32),
            jax.ShapeDtypeStruct((n * 8, c), jnp.float32),
            jax.ShapeDtypeStruct((n * 8, c), jnp.float32),
        ),
        scratch_shapes=[pltpu.VMEM((hh + 2, ww + 2, c), jnp.bfloat16)],
        compiler_params=_compiler_params(),
    )(y1_img, w2, scale, shift)
    return y2, jnp.sum(ssum, axis=0), jnp.sum(ssq, axis=0)


# ---------------------------------------------------------------------------
# Pass 3: bn+relu of previous pre-activation fused into a 1x1 conv (matmul).
# ---------------------------------------------------------------------------
def _make_bn_matmul_stats_kernel(tile, m_real, m_pad):
    def kernel(yin_ref, w_ref, sc_ref, sh_ref, yout_ref, sum_ref, sq_ref):
        h = jnp.maximum(yin_ref[...] * sc_ref[...] + sh_ref[...], 0.0)
        if m_pad > m_real:
            # Zero rows that only exist because M was padded up to the tile
            # size so they don't pollute the next layer's batch statistics.
            row = (pl.program_id(0) * tile +
                   jax.lax.broadcasted_iota(jnp.int32, h.shape, 0))
            h = jnp.where(row < m_real, h, 0.0)
        y = jnp.dot(h.astype(jnp.bfloat16), w_ref[...],
                    preferred_element_type=jnp.float32)
        yout_ref[...] = y
        sum_ref[...] = _partial_stats(y, sum_ref.shape)
        sq_ref[...] = _partial_stats(y * y, sq_ref.shape)
    return kernel


def _bn_matmul_stats(y_in, w, scale, shift, *, tile, n_tiles, m_real):
    m_pad, k = y_in.shape
    c = w.shape[1]
    kernel = _make_bn_matmul_stats_kernel(tile, m_real, m_pad)
    y, ssum, ssq = pl.pallas_call(
        kernel,
        grid=(n_tiles,),
        in_specs=[
            pl.BlockSpec((tile, k), lambda i: (i, 0)),
            pl.BlockSpec((k, c), lambda i: (0, 0)),
            pl.BlockSpec((1, k), lambda i: (0, 0)),
            pl.BlockSpec((1, k), lambda i: (0, 0)),
        ],
        out_specs=[
            pl.BlockSpec((tile, c), lambda i: (i, 0)),
            pl.BlockSpec((8, c), lambda i: (i, 0)),
            pl.BlockSpec((8, c), lambda i: (i, 0)),
        ],
        out_shape=(
            jax.ShapeDtypeStruct((m_pad, c), jnp.float32),
            jax.ShapeDtypeStruct((n_tiles * 8, c), jnp.float32),
            jax.ShapeDtypeStruct((n_tiles * 8, c), jnp.float32),
        ),
        compiler_params=_compiler_params(),
    )(y_in, w, scale, shift)
    return y, jnp.sum(ssum, axis=0), jnp.sum(ssq, axis=0)


# ---------------------------------------------------------------------------
# Pass 4: bn3 + residual add + relu.
# ---------------------------------------------------------------------------
def _bn_add_relu_kernel(y_ref, id_ref, sc_ref, sh_ref, o_ref):
    o_ref[...] = jnp.maximum(
        y_ref[...] * sc_ref[...] + sh_ref[...] + id_ref[...], 0.0)


def _bn_add_relu(y3, identity, scale, shift, *, tile, n_tiles):
    m_pad, c = y3.shape
    return pl.pallas_call(
        _bn_add_relu_kernel,
        grid=(n_tiles,),
        in_specs=[
            pl.BlockSpec((tile, c), lambda i: (i, 0)),
            pl.BlockSpec((tile, c), lambda i: (i, 0)),
            pl.BlockSpec((1, c), lambda i: (0, 0)),
            pl.BlockSpec((1, c), lambda i: (0, 0)),
        ],
        out_specs=pl.BlockSpec((tile, c), lambda i: (i, 0)),
        out_shape=jax.ShapeDtypeStruct((m_pad, c), jnp.float32),
        compiler_params=_compiler_params(),
    )(y3, identity, scale, shift)


def _affine_from_stats(ssum, ssq, count, gamma, beta):
    """Fold training-mode BN (batch stats, biased var) into y*scale + shift."""
    c_pad = ssum.shape[0]
    g = _pad_to(gamma.astype(jnp.float32), (c_pad,))
    b = _pad_to(beta.astype(jnp.float32), (c_pad,))
    mean = ssum / count
    var = jnp.maximum(ssq / count - mean * mean, 0.0)
    scale = g * jax.lax.rsqrt(var + EPS)
    shift = b - mean * scale
    return scale.reshape(1, c_pad), shift.reshape(1, c_pad)


def bottleneck_forward(x_nchw, p, *, tile_m=1024):
    """Bottleneck forward: stride=1, groups=1, dilation=1, downsample=None."""
    n, cin, hh, ww = map(int, x_nchw.shape)
    width = int(p["w1_hwio"].shape[-1])
    cout = int(p["w3_hwio"].shape[-1])
    assert cout == cin, "downsample=None requires inplanes == planes*expansion"
    # TODO(synk): stride=2 / downsample / groups>1 / dilation>1 variants and the
    # BatchNorm running_mean/running_var (momentum) update are not implemented.

    m = n * hh * ww
    cin_p = _round_up(cin, LANE)
    wid_p = _round_up(width, LANE)
    cout_p = _round_up(cout, LANE)
    tile = _round_up(min(tile_m, m), 16)
    m_pad = _round_up(m, tile)
    n_tiles = m_pad // tile

    # Layout glue: NCHW -> flattened NHWC rows, channels padded to lane width.
    x2d = jnp.transpose(x_nchw, (0, 2, 3, 1)).reshape(m, cin)
    x2d_f32 = _pad_to(x2d, (m_pad, cin_p))       # residual branch (exact f32)
    x2d_bf = x2d_f32.astype(jnp.bfloat16)        # MXU operand

    w1 = _pad_to(p["w1_hwio"].reshape(cin, width),
                 (cin_p, wid_p)).astype(jnp.bfloat16)
    w2 = _pad_to(p["w2_hwio"].reshape(9, width, width),
                 (9, wid_p, wid_p)).astype(jnp.bfloat16)
    w3 = _pad_to(p["w3_hwio"].reshape(width, cout),
                 (wid_p, cout_p)).astype(jnp.bfloat16)

    # pass 1: conv1 (1x1) + stats
    y1, s1, q1 = _matmul_stats(x2d_bf, w1, tile=tile, n_tiles=n_tiles)
    sc1, sh1 = _affine_from_stats(s1, q1, m, p["g1"], p["b1"])

    # pass 2: bn1 + relu fused into conv2 (3x3, VMEM halo) + stats
    y1_img = y1[:m].reshape(n, hh, ww, wid_p)
    y2, s2, q2 = _conv3x3_stats(y1_img, w2, sc1, sh1)
    sc2, sh2 = _affine_from_stats(s2, q2, m, p["g2"], p["b2"])

    # pass 3: bn2 + relu fused into conv3 (1x1) + stats
    y2_2d = _pad_to(y2.reshape(m, wid_p), (m_pad, wid_p))
    y3, s3, q3 = _bn_matmul_stats(y2_2d, w3, sc2, sh2,
                                  tile=tile, n_tiles=n_tiles, m_real=m)
    sc3, sh3 = _affine_from_stats(s3, q3, m, p["g3"], p["b3"])

    # pass 4: bn3 + residual add + relu
    out2d = _bn_add_relu(y3, x2d_f32, sc3, sh3, tile=tile, n_tiles=n_tiles)

    out = out2d[:m, :cout].reshape(n, hh, ww, cout)
    return jnp.transpose(out, (0, 3, 1, 2))      # back to NCHW


def reference(x_nchw, p):
    """Pure-JAX reference.  Convolutions mirror the kernels' mixed-precision
    policy (bf16 MXU operands, f32 accumulation); BN (training-mode batch
    stats, biased var, eps=1e-5), ReLU and the residual add are f32."""
    x = jnp.transpose(x_nchw, (0, 2, 3, 1))
    dn = ("NHWC", "HWIO", "NHWC")

    def conv(h, w_hwio, padding):
        return jax.lax.conv_general_dilated(
            h.astype(jnp.bfloat16), w_hwio.astype(jnp.bfloat16), (1, 1),
            padding, dimension_numbers=dn,
            preferred_element_type=jnp.float32)

    def bn(y, g, b):
        mean = jnp.mean(y, axis=(0, 1, 2), keepdims=True)
        var = jnp.mean((y - mean) ** 2, axis=(0, 1, 2), keepdims=True)
        return ((y - mean) * jax.lax.rsqrt(var + EPS) * g.reshape(1, 1, 1, -1)
                + b.reshape(1, 1, 1, -1))

    h = jnp.maximum(bn(conv(x, p["w1_hwio"], "VALID"), p["g1"], p["b1"]), 0.0)
    h = jnp.maximum(bn(conv(h, p["w2_hwio"], ((1, 1), (1, 1))),
                       p["g2"], p["b2"]), 0.0)
    h = bn(conv(h, p["w3_hwio"], "VALID"), p["g3"], p["b3"])
    out = jnp.maximum(h + x, 0.0)
    return jnp.transpose(out, (0, 3, 1, 2))


if __name__ == "__main__":
    # Bottleneck(inplanes=16, planes=4): width=4, planes*expansion=16=inplanes.
    N, INPLANES, PLANES, H, W = 2, 16, 4, 16, 16
    WIDTH = PLANES            # base_width=64, groups=1 -> width = planes
    COUT = PLANES * 4         # expansion = 4

    key = jax.random.PRNGKey(0)
    k1, k2, k3, k4, k5, kx = jax.random.split(key, 6)
    w1_hwio = 0.1 * jax.random.normal(k1, (1, 1, INPLANES, WIDTH), jnp.float32)
    w2_hwio = 0.1 * jax.random.normal(k2, (3, 3, WIDTH, WIDTH), jnp.float32)
    w3_hwio = 0.1 * jax.random.normal(k3, (1, 1, WIDTH, COUT), jnp.float32)
    gam = 1.0 + 0.1 * jax.random.normal(k4, (2 * WIDTH + COUT,), jnp.float32)
    bet = 0.1 * jax.random.normal(k5, (2 * WIDTH + COUT,), jnp.float32)

    params = {
        "w1_hwio": w1_hwio, "w2_hwio": w2_hwio, "w3_hwio": w3_hwio,
        "g1": gam[:WIDTH], "b1": bet[:WIDTH],
        "g2": gam[WIDTH:2 * WIDTH], "b2": bet[WIDTH:2 * WIDTH],
        "g3": gam[2 * WIDTH:], "b3": bet[2 * WIDTH:],
    }
    x = jax.random.normal(kx, (N, INPLANES, H, W), jnp.float32)

    # tile_m=384 deliberately exercises multi-tile stats + padded-row masking.
    fwd = jax.jit(functools.partial(bottleneck_forward, tile_m=384))
    out = jax.block_until_ready(fwd(x, params))
    ref = jax.block_until_ready(jax.jit(reference)(x, params))

    assert out.shape == (N, COUT, H, W)
    np.testing.assert_allclose(np.asarray(out), np.asarray(ref),
                               rtol=1e-2, atol=1e-2)
    print("KERNEL_OK")
</pallas_src>

<mosaic_0001>
module attributes {stable_mosaic.version = 11 : i64} {
  func.func @_matmul_stats_kernel(%arg0: i32, %arg1: memref<384x128xbf16, #tpu.memory_space<vmem>>, %arg2: memref<128x128xbf16, #tpu.memory_space<vmem>>, %arg3: memref<384x128xf32, #tpu.memory_space<vmem>>, %arg4: memref<8x128xf32, #tpu.memory_space<vmem>>, %arg5: memref<8x128xf32, #tpu.memory_space<vmem>>) attributes {dimension_semantics = [#tpu.dimension_semantics<parallel>], iteration_bounds = array<i64: 2>, scalar_prefetch = 0 : i64, scratch_operands = 0 : i64, tpu.core_type = #tpu.core_type<tc>, window_params = [{transform_indices = @transform_0, window_bounds = array<i64: 384, 128>}, {pipeline_mode = #tpu.pipeline_mode<synchronous>, transform_indices = @transform_1, window_bounds = array<i64: 128, 128>}, {transform_indices = @transform_2, window_bounds = array<i64: 384, 128>}, {transform_indices = @transform_3, window_bounds = array<i64: 8, 128>}, {transform_indices = @transform_4, window_bounds = array<i64: 8, 128>}]} {
    %c0 = arith.constant 0 : index
    %c0_0 = arith.constant 0 : index
    %0 = vector.load %arg1[%c0, %c0_0] : memref<384x128xbf16, #tpu.memory_space<vmem>>, vector<384x128xbf16>
    %c0_1 = arith.constant 0 : index
    %c0_2 = arith.constant 0 : index
    %1 = vector.load %arg2[%c0_1, %c0_2] : memref<128x128xbf16, #tpu.memory_space<vmem>>, vector<128x128xbf16>
    %cst = arith.constant dense<0.000000e+00> : vector<384x128xf32>
    %2 = tpu.matmul %0, %1, %cst {dimension_numbers = #tpu.dot_dimension_numbers<[1], [0], [0], [1], [0, 0, 1, 1], [], []>} : vector<384x128xbf16>, vector<128x128xbf16>, vector<384x128xf32> -> vector<384x128xf32>
    %c0_3 = arith.constant 0 : index
    %c0_4 = arith.constant 0 : index
    %3 = vector.load %arg3[%c0_3, %c0_4] : memref<384x128xf32, #tpu.memory_space<vmem>>, vector<384x128xf32>
    tpu.vector_store %arg3[%c0_3, %c0_4], %2 {strides = array<i32>} : memref<384x128xf32, #tpu.memory_space<vmem>>, vector<384x128xf32>,
    %4 = tpu.iota {dimensions = array<i32: 0>} : vector<8x128xi32>
    %c0_i32 = arith.constant 0 : i32
    %5 = vector.broadcast %c0_i32 : i32 to vector<8x128xi32>
    %6 = arith.cmpi eq, %4, %5 : vector<8x128xi32>
    %cst_5 = arith.constant dense<0.000000e+00> : vector<128xf32>
    %7 = vector.multi_reduction <add>, %2, %cst_5 [0] : vector<384x128xf32> to vector<128xf32>
    %8 = vector.shape_cast %7 : vector<128xf32> to vector<1x128xf32>
    %cst_6 = arith.constant 0.000000e+00 : f32
    %9 = vector.shape_cast %8 : vector<1x128xf32> to vector<1x128xf32>
    %10 = vector.broadcast %9 : vector<1x128xf32> to vector<8x128xf32>
    %11 = vector.broadcast %cst_6 : f32 to vector<8x128xf32>
    %12 = arith.select %6, %10, %11 : vector<8x128xi1>, vector<8x128xf32>
    %c0_7 = arith.constant 0 : index
    %c0_8 = arith.constant 0 : index
    %13 = vector.load %arg4[%c0_7, %c0_8] : memref<8x128xf32, #tpu.memory_space<vmem>>, vector<8x128xf32>
    tpu.vector_store %arg4[%c0_7, %c0_8], %12 {strides = array<i32>} : memref<8x128xf32, #tpu.memory_space<vmem>>, vector<8x128xf32>,
    %14 = arith.mulf %2, %2 : vector<384x128xf32>
    %15 = tpu.iota {dimensions = array<i32: 0>} : vector<8x128xi32>
    %c0_i32_9 = arith.constant 0 : i32
    %16 = vector.broadcast %c0_i32_9 : i32 to vector<8x128xi32>
    %17 = arith.cmpi eq, %15, %16 : vector<8x128xi32>
    %cst_10 = arith.constant dense<0.000000e+00> : vector<128xf32>
    %18 = vector.multi_reduction <add>, %14, %cst_10 [0] : vector<384x128xf32> to vector<128xf32>
    %19 = vector.shape_cast %18 : vector<128xf32> to vector<1x128xf32>
    %cst_11 = arith.constant 0.000000e+00 : f32
    %20 = vector.shape_cast %19 : vector<1x128xf32> to vector<1x128xf32>
    %21 = vector.broadcast %20 : vector<1x128xf32> to vector<8x128xf32>
    %22 = vector.broadcast %cst_11 : f32 to vector<8x128xf32>
    %23 = arith.select %17, %21, %22 : vector<8x128xi1>, vector<8x128xf32>
    %c0_12 = arith.constant 0 : index
    %c0_13 = arith.constant 0 : index
    %24 = vector.load %arg5[%c0_12, %c0_13] : memref<8x128xf32, #tpu.memory_space<vmem>>, vector<8x128xf32>
    tpu.vector_store %arg5[%c0_12, %c0_13], %23 {strides = array<i32>} : memref<8x128xf32, #tpu.memory_space<vmem>>, vector<8x128xf32>,
    return
  }
  func.func @transform_0(%arg0: i32) -> (i32, i32) {
    %c0_i32 = arith.constant 0 : i32
    %c0_i32_0 = arith.constant 0 : i32
    return %arg0, %c0_i32 : i32, i32
  }
  func.func @transform_1(%arg0: i32) -> (i32, i32) {
    %c0_i32 = arith.constant 0 : i32
    %c0_i32_0 = arith.constant 0 : i32
    %c0_i32_1 = arith.constant 0 : i32
    return %c0_i32, %c0_i32_0 : i32, i32
  }
  func.func @transform_2(%arg0: i32) -> (i32, i32) {
    %c0_i32 = arith.constant 0 : i32
    %c0_i32_0 = arith.constant 0 : i32
    return %arg0, %c0_i32 : i32, i32
  }
  func.func @transform_3(%arg0: i32) -> (i32, i32) {
    %c0_i32 = arith.constant 0 : i32
    %c0_i32_0 = arith.constant 0 : i32
    return %arg0, %c0_i32 : i32, i32
  }
  func.func @transform_4(%arg0: i32) -> (i32, i32) {
    %c0_i32 = arith.constant 0 : i32
    %c0_i32_0 = arith.constant 0 : i32
    return %arg0, %c0_i32 : i32, i32
  }
}

module attributes {stable_mosaic.version = 11 : i64} {
  func.func @kernel(%arg0: i32, %arg1: memref<384x128xf32, #tpu.memory_space<vmem>>, %arg2: memref<128x128xbf16, #tpu.memory_space<vmem>>, %arg3: memref<1x128xf32, #tpu.memory_space<vmem>>, %arg4: memref<1x128xf32, #tpu.memory_space<vmem>>, %arg5: memref<384x128xf32, #tpu.memory_space<vmem>>, %arg6: memref<8x128xf32, #tpu.memory_space<vmem>>, %arg7: memref<8x128xf32, #tpu.memory_space<vmem>>) attributes {dimension_semantics = [#tpu.dimension_semantics<parallel>], iteration_bounds = array<i64: 2>, scalar_prefetch = 0 : i64, scratch_operands = 0 : i64, tpu.core_type = #tpu.core_type<tc>, window_params = [{transform_indices = @transform_0, window_bounds = array<i64: 384, 128>}, {pipeline_mode = #tpu.pipeline_mode<synchronous>, transform_indices = @transform_1, window_bounds = array<i64: 128, 128>}, {pipeline_mode = #tpu.pipeline_mode<synchronous>, transform_indices = @transform_2, window_bounds = array<i64: 1, 128>}, {pipeline_mode = #tpu.pipeline_mode<synchronous>, transform_indices = @transform_3, window_bounds = array<i64: 1, 128>}, {transform_indices = @transform_4, window_bounds = array<i64: 384, 128>}, {transform_indices = @transform_5, window_bounds = array<i64: 8, 128>}, {transform_indices = @transform_6, window_bounds = array<i64: 8, 128>}]} {
    %c0 = arith.constant 0 : index
    %c0_0 = arith.constant 0 : index
    %0 = vector.load %arg1[%c0, %c0_0] : memref<384x128xf32, #tpu.memory_space<vmem>>, vector<384x128xf32>
    %c0_1 = arith.constant 0 : index
    %c0_2 = arith.constant 0 : index
    %1 = vector.load %arg3[%c0_1, %c0_2] : memref<1x128xf32, #tpu.memory_space<vmem>>, vector<1x128xf32>
    %2 = vector.broadcast %1 : vector<1x128xf32> to vector<384x128xf32>
    %3 = arith.mulf %0, %2 : vector<384x128xf32>
    %c0_3 = arith.constant 0 : index
    %c0_4 = arith.constant 0 : index
    %4 = vector.load %arg4[%c0_3, %c0_4] : memref<1x128xf32, #tpu.memory_space<vmem>>, vector<1x128xf32>
    %5 = vector.broadcast %4 : vector<1x128xf32> to vector<384x128xf32>
    %6 = arith.addf %3, %5 : vector<384x128xf32>
    %cst = arith.constant 0.000000e+00 : f32
    %7 = vector.broadcast %cst : f32 to vector<384x128xf32>
    %8 = arith.maximumf %6, %7 : vector<384x128xf32>
    %c384_i32 = arith.constant 384 : i32
    %9 = arith.muli %arg0, %c384_i32 : i32
    %10 = tpu.iota {dimensions = array<i32: 0>} : vector<384x128xi32>
    %11 = vector.broadcast %9 : i32 to vector<384x128xi32>
    %12 = arith.addi %11, %10 : vector<384x128xi32>
    %c512_i32 = arith.constant 512 : i32
    %13 = vector.broadcast %c512_i32 : i32 to vector<384x128xi32>
    %14 = arith.cmpi slt, %12, %13 : vector<384x128xi32>
    %cst_5 = arith.constant 0.000000e+00 : f32
    %15 = vector.broadcast %cst_5 : f32 to vector<384x128xf32>
    %16 = arith.select %14, %8, %15 : vector<384x128xi1>, vector<384x128xf32>
    %17 = arith.truncf %16 : vector<384x128xf32> to vector<384x128xbf16>
    %c0_6 = arith.constant 0 : index
    %c0_7 = arith.constant 0 : index
    %18 = vector.load %arg2[%c0_6, %c0_7] : memref<128x128xbf16, #tpu.memory_space<vmem>>, vector<128x128xbf16>
    %cst_8 = arith.constant dense<0.000000e+00> : vector<384x128xf32>
    %19 = tpu.matmul %17, %18, %cst_8 {dimension_numbers = #tpu.dot_dimension_numbers<[1], [0], [0], [1], [0, 0, 1, 1], [], []>} : vector<384x128xbf16>, vector<128x128xbf16>, vector<384x128xf32> -> vector<384x128xf32>
    %c0_9 = arith.constant 0 : index
    %c0_10 = arith.constant 0 : index
    %20 = vector.load %arg5[%c0_9, %c0_10] : memref<384x128xf32, #tpu.memory_space<vmem>>, vector<384x128xf32>
    tpu.vector_store %arg5[%c0_9, %c0_10], %19 {strides = array<i32>} : memref<384x128xf32, #tpu.memory_space<vmem>>, vector<384x128xf32>,
    %21 = tpu.iota {dimensions = array<i32: 0>} : vector<8x128xi32>
    %c0_i32 = arith.constant 0 : i32
    %22 = vector.broadcast %c0_i32 : i32 to vector<8x128xi32>
    %23 = arith.cmpi eq, %21, %22 : vector<8x128xi32>
    %cst_11 = arith.constant dense<0.000000e+00> : vector<128xf32>
    %24 = vector.multi_reduction <add>, %19, %cst_11 [0] : vector<384x128xf32> to vector<128xf32>
    %25 = vector.shape_cast %24 : vector<128xf32> to vector<1x128xf32>
    %cst_12 = arith.constant 0.000000e+00 : f32
    %26 = vector.shape_cast %25 : vector<1x128xf32> to vector<1x128xf32>
    %27 = vector.broadcast %26 : vector<1x128xf32> to vector<8x128xf32>
    %28 = vector.broadcast %cst_12 : f32 to vector<8x128xf32>
    %29 = arith.select %23, %27, %28 : vector<8x128xi1>, vector<8x128xf32>
    %c0_13 = arith.constant 0 : index
    %c0_14 = arith.constant 0 : index
    %30 = vector.load %arg6[%c0_13, %c0_14] : memref<8x128xf32, #tpu.memory_space<vmem>>, vector<8x128xf32>
    tpu.vector_store %arg6[%c0_13, %c0_14], %29 {strides = array<i32>} : memref<8x128xf32, #tpu.memory_space<vmem>>, vector<8x128xf32>,
    %31 = arith.mulf %19, %19 : vector<384x128xf32>
    %32 = tpu.iota {dimensions = array<i32: 0>} : vector<8x128xi32>
    %c0_i32_15 = arith.constant 0 : i32
    %33 = vector.broadcast %c0_i32_15 : i32 to vector<8x128xi32>
    %34 = arith.cmpi eq, %32, %33 : vector<8x128xi32>
    %cst_16 = arith.constant dense<0.000000e+00> : vector<128xf32>
    %35 = vector.multi_reduction <add>, %31, %cst_16 [0] : vector<384x128xf32> to vector<128xf32>
    %36 = vector.shape_cast %35 : vector<128xf32> to vector<1x128xf32>
    %cst_17 = arith.constant 0.000000e+00 : f32
    %37 = vector.shape_cast %36 : vector<1x128xf32> to vector<1x128xf32>
    %38 = vector.broadcast %37 : vector<1x128xf32> to vector<8x128xf32>
    %39 = vector.broadcast %cst_17 : f32 to vector<8x128xf32>
    %40 = arith.select %34, %38, %39 : vector<8x128xi1>, vector<8x128xf32>
    %c0_18 = arith.constant 0 : index
    %c0_19 = arith.constant 0 : index
    %41 = vector.load %arg7[%c0_18, %c0_19] : memref<8x128xf32, #tpu.memory_space<vmem>>, vector<8x128xf32>
    tpu.vector_store %arg7[%c0_18, %c0_19], %40 {strides = array<i32>} : memref<8x128xf32, #tpu.memory_space<vmem>>, vector<8x128xf32>,
    return
  }
  func.func @transform_0(%arg0: i32) -> (i32, i32) {
    %c0_i32 = arith.constant 0 : i32
    %c0_i32_0 = arith.constant 0 : i32
    return %arg0, %c0_i32 : i32, i32
  }
  func.func @transform_1(%arg0: i32) -> (i32, i32) {
    %c0_i32 = arith.constant 0 : i32
    %c0_i32_0 = arith.constant 0 : i32
    %c0_i32_1 = arith.constant 0 : i32
    return %c0_i32, %c0_i32_0 : i32, i32
  }
  func.func @transform_2(%arg0: i32) -> (i32, i32) {
    %c0_i32 = arith.constant 0 : i32
    %c0_i32_0 = arith.constant 0 : i32
    %c0_i32_1 = arith.constant 0 : i32
    return %c0_i32, %c0_i32_0 : i32, i32
  }
  func.func @transform_3(%arg0: i32) -> (i32, i32) {
    %c0_i32 = arith.constant 0 : i32
    %c0_i32_0 = arith.constant 0 : i32
    %c0_i32_1 = arith.constant 0 : i32
    return %c0_i32, %c0_i32_0 : i32, i32
  }
  func.func @transform_4(%arg0: i32) -> (i32, i32) {
    %c0_i32 = arith.constant 0 : i32
    %c0_i32_0 = arith.constant 0 : i32
    return %arg0, %c0_i32 : i32, i32
  }
  func.func @transform_5(%arg0: i32) -> (i32, i32) {
    %c0_i32 = arith.constant 0 : i32
    %c0_i32_0 = arith.constant 0 : i32
    return %arg0, %c0_i32 : i32, i32
  }
  func.func @transform_6(%arg0: i32) -> (i32, i32) {
    %c0_i32 = arith.constant 0 : i32
    %c0_i32_0 = arith.constant 0 : i32
    return %arg0, %c0_i32 : i32, i32
  }
}

module attributes {stable_mosaic.version = 11 : i64} {
  func.func @kernel(%arg0: i32, %arg1: memref<1x16x16x128xf32, #tpu.memory_space<vmem>>, %arg2: memref<9x128x128xbf16, #tpu.memory_space<vmem>>, %arg3: memref<1x128xf32, #tpu.memory_space<vmem>>, %arg4: memref<1x128xf32, #tpu.memory_space<vmem>>, %arg5: memref<1x256x128xf32, #tpu.memory_space<vmem>>, %arg6: memref<8x128xf32, #tpu.memory_space<vmem>>, %arg7: memref<8x128xf32, #tpu.memory_space<vmem>>, %arg8: memref<18x18x128xbf16, #tpu.memory_space<vmem>>) attributes {dimension_semantics = [#tpu.dimension_semantics<parallel>], iteration_bounds = array<i64: 2>, scalar_prefetch = 0 : i64, scratch_operands = 1 : i64, tpu.core_type = #tpu.core_type<tc>, window_params = [{transform_indices = @transform_0, window_bounds = array<i64: 1, 16, 16, 128>}, {pipeline_mode = #tpu.pipeline_mode<synchronous>, transform_indices = @transform_1, window_bounds = array<i64: 9, 128, 128>}, {pipeline_mode = #tpu.pipeline_mode<synchronous>, transform_indices = @transform_2, window_bounds = array<i64: 1, 128>}, {pipeline_mode = #tpu.pipeline_mode<synchronous>, transform_indices = @transform_3, window_bounds = array<i64: 1, 128>}, {transform_indices = @transform_4, window_bounds = array<i64: 1, 256, 128>}, {transform_indices = @transform_5, window_bounds = array<i64: 8, 128>}, {transform_indices = @transform_6, window_bounds = array<i64: 8, 128>}]} {
    %c0 = arith.constant 0 : index
    %c0_0 = arith.constant 0 : index
    %c0_1 = arith.constant 0 : index
    %c0_2 = arith.constant 0 : index
    %0 = vector.load %arg1[%c0, %c0_0, %c0_1, %c0_2] : memref<1x16x16x128xf32, #tpu.memory_space<vmem>>, vector<1x16x16x128xf32>
    %1 = vector.shape_cast %0 : vector<1x16x16x128xf32> to vector<16x16x128xf32>
    %c0_3 = arith.constant 0 : index
    %c0_4 = arith.constant 0 : index
    %2 = vector.load %arg3[%c0_3, %c0_4] : memref<1x128xf32, #tpu.memory_space<vmem>>, vector<1x128xf32>
    %3 = vector.shape_cast %2 : vector<1x128xf32> to vector<1x1x128xf32>
    %4 = vector.broadcast %3 : vector<1x1x128xf32> to vector<16x16x128xf32>
    %5 = arith.mulf %1, %4 : vector<16x16x128xf32>
    %c0_5 = arith.constant 0 : index
    %c0_6 = arith.constant 0 : index
    %6 = vector.load %arg4[%c0_5, %c0_6] : memref<1x128xf32, #tpu.memory_space<vmem>>, vector<1x128xf32>
    %7 = vector.shape_cast %6 : vector<1x128xf32> to vector<1x1x128xf32>
    %8 = vector.broadcast %7 : vector<1x1x128xf32> to vector<16x16x128xf32>
    %9 = arith.addf %5, %8 : vector<16x16x128xf32>
    %cst = arith.constant 0.000000e+00 : f32
    %10 = vector.broadcast %cst : f32 to vector<16x16x128xf32>
    %11 = arith.maximumf %9, %10 : vector<16x16x128xf32>
    %12 = arith.truncf %11 : vector<16x16x128xf32> to vector<16x16x128xbf16>
    %cst_7 = arith.constant 0.000000e+00 : bf16
    %13 = vector.broadcast %cst_7 : bf16 to vector<18x18x128xbf16>
    %c0_8 = arith.constant 0 : index
    %c0_9 = arith.constant 0 : index
    %c0_10 = arith.constant 0 : index
    %14 = vector.load %arg8[%c0_8, %c0_9, %c0_10] : memref<18x18x128xbf16, #tpu.memory_space<vmem>>, vector<18x18x128xbf16>
    tpu.vector_store %arg8[%c0_8, %c0_9, %c0_10], %13 {strides = array<i32>} : memref<18x18x128xbf16, #tpu.memory_space<vmem>>, vector<18x18x128xbf16>,
    %c1 = arith.constant 1 : index
    %c1_11 = arith.constant 1 : index
    %c0_12 = arith.constant 0 : index
    %15 = vector.load %arg8[%c1, %c1_11, %c0_12] : memref<18x18x128xbf16, #tpu.memory_space<vmem>>, vector<16x16x128xbf16>
    tpu.vector_store %arg8[%c1, %c1_11, %c0_12], %12 {strides = array<i32>} : memref<18x18x128xbf16, #tpu.memory_space<vmem>>, vector<16x16x128xbf16>,
    %cst_13 = arith.constant 0.000000e+00 : f32
    %16 = vector.broadcast %cst_13 : f32 to vector<256x128xf32>
    %c0_14 = arith.constant 0 : index
    %c0_15 = arith.constant 0 : index
    %c0_16 = arith.constant 0 : index
    %17 = vector.load %arg8[%c0_14, %c0_15, %c0_16] : memref<18x18x128xbf16, #tpu.memory_space<vmem>>, vector<16x16x128xbf16>
    %18 = vector.shape_cast %17 : vector<16x16x128xbf16> to vector<256x128xbf16>
    %c0_17 = arith.constant 0 : index
    %c0_18 = arith.constant 0 : index
    %c0_19 = arith.constant 0 : index
    %19 = vector.load %arg2[%c0_17, %c0_18, %c0_19] : memref<9x128x128xbf16, #tpu.memory_space<vmem>>, vector<1x128x128xbf16>
    %20 = vector.shape_cast %19 : vector<1x128x128xbf16> to vector<128x128xbf16>
    %cst_20 = arith.constant dense<0.000000e+00> : vector<256x128xf32>
    %21 = tpu.matmul %18, %20, %cst_20 {dimension_numbers = #tpu.dot_dimension_numbers<[1], [0], [0], [1], [0, 0, 1, 1], [], []>} : vector<256x128xbf16>, vector<128x128xbf16>, vector<256x128xf32> -> vector<256x128xf32>
    %22 = arith.addf %16, %21 : vector<256x128xf32>
    %c0_21 = arith.constant 0 : index
    %c1_22 = arith.constant 1 : index
    %c0_23 = arith.constant 0 : index
    %23 = vector.load %arg8[%c0_21, %c1_22, %c0_23] : memref<18x18x128xbf16, #tpu.memory_space<vmem>>, vector<16x16x128xbf16>
    %24 = vector.shape_cast %23 : vector<16x16x128xbf16> to vector<256x128xbf16>
    %c1_24 = arith.constant 1 : index
    %c0_25 = arith.constant 0 : index
    %c0_26 = arith.constant 0 : index
    %25 = vector.load %arg2[%c1_24, %c0_25, %c0_26] : memref<9x128x128xbf16, #tpu.memory_space<vmem>>, vector<1x128x128xbf16>
    %26 = vector.shape_cast %25 : vector<1x128x128xbf16> to vector<128x128xbf16>
    %cst_27 = arith.constant dense<0.000000e+00> : vector<256x128xf32>
    %27 = tpu.matmul %24, %26, %cst_27 {dimension_numbers = #tpu.dot_dimension_numbers<[1], [0], [0], [1], [0, 0, 1, 1], [], []>} : vector<256x128xbf16>, vector<128x128xbf16>, vector<256x128xf32> -> vector<256x128xf32>
    %28 = arith.addf %22, %27 : vector<256x128xf32>
    %c0_28 = arith.constant 0 : index
    %c2 = arith.constant 2 : index
    %c0_29 = arith.constant 0 : index
    %29 = vector.load %arg8[%c0_28, %c2, %c0_29] : memref<18x18x128xbf16, #tpu.memory_space<vmem>>, vector<16x16x128xbf16>
    %30 = vector.shape_cast %29 : vector<16x16x128xbf16> to vector<256x128xbf16>
    %c2_30 = arith.constant 2 : index
    %c0_31 = arith.constant 0 : index
    %c0_32 = arith.constant 0 : index
    %31 = vector.load %arg2[%c2_30, %c0_31, %c0_32] : memref<9x128x128xbf16, #tpu.memory_space<vmem>>, vector<1x128x128xbf16>
    %32 = vector.shape_cast %31 : vector<1x128x128xbf16> to vector<128x128xbf16>
    %cst_33 = arith.constant dense<0.000000e+00> : vector<256x128xf32>
    %33 = tpu.matmul %30, %32, %cst_33 {dimension_numbers = #tpu.dot_dimension_numbers<[1], [0], [0], [1], [0, 0, 1, 1], [], []>} : vector<256x128xbf16>, vector<128x128xbf16>, vector<256x128xf32> -> vector<256x128xf32>
    %34 = arith.addf %28, %33 : vector<256x128xf32>
    %c1_34 = arith.constant 1 : index
    %c0_35 = arith.constant 0 : index
    %c0_36 = arith.constant 0 : index
    %35 = vector.load %arg8[%c1_34, %c0_35, %c0_36] : memref<18x18x128xbf16, #tpu.memory_space<vmem>>, vector<16x16x128xbf16>
    %36 = vector.shape_cast %35 : vector<16x16x128xbf16> to vector<256x128xbf16>
    %c3 = arith.constant 3 : index
    %c0_37 = arith.constant 0 : index
    %c0_38 = arith.constant 0 : index
    %37 = vector.load %arg2[%c3, %c0_37, %c0_38] : memref<9x128x128xbf16, #tpu.memory_space<vmem>>, vector<1x128x128xbf16>
    %38 = vector.shape_cast %37 : vector<1x128x128xbf16> to vector<128x128xbf16>
    %cst_39 = arith.constant dense<0.000000e+00> : vector<256x128xf32>
    %39 = tpu.matmul %36, %38, %cst_39 {dimension_numbers = #tpu.dot_dimension_numbers<[1], [0], [0], [1], [0, 0, 1, 1], [], []>} : vector<256x128xbf16>, vector<128x128xbf16>, vector<256x128xf32> -> vector<256x128xf32>
    %40 = arith.addf %34, %39 : vector<256x128xf32>
    %c1_40 = arith.constant 1 : index
    %c1_41 = arith.constant 1 : index
    %c0_42 = arith.constant 0 : index
    %41 = vector.load %arg8[%c1_40, %c1_41, %c0_42] : memref<18x18x128xbf16, #tpu.memory_space<vmem>>, vector<16x16x128xbf16>
    %42 = vector.shape_cast %41 : vector<16x16x128xbf16> to vector<256x128xbf16>
    %c4 = arith.constant 4 : index
    %c0_43 = arith.constant 0 : index
    %c0_44 = arith.constant 0 : index
    %43 = vector.load %arg2[%c4, %c0_43, %c0_44] : memref<9x128x128xbf16, #tpu.memory_space<vmem>>, vector<1x128x128xbf16>
    %44 = vector.shape_cast %43 : vector<1x128x128xbf16> to vector<128x128xbf16>
    %cst_45 = arith.constant dense<0.000000e+00> : vector<256x128xf32>
    %45 = tpu.matmul %42, %44, %cst_45 {dimension_numbers = #tpu.dot_dimension_numbers<[1], [0], [0], [1], [0, 0, 1, 1], [], []>} : vector<256x128xbf16>, vector<128x128xbf16>, vector<256x128xf32> -> vector<256x128xf32>
    %46 = arith.addf %40, %45 : vector<256x128xf32>
    %c1_46 = arith.constant 1 : index
    %c2_47 = arith.constant 2 : index
    %c0_48 = arith.constant 0 : index
    %47 = vector.load %arg8[%c1_46, %c2_47, %c0_48] : memref<18x18x128xbf16, #tpu.memory_space<vmem>>, vector<16x16x128xbf16>
    %48 = vector.shape_cast %47 : vector<16x16x128xbf16> to vector<256x128xbf16>
    %c5 = arith.constant 5 : index
    %c0_49 = arith.constant 0 : index
    %c0_50 = arith.constant 0 : index
    %49 = vector.load %arg2[%c5, %c0_49, %c0_50] : memref<9x128x128xbf16, #tpu.memory_space<vmem>>, vector<1x128x128xbf16>
    %50 = vector.shape_cast %49 : vector<1x128x128xbf16> to vector<128x128xbf16>
    %cst_51 = arith.constant dense<0.000000e+00> : vector<256x128xf32>
    %51 = tpu.matmul %48, %50, %cst_51 {dimension_numbers = #tpu.dot_dimension_numbers<[1], [0], [0], [1], [0, 0, 1, 1], [], []>} : vector<256x128xbf16>, vector<128x128xbf16>, vector<256x128xf32> -> vector<256x128xf32>
    %52 = arith.addf %46, %51 : vector<256x128xf32>
    %c2_52 = arith.constant 2 : index
    %c0_53 = arith.constant 0 : index
    %c0_54 = arith.constant 0 : index
    %53 = vector.load %arg8[%c2_52, %c0_53, %c0_54] : memref<18x18x128xbf16, #tpu.memory_space<vmem>>, vector<16x16x128xbf16>
    %54 = vector.shape_cast %53 : vector<16x16x128xbf16> to vector<256x128xbf16>
    %c6 = arith.constant 6 : index
    %c0_55 = arith.constant 0 : index
    %c0_56 = arith.constant 0 : index
    %55 = vector.load %arg2[%c6, %c0_55, %c0_56] : memref<9x128x128xbf16, #tpu.memory_space<vmem>>, vector<1x128x128xbf16>
    %56 = vector.shape_cast %55 : vector<1x128x128xbf16> to vector<128x128xbf16>
    %cst_57 = arith.constant dense<0.000000e+00> : vector<256x128xf32>
    %57 = tpu.matmul %54, %56, %cst_57 {dimension_numbers = #tpu.dot_dimension_numbers<[1], [0], [0], [1], [0, 0, 1, 1], [], []>} : vector<256x128xbf16>, vector<128x128xbf16>, vector<256x128xf32> -> vector<256x128xf32>
    %58 = arith.addf %52, %57 : vector<256x128xf32>
    %c2_58 = arith.constant 2 : index
    %c1_59 = arith.constant 1 : index
    %c0_60 = arith.constant 0 : index
    %59 = vector.load %arg8[%c2_58, %c1_59, %c0_60] : memref<18x18x128xbf16, #tpu.memory_space<vmem>>, vector<16x16x128xbf16>
    %60 = vector.shape_cast %59 : vector<16x16x128xbf16> to vector<256x128xbf16>
    %c7 = arith.constant 7 : index
    %c0_61 = arith.constant 0 : index
    %c0_62 = arith.constant 0 : index
    %61 = vector.load %arg2[%c7, %c0_61, %c0_62] : memref<9x128x128xbf16, #tpu.memory_space<vmem>>, vector<1x128x128xbf16>
    %62 = vector.shape_cast %61 : vector<1x128x128xbf16> to vector<128x128xbf16>
    %cst_63 = arith.constant dense<0.000000e+00> : vector<256x128xf32>
    %63 = tpu.matmul %60, %62, %cst_63 {dimension_numbers = #tpu.dot_dimension_numbers<[1], [0], [0], [1], [0, 0, 1, 1], [], []>} : vector<256x128xbf16>, vector<128x128xbf16>, vector<256x128xf32> -> vector<256x128xf32>
    %64 = arith.addf %58, %63 : vector<256x128xf32>
    %c2_64 = arith.constant 2 : index
    %c2_65 = arith.constant 2 : index
    %c0_66 = arith.constant 0 : index
    %65 = vector.load %arg8[%c2_64, %c2_65, %c0_66] : memref<18x18x128xbf16, #tpu.memory_space<vmem>>, vector<16x16x128xbf16>
    %66 = vector.shape_cast %65 : vector<16x16x128xbf16> to vector<256x128xbf16>
    %c8 = arith.constant 8 : index
    %c0_67 = arith.constant 0 : index
    %c0_68 = arith.constant 0 : index
    %67 = vector.load %arg2[%c8, %c0_67, %c0_68] : memref<9x128x128xbf16, #tpu.memory_space<vmem>>, vector<1x128x128xbf16>
    %68 = vector.shape_cast %67 : vector<1x128x128xbf16> to vector<128x128xbf16>
    %cst_69 = arith.constant dense<0.000000e+00> : vector<256x128xf32>
    %69 = tpu.matmul %66, %68, %cst_69 {dimension_numbers = #tpu.dot_dimension_numbers<[1], [0], [0], [1], [0, 0, 1, 1], [], []>} : vector<256x128xbf16>, vector<128x128xbf16>, vector<256x128xf32> -> vector<256x128xf32>
    %70 = arith.addf %64, %69 : vector<256x128xf32>
    %71 = vector.shape_cast %70 : vector<256x128xf32> to vector<1x256x128xf32>
    %c0_70 = arith.constant 0 : index
    %c0_71 = arith.constant 0 : index
    %c0_72 = arith.constant 0 : index
    %72 = vector.load %arg5[%c0_70, %c0_71, %c0_72] : memref<1x256x128xf32, #tpu.memory_space<vmem>>, vector<1x256x128xf32>
    tpu.vector_store %arg5[%c0_70, %c0_71, %c0_72], %71 {strides = array<i32>} : memref<1x256x128xf32, #tpu.memory_space<vmem>>, vector<1x256x128xf32>,
    %73 = tpu.iota {dimensions = array<i32: 0>} : vector<8x128xi32>
    %c0_i32 = arith.constant 0 : i32
    %74 = vector.broadcast %c0_i32 : i32 to vector<8x128xi32>
    %75 = arith.cmpi eq, %73, %74 : vector<8x128xi32>
    %cst_73 = arith.constant dense<0.000000e+00> : vector<128xf32>
    %76 = vector.multi_reduction <add>, %70, %cst_73 [0] : vector<256x128xf32> to vector<128xf32>
    %77 = vector.shape_cast %76 : vector<128xf32> to vector<1x128xf32>
    %cst_74 = arith.constant 0.000000e+00 : f32
    %78 = vector.shape_cast %77 : vector<1x128xf32> to vector<1x128xf32>
    %79 = vector.broadcast %78 : vector<1x128xf32> to vector<8x128xf32>
    %80 = vector.broadcast %cst_74 : f32 to vector<8x128xf32>
    %81 = arith.select %75, %79, %80 : vector<8x128xi1>, vector<8x128xf32>
    %c0_75 = arith.constant 0 : index
    %c0_76 = arith.constant 0 : index
    %82 = vector.load %arg6[%c0_75, %c0_76] : memref<8x128xf32, #tpu.memory_space<vmem>>, vector<8x128xf32>
    tpu.vector_store %arg6[%c0_75, %c0_76], %81 {strides = array<i32>} : memref<8x128xf32, #tpu.memory_space<vmem>>, vector<8x128xf32>,
    %83 = arith.mulf %70, %70 : vector<256x128xf32>
    %84 = tpu.iota {dimensions = array<i32: 0>} : vector<8x128xi32>
    %c0_i32_77 = arith.constant 0 : i32
    %85 = vector.broadcast %c0_i32_77 : i32 to vector<8x128xi32>
    %86 = arith.cmpi eq, %84, %85 : vector<8x128xi32>
    %cst_78 = arith.constant dense<0.000000e+00> : vector<128xf32>
    %87 = vector.multi_reduction <add>, %83, %cst_78 [0] : vector<256x128xf32> to vector<128xf32>
    %88 = vector.shape_cast %87 : vector<128xf32> to vector<1x128xf32>
    %cst_79 = arith.constant 0.000000e+00 : f32
    %89 = vector.shape_cast %88 : vector<1x128xf32> to vector<1x128xf32>
    %90 = vector.broadcast %89 : vector<1x128xf32> to vector<8x128xf32>
    %91 = vector.broadcast %cst_79 : f32 to vector<8x128xf32>
    %92 = arith.select %86, %90, %91 : vector<8x128xi1>, vector<8x128xf32>
    %c0_80 = arith.constant 0 : index
    %c0_81 = arith.constant 0 : index
    %93 = vector.load %arg7[%c0_80, %c0_81] : memref<8x128xf32, #tpu.memory_space<vmem>>, vector<8x128xf32>
    tpu.vector_store %arg7[%c0_80, %c0_81], %92 {strides = array<i32>} : memref<8x128xf32, #tpu.memory_space<vmem>>, vector<8x128xf32>,
    return
  }
  func.func @transform_0(%arg0: i32) -> (i32, i32, i32, i32) {
    %c0_i32 = arith.constant 0 : i32
    %c0_i32_0 = arith.constant 0 : i32
    %c0_i32_1 = arith.constant 0 : i32
    %c0_i32_2 = arith.constant 0 : i32
    return %arg0, %c0_i32, %c0_i32_0, %c0_i32_1 : i32, i32, i32, i32
  }
  func.func @transform_1(%arg0: i32) -> (i32, i32, i32) {
    %c0_i32 = arith.constant 0 : i32
    %c0_i32_0 = arith.constant 0 : i32
    %c0_i32_1 = arith.constant 0 : i32
    %c0_i32_2 = arith.constant 0 : i32
    return %c0_i32, %c0_i32_0, %c0_i32_1 : i32, i32, i32
  }
  func.func @transform_2(%arg0: i32) -> (i32, i32) {
    %c0_i32 = arith.constant 0 : i32
    %c0_i32_0 = arith.constant 0 : i32
    %c0_i32_1 = arith.constant 0 : i32
    return %c0_i32, %c0_i32_0 : i32, i32
  }
  func.func @transform_3(%arg0: i32) -> (i32, i32) {
    %c0_i32 = arith.constant 0 : i32
    %c0_i32_0 = arith.constant 0 : i32
    %c0_i32_1 = arith.constant 0 : i32
    return %c0_i32, %c0_i32_0 : i32, i32
  }
  func.func @transform_4(%arg0: i32) -> (i32, i32, i32) {
    %c0_i32 = arith.constant 0 : i32
    %c0_i32_0 = arith.constant 0 : i32
    %c0_i32_1 = arith.constant 0 : i32
    return %arg0, %c0_i32, %c0_i32_0 : i32, i32, i32
  }
  func.func @transform_5(%arg0: i32) -> (i32, i32) {
    %c0_i32 = arith.constant 0 : i32
    %c0_i32_0 = arith.constant 0 : i32
    return %arg0, %c0_i32 : i32, i32
  }
  func.func @transform_6(%arg0: i32) -> (i32, i32) {
    %c0_i32 = arith.constant 0 : i32
    %c0_i32_0 = arith.constant 0 : i32
    return %arg0, %c0_i32 : i32, i32
  }
}

module attributes {stable_mosaic.version = 11 : i64} {
  func.func @_bn_add_relu_kernel(%arg0: i32, %arg1: memref<384x128xf32, #tpu.memory_space<vmem>>, %arg2: memref<384x128xf32, #tpu.memory_space<vmem>>, %arg3: memref<1x128xf32, #tpu.memory_space<vmem>>, %arg4: memref<1x128xf32, #tpu.memory_space<vmem>>, %arg5: memref<384x128xf32, #tpu.memory_space<vmem>>) attributes {dimension_semantics = [#tpu.dimension_semantics<parallel>], iteration_bounds = array<i64: 2>, scalar_prefetch = 0 : i64, scratch_operands = 0 : i64, tpu.core_type = #tpu.core_type<tc>, window_params = [{transform_indices = @transform_0, window_bounds = array<i64: 384, 128>}, {transform_indices = @transform_1, window_bounds = array<i64: 384, 128>}, {pipeline_mode = #tpu.pipeline_mode<synchronous>, transform_indices = @transform_2, window_bounds = array<i64: 1, 128>}, {pipeline_mode = #tpu.pipeline_mode<synchronous>, transform_indices = @transform_3, window_bounds = array<i64: 1, 128>}, {transform_indices = @transform_4, window_bounds = array<i64: 384, 128>}]} {
    %c0 = arith.constant 0 : index
    %c0_0 = arith.constant 0 : index
    %0 = vector.load %arg1[%c0, %c0_0] : memref<384x128xf32, #tpu.memory_space<vmem>>, vector<384x128xf32>
    %c0_1 = arith.constant 0 : index
    %c0_2 = arith.constant 0 : index
    %1 = vector.load %arg3[%c0_1, %c0_2] : memref<1x128xf32, #tpu.memory_space<vmem>>, vector<1x128xf32>
    %2 = vector.broadcast %1 : vector<1x128xf32> to vector<384x128xf32>
    %3 = arith.mulf %0, %2 : vector<384x128xf32>
    %c0_3 = arith.constant 0 : index
    %c0_4 = arith.constant 0 : index
    %4 = vector.load %arg4[%c0_3, %c0_4] : memref<1x128xf32, #tpu.memory_space<vmem>>, vector<1x128xf32>
    %5 = vector.broadcast %4 : vector<1x128xf32> to vector<384x128xf32>
    %6 = arith.addf %3, %5 : vector<384x128xf32>
    %c0_5 = arith.constant 0 : index
    %c0_6 = arith.constant 0 : index
    %7 = vector.load %arg2[%c0_5, %c0_6] : memref<384x128xf32, #tpu.memory_space<vmem>>, vector<384x128xf32>
    %8 = arith.addf %6, %7 : vector<384x128xf32>
    %cst = arith.constant 0.000000e+00 : f32
    %9 = vector.broadcast %cst : f32 to vector<384x128xf32>
    %10 = arith.maximumf %8, %9 : vector<384x128xf32>
    %c0_7 = arith.constant 0 : index
    %c0_8 = arith.constant 0 : index
    %11 = vector.load %arg5[%c0_7, %c0_8] : memref<384x128xf32, #tpu.memory_space<vmem>>, vector<384x128xf32>
    tpu.vector_store %arg5[%c0_7, %c0_8], %10 {strides = array<i32>} : memref<384x128xf32, #tpu.memory_space<vmem>>, vector<384x128xf32>,
    return
  }
  func.func @transform_0(%arg0: i32) -> (i32, i32) {
    %c0_i32 = arith.constant 0 : i32
    %c0_i32_0 = arith.constant 0 : i32
    return %arg0, %c0_i32 : i32, i32
  }
  func.func @transform_1(%arg0: i32) -> (i32, i32) {
    %c0_i32 = arith.constant 0 : i32
    %c0_i32_0 = arith.constant 0 : i32
    return %arg0, %c0_i32 : i32, i32
  }
  func.func @transform_2(%arg0: i32) -> (i32, i32) {
    %c0_i32 = arith.constant 0 : i32
    %c0_i32_0 = arith.constant 0 : i32
    %c0_i32_1 = arith.constant 0 : i32
    return %c0_i32, %c0_i32_0 : i32, i32
  }
  func.func @transform_3(%arg0: i32) -> (i32, i32) {
    %c0_i32 = arith.constant 0 : i32
    %c0_i32_0 = arith.constant 0 : i32
    %c0_i32_1 = arith.constant 0 : i32
    return %c0_i32, %c0_i32_0 : i32, i32
  }
  func.func @transform_4(%arg0: i32) -> (i32, i32) {
    %c0_i32 = arith.constant 0 : i32
    %c0_i32_0 = arith.constant 0 : i32
    return %arg0, %c0_i32 : i32, i32
  }
}

</mosaic_0001>

<bundles_post_ra>
// kernel: bottleneck_forward.7
= control target key start
LH: loop header
LB: loop body
LE: loop exit
PB: predicated region body
PF: predicated region fallthrough
CT: control target
= control target key end

     0   :  { %s694_s15 = smov 0   ;;  %s975_s0 = inlined_call_operand.vmem [shape: f32[768,128], index: 0, kind: input, shape index: {}]   ;;  %s976_s1 = inlined_call_operand.vmem [shape: f32[768,128], index: 1, kind: input, shape index: {}]   ;;  %s977_s2 = inlined_call_operand.vmem [shape: f32[1,128], index: 2, kind: input, shape index: {}]   ;;  %s978_s3 = inlined_call_operand.vmem [shape: f32[1,128], index: 3, kind: input, shape index: {}]   ;;  %s979_s4 = inlined_call_operand.vmem [shape: f32[768,128], index: 4, kind: output, shape index: {}]  }
   0x1 LB: > { %s641_s16 = sadd.s32 4294967295, %s667_s15   ;;  %p645_p0 = scmp.ge.s32.totalorder %s667_s15, 1  ;;  %s667_s15 = sphi %s694_s15, %s14_s15  }
   0x2   : > { %p174_p1 = scmp.lt.s32.totalorder %s667_s15, 3 }
   0x4   : > { %p175_p2 = pnand %p645_p0, %p174_p1 }
   0x5   : > { %s205_s17 = smul.u32 (!%p175_p2), 48, %s641_s16  ;;  %v707_v0 = vld [vmem:[%s977_s2] ss:$0 sm:$0xff] (!%p175_p2) }
   0x6   : > { %178 = sbr.rel (%p175_p2) target bundleno = 71 (0x47), region = 36  ;;  %v725_v2 = vld [vmem:[%s978_s3] ss:$0 sm:$0xff] (!%p175_p2) }
   0x7   : > { %p206_p3 = scmp.lt.s32.totalorder (!%p175_p2), %s205_s17, 95 }
   0xd   : > { %s981_s17 = smov (!%p206_p3, %s205_s17), 95 }
   0xe   : > { %s702_s18 = sshll.u32 %s981_s17, 3 }
   0xf   : > { %s713_s23 = scalar_lea.vmem %s975_s0, %s702_s18  ;;  %s719_s26 = scalar_lea.vmem %s976_s1, %s702_s18 }
  0x10   : > { %v223_v1 = vld [vmem:[%s713_s23] sm:$0xff]  ;;  %v224_v3 = vld [vmem:[%s713_s23 + $0x8] sm:$0xff]  ;;  %v225_v7 = vld [vmem:[%s713_s23 + $0x10] sm:$0xff]  ;;  %s755_s5 = scalar_lea.vmem %s979_s4, %s702_s18 }
  0x11   : > { %v278_v4 = vmul.f32 %v707_v0, %v223_v1  ;;  %v381_v5 = vld [vmem:[%s719_s26] sm:$0xff]  ;;  %v279_v6 = vmul.f32 %v707_v0, %v224_v3  ;;  %v382_v8 = vld [vmem:[%s719_s26 + $0x8] sm:$0xff]  ;;  %v280_v9 = vmul.f32 %v707_v0, %v225_v7  ;;  %v226_v10 = vld [vmem:[%s713_s23 + $0x18] sm:$0xff] }
  0x12   : > { %v227_v11 = vld [vmem:[%s713_s23 + $0x20] sm:$0xff]  ;;  %v383_v14 = vld [vmem:[%s719_s26 + $0x10] sm:$0xff]  ;;  %v281_v15 = vmul.f32 %v707_v0, %v226_v10  ;;  %v384_v16 = vld [vmem:[%s719_s26 + $0x18] sm:$0xff] }
  0x13   : > { %v333_v12 = vadd.f32 %v725_v2, %v278_v4  ;;  %v334_v13 = vadd.f32 %v725_v2, %v279_v6  ;;  %v282_v17 = vmul.f32 %v707_v0, %v227_v11  ;;  %v228_v18 = vld [vmem:[%s713_s23 + $0x28] sm:$0xff]  ;;  %v335_v19 = vadd.f32 %v725_v2, %v280_v9  ;;  %v385_v20 = vld [vmem:[%s719_s26 + $0x20] sm:$0xff]  ;;  %v229_v22 = vld [vmem:[%s713_s23 + $0x30] sm:$0xff] }
  0x14   : > { %v283_v21 = vmul.f32 %v707_v0, %v228_v18  ;;  %v230_v23 = vld [vmem:[%s713_s23 + $0x38] sm:$0xff]  ;;  %v336_v26 = vadd.f32 %v725_v2, %v281_v15  ;;  %v386_v28 = vld [vmem:[%s719_s26 + $0x28] sm:$0xff]  ;;  %v284_v31 = vmul.f32 %v707_v0, %v229_v22  ;;  %v231_v33 = vld [vmem:[%s713_s23 + $0x40] sm:$0xff] }
  0x15   : > { %v429_v24 = vadd.f32 %v381_v5, %v333_v12  ;;  %v430_v25 = vadd.f32 %v382_v8, %v334_v13  ;;  %v337_v27 = vadd.f32 %v725_v2, %v282_v17  ;;  %v431_v29 = vadd.f32 %v383_v14, %v335_v19  ;;  %v232_v34 = vld [vmem:[%s713_s23 + $0x48] sm:$0xff]  ;;  %v387_v39 = vld [vmem:[%s719_s26 + $0x30] sm:$0xff]  ;;  %v388_v40 = vld [vmem:[%s719_s26 + $0x38] sm:$0xff] }
  0x16   : > { %v338_v30 = vadd.f32 %v725_v2, %v283_v21  ;;  %v285_v32 = vmul.f32 %v707_v0, %v230_v23  ;;  %v432_v37 = vadd.f32 %v384_v16, %v336_v26  ;;  %v233_v41 = vld [vmem:[%s713_s23 + $0x50] sm:$0xff]  ;;  %v339_v44 = vadd.f32 %v725_v2, %v284_v31  ;;  %v234_v46 = vld [vmem:[%s713_s23 + $0x58] sm:$0xff]  ;;  %v235_v47 = vld [vmem:[%s713_s23 + $0x60] sm:$0xff] }
  0x17   : > { %v477_v35 = vmax.f32 %v429_v24, 0.0  ;;  %v478_v36 = vmax.f32 %v430_v25, 0.0  ;;  %v433_v38 = vadd.f32 %v385_v20, %v337_v27  ;;  %v479_v42 = vmax.f32 %v431_v29, 0.0  ;;  %v236_v52 = vld [vmem:[%s713_s23 + $0x68] sm:$0xff]  ;;  %v389_v56 = vld [vmem:[%s719_s26 + $0x40] sm:$0xff]  ;;  %v391_v61 = vld [vmem:[%s719_s26 + $0x50] sm:$0xff] }
  0x18   : > { %v434_v43 = vadd.f32 %v386_v28, %v338_v30  ;;  %v340_v45 = vadd.f32 %v725_v2, %v285_v32  ;;  %v480_v48 = vmax.f32 %v432_v37, 0.0  ;;  %v286_v50 = vmul.f32 %v707_v0, %v231_v33  ;;  %v390_v57 = vld [vmem:[%s719_s26 + $0x48] sm:$0xff]  ;;  %v237_v1 = vld [vmem:[%s713_s23 + $0x70] sm:$0xff]  ;;  %v238_v3 = vld [vmem:[%s713_s23 + $0x78] sm:$0xff] }
  0x19   : > { %525 = vst [vmem:[%s755_s5] sm:$0xff] %v477_v35  ;;  %526 = vst [vmem:[%s755_s5 + $0x8] sm:$0xff] %v478_v36  ;;  %v481_v49 = vmax.f32 %v433_v38, 0.0  ;;  %v287_v51 = vmul.f32 %v707_v0, %v232_v34  ;;  %v435_v54 = vadd.f32 %v387_v39, %v339_v44  ;;  %v288_v58 = vmul.f32 %v707_v0, %v233_v41  ;;  %v392_v7 = vld [vmem:[%s719_s26 + $0x58] sm:$0xff]  ;;  %v393_v8 = vld [vmem:[%s719_s26 + $0x60] sm:$0xff] }
  0x1a   : > { %527 = vst [vmem:[%s755_s5 + $0x10] sm:$0xff] %v479_v42  ;;  %v482_v53 = vmax.f32 %v434_v43, 0.0  ;;  %v436_v55 = vadd.f32 %v388_v40, %v340_v45  ;;  %528 = vst [vmem:[%s755_s5 + $0x18] sm:$0xff] %v480_v48  ;;  %v341_v59 = vadd.f32 %v725_v2, %v286_v50  ;;  %v289_v62 = vmul.f32 %v707_v0, %v234_v46  ;;  %v394_v14 = vld [vmem:[%s719_s26 + $0x68] sm:$0xff]  ;;  %v239_v19 = vld [vmem:[%s713_s23 + $0x80] sm:$0xff] }
  0x1b   : > { %529 = vst [vmem:[%s755_s5 + $0x20] sm:$0xff] %v481_v49  ;;  %v342_v60 = vadd.f32 %v725_v2, %v287_v51  ;;  %v290_v63 = vmul.f32 %v707_v0, %v235_v47  ;;  %v483_v4 = vmax.f32 %v435_v54, 0.0  ;;  %v343_v6 = vadd.f32 %v725_v2, %v288_v58  ;;  %v240_v20 = vld [vmem:[%s713_s23 + $0x88] sm:$0xff]  ;;  %v395_v25 = vld [vmem:[%s719_s26 + $0x70] sm:$0xff]  ;;  %v396_v26 = vld [vmem:[%s719_s26 + $0x78] sm:$0xff] }
  0x1c   : > { %530 = vst [vmem:[%s755_s5 + $0x28] sm:$0xff] %v482_v53  ;;  %v484_v5 = vmax.f32 %v436_v55, 0.0  ;;  %v291_v9 = vmul.f32 %v707_v0, %v236_v52  ;;  %v437_v10 = vadd.f32 %v389_v56, %v341_v59  ;;  %v344_v12 = vadd.f32 %v725_v2, %v289_v62  ;;  %v241_v27 = vld [vmem:[%s713_s23 + $0x90] sm:$0xff]  ;;  %v242_v32 = vld [vmem:[%s713_s23 + $0x98] sm:$0xff]  ;;  %v243_v33 = vld [vmem:[%s713_s23 + $0xa0] sm:$0xff] }
  0x1d   : > { %v438_v11 = vadd.f32 %v390_v57, %v342_v60  ;;  %v345_v13 = vadd.f32 %v725_v2, %v290_v63  ;;  %531 = vst [vmem:[%s755_s5 + $0x30] sm:$0xff] %v483_v4  ;;  %v439_v15 = vadd.f32 %v391_v61, %v343_v6  ;;  %v292_v17 = vmul.f32 %v707_v0, %v237_v1  ;;  %v244_v38 = vld [vmem:[%s713_s23 + $0xa8] sm:$0xff]  ;;  %v397_v42 = vld [vmem:[%s719_s26 + $0x80] sm:$0xff]  ;;  %v399_v47 = vld [vmem:[%s719_s26 + $0x90] sm:$0xff] }
  0x1e   : > { %532 = vst [vmem:[%s755_s5 + $0x38] sm:$0xff] %v484_v5  ;;  %v346_v16 = vadd.f32 %v725_v2, %v291_v9  ;;  %v293_v18 = vmul.f32 %v707_v0, %v238_v3  ;;  %v485_v21 = vmax.f32 %v437_v10, 0.0  ;;  %v440_v23 = vadd.f32 %v392_v7, %v344_v12  ;;  %v398_v43 = vld [vmem:[%s719_s26 + $0x88] sm:$0xff]  ;;  %v245_v50 = vld [vmem:[%s713_s23 + $0xb0] sm:$0xff]  ;;  %v246_v51 = vld [vmem:[%s713_s23 + $0xb8] sm:$0xff] }
  0x1f   : > { %v486_v22 = vmax.f32 %v438_v11, 0.0  ;;  %v441_v24 = vadd.f32 %v393_v8, %v345_v13  ;;  %v487_v28 = vmax.f32 %v439_v15, 0.0  ;;  %v347_v30 = vadd.f32 %v725_v2, %v292_v17  ;;  %v400_v55 = vld [vmem:[%s719_s26 + $0x98] sm:$0xff]  ;;  %v401_v56 = vld [vmem:[%s719_s26 + $0xa0] sm:$0xff]  ;;  %v402_v62 = vld [vmem:[%s719_s26 + $0xa8] sm:$0xff] }
  0x20   : > { %v442_v29 = vadd.f32 %v394_v14, %v346_v16  ;;  %v348_v31 = vadd.f32 %v725_v2, %v293_v18  ;;  %533 = vst [vmem:[%s755_s5 + $0x40] sm:$0xff] %v485_v21  ;;  %v488_v34 = vmax.f32 %v440_v23, 0.0  ;;  %v294_v36 = vmul.f32 %v707_v0, %v239_v19  ;;  %v247_v5 = vld [vmem:[%s713_s23 + $0xc0] sm:$0xff]  ;;  %v248_v6 = vld [vmem:[%s713_s23 + $0xc8] sm:$0xff]  ;;  %v403_v11 = vld [vmem:[%s719_s26 + $0xb0] sm:$0xff] }
  0x21   : > { %534 = vst [vmem:[%s755_s5 + $0x48] sm:$0xff] %v486_v22  ;;  %v489_v35 = vmax.f32 %v441_v24, 0.0  ;;  %v295_v37 = vmul.f32 %v707_v0, %v240_v20  ;;  %535 = vst [vmem:[%s755_s5 + $0x50] sm:$0xff] %v487_v28  ;;  %v443_v40 = vadd.f32 %v395_v25, %v347_v30  ;;  %v296_v44 = vmul.f32 %v707_v0, %v241_v27  ;;  %v404_v12 = vld [vmem:[%s719_s26 + $0xb8] sm:$0xff]  ;;  %v249_v13 = vld [vmem:[%s713_s23 + $0xd0] sm:$0xff] }
  0x22   : > { %v490_v39 = vmax.f32 %v442_v29, 0.0  ;;  %v444_v41 = vadd.f32 %v396_v26, %v348_v31  ;;  %536 = vst [vmem:[%s755_s5 + $0x58] sm:$0xff] %v488_v34  ;;  %v349_v45 = vadd.f32 %v725_v2, %v294_v36  ;;  %v297_v48 = vmul.f32 %v707_v0, %v242_v32  ;;  %v250_v18 = vld [vmem:[%s713_s23 + $0xd8] sm:$0xff]  ;;  %v251_v19 = vld [vmem:[%s713_s23 + $0xe0] sm:$0xff]  ;;  %v252_v24 = vld [vmem:[%s713_s23 + $0xe8] sm:$0xff] }
  0x23   : > { %537 = vst [vmem:[%s755_s5 + $0x60] sm:$0xff] %v489_v35  ;;  %v350_v46 = vadd.f32 %v725_v2, %v295_v37  ;;  %v298_v49 = vmul.f32 %v707_v0, %v243_v33  ;;  %v491_v52 = vmax.f32 %v443_v40, 0.0  ;;  %v351_v54 = vadd.f32 %v725_v2, %v296_v44  ;;  %v405_v28 = vld [vmem:[%s719_s26 + $0xc0] sm:$0xff]  ;;  %v406_v29 = vld [vmem:[%s719_s26 + $0xc8] sm:$0xff]  ;;  %v407_v33 = vld [vmem:[%s719_s26 + $0xd0] sm:$0xff] }
  0x24   : > { %538 = vst [vmem:[%s755_s5 + $0x68] sm:$0xff] %v490_v39  ;;  %v492_v53 = vmax.f32 %v444_v41, 0.0  ;;  %v299_v57 = vmul.f32 %v707_v0, %v244_v38  ;;  %v445_v58 = vadd.f32 %v397_v42, %v349_v45  ;;  %v352_v60 = vadd.f32 %v725_v2, %v297_v48  ;;  %v253_v36 = vld [vmem:[%s713_s23 + $0xf0] sm:$0xff]  ;;  %v254_v37 = vld [vmem:[%s713_s23 + $0xf8] sm:$0xff]  ;;  %v409_v42 = vld [vmem:[%s719_s26 + $0xe0] sm:$0xff] }
  0x25   : > { %v446_v59 = vadd.f32 %v398_v43, %v350_v46  ;;  %v353_v61 = vadd.f32 %v725_v2, %v298_v49  ;;  %539 = vst [vmem:[%s755_s5 + $0x70] sm:$0xff] %v491_v52  ;;  %v447_v63 = vadd.f32 %v399_v47, %v351_v54  ;;  %v300_v3 = vmul.f32 %v707_v0, %v245_v50  ;;  %v408_v41 = vld [vmem:[%s719_s26 + $0xd8] sm:$0xff]  ;;  %v410_v48 = vld [vmem:[%s719_s26 + $0xe8] sm:$0xff] }
  0x26   : > { %540 = vst [vmem:[%s755_s5 + $0x78] sm:$0xff] %v492_v53  ;;  %v354_v1 = vadd.f32 %v725_v2, %v299_v57  ;;  %v301_v4 = vmul.f32 %v707_v0, %v246_v51  ;;  %v493_v7 = vmax.f32 %v445_v58, 0.0  ;;  %v448_v9 = vadd.f32 %v400_v55, %v352_v60  ;;  %v255_v53 = vld [vmem:[%s713_s23 + $0x100] sm:$0xff]  ;;  %v256_v54 = vld [vmem:[%s713_s23 + $0x108] sm:$0xff]  ;;  %v412_v60 = vld [vmem:[%s719_s26 + $0xf8] sm:$0xff] }
  0x27   : > { %v494_v8 = vmax.f32 %v446_v59, 0.0  ;;  %v449_v10 = vadd.f32 %v401_v56, %v353_v61  ;;  %v495_v14 = vmax.f32 %v447_v63, 0.0  ;;  %v355_v16 = vadd.f32 %v725_v2, %v300_v3  ;;  %v411_v59 = vld [vmem:[%s719_s26 + $0xf0] sm:$0xff] }
  0x28   : > { %v450_v15 = vadd.f32 %v402_v62, %v354_v1  ;;  %v356_v17 = vadd.f32 %v725_v2, %v301_v4  ;;  %541 = vst [vmem:[%s755_s5 + $0x80] sm:$0xff] %v493_v7  ;;  %v496_v20 = vmax.f32 %v448_v9, 0.0  ;;  %v302_v22 = vmul.f32 %v707_v0, %v247_v5  ;;  %v257_v61 = vld [vmem:[%s713_s23 + $0x110] sm:$0xff]  ;;  %v258_v4 = vld [vmem:[%s713_s23 + $0x118] sm:$0xff]  ;;  %v259_v5 = vld [vmem:[%s713_s23 + $0x120] sm:$0xff] }
  0x29   : > { %542 = vst [vmem:[%s755_s5 + $0x88] sm:$0xff] %v494_v8  ;;  %v497_v21 = vmax.f32 %v449_v10, 0.0  ;;  %v303_v23 = vmul.f32 %v707_v0, %v248_v6  ;;  %543 = vst [vmem:[%s755_s5 + $0x90] sm:$0xff] %v495_v14  ;;  %v451_v26 = vadd.f32 %v403_v11, %v355_v16  ;;  %v304_v30 = vmul.f32 %v707_v0, %v249_v13  ;;  %v260_v10 = vld [vmem:[%s713_s23 + $0x128] sm:$0xff]  ;;  %v413_v14 = vld [vmem:[%s719_s26 + $0x100] sm:$0xff] }
  0x2a   : > { %v498_v25 = vmax.f32 %v450_v15, 0.0  ;;  %v452_v27 = vadd.f32 %v404_v12, %v356_v17  ;;  %544 = vst [vmem:[%s755_s5 + $0x98] sm:$0xff] %v496_v20  ;;  %v357_v31 = vadd.f32 %v725_v2, %v302_v22  ;;  %v305_v34 = vmul.f32 %v707_v0, %v250_v18  ;;  %v414_v15 = vld [vmem:[%s719_s26 + $0x108] sm:$0xff]  ;;  %v261_v22 = vld [vmem:[%s713_s23 + $0x130] sm:$0xff] }
  0x2b   : > { %545 = vst [vmem:[%s755_s5 + $0xa0] sm:$0xff] %v497_v21  ;;  %v358_v32 = vadd.f32 %v725_v2, %v303_v23  ;;  %v306_v35 = vmul.f32 %v707_v0, %v251_v19  ;;  %v499_v38 = vmax.f32 %v451_v26, 0.0  ;;  %v359_v40 = vadd.f32 %v725_v2, %v304_v30  ;;  %v415_v19 = vld [vmem:[%s719_s26 + $0x110] sm:$0xff]  ;;  %v262_v23 = vld [vmem:[%s713_s23 + $0x138] sm:$0xff] }
  0x2c   : > { %546 = vst [vmem:[%s755_s5 + $0xa8] sm:$0xff] %v498_v25  ;;  %v500_v39 = vmax.f32 %v452_v27, 0.0  ;;  %v307_v43 = vmul.f32 %v707_v0, %v252_v24  ;;  %v453_v44 = vadd.f32 %v405_v28, %v357_v31  ;;  %v360_v46 = vadd.f32 %v725_v2, %v305_v34  ;;  %v416_v27 = vld [vmem:[%s719_s26 + $0x118] sm:$0xff]  ;;  %v417_v28 = vld [vmem:[%s719_s26 + $0x120] sm:$0xff]  ;;  %v418_v34 = vld [vmem:[%s719_s26 + $0x128] sm:$0xff] }
  0x2d   : > { %v454_v45 = vadd.f32 %v406_v29, %v358_v32  ;;  %v361_v47 = vadd.f32 %v725_v2, %v306_v35  ;;  %547 = vst [vmem:[%s755_s5 + $0xb0] sm:$0xff] %v499_v38  ;;  %v455_v49 = vadd.f32 %v407_v33, %v359_v40  ;;  %v308_v51 = vmul.f32 %v707_v0, %v253_v36  ;;  %v264_v40 = vld [vmem:[%s713_s23 + $0x148] sm:$0xff] }
  0x2e   : > { %548 = vst [vmem:[%s755_s5 + $0xb8] sm:$0xff] %v500_v39  ;;  %v362_v50 = vadd.f32 %v725_v2, %v307_v43  ;;  %v309_v52 = vmul.f32 %v707_v0, %v254_v37  ;;  %v501_v55 = vmax.f32 %v453_v44, 0.0  ;;  %v456_v57 = vadd.f32 %v408_v41, %v360_v46  ;;  %v263_v39 = vld [vmem:[%s713_s23 + $0x140] sm:$0xff]  ;;  %v420_v46 = vld [vmem:[%s719_s26 + $0x138] sm:$0xff] }
  0x2f   : > { %v502_v56 = vmax.f32 %v454_v45, 0.0  ;;  %v457_v58 = vadd.f32 %v409_v42, %v361_v47  ;;  %v503_v62 = vmax.f32 %v455_v49, 0.0  ;;  %v363_v1 = vadd.f32 %v725_v2, %v308_v51  ;;  %v419_v45 = vld [vmem:[%s719_s26 + $0x130] sm:$0xff] }
  0x30   : > { %v458_v63 = vadd.f32 %v410_v48, %v362_v50  ;;  %v364_v3 = vadd.f32 %v725_v2, %v309_v52  ;;  %549 = vst [vmem:[%s755_s5 + $0xc0] sm:$0xff] %v501_v55  ;;  %v504_v6 = vmax.f32 %v456_v57, 0.0  ;;  %v310_v8 = vmul.f32 %v707_v0, %v255_v53  ;;  %v265_v47 = vld [vmem:[%s713_s23 + $0x150] sm:$0xff]  ;;  %v266_v52 = vld [vmem:[%s713_s23 + $0x158] sm:$0xff]  ;;  %v267_v53 = vld [vmem:[%s713_s23 + $0x160] sm:$0xff] }
  0x31   : > { %550 = vst [vmem:[%s755_s5 + $0xc8] sm:$0xff] %v502_v56  ;;  %v505_v7 = vmax.f32 %v457_v58, 0.0  ;;  %v311_v9 = vmul.f32 %v707_v0, %v256_v54  ;;  %551 = vst [vmem:[%s755_s5 + $0xd0] sm:$0xff] %v503_v62  ;;  %v459_v12 = vadd.f32 %v411_v59, %v363_v1  ;;  %v312_v16 = vmul.f32 %v707_v0, %v257_v61  ;;  %v268_v58 = vld [vmem:[%s713_s23 + $0x168] sm:$0xff]  ;;  %v421_v62 = vld [vmem:[%s719_s26 + $0x140] sm:$0xff] }
  0x32   : > { %v506_v11 = vmax.f32 %v458_v63, 0.0  ;;  %v460_v13 = vadd.f32 %v412_v60, %v364_v3  ;;  %552 = vst [vmem:[%s755_s5 + $0xd8] sm:$0xff] %v504_v6  ;;  %v365_v17 = vadd.f32 %v725_v2, %v310_v8  ;;  %v313_v20 = vmul.f32 %v707_v0, %v258_v4  ;;  %v422_v63 = vld [vmem:[%s719_s26 + $0x148] sm:$0xff]  ;;  %v269_v8 = vld [vmem:[%s713_s23 + $0x170] sm:$0xff] }
  0x33   : > { %553 = vst [vmem:[%s755_s5 + $0xe0] sm:$0xff] %v505_v7  ;;  %v366_v18 = vadd.f32 %v725_v2, %v311_v9  ;;  %v314_v21 = vmul.f32 %v707_v0, %v259_v5  ;;  %v507_v24 = vmax.f32 %v459_v12, 0.0  ;;  %v367_v26 = vadd.f32 %v725_v2, %v312_v16  ;;  %v423_v5 = vld [vmem:[%s719_s26 + $0x150] sm:$0xff]  ;;  %v270_v9 = vld [vmem:[%s713_s23 + $0x178] sm:$0xff] }
  0x34   : > { %554 = vst [vmem:[%s755_s5 + $0xe8] sm:$0xff] %v506_v11  ;;  %v508_v25 = vmax.f32 %v460_v13, 0.0  ;;  %v315_v29 = vmul.f32 %v707_v0, %v260_v10  ;;  %v461_v30 = vadd.f32 %v413_v14, %v365_v17  ;;  %v368_v32 = vadd.f32 %v725_v2, %v313_v20  ;;  %v424_v13 = vld [vmem:[%s719_s26 + $0x158] sm:$0xff]  ;;  %v425_v14 = vld [vmem:[%s719_s26 + $0x160] sm:$0xff]  ;;  %v426_v20 = vld [vmem:[%s719_s26 + $0x168] sm:$0xff] }
  0x35   : > { %v462_v31 = vadd.f32 %v414_v15, %v366_v18  ;;  %v369_v33 = vadd.f32 %v725_v2, %v314_v21  ;;  %555 = vst [vmem:[%s755_s5 + $0xf0] sm:$0xff] %v507_v24  ;;  %v463_v35 = vadd.f32 %v415_v19, %v367_v26  ;;  %v316_v37 = vmul.f32 %v707_v0, %v261_v22 }
  0x36   : > { %556 = vst [vmem:[%s755_s5 + $0xf8] sm:$0xff] %v508_v25  ;;  %v370_v36 = vadd.f32 %v725_v2, %v315_v29  ;;  %v317_v38 = vmul.f32 %v707_v0, %v262_v23  ;;  %v509_v41 = vmax.f32 %v461_v30, 0.0  ;;  %v464_v43 = vadd.f32 %v416_v27, %v368_v32  ;;  %v427_v29 = vld [vmem:[%s719_s26 + $0x170] sm:$0xff]  ;;  %v428_v30 = vld [vmem:[%s719_s26 + $0x178] sm:$0xff] }
  0x37   : > { %v510_v42 = vmax.f32 %v462_v31, 0.0  ;;  %v465_v44 = vadd.f32 %v417_v28, %v369_v33  ;;  %v511_v48 = vmax.f32 %v463_v35, 0.0  ;;  %v371_v50 = vadd.f32 %v725_v2, %v316_v37 }
  0x38   : > { %v466_v49 = vadd.f32 %v418_v34, %v370_v36  ;;  %v372_v51 = vadd.f32 %v725_v2, %v317_v38  ;;  %557 = vst [vmem:[%s755_s5 + $0x100] sm:$0xff] %v509_v41  ;;  %v512_v54 = vmax.f32 %v464_v43, 0.0  ;;  %v318_v56 = vmul.f32 %v707_v0, %v263_v39 }
  0x39   : > { %558 = vst [vmem:[%s755_s5 + $0x108] sm:$0xff] %v510_v42  ;;  %v513_v55 = vmax.f32 %v465_v44, 0.0  ;;  %v319_v57 = vmul.f32 %v707_v0, %v264_v40  ;;  %559 = vst [vmem:[%s755_s5 + $0x110] sm:$0xff] %v511_v48  ;;  %v467_v60 = vadd.f32 %v419_v45, %v371_v50  ;;  %v320_v1 = vmul.f32 %v707_v0, %v265_v47 }
  0x3a   : > { %v514_v59 = vmax.f32 %v466_v49, 0.0  ;;  %v468_v61 = vadd.f32 %v420_v46, %v372_v51  ;;  %560 = vst [vmem:[%s755_s5 + $0x118] sm:$0xff] %v512_v54  ;;  %v373_v3 = vadd.f32 %v725_v2, %v318_v56  ;;  %v321_v6 = vmul.f32 %v707_v0, %v266_v52 }
  0x3b   : > { %561 = vst [vmem:[%s755_s5 + $0x120] sm:$0xff] %v513_v55  ;;  %v374_v4 = vadd.f32 %v725_v2, %v319_v57  ;;  %v322_v7 = vmul.f32 %v707_v0, %v267_v53  ;;  %v515_v10 = vmax.f32 %v467_v60, 0.0  ;;  %v375_v12 = vadd.f32 %v725_v2, %v320_v1 }
  0x3c   : > { %562 = vst [vmem:[%s755_s5 + $0x128] sm:$0xff] %v514_v59  ;;  %v516_v11 = vmax.f32 %v468_v61, 0.0  ;;  %v323_v15 = vmul.f32 %v707_v0, %v268_v58  ;;  %v469_v16 = vadd.f32 %v421_v62, %v373_v3  ;;  %v376_v18 = vadd.f32 %v725_v2, %v321_v6 }
  0x3d   : > { %v470_v17 = vadd.f32 %v422_v63, %v374_v4  ;;  %v377_v19 = vadd.f32 %v725_v2, %v322_v7  ;;  %563 = vst [vmem:[%s755_s5 + $0x130] sm:$0xff] %v515_v10  ;;  %v471_v21 = vadd.f32 %v423_v5, %v375_v12  ;;  %v324_v23 = vmul.f32 %v707_v0, %v269_v8 }
  0x3e   : > { %564 = vst [vmem:[%s755_s5 + $0x138] sm:$0xff] %v516_v11  ;;  %v378_v22 = vadd.f32 %v725_v2, %v323_v15  ;;  %v325_v24 = vmul.f32 %v707_v0, %v270_v9  ;;  %v517_v25 = vmax.f32 %v469_v16, 0.0  ;;  %v472_v27 = vadd.f32 %v424_v13, %v376_v18 }
  0x3f   : > { %v518_v26 = vmax.f32 %v470_v17, 0.0  ;;  %v473_v28 = vadd.f32 %v425_v14, %v377_v19  ;;  %v519_v31 = vmax.f32 %v471_v21, 0.0  ;;  %v379_v33 = vadd.f32 %v725_v2, %v324_v23 }
  0x40   : > { %v474_v32 = vadd.f32 %v426_v20, %v378_v22  ;;  %v380_v34 = vadd.f32 %v725_v2, %v325_v24  ;;  %565 = vst [vmem:[%s755_s5 + $0x140] sm:$0xff] %v517_v25  ;;  %v520_v0 = vmax.f32 %v472_v27, 0.0 }
  0x41   : > { %566 = vst [vmem:[%s755_s5 + $0x148] sm:$0xff] %v518_v26  ;;  %v521_v35 = vmax.f32 %v473_v28, 0.0  ;;  %567 = vst [vmem:[%s755_s5 + $0x150] sm:$0xff] %v519_v31  ;;  %v475_v37 = vadd.f32 %v427_v29, %v379_v33 }
  0x42   : > { %v522_v36 = vmax.f32 %v474_v32, 0.0  ;;  %v476_v38 = vadd.f32 %v428_v30, %v380_v34  ;;  %568 = vst [vmem:[%s755_s5 + $0x158] sm:$0xff] %v520_v0 }
  0x43   : > { %569 = vst [vmem:[%s755_s5 + $0x160] sm:$0xff] %v521_v35  ;;  %v523_v39 = vmax.f32 %v475_v37, 0.0 }
  0x44   : > { %570 = vst [vmem:[%s755_s5 + $0x168] sm:$0xff] %v522_v36  ;;  %v524_v40 = vmax.f32 %v476_v38, 0.0 }
  0x45   : > { %571 = vst [vmem:[%s755_s5 + $0x170] sm:$0xff] %v523_v39 }
  0x46   : > { %572 = vst [vmem:[%s755_s5 + $0x178] sm:$0xff] %v524_v40 }
  0x47 PF: > { %s14_s15 = sadd.s32 1, %s667_s15  }
  0x48   : > { %p11_p4 = scmp.ge.s32.totalorder %s14_s15, 4  }
  0x4a   :  { %13 = sbr.rel (!%p11_p4) target bundleno = 1 (0x1), region = 69 }

// kernel: bottleneck_forward.4
= control target key start
LH: loop header
LB: loop body
LE: loop exit
PB: predicated region body
PF: predicated region fallthrough
CT: control target
= control target key end

     0   :  { %s1259_s15 = smov 0   ;;  %s1535_s0 = inlined_call_operand.vmem [shape: bf16[768,128], index: 0, kind: input, shape index: {}]   ;;  %s1536_s1 = inlined_call_operand.vmem [shape: bf16[128,128], index: 1, kind: input, shape index: {}]   ;;  %s1537_s2 = inlined_call_operand.vmem [shape: f32[768,128], index: 2, kind: output, shape index: {0}]   ;;  %s1538_s3 = inlined_call_operand.vmem [shape: f32[16,128], index: 3, kind: output, shape index: {1}]   ;;  %s1539_s4 = inlined_call_operand.vmem [shape: f32[16,128], index: 4, kind: output, shape index: {2}]  }
   0x1 LB: > { %s1265_s16 = sadd.s32 4294967295, %s1232_s15   ;;  %p1035_p0 = scmp.ge.s32.totalorder %s1232_s15, 1  ;;  %s1232_s15 = sphi %s1259_s15, %s15_s15  }
   0x2   : > { %p168_p1 = scmp.lt.s32.totalorder %s1232_s15, 3 }
   0x4   : > { %p169_p2 = pnand %p1035_p0, %p168_p1 }
   0x5   : > { %v1194_v0 = vld [vmem:[%s1536_s1] sm:$0xff] (!%p169_p2)   ;;  %s202_s19 = smul.u32 (!%p169_p2), 48, %s1265_s16  ;;  %v1195_v1 = vld [vmem:[%s1536_s1 + $0x8] sm:$0xff] (!%p169_p2)   ;;  %v1196_v2 = vld [vmem:[%s1536_s1 + $0x10] sm:$0xff] (!%p169_p2)   ;;  %p214_p4 = scmp.lt.s32.totalorder (!%p169_p2), %s1265_s16, 1 }
   0x6   : > { %172 = sbr.rel (%p169_p2) target bundleno = 363 (0x16b), region = 28  ;;  %1106 = vmatprep.subr.bf16.mxu0 (!%p169_p2), %v1194_v0  ;;  %1170 = vmatprep.subr.bf16.mxu1 (!%p169_p2), %v1194_v0  ;;  %v1197_v3 = vld [vmem:[%s1536_s1 + $0x18] sm:$0xff] (!%p169_p2)   ;;  %v1198_v5 = vld [vmem:[%s1536_s1 + $0x20] sm:$0xff] (!%p169_p2)   ;;  %v1199_v6 = vld [vmem:[%s1536_s1 + $0x28] sm:$0xff] (!%p169_p2)  }
   0x7   : > { %p203_p3 = scmp.lt.s32.totalorder (!%p169_p2), %s202_s19, 95  ;;  %1107 = vmatpush3.bf16.msra.mxu0 (!%p169_p2), %v1194_v0  ;;  %1178 = vmatpush3.bf16.msra.mxu1 (!%p169_p2), %v1194_v0  ;;  %v1200_v7 = vld [vmem:[%s1536_s1 + $0x30] sm:$0xff] (!%p169_p2)   ;;  %v1201_v9 = vld [vmem:[%s1536_s1 + $0x38] sm:$0xff] (!%p169_p2)  }
   0x8   : > { %1108 = vmatprep.subr.bf16.mxu0 (!%p169_p2), %v1195_v1  ;;  %1171 = vmatprep.subr.bf16.mxu1 (!%p169_p2), %v1195_v1 }
   0xb   : > { %1109 = vmatpush3.bf16.msra.mxu0 (!%p169_p2), %v1195_v1  ;;  %1179 = vmatpush3.bf16.msra.mxu1 (!%p169_p2), %v1195_v1 }
   0xc   : > { %1110 = vmatprep.subr.bf16.mxu0 (!%p169_p2), %v1196_v2  ;;  %1172 = vmatprep.subr.bf16.mxu1 (!%p169_p2), %v1196_v2 }
   0xd   : > { %s1541_s19 = smov (!%p203_p3, %s202_s19), 95  ;;  %s1543_s16 = smov (!%p214_p4, %s1265_s16), 1 }
   0xe   : > { %s1036_s24 = sshll.u32 %s1541_s19, 2  ;;  %s1037_s12 = sshll.u32 %s1541_s19, 3 }
   0xf   : > { %s1288_s29 = scalar_lea.vmem %s1535_s0, %s1036_s24  ;;  %1111 = vmatpush3.bf16.msra.mxu0 %v1196_v2  ;;  %1180 = vmatpush3.bf16.msra.mxu1 %v1196_v2  ;;  %s1330_s17 = scalar_lea.vmem %s1537_s2, %s1037_s12 }
  0x10   : > { %v1202_v4 = vld [vmem:[%s1288_s29] sm:$0xff]   ;;  %1112 = vmatprep.subr.bf16.mxu0 %v1197_v3  ;;  %1173 = vmatprep.subr.bf16.mxu1 %v1197_v3  ;;  %v1203_v10 = vld [vmem:[%s1288_s29 + $0x8] sm:$0xff]   ;;  %v1204_v11 = vld [vmem:[%s1288_s29 + $0x10] sm:$0xff]   ;;  %s1038_s18 = sshll.u32 %s1543_s16, 3 }
  0x11   : > { %1122 = vmatprep.mubr.bf16.mxu0 %v1202_v4  ;;  %v1214_v8 = vld [vmem:[%s1288_s29 + $0x60] sm:$0xff]   ;;  %v1215_v12 = vld [vmem:[%s1288_s29 + $0x68] sm:$0xff]   ;;  %v1216_v13 = vld [vmem:[%s1288_s29 + $0x70] sm:$0xff]   ;;  %s217_s21 = scalar_lea.vmem %s1538_s3, %s1038_s18  ;;  %s221_s24 = scalar_lea.vmem %s1539_s4, %s1038_s18 }
  0x12   : > { %1146 = vmatprep.mubr.bf16.mxu1 %v1214_v8  ;;  %v1205_v14 = vld [vmem:[%s1288_s29 + $0x18] sm:$0xff]   ;;  %v1206_v16 = vld [vmem:[%s1288_s29 + $0x20] sm:$0xff]   ;;  %v1207_v18 = vld [vmem:[%s1288_s29 + $0x28] sm:$0xff]  }
  0x13   : > { %1113 = vmatpush3.bf16.msra.mxu0 %v1197_v3  ;;  %1181 = vmatpush3.bf16.msra.mxu1 %v1197_v3  ;;  %v1217_v15 = vld [vmem:[%s1288_s29 + $0x78] sm:$0xff]   ;;  %v1218_v17 = vld [vmem:[%s1288_s29 + $0x80] sm:$0xff]   ;;  %v1219_v19 = vld [vmem:[%s1288_s29 + $0x88] sm:$0xff]  }
  0x14   : > { %1114 = vmatprep.subr.bf16.mxu0 %v1198_v5  ;;  %1174 = vmatprep.subr.bf16.mxu1 %v1198_v5  ;;  %v1208_v20 = vld [vmem:[%s1288_s29 + $0x30] sm:$0xff]   ;;  %v1209_v22 = vld [vmem:[%s1288_s29 + $0x38] sm:$0xff]   ;;  %v1210_v24 = vld [vmem:[%s1288_s29 + $0x40] sm:$0xff]  }
  0x15   : > { %v1220_v21 = vld [vmem:[%s1288_s29 + $0x90] sm:$0xff]   ;;  %v1221_v23 = vld [vmem:[%s1288_s29 + $0x98] sm:$0xff]   ;;  %v1222_v25 = vld [vmem:[%s1288_s29 + $0xa0] sm:$0xff]  }
  0x16   : > { %v1211_v26 = vld [vmem:[%s1288_s29 + $0x48] sm:$0xff]   ;;  %v1212_v28 = vld [vmem:[%s1288_s29 + $0x50] sm:$0xff]   ;;  %v1213_v30 = vld [vmem:[%s1288_s29 + $0x58] sm:$0xff]  }
  0x17   : > { %1115 = vmatpush3.bf16.msra.mxu0 %v1198_v5  ;;  %1182 = vmatpush3.bf16.msra.mxu1 %v1198_v5  ;;  %v1223_v27 = vld [vmem:[%s1288_s29 + $0xa8] sm:$0xff]   ;;  %v1224_v29 = vld [vmem:[%s1288_s29 + $0xb0] sm:$0xff]   ;;  %v1225_v31 = vld [vmem:[%s1288_s29 + $0xb8] sm:$0xff]  }
  0x18   : > { %1116 = vmatprep.subr.bf16.mxu0 %v1199_v6  ;;  %1175 = vmatprep.subr.bf16.mxu1 %v1199_v6 }
  0x1b   : > { %1117 = vmatpush3.bf16.msra.mxu0 %v1199_v6  ;;  %1183 = vmatpush3.bf16.msra.mxu1 %v1199_v6 }
  0x1c   : > { %1118 = vmatprep.subr.bf16.mxu0 %v1200_v7  ;;  %1176 = vmatprep.subr.bf16.mxu1 %v1200_v7 }
  0x1f   : > { %1119 = vmatpush3.bf16.msra.mxu0 %v1200_v7  ;;  %1184 = vmatpush3.bf16.msra.mxu1 %v1200_v7 }
  0x20   : > { %1120 = vmatprep.subr.bf16.mxu0 %v1201_v9  ;;  %1177 = vmatprep.subr.bf16.mxu1 %v1201_v9 }
  0x23   : > { %1121 = vmatpush3.bf16.msra.mxu0 %v1201_v9  ;;  %1185 = vmatpush3.bf16.msra.mxu1 %v1201_v9 }
  0x26   : > { %1123 = vmatmul.mubr.bf16.vlgmr.msra.gmra.mrb[0].mxu0 %v1203_v10  ;;  %1147 = vmatmul.mubr.bf16.vlgmr.msra.gmra.mrb[0].mxu1 %v1215_v12 }
  0x27   : > { %1126 = vmatprep.mubr.bf16.mxu0 %v1204_v11  ;;  %1150 = vmatprep.mubr.bf16.mxu1 %v1216_v13 }
  0x2e   : > { %1127 = vmatmul.mubr.bf16.gmra.mrb[4].mxu0 %v1205_v14  ;;  %1151 = vmatmul.mubr.bf16.gmra.mrb[4].mxu1 %v1217_v15 }
  0x2f   : > { %1130 = vmatprep.mubr.bf16.mxu0 %v1206_v16  ;;  %1154 = vmatprep.mubr.bf16.mxu1 %v1218_v17 }
  0x36   : > { %1131 = vmatmul.mubr.bf16.gmra.mrb[8].mxu0 %v1207_v18  ;;  %1155 = vmatmul.mubr.bf16.gmra.mrb[8].mxu1 %v1219_v19 }
  0x37   : > { %1134 = vmatprep.mubr.bf16.mxu0 %v1208_v20  ;;  %1158 = vmatprep.mubr.bf16.mxu1 %v1220_v21 }
  0x3e   : > { %1135 = vmatmul.mubr.bf16.gmra.mrb[12].mxu0 %v1209_v22  ;;  %1159 = vmatmul.mubr.bf16.gmra.mrb[12].mxu1 %v1221_v23 }
  0x3f   : > { %1138 = vmatprep.mubr.bf16.mxu0 %v1210_v24  ;;  %1162 = vmatprep.mubr.bf16.mxu1 %v1222_v25 }
  0x46   : > { %1139 = vmatmul.mubr.bf16.gmra.mrb[16].mxu0 %v1211_v26  ;;  %1163 = vmatmul.mubr.bf16.gmra.mrb[16].mxu1 %v1223_v27 }
  0x47   : > { %1142 = vmatprep.mubr.bf16.mxu0 %v1212_v28  ;;  %1166 = vmatprep.mubr.bf16.mxu1 %v1224_v29 }
  0x4e   : > { %1143 = vmatmul.mubr.bf16.gmra.mrb[20].mxu0 %v1213_v30  ;;  %1167 = vmatmul.mubr.bf16.gmra.mrb[20].mxu1 %v1225_v31 }
  0xf9   : > { %v1124_v32 = vpop.f32.mrb[0].mxu0  ;;  %v1332_v33 = vpop.f32.mrb[0].mxu1 }
  0xfa   : > { %706 = vst [vmem:[%s1330_s17 + $0x10] sm:$0xff] %v1124_v32  ;;  %v513_v34 = vpop.f32.mrb[1].mxu0  ;;  %730 = vst [vmem:[%s1330_s17 + $0xd0] sm:$0xff] %v1332_v33  ;;  %v1337_v35 = vpop.f32.mrb[1].mxu1  ;;  %v812_v43 = vmul.f32 %v1124_v32, %v1124_v32 }
  0xfb   : > { %704 = vst [vmem:[%s1330_s17] sm:$0xff] %v513_v34  ;;  %v1125_v36 = vpop.f32.mrb[2].mxu0  ;;  %728 = vst [vmem:[%s1330_s17 + $0xc0] sm:$0xff] %v1337_v35  ;;  %v1342_v37 = vpop.f32.mrb[2].mxu1  ;;  %v810_v40 = vmul.f32 %v513_v34, %v513_v34 }
  0xfc   : > { %707 = vst [vmem:[%s1330_s17 + $0x18] sm:$0xff] %v1125_v36  ;;  %v516_v38 = vpop.f32.mrb[3].mxu0  ;;  %731 = vst [vmem:[%s1330_s17 + $0xd8] sm:$0xff] %v1342_v37  ;;  %v1347_v39 = vpop.f32.mrb[3].mxu1  ;;  %v813_v46 = vmul.f32 %v1125_v36, %v1125_v36 }
  0xfd   : > { %705 = vst [vmem:[%s1330_s17 + $0x8] sm:$0xff] %v516_v38  ;;  %v755_v41 = vadd.f32 %v516_v38, %v513_v34  ;;  %v811_v42 = vmul.f32 %v516_v38, %v516_v38  ;;  %729 = vst [vmem:[%s1330_s17 + $0xc8] sm:$0xff] %v1347_v39 }
  0xff   : > { %v756_v44 = vadd.f32 %v1124_v32, %v755_v41  ;;  %v858_v45 = vadd.f32 %v811_v42, %v810_v40 }
 0x101   : > { %v859_v47 = vadd.f32 %v858_v45, %v812_v43  ;;  %v1128_v48 = vpop.f32.mrb[4].mxu0  ;;  %v757_v49 = vadd.f32 %v1125_v36, %v756_v44  ;;  %v1352_v50 = vpop.f32.mrb[4].mxu1 }
 0x102   : > { %710 = vst [vmem:[%s1330_s17 + $0x30] sm:$0xff] %v1128_v48  ;;  %v529_v51 = vpop.f32.mrb[5].mxu0  ;;  %734 = vst [vmem:[%s1330_s17 + $0xf0] sm:$0xff] %v1352_v50  ;;  %v1357_v52 = vpop.f32.mrb[5].mxu1  ;;  %v816_v63 = vmul.f32 %v1128_v48, %v1128_v48 }
 0x103   : > { %708 = vst [vmem:[%s1330_s17 + $0x20] sm:$0xff] %v529_v51  ;;  %v758_v53 = vadd.f32 %v757_v49, %v529_v51  ;;  %v814_v54 = vmul.f32 %v529_v51, %v529_v51  ;;  %v860_v55 = vadd.f32 %v859_v47, %v813_v46  ;;  %v1129_v56 = vpop.f32.mrb[6].mxu0  ;;  %732 = vst [vmem:[%s1330_s17 + $0xe0] sm:$0xff] %v1357_v52  ;;  %v1362_v57 = vpop.f32.mrb[6].mxu1 }
 0x104   : > { %711 = vst [vmem:[%s1330_s17 + $0x38] sm:$0xff] %v1129_v56  ;;  %v532_v58 = vpop.f32.mrb[7].mxu0  ;;  %735 = vst [vmem:[%s1330_s17 + $0xf8] sm:$0xff] %v1362_v57  ;;  %v1367_v59 = vpop.f32.mrb[7].mxu1  ;;  %v817_v2 = vmul.f32 %v1129_v56, %v1129_v56 }
 0x105   : > { %v861_v60 = vadd.f32 %v860_v55, %v814_v54  ;;  %709 = vst [vmem:[%s1330_s17 + $0x28] sm:$0xff] %v532_v58  ;;  %v759_v61 = vadd.f32 %v758_v53, %v532_v58  ;;  %v815_v62 = vmul.f32 %v532_v58, %v532_v58  ;;  %733 = vst [vmem:[%s1330_s17 + $0xe8] sm:$0xff] %v1367_v59 }
 0x107   : > { %v760_v0 = vadd.f32 %v1128_v48, %v759_v61  ;;  %v862_v1 = vadd.f32 %v861_v60, %v815_v62 }
 0x109   : > { %v863_v3 = vadd.f32 %v862_v1, %v816_v63  ;;  %v1132_v4 = vpop.f32.mrb[8].mxu0  ;;  %v761_v5 = vadd.f32 %v1129_v56, %v760_v0  ;;  %v1372_v6 = vpop.f32.mrb[8].mxu1 }
 0x10a   : > { %714 = vst [vmem:[%s1330_s17 + $0x50] sm:$0xff] %v1132_v4  ;;  %v545_v7 = vpop.f32.mrb[9].mxu0  ;;  %738 = vst [vmem:[%s1330_s17 + $0x110] sm:$0xff] %v1372_v6  ;;  %v1377_v8 = vpop.f32.mrb[9].mxu1  ;;  %v820_v19 = vmul.f32 %v1132_v4, %v1132_v4 }
 0x10b   : > { %712 = vst [vmem:[%s1330_s17 + $0x40] sm:$0xff] %v545_v7  ;;  %v762_v9 = vadd.f32 %v761_v5, %v545_v7  ;;  %v818_v10 = vmul.f32 %v545_v7, %v545_v7  ;;  %v864_v11 = vadd.f32 %v863_v3, %v817_v2  ;;  %v1133_v12 = vpop.f32.mrb[10].mxu0  ;;  %736 = vst [vmem:[%s1330_s17 + $0x100] sm:$0xff] %v1377_v8  ;;  %v1382_v13 = vpop.f32.mrb[10].mxu1 }
 0x10c   : > { %715 = vst [vmem:[%s1330_s17 + $0x58] sm:$0xff] %v1133_v12  ;;  %v548_v14 = vpop.f32.mrb[11].mxu0  ;;  %739 = vst [vmem:[%s1330_s17 + $0x118] sm:$0xff] %v1382_v13  ;;  %v1387_v15 = vpop.f32.mrb[11].mxu1  ;;  %v821_v22 = vmul.f32 %v1133_v12, %v1133_v12 }
 0x10d   : > { %v865_v16 = vadd.f32 %v864_v11, %v818_v10  ;;  %713 = vst [vmem:[%s1330_s17 + $0x48] sm:$0xff] %v548_v14  ;;  %v763_v17 = vadd.f32 %v762_v9, %v548_v14  ;;  %v819_v18 = vmul.f32 %v548_v14, %v548_v14  ;;  %737 = vst [vmem:[%s1330_s17 + $0x108] sm:$0xff] %v1387_v15 }
 0x10f   : > { %v764_v20 = vadd.f32 %v1132_v4, %v763_v17  ;;  %v866_v21 = vadd.f32 %v865_v16, %v819_v18 }
 0x111   : > { %v867_v23 = vadd.f32 %v866_v21, %v820_v19  ;;  %v1136_v24 = vpop.f32.mrb[12].mxu0  ;;  %v765_v25 = vadd.f32 %v1133_v12, %v764_v20  ;;  %v1392_v26 = vpop.f32.mrb[12].mxu1 }
 0x112   : > { %718 = vst [vmem:[%s1330_s17 + $0x70] sm:$0xff] %v1136_v24  ;;  %v561_v27 = vpop.f32.mrb[13].mxu0  ;;  %742 = vst [vmem:[%s1330_s17 + $0x130] sm:$0xff] %v1392_v26  ;;  %v1397_v28 = vpop.f32.mrb[13].mxu1  ;;  %v824_v43 = vmul.f32 %v1136_v24, %v1136_v24 }
 0x113   : > { %716 = vst [vmem:[%s1330_s17 + $0x60] sm:$0xff] %v561_v27  ;;  %v766_v29 = vadd.f32 %v765_v25, %v561_v27  ;;  %v822_v30 = vmul.f32 %v561_v27, %v561_v27  ;;  %v868_v31 = vadd.f32 %v867_v23, %v821_v22  ;;  %v1137_v32 = vpop.f32.mrb[14].mxu0  ;;  %740 = vst [vmem:[%s1330_s17 + $0x120] sm:$0xff] %v1397_v28  ;;  %v1402_v34 = vpop.f32.mrb[14].mxu1 }
 0x114   : > { %719 = vst [vmem:[%s1330_s17 + $0x78] sm:$0xff] %v1137_v32  ;;  %v564_v36 = vpop.f32.mrb[15].mxu0  ;;  %743 = vst [vmem:[%s1330_s17 + $0x138] sm:$0xff] %v1402_v34  ;;  %v1407_v38 = vpop.f32.mrb[15].mxu1  ;;  %v825_v46 = vmul.f32 %v1137_v32, %v1137_v32 }
 0x115   : > { %v869_v40 = vadd.f32 %v868_v31, %v822_v30  ;;  %717 = vst [vmem:[%s1330_s17 + $0x68] sm:$0xff] %v564_v36  ;;  %v767_v41 = vadd.f32 %v766_v29, %v564_v36  ;;  %v823_v42 = vmul.f32 %v564_v36, %v564_v36  ;;  %741 = vst [vmem:[%s1330_s17 + $0x128] sm:$0xff] %v1407_v38 }
 0x117   : > { %v768_v44 = vadd.f32 %v1136_v24, %v767_v41  ;;  %v870_v45 = vadd.f32 %v869_v40, %v823_v42  ;;  %v834_v41 = vmul.f32 %v1337_v35, %v1337_v35 }
 0x119   : > { %v871_v47 = vadd.f32 %v870_v45, %v824_v43  ;;  %v1140_v48 = vpop.f32.mrb[16].mxu0  ;;  %v769_v49 = vadd.f32 %v1137_v32, %v768_v44  ;;  %v1412_v51 = vpop.f32.mrb[16].mxu1 }
 0x11a   : > { %722 = vst [vmem:[%s1330_s17 + $0x90] sm:$0xff] %v1140_v48  ;;  %v577_v53 = vpop.f32.mrb[17].mxu0  ;;  %746 = vst [vmem:[%s1330_s17 + $0x150] sm:$0xff] %v1412_v51  ;;  %v1417_v54 = vpop.f32.mrb[17].mxu1  ;;  %v828_v3 = vmul.f32 %v1140_v48, %v1140_v48 }
 0x11b   : > { %720 = vst [vmem:[%s1330_s17 + $0x80] sm:$0xff] %v577_v53  ;;  %v770_v55 = vadd.f32 %v769_v49, %v577_v53  ;;  %v826_v56 = vmul.f32 %v577_v53, %v577_v53  ;;  %v872_v58 = vadd.f32 %v871_v47, %v825_v46  ;;  %v1141_v60 = vpop.f32.mrb[18].mxu0  ;;  %744 = vst [vmem:[%s1330_s17 + $0x140] sm:$0xff] %v1417_v54  ;;  %v1422_v61 = vpop.f32.mrb[18].mxu1 }
 0x11c   : > { %723 = vst [vmem:[%s1330_s17 + $0x98] sm:$0xff] %v1141_v60  ;;  %v580_v62 = vpop.f32.mrb[19].mxu0  ;;  %747 = vst [vmem:[%s1330_s17 + $0x158] sm:$0xff] %v1422_v61  ;;  %v1427_v63 = vpop.f32.mrb[19].mxu1  ;;  %v829_v7 = vmul.f32 %v1141_v60, %v1141_v60  ;;  %v835_v46 = vmul.f32 %v1347_v39, %v1347_v39  ;;  %v836_v47 = vmul.f32 %v1332_v33, %v1332_v33 }
 0x11d   : > { %v873_v0 = vadd.f32 %v872_v58, %v826_v56  ;;  %721 = vst [vmem:[%s1330_s17 + $0x88] sm:$0xff] %v580_v62  ;;  %v771_v1 = vadd.f32 %v770_v55, %v580_v62  ;;  %v827_v2 = vmul.f32 %v580_v62, %v580_v62  ;;  %745 = vst [vmem:[%s1330_s17 + $0x148] sm:$0xff] %v1427_v63 }
 0x11e   : > { %v837_v53 = vmul.f32 %v1342_v37, %v1342_v37 }
 0x11f   : > { %v772_v4 = vadd.f32 %v1140_v48, %v771_v1  ;;  %v874_v5 = vadd.f32 %v873_v0, %v827_v2  ;;  %v839_v0 = vmul.f32 %v1367_v59, %v1367_v59 }
 0x121   : > { %v875_v9 = vadd.f32 %v874_v5, %v828_v3  ;;  %v1144_v10 = vpop.f32.mrb[20].mxu0  ;;  %v773_v11 = vadd.f32 %v1141_v60, %v772_v4  ;;  %v1432_v12 = vpop.f32.mrb[20].mxu1 }
 0x122   : > { %726 = vst [vmem:[%s1330_s17 + $0xb0] sm:$0xff] %v1144_v10  ;;  %v593_v14 = vpop.f32.mrb[21].mxu0  ;;  %750 = vst [vmem:[%s1330_s17 + $0x170] sm:$0xff] %v1432_v12  ;;  %v1437_v16 = vpop.f32.mrb[21].mxu1  ;;  %v832_v29 = vmul.f32 %v1144_v10, %v1144_v10 }
 0x123   : > { %724 = vst [vmem:[%s1330_s17 + $0xa0] sm:$0xff] %v593_v14  ;;  %v774_v17 = vadd.f32 %v773_v11, %v593_v14  ;;  %v830_v18 = vmul.f32 %v593_v14, %v593_v14  ;;  %v876_v19 = vadd.f32 %v875_v9, %v829_v7  ;;  %v1145_v20 = vpop.f32.mrb[22].mxu0  ;;  %748 = vst [vmem:[%s1330_s17 + $0x160] sm:$0xff] %v1437_v16  ;;  %v1442_v21 = vpop.f32.mrb[22].mxu1 }
 0x124   : > { %727 = vst [vmem:[%s1330_s17 + $0xb8] sm:$0xff] %v1145_v20  ;;  %v596_v22 = vpop.f32.mrb[23].mxu0  ;;  %751 = vst [vmem:[%s1330_s17 + $0x178] sm:$0xff] %v1442_v21  ;;  %v1447_v23 = vpop.f32.mrb[23].mxu1  ;;  %v833_v32 = vmul.f32 %v1145_v20, %v1145_v20 }
 0x125   : > { %v877_v24 = vadd.f32 %v876_v19, %v830_v18  ;;  %725 = vst [vmem:[%s1330_s17 + $0xa8] sm:$0xff] %v596_v22  ;;  %v775_v25 = vadd.f32 %v774_v17, %v596_v22  ;;  %v831_v27 = vmul.f32 %v596_v22, %v596_v22  ;;  %749 = vst [vmem:[%s1330_s17 + $0x168] sm:$0xff] %v1447_v23 }
 0x127   : > { %v776_v30 = vadd.f32 %v1144_v10, %v775_v25  ;;  %v878_v31 = vadd.f32 %v877_v24, %v831_v27  ;;  %v843_v10 = vmul.f32 %v1387_v15, %v1387_v15  ;;  %v847_v24 = vmul.f32 %v1407_v38, %v1407_v38 }
 0x129   : > { %v879_v36 = vadd.f32 %v878_v31, %v832_v29  ;;  %v777_v40 = vadd.f32 %v1145_v20, %v776_v30 }
 0x12b   : > { %v778_v42 = vadd.f32 %v777_v40, %v1337_v35  ;;  %v880_v43 = vadd.f32 %v879_v36, %v833_v32  ;;  %v838_v35 = vmul.f32 %v1357_v52, %v1357_v52  ;;  %v851_v40 = vmul.f32 %v1427_v63, %v1427_v63 }
 0x12d   : > { %v881_v44 = vadd.f32 %v880_v43, %v834_v41  ;;  %v779_v45 = vadd.f32 %v778_v42, %v1347_v39 }
 0x12f   : > { %v780_v48 = vadd.f32 %v1332_v33, %v779_v45  ;;  %v882_v49 = vadd.f32 %v881_v44, %v835_v46  ;;  %v840_v33 = vmul.f32 %v1352_v50, %v1352_v50  ;;  %v854_v44 = vmul.f32 %v1437_v16, %v1437_v16 }
 0x131   : > { %v883_v55 = vadd.f32 %v882_v49, %v836_v47  ;;  %v781_v56 = vadd.f32 %v1342_v37, %v780_v48  ;;  %v841_v37 = vmul.f32 %v1362_v57, %v1362_v57  ;;  %v856_v48 = vmul.f32 %v1432_v12, %v1432_v12 }
 0x133   : > { %v782_v58 = vadd.f32 %v781_v56, %v1357_v52  ;;  %v884_v60 = vadd.f32 %v883_v55, %v837_v53  ;;  %v842_v52 = vmul.f32 %v1377_v8, %v1377_v8 }
 0x135   : > { %v885_v62 = vadd.f32 %v884_v60, %v838_v35  ;;  %v783_v39 = vadd.f32 %v782_v58, %v1367_v59  ;;  %v752_v58 = vlaneseq }
 0x137   : > { %v784_v1 = vadd.f32 %v1352_v50, %v783_v39  ;;  %v886_v2 = vadd.f32 %v885_v62, %v839_v0  ;;  %v844_v50 = vmul.f32 %v1372_v6, %v1372_v6  ;;  %v753_v0 = vshrl.u32 %v752_v58, 7 }
 0x139   : > { %v887_v3 = vadd.f32 %v886_v2, %v840_v33  ;;  %v785_v4 = vadd.f32 %v1362_v57, %v784_v1  ;;  %v845_v57 = vmul.f32 %v1382_v13, %v1382_v13  ;;  %vm754_vm0 = vcmp.eq.s32.totalorder %v753_v0, 0 }
 0x13b   : > { %v786_v5 = vadd.f32 %v785_v4, %v1377_v8  ;;  %v888_v7 = vadd.f32 %v887_v3, %v841_v37  ;;  %v846_v8 = vmul.f32 %v1397_v28, %v1397_v28 }
 0x13d   : > { %v889_v9 = vadd.f32 %v888_v7, %v842_v52  ;;  %v787_v59 = vadd.f32 %v786_v5, %v1387_v15 }
 0x13f   : > { %v788_v11 = vadd.f32 %v1372_v6, %v787_v59  ;;  %v890_v14 = vadd.f32 %v889_v9, %v843_v10  ;;  %v848_v6 = vmul.f32 %v1392_v26, %v1392_v26 }
 0x141   : > { %v891_v17 = vadd.f32 %v890_v14, %v844_v50  ;;  %v789_v18 = vadd.f32 %v1382_v13, %v788_v11  ;;  %v849_v13 = vmul.f32 %v1402_v34, %v1402_v34 }
 0x143   : > { %v790_v19 = vadd.f32 %v789_v18, %v1397_v28  ;;  %v892_v20 = vadd.f32 %v891_v17, %v845_v57  ;;  %v850_v28 = vmul.f32 %v1417_v54, %v1417_v54 }
 0x145   : > { %v893_v22 = vadd.f32 %v892_v20, %v846_v8  ;;  %v791_v15 = vadd.f32 %v790_v19, %v1407_v38 }
 0x147   : > { %v792_v25 = vadd.f32 %v1392_v26, %v791_v15  ;;  %v894_v27 = vadd.f32 %v893_v22, %v847_v24  ;;  %v852_v26 = vmul.f32 %v1412_v51, %v1412_v51 }
 0x149   : > { %v895_v29 = vadd.f32 %v894_v27, %v848_v6  ;;  %v793_v30 = vadd.f32 %v1402_v34, %v792_v25  ;;  %v853_v34 = vmul.f32 %v1422_v61, %v1422_v61 }
 0x14b   : > { %v794_v31 = vadd.f32 %v793_v30, %v1417_v54  ;;  %v896_v32 = vadd.f32 %v895_v29, %v849_v13 }
 0x14d   : > { %v897_v36 = vadd.f32 %v896_v32, %v850_v28  ;;  %v795_v38 = vadd.f32 %v794_v31, %v1427_v63 }
 0x14f   : > { %v796_v41 = vadd.f32 %v1412_v51, %v795_v38  ;;  %v898_v42 = vadd.f32 %v897_v36, %v851_v40  ;;  %v855_v51 = vmul.f32 %v1447_v23, %v1447_v23 }
 0x151   : > { %v899_v43 = vadd.f32 %v898_v42, %v852_v26  ;;  %v797_v54 = vadd.f32 %v1422_v61, %v796_v41  ;;  %v857_v61 = vmul.f32 %v1442_v21, %v1442_v21 }
 0x153   : > { %v798_v45 = vadd.f32 %v797_v54, %v1437_v16  ;;  %v900_v46 = vadd.f32 %v899_v43, %v853_v34 }
 0x155   : > { %v901_v63 = vadd.f32 %v900_v46, %v854_v44  ;;  %v799_v47 = vadd.f32 %v798_v45, %v1447_v23 }
 0x157   : > { %v800_v49 = vadd.f32 %v1432_v12, %v799_v47  ;;  %v902_v53 = vadd.f32 %v901_v63, %v855_v51 }
 0x159   : > { %v801_v55 = vadd.f32 %v1442_v21, %v800_v49  ;;  %v903_v16 = vadd.f32 %v902_v53, %v856_v48 }
 0x15b   : > { %v802_v56 = vrot.slane %v801_v55, 4  ;;  %v904_v35 = vadd.f32 %v903_v16, %v857_v61 }
 0x15d   : > { %v803_v60 = vadd.f32 %v802_v56, %v801_v55  ;;  %v905_v62 = vrot.slane %v904_v35, 4 }
 0x15f   : > { %v804_v23 = vrot.slane %v803_v60, 2  ;;  %v906_v39 = vadd.f32 %v905_v62, %v904_v35 }
 0x161   : > { %v805_v33 = vadd.f32 %v804_v23, %v803_v60  ;;  %v907_v1 = vrot.slane %v906_v39, 2 }
 0x163   : > { %v806_v12 = vrot.slane %v805_v33, 1  ;;  %v908_v2 = vadd.f32 %v907_v1, %v906_v39 }
 0x165   : > { %v807_v21 = vadd.f32 %v806_v12, %v805_v33  ;;  %v909_v37 = vrot.slane %v908_v2, 1 }
 0x167   : > { %v808_v3 = vsel %vm754_vm0, %v807_v21, 0.0  ;;  %v910_v4 = vadd.f32 %v909_v37, %v908_v2 }
 0x168   : > { %809 = vst [vmem:[%s217_s21] sm:$0xff] %v808_v3 }
 0x169   : > { %v911_v52 = vsel %vm754_vm0, %v910_v4, 0.0 }
 0x16a   : > { %912 = vst [vmem:[%s221_s24] sm:$0xff] %v911_v52 }
 0x16b PF: > { %s15_s15 = sadd.s32 1, %s1232_s15  }
 0x16c   : > { %p12_p5 = scmp.ge.s32.totalorder %s15_s15, 4  }
 0x16e   :  { %14 = sbr.rel (!%p12_p5) target bundleno = 1 (0x1), region = 82 }

// kernel: bottleneck_forward.6
= control target key start
LH: loop header
LB: loop body
LE: loop exit
PB: predicated region body
PF: predicated region fallthrough
CT: control target
= control target key end

     0   :  { %s1580_s21 = smov 0   ;;  %s2246_s0 = inlined_call_operand.vmem [shape: f32[768,128], index: 0, kind: input, shape index: {}]   ;;  %s2247_s1 = inlined_call_operand.vmem [shape: bf16[128,128], index: 1, kind: input, shape index: {}]   ;;  %s2248_s2 = inlined_call_operand.vmem [shape: f32[1,128], index: 2, kind: input, shape index: {}]   ;;  %s2249_s3 = inlined_call_operand.vmem [shape: f32[1,128], index: 3, kind: input, shape index: {}]   ;;  %s2250_s4 = inlined_call_operand.vmem [shape: f32[768,128], index: 4, kind: output, shape index: {0}]   ;;  %s2251_s5 = inlined_call_operand.vmem [shape: f32[16,128], index: 5, kind: output, shape index: {1}]   ;;  %s2252_s6 = inlined_call_operand.vmem [shape: f32[16,128], index: 6, kind: output, shape index: {2}]  }
   0x1 LB: > { %s1586_s22 = sadd.s32 4294967295, %s1543_s21   ;;  %p1320_p0 = scmp.ge.s32.totalorder %s1543_s21, 1  ;;  %s1543_s21 = sphi %s1580_s21, %s17_s21  }
   0x2   : > { %p218_p1 = scmp.lt.s32.totalorder %s1543_s21, 3 }
   0x4   : > { %p219_p2 = pnand %p1320_p0, %p218_p1 }
   0x5   : > { %v1529_v0 = vld [vmem:[%s2247_s1] sm:$0xff] (!%p219_p2)   ;;  %s256_s25 = smul.u32 (!%p219_p2), 48, %s1586_s22  ;;  %v484_v1 = vlaneseq (!%p219_p2)  ;;  %v1530_v2 = vld [vmem:[%s2247_s1 + $0x8] sm:$0xff] (!%p219_p2)   ;;  %v1531_v4 = vld [vmem:[%s2247_s1 + $0x10] sm:$0xff] (!%p219_p2)   ;;  %p268_p4 = scmp.lt.s32.totalorder (!%p219_p2), %s1586_s22, 1 }
   0x6   : > { %222 = sbr.rel (%p219_p2) target bundleno = 363 (0x16b), region = 36  ;;  %1441 = vmatprep.subr.bf16.mxu0 (!%p219_p2), %v1529_v0  ;;  %1505 = vmatprep.subr.bf16.mxu1 (!%p219_p2), %v1529_v0  ;;  %v1532_v7 = vld [vmem:[%s2247_s1 + $0x18] sm:$0xff] (!%p219_p2)   ;;  %v1627_v12 = vld [vmem:[%s2248_s2] ss:$0 sm:$0xff] (!%p219_p2)  ;;  %v1534_v37 = vld [vmem:[%s2247_s1 + $0x28] sm:$0xff] (!%p219_p2)  }
   0x7   : > { %s483_s28 = smul.u32 (!%p219_p2), 384, %s1586_s22  ;;  %p257_p3 = scmp.lt.s32.totalorder (!%p219_p2), %s256_s25, 95  ;;  %1442 = vmatpush3.bf16.msra.mxu0 (!%p219_p2), %v1529_v0  ;;  %v1598_v3 = vshrl.u32 (!%p219_p2), %v484_v1, 7  ;;  %1513 = vmatpush3.bf16.msra.mxu1 (!%p219_p2), %v1529_v0  ;;  %v1634_v15 = vld [vmem:[%s2249_s3] ss:$0 sm:$0xff] (!%p219_p2)  ;;  %v1535_v54 = vld [vmem:[%s2247_s1 + $0x30] sm:$0xff] (!%p219_p2)  }
   0x8   : > { %1443 = vmatprep.subr.bf16.mxu0 (!%p219_p2), %v1530_v2  ;;  %1506 = vmatprep.subr.bf16.mxu1 (!%p219_p2), %v1530_v2  ;;  %v1533_v24 = vld [vmem:[%s2247_s1 + $0x20] sm:$0xff] (!%p219_p2)  }
   0x9   : > { %v1605_v5 = vstv (!%p219_p2), %s483_s28  ;;  %v486_v6 = vadd.s32 (!%p219_p2), 8, %v1598_v3  ;;  %v487_v25 = vadd.s32 (!%p219_p2), 16, %v1598_v3  ;;  %v488_v35 = vadd.s32 (!%p219_p2), 24, %v1598_v3 }
   0xa   : > { %v534_v8 = vadd.s32 (!%p219_p2), %v1605_v5, %v1598_v3  ;;  %v489_v39 = vadd.s32 (!%p219_p2), 32, %v1598_v3  ;;  %v490_v47 = vadd.s32 (!%p219_p2), 40, %v1598_v3  ;;  %v491_v51 = vadd.s32 (!%p219_p2), 48, %v1598_v3 }
   0xb   : > { %1444 = vmatpush3.bf16.msra.mxu0 (!%p219_p2), %v1530_v2  ;;  %v535_v9 = vadd.s32 (!%p219_p2), %v1605_v5, %v486_v6  ;;  %1514 = vmatpush3.bf16.msra.mxu1 (!%p219_p2), %v1530_v2  ;;  %v1661_v38 = vadd.s32 (!%p219_p2), %v1605_v5, %v487_v25  ;;  %v1672_v49 = vadd.s32 (!%p219_p2), %v1605_v5, %v488_v35  ;;  %v492_v52 = vadd.s32 (!%p219_p2), 56, %v1598_v3 }
   0xc   : > { %1445 = vmatprep.subr.bf16.mxu0 (!%p219_p2), %v1531_v4  ;;  %1507 = vmatprep.subr.bf16.mxu1 (!%p219_p2), %v1531_v4  ;;  %vm582_vm0 = vcmp.lt.s32.totalorder (!%p219_p2), %v534_v8, 512  ;;  %v1683_v55 = vadd.s32 (!%p219_p2), %v1605_v5, %v489_v39  ;;  %v493_v62 = vadd.s32 (!%p219_p2), 64, %v1598_v3  ;;  %v539_v0 = vadd.s32 (!%p219_p2), %v1605_v5, %v490_v47 }
   0xd   : > { %s2280_s25 = smov (!%p257_p3, %s256_s25), 95  ;;  %vm583_vm1 = vcmp.lt.s32.totalorder %v535_v9, 512  ;;  %vm584_vm3 = vcmp.lt.s32.totalorder %v1661_v38, 512  ;;  %v494_v2 = vadd.s32 72, %v1598_v3  ;;  %v1697_v8 = vadd.s32 %v1605_v5, %v491_v51  ;;  %s2282_s22 = smov (!%p268_p4, %s1586_s22), 1 }
   0xe   : > { %s1321_s7 = sshll.u32 %s2280_s25, 3  ;;  %vm1335_vm2 = vmpackc.low %vm583_vm1, %vm582_vm0  ;;  %v1700_v9 = vadd.s32 %v1605_v5, %v492_v52  ;;  %vm585_vm4 = vcmp.lt.s32.totalorder %v1672_v49, 512  ;;  %vm586_vm5 = vcmp.lt.s32.totalorder %v1683_v55, 512  ;;  %vm587_vm6 = vcmp.lt.s32.totalorder %v539_v0, 512  ;;  %s1323_s25 = sshll.u32 %s2282_s22, 3 }
   0xf   : > { %s1617_s12 = scalar_lea.vmem %s2246_s0, %s1321_s7  ;;  %1446 = vmatpush3.bf16.msra.mxu0 %v1531_v4  ;;  %1515 = vmatpush3.bf16.msra.mxu1 %v1531_v4  ;;  %vm588_vm7 = vcmp.lt.s32.totalorder %v1697_v8, 512  ;;  %v498_v35 = vadd.s32 104, %v1598_v3  ;;  %vm1749_vm11 = vmpackc.low %vm585_vm4, %vm584_vm3  ;;  %s2100_s30 = scalar_lea.vmem %s2250_s4, %s1321_s7 }
  0x10   : > { %v277_v10 = vld [vmem:[%s1617_s12] sm:$0xff]  ;;  %v278_v11 = vld [vmem:[%s1617_s12 + $0x8] sm:$0xff]  ;;  %v279_v16 = vld [vmem:[%s1617_s12 + $0x10] sm:$0xff]  ;;  %1447 = vmatprep.subr.bf16.mxu0 %v1532_v7  ;;  %1508 = vmatprep.subr.bf16.mxu1 %v1532_v7  ;;  %vm589_vm8 = vcmp.lt.s32.totalorder %v1700_v9, 512  ;;  %s271_s9 = scalar_lea.vmem %s2251_s5, %s1323_s25 }
  0x11   : > { %v332_v13 = vmul.f32 %v1627_v12, %v277_v10  ;;  %v333_v14 = vmul.f32 %v1627_v12, %v278_v11  ;;  %v280_v17 = vld [vmem:[%s1617_s12 + $0x18] sm:$0xff]  ;;  %v334_v18 = vmul.f32 %v1627_v12, %v279_v16  ;;  %v281_v20 = vld [vmem:[%s1617_s12 + $0x20] sm:$0xff]  ;;  %v282_v21 = vld [vmem:[%s1617_s12 + $0x28] sm:$0xff] }
  0x12   : > { %v335_v19 = vmul.f32 %v1627_v12, %v280_v17  ;;  %v336_v26 = vmul.f32 %v1627_v12, %v281_v20  ;;  %v337_v27 = vmul.f32 %v1627_v12, %v282_v21  ;;  %v283_v28 = vld [vmem:[%s1617_s12 + $0x30] sm:$0xff]  ;;  %v284_v33 = vld [vmem:[%s1617_s12 + $0x38] sm:$0xff]  ;;  %v285_v45 = vld [vmem:[%s1617_s12 + $0x40] sm:$0xff]  ;;  %v1717_v21 = vadd.s32 %v1605_v5, %v494_v2 }
  0x13   : > { %v387_v22 = vadd.f32 %v1634_v15, %v332_v13  ;;  %v388_v23 = vadd.f32 %v1634_v15, %v333_v14  ;;  %v389_v31 = vadd.f32 %v1634_v15, %v334_v18  ;;  %1448 = vmatpush3.bf16.msra.mxu0 %v1532_v7  ;;  %v338_v36 = vmul.f32 %v1627_v12, %v283_v28  ;;  %v286_v46 = vld [vmem:[%s1617_s12 + $0x48] sm:$0xff]  ;;  %v287_v53 = vld [vmem:[%s1617_s12 + $0x50] sm:$0xff]  ;;  %v288_v58 = vld [vmem:[%s1617_s12 + $0x58] sm:$0xff] }
  0x14   : > { %v390_v32 = vadd.f32 %v1634_v15, %v335_v19  ;;  %1449 = vmatprep.subr.bf16.mxu0 %v1533_v24  ;;  %v339_v40 = vmul.f32 %v1627_v12, %v284_v33  ;;  %1516 = vmatpush3.bf16.msra.mxu1 %v1532_v7  ;;  %v391_v43 = vadd.f32 %v1634_v15, %v336_v26  ;;  %v289_v63 = vld [vmem:[%s1617_s12 + $0x60] sm:$0xff]  ;;  %v290_v6 = vld [vmem:[%s1617_s12 + $0x68] sm:$0xff]  ;;  %v1536_v11 = vld [vmem:[%s2247_s1 + $0x38] sm:$0xff]   ;;  %vm591_vm10 = vcmp.lt.s32.totalorder %v1717_v21, 512 }
  0x15   : > { %v435_v29 = vmax.f32 %v387_v22, 0.0  ;;  %v436_v30 = vmax.f32 %v388_v23, 0.0  ;;  %v437_v41 = vmax.f32 %v389_v31, 0.0  ;;  %v392_v44 = vadd.f32 %v1634_v15, %v337_v27  ;;  %1509 = vmatprep.subr.bf16.mxu1 %v1533_v24  ;;  %v291_v17 = vld [vmem:[%s1617_s12 + $0x70] sm:$0xff]  ;;  %v292_v25 = vld [vmem:[%s1617_s12 + $0x78] sm:$0xff]  ;;  %v293_v33 = vld [vmem:[%s1617_s12 + $0x80] sm:$0xff] }
  0x16   : > { %v438_v42 = vmax.f32 %v390_v32, 0.0  ;;  %v393_v48 = vadd.f32 %v1634_v15, %v338_v36  ;;  %v394_v50 = vadd.f32 %v1634_v15, %v339_v40  ;;  %v340_v56 = vmul.f32 %v1627_v12, %v285_v45  ;;  %vm1759_vm12 = vmpackc.low %vm587_vm6, %vm586_vm5  ;;  %v296_v52 = vld [vmem:[%s1617_s12 + $0x98] sm:$0xff] }
  0x17   : > { %v1336_v34 = vpack.c.bf16 %v436_v30, %v435_v29  ;;  %1450 = vmatpush3.bf16.msra.mxu0 %v1533_v24  ;;  %v341_v57 = vmul.f32 %v1627_v12, %v286_v46  ;;  %v439_v60 = vmax.f32 %v391_v43, 0.0  ;;  %v440_v61 = vmax.f32 %v392_v44, 0.0  ;;  %vm1813_vm1 = vmpackc.low %vm589_vm8, %vm588_vm7 }
  0x18   : > { %1451 = vmatprep.subr.bf16.mxu0 %v1534_v37  ;;  %1517 = vmatpush3.bf16.msra.mxu1 %v1533_v24  ;;  %v1688_v59 = vpack.c.bf16 %v438_v42, %v437_v41  ;;  %v441_v1 = vmax.f32 %v393_v48, 0.0  ;;  %v342_v4 = vmul.f32 %v1627_v12, %v287_v53  ;;  %v442_v7 = vmax.f32 %v394_v50, 0.0  ;;  %v295_v42 = vld [vmem:[%s1617_s12 + $0x90] sm:$0xff] }
  0x19   : > { %1457 = vmatprep.mubr.msk.bf16.mxu0 %vm1335_vm2, %v1336_v34  ;;  %1510 = vmatprep.subr.bf16.mxu1 %v1534_v37  ;;  %v343_v10 = vmul.f32 %v1627_v12, %v288_v58  ;;  %v395_v13 = vadd.f32 %v1634_v15, %v340_v56  ;;  %v396_v14 = vadd.f32 %v1634_v15, %v341_v57  ;;  %v495_v23 = vadd.s32 80, %v1598_v3  ;;  %v303_v48 = vld [vmem:[%s1617_s12 + $0xd0] sm:$0xff] }
  0x1a   : > { %v344_v16 = vmul.f32 %v1627_v12, %v289_v63  ;;  %v1342_v18 = vpack.c.bf16 %v440_v61, %v439_v60  ;;  %v1713_v19 = vadd.s32 %v1605_v5, %v493_v62  ;;  %v345_v20 = vmul.f32 %v1627_v12, %v290_v6  ;;  %v297_v62 = vld [vmem:[%s1617_s12 + $0xa0] sm:$0xff] }
  0x1b   : > { %1452 = vmatpush3.bf16.msra.mxu0 %v1534_v37  ;;  %v397_v22 = vadd.f32 %v1634_v15, %v342_v4  ;;  %v496_v24 = vadd.s32 88, %v1598_v3  ;;  %v1723_v26 = vpack.c.bf16 %v442_v7, %v441_v1  ;;  %v398_v27 = vadd.f32 %v1634_v15, %v343_v10  ;;  %v298_v4 = vld [vmem:[%s1617_s12 + $0xa8] sm:$0xff] }
  0x1c   : > { %1453 = vmatprep.subr.bf16.mxu0 %v1535_v54  ;;  %1518 = vmatpush3.bf16.msra.mxu1 %v1534_v37  ;;  %v346_v28 = vmul.f32 %v1627_v12, %v291_v17  ;;  %v443_v29 = vmax.f32 %v395_v13, 0.0  ;;  %v444_v30 = vmax.f32 %v396_v14, 0.0  ;;  %v399_v31 = vadd.f32 %v1634_v15, %v344_v16  ;;  %v294_v37 = vld [vmem:[%s1617_s12 + $0x88] sm:$0xff]  ;;  %v299_v17 = vld [vmem:[%s1617_s12 + $0xb0] sm:$0xff] }
  0x1d   : > { %1511 = vmatprep.subr.bf16.mxu1 %v1535_v54  ;;  %v400_v32 = vadd.f32 %v1634_v15, %v345_v20  ;;  %vm590_vm9 = vcmp.lt.s32.totalorder %v1713_v19, 512  ;;  %v497_v34 = vadd.s32 96, %v1598_v3  ;;  %v347_v36 = vmul.f32 %v1627_v12, %v292_v25 }
  0x1e   : > { %v445_v39 = vmax.f32 %v397_v22, 0.0  ;;  %v1739_v40 = vadd.s32 %v1605_v5, %v495_v23  ;;  %v1742_v41 = vadd.s32 %v1605_v5, %v496_v24  ;;  %v446_v44 = vmax.f32 %v398_v27, 0.0  ;;  %vm1826_vm2 = vmpackc.low %vm591_vm10, %vm590_vm9 }
  0x1f   : > { %1454 = vmatpush3.bf16.msra.mxu0 %v1535_v54  ;;  %v401_v45 = vadd.f32 %v1634_v15, %v346_v28  ;;  %v402_v46 = vadd.f32 %v1634_v15, %v347_v36  ;;  %v348_v47 = vmul.f32 %v1627_v12, %v293_v33  ;;  %v447_v38 = vmax.f32 %v399_v31, 0.0 }
  0x20   : > { %1455 = vmatprep.subr.bf16.mxu0 %v1536_v11  ;;  %1519 = vmatpush3.bf16.msra.mxu1 %v1535_v54  ;;  %v448_v49 = vmax.f32 %v400_v32, 0.0  ;;  %v499_v50 = vadd.s32 112, %v1598_v3  ;;  %v349_v51 = vmul.f32 %v1627_v12, %v294_v37  ;;  %v1767_v53 = vadd.s32 %v1605_v5, %v497_v34  ;;  %v301_v34 = vld [vmem:[%s1617_s12 + $0xc0] sm:$0xff] }
  0x21   : > { %1512 = vmatprep.subr.bf16.mxu1 %v1536_v11  ;;  %v1770_v54 = vadd.s32 %v1605_v5, %v498_v35  ;;  %v403_v55 = vadd.f32 %v1634_v15, %v348_v47  ;;  %v350_v56 = vmul.f32 %v1627_v12, %v295_v42  ;;  %v1348_v57 = vpack.c.bf16 %v444_v30, %v443_v29  ;;  %v300_v30 = vld [vmem:[%s1617_s12 + $0xb8] sm:$0xff] }
  0x22   : > { %v500_v58 = vadd.s32 120, %v1598_v3  ;;  %v404_v60 = vadd.f32 %v1634_v15, %v349_v51  ;;  %v501_v61 = vadd.s32 128, %v1598_v3  ;;  %v1783_v63 = vpack.c.bf16 %v446_v44, %v445_v39  ;;  %v302_v44 = vld [vmem:[%s1617_s12 + $0xc8] sm:$0xff] }
  0x23   : > { %1456 = vmatpush3.bf16.msra.mxu0 %v1536_v11  ;;  %v449_v0 = vmax.f32 %v401_v45, 0.0  ;;  %v450_v1 = vmax.f32 %v402_v46, 0.0  ;;  %v351_v2 = vmul.f32 %v1627_v12, %v296_v52  ;;  %vm592_vm13 = vcmp.lt.s32.totalorder %v1739_v40, 512 }
  0x24   : > { %1520 = vmatpush3.bf16.msra.mxu1 %v1536_v11  ;;  %vm593_vm14 = vcmp.lt.s32.totalorder %v1742_v41, 512  ;;  %v1792_v6 = vadd.s32 %v1605_v5, %v499_v50  ;;  %v502_v7 = vadd.s32 136, %v1598_v3  ;;  %v405_v10 = vadd.f32 %v1634_v15, %v350_v56 }
  0x25   : > { %vm594_vm15 = vcmp.lt.s32.totalorder %v1767_v53, 512  ;;  %vm595_vm0 = vcmp.lt.s32.totalorder %v1770_v54, 512  ;;  %v451_v11 = vmax.f32 %v403_v55, 0.0  ;;  %v452_v13 = vmax.f32 %v404_v60, 0.0  ;;  %vm1883_vm7 = vmpackc.low %vm593_vm14, %vm592_vm13 }
  0x26   : > { %1458 = vmatmul.mubr.msk.bf16.vlgmr.msra.gmra.mrb[0].mxu0 %vm1749_vm11, %v1688_v59  ;;  %v1789_v59 = vpack.c.bf16 %v448_v49, %v447_v38  ;;  %v406_v14 = vadd.f32 %v1634_v15, %v351_v2  ;;  %v352_v16 = vmul.f32 %v1627_v12, %v297_v62  ;;  %v1805_v20 = vadd.s32 %v1605_v5, %v501_v61  ;;  %vm1899_vm8 = vmpackc.low %vm595_vm0, %vm594_vm15 }
  0x27   : > { %1461 = vmatprep.mubr.msk.bf16.mxu0 %vm1759_vm12, %v1342_v18  ;;  %v1802_v18 = vadd.s32 %v1605_v5, %v500_v58  ;;  %v503_v22 = vadd.s32 144, %v1598_v3  ;;  %v353_v23 = vmul.f32 %v1627_v12, %v298_v4  ;;  %v1817_v25 = vpack.c.bf16 %v450_v1, %v449_v0  ;;  %v304_v58 = vld [vmem:[%s1617_s12 + $0xd8] sm:$0xff] }
  0x28   : > { %v453_v27 = vmax.f32 %v405_v10, 0.0  ;;  %v504_v28 = vadd.s32 152, %v1598_v3  ;;  %v407_v29 = vadd.f32 %v1634_v15, %v352_v16  ;;  %v454_v9 = vmax.f32 %v406_v14, 0.0 }
  0x29   : > { %v408_v31 = vadd.f32 %v1634_v15, %v353_v23  ;;  %v505_v32 = vadd.s32 160, %v1598_v3  ;;  %v354_v33 = vmul.f32 %v1627_v12, %v299_v17  ;;  %v1835_v35 = vadd.s32 %v1605_v5, %v502_v7  ;;  %v306_v23 = vld [vmem:[%s1617_s12 + $0xe8] sm:$0xff] }
  0x2a   : > { %v1837_v19 = vpack.c.bf16 %v452_v13, %v451_v11  ;;  %v455_v21 = vmax.f32 %v407_v29, 0.0  ;;  %v506_v36 = vadd.s32 168, %v1598_v3  ;;  %v1844_v37 = vadd.s32 %v1605_v5, %v503_v22  ;;  %v305_v11 = vld [vmem:[%s1617_s12 + $0xe0] sm:$0xff] }
  0x2b   : > { %v456_v39 = vmax.f32 %v408_v31, 0.0  ;;  %v355_v42 = vmul.f32 %v1627_v12, %v300_v30  ;;  %v409_v43 = vadd.f32 %v1634_v15, %v354_v33  ;;  %v1852_v45 = vadd.s32 %v1605_v5, %v504_v28  ;;  %v307_v28 = vld [vmem:[%s1617_s12 + $0xf0] sm:$0xff]  ;;  %v308_v33 = vld [vmem:[%s1617_s12 + $0xf8] sm:$0xff] }
  0x2c   : > { %v507_v46 = vadd.s32 176, %v1598_v3  ;;  %v356_v47 = vmul.f32 %v1627_v12, %v301_v34  ;;  %vm596_vm3 = vcmp.lt.s32.totalorder %v1792_v6, 512  ;;  %vm597_vm4 = vcmp.lt.s32.totalorder %v1802_v18, 512 }
  0x2d   : > { %v1860_v38 = vpack.c.bf16 %v454_v9, %v453_v27  ;;  %v1863_v49 = vadd.s32 %v1605_v5, %v505_v32  ;;  %v410_v50 = vadd.f32 %v1634_v15, %v355_v42  ;;  %v457_v51 = vmax.f32 %v409_v43, 0.0 }
  0x2e   : > { %1462 = vmatmul.mubr.msk.bf16.gmra.mrb[4].mxu0 %vm1813_vm1, %v1723_v26  ;;  %v508_v26 = vadd.s32 184, %v1598_v3  ;;  %vm598_vm5 = vcmp.lt.s32.totalorder %v1805_v20, 512  ;;  %vm599_vm6 = vcmp.lt.s32.totalorder %v1835_v35, 512  ;;  %v1869_v52 = vadd.s32 %v1605_v5, %v506_v36  ;;  %v309_v36 = vld [vmem:[%s1617_s12 + $0x100] sm:$0xff] }
  0x2f   : > { %1465 = vmatprep.mubr.msk.bf16.mxu0 %vm1826_vm2, %v1348_v57  ;;  %v1871_v55 = vpack.c.bf16 %v456_v39, %v455_v21  ;;  %v357_v56 = vmul.f32 %v1627_v12, %v302_v44  ;;  %v411_v57 = vadd.f32 %v1634_v15, %v356_v47  ;;  %v458_v60 = vmax.f32 %v410_v50, 0.0 }
  0x30   : > { %v509_v61 = vadd.s32 192, %v1598_v3  ;;  %v510_v62 = vadd.s32 200, %v1598_v3  ;;  %v358_v0 = vmul.f32 %v1627_v12, %v303_v48  ;;  %v1888_v2 = vadd.s32 %v1605_v5, %v507_v46 }
  0x31   : > { %v1891_v4 = vadd.s32 %v1605_v5, %v508_v26  ;;  %v412_v7 = vadd.f32 %v1634_v15, %v357_v56  ;;  %v459_v10 = vmax.f32 %v411_v57, 0.0  ;;  %v1903_v41 = vpack.c.bf16 %v458_v60, %v457_v51  ;;  %v310_v51 = vld [vmem:[%s1617_s12 + $0x108] sm:$0xff] }
  0x32   : > { %v558_v13 = vadd.s32 %v1605_v5, %v509_v61  ;;  %v559_v14 = vadd.s32 %v1605_v5, %v510_v62  ;;  %v359_v16 = vmul.f32 %v1627_v12, %v304_v58  ;;  %v413_v22 = vadd.f32 %v1634_v15, %v358_v0  ;;  %v311_v61 = vld [vmem:[%s1617_s12 + $0x110] sm:$0xff] }
  0x33   : > { %v460_v17 = vmax.f32 %v412_v7, 0.0  ;;  %v511_v53 = vadd.s32 208, %v1598_v3  ;;  %v512_v54 = vadd.s32 216, %v1598_v3  ;;  %v360_v27 = vmul.f32 %v1627_v12, %v305_v11  ;;  %v312_v7 = vld [vmem:[%s1617_s12 + $0x118] sm:$0xff] }
  0x34   : > { %vm606_vm9 = vcmp.lt.s32.totalorder %v558_v13, 512  ;;  %vm607_vm10 = vcmp.lt.s32.totalorder %v559_v14, 512  ;;  %v414_v24 = vadd.f32 %v1634_v15, %v359_v16  ;;  %vm600_vm11 = vcmp.lt.s32.totalorder %v1844_v37, 512  ;;  %v313_v16 = vld [vmem:[%s1617_s12 + $0x120] sm:$0xff] }
  0x35   : > { %vm601_vm12 = vcmp.lt.s32.totalorder %v1852_v45, 512  ;;  %vm1371_vm13 = vmpackc.low %vm607_vm10, %vm606_vm9  ;;  %v1372_v29 = vpack.c.bf16 %v460_v17, %v459_v10  ;;  %v560_v30 = vadd.s32 %v1605_v5, %v511_v53  ;;  %v561_v8 = vadd.s32 %v1605_v5, %v512_v54 }
  0x36   : > { %1466 = vmatmul.mubr.msk.bf16.gmra.mrb[8].mxu0 %vm1883_vm7, %v1783_v63  ;;  %v461_v63 = vmax.f32 %v413_v22, 0.0  ;;  %vm602_vm14 = vcmp.lt.s32.totalorder %v1863_v49, 512  ;;  %vm603_vm15 = vcmp.lt.s32.totalorder %v1869_v52, 512  ;;  %v462_v9 = vmax.f32 %v414_v24, 0.0  ;;  %vm1940_vm7 = vmpackc.low %vm597_vm4, %vm596_vm3 }
  0x37   : > { %1469 = vmatprep.mubr.msk.bf16.mxu0 %vm1899_vm8, %v1789_v59  ;;  %v361_v31 = vmul.f32 %v1627_v12, %v306_v23  ;;  %v415_v59 = vadd.f32 %v1634_v15, %v360_v27  ;;  %v513_v32 = vadd.s32 224, %v1598_v3  ;;  %1481 = vmatprep.mubr.msk.bf16.mxu1 %vm1371_vm13, %v1372_v29  ;;  %vm608_vm0 = vcmp.lt.s32.totalorder %v560_v30, 512  ;;  %vm1953_vm8 = vmpackc.low %vm599_vm6, %vm598_vm5 }
  0x38   : > { %vm609_vm1 = vcmp.lt.s32.totalorder %v561_v8, 512  ;;  %v514_v34 = vadd.s32 232, %v1598_v3  ;;  %v362_v21 = vmul.f32 %v1627_v12, %v307_v28  ;;  %v1375_v39 = vpack.c.bf16 %v462_v9, %v461_v63  ;;  %v314_v63 = vld [vmem:[%s1617_s12 + $0x128] sm:$0xff]  ;;  %v315_v8 = vld [vmem:[%s1617_s12 + $0x130] sm:$0xff] }
  0x39   : > { %vm1374_vm2 = vmpackc.low %vm609_vm1, %vm608_vm0  ;;  %v416_v42 = vadd.f32 %v1634_v15, %v361_v31  ;;  %v463_v43 = vmax.f32 %v415_v59, 0.0  ;;  %v562_v44 = vadd.s32 %v1605_v5, %v513_v32  ;;  %v363_v47 = vmul.f32 %v1627_v12, %v308_v33 }
  0x3a   : > { %v563_v26 = vadd.s32 %v1605_v5, %v514_v34  ;;  %v417_v48 = vadd.f32 %v1634_v15, %v362_v21  ;;  %v515_v50 = vadd.s32 240, %v1598_v3  ;;  %1482 = vmatmul.mubr.msk.bf16.vlgmr.msra.gmra.mrb[0].mxu1 %vm1374_vm2, %v1375_v39  ;;  %v516_v56 = vadd.s32 248, %v1598_v3  ;;  %vm1990_vm1 = vmpackc.low %vm601_vm12, %vm600_vm11  ;;  %v316_v21 = vld [vmem:[%s1617_s12 + $0x138] sm:$0xff] }
  0x3b   : > { %v464_v18 = vmax.f32 %v416_v42, 0.0  ;;  %vm610_vm3 = vcmp.lt.s32.totalorder %v562_v44, 512  ;;  %v364_v57 = vmul.f32 %v1627_v12, %v309_v36  ;;  %v418_v58 = vadd.f32 %v1634_v15, %v363_v47  ;;  %vm2002_vm2 = vmpackc.low %vm603_vm15, %vm602_vm14  ;;  %v317_v42 = vld [vmem:[%s1617_s12 + $0x140] sm:$0xff] }
  0x3c   : > { %vm611_vm4 = vcmp.lt.s32.totalorder %v563_v26, 512  ;;  %v465_v60 = vmax.f32 %v417_v48, 0.0  ;;  %v564_v20 = vadd.s32 %v1605_v5, %v515_v50  ;;  %v565_v62 = vadd.s32 %v1605_v5, %v516_v56 }
  0x3d   : > { %vm1377_vm5 = vmpackc.low %vm611_vm4, %vm610_vm3  ;;  %v1378_v35 = vpack.c.bf16 %v464_v18, %v463_v43  ;;  %v365_v0 = vmul.f32 %v1627_v12, %v310_v51  ;;  %v419_v1 = vadd.f32 %v1634_v15, %v364_v57  ;;  %vm604_vm6 = vcmp.lt.s32.totalorder %v1888_v2, 512  ;;  %v318_v51 = vld [vmem:[%s1617_s12 + $0x148] sm:$0xff] }
  0x3e   : > { %1470 = vmatmul.mubr.msk.bf16.gmra.mrb[12].mxu0 %vm1940_vm7, %v1817_v25  ;;  %vm605_vm9 = vcmp.lt.s32.totalorder %v1891_v4, 512  ;;  %v466_v10 = vmax.f32 %v418_v58, 0.0  ;;  %vm612_vm10 = vcmp.lt.s32.totalorder %v564_v20, 512  ;;  %v517_v25 = vadd.s32 256, %v1598_v3 }
  0x3f   : > { %1473 = vmatprep.mubr.msk.bf16.mxu0 %vm1953_vm8, %v1837_v19  ;;  %v518_v11 = vadd.s32 264, %v1598_v3  ;;  %1485 = vmatprep.mubr.msk.bf16.mxu1 %vm1377_vm5, %v1378_v35  ;;  %vm613_vm13 = vcmp.lt.s32.totalorder %v565_v62, 512  ;;  %v420_v40 = vadd.f32 %v1634_v15, %v365_v0  ;;  %v467_v13 = vmax.f32 %v419_v1, 0.0  ;;  %vm2044_vm4 = vmpackc.low %vm605_vm9, %vm604_vm6  ;;  %v320_v0 = vld [vmem:[%s1617_s12 + $0x158] sm:$0xff] }
  0x40   : > { %v366_v14 = vmul.f32 %v1627_v12, %v311_v61  ;;  %vm1979_vm0 = vmpackc.low %vm613_vm13, %vm612_vm10  ;;  %v1381_v17 = vpack.c.bf16 %v466_v10, %v465_v60  ;;  %v566_v22 = vadd.s32 %v1605_v5, %v517_v25  ;;  %v367_v54 = vmul.f32 %v1627_v12, %v312_v7  ;;  %v319_v61 = vld [vmem:[%s1617_s12 + $0x150] sm:$0xff] }
  0x41   : > { %v567_v53 = vadd.s32 %v1605_v5, %v518_v11  ;;  %v468_v24 = vmax.f32 %v420_v40, 0.0  ;;  %v519_v28 = vadd.s32 272, %v1598_v3  ;;  %v520_v29 = vadd.s32 280, %v1598_v3 }
  0x42   : > { %v421_v27 = vadd.f32 %v1634_v15, %v366_v14  ;;  %vm614_vm11 = vcmp.lt.s32.totalorder %v566_v22, 512  ;;  %v422_v45 = vadd.f32 %v1634_v15, %v367_v54  ;;  %v368_v30 = vmul.f32 %v1627_v12, %v313_v16  ;;  %1486 = vmatmul.mubr.msk.bf16.gmra.mrb[4].mxu1 %vm1979_vm0, %v1381_v17 }
  0x43   : > { %vm615_vm12 = vcmp.lt.s32.totalorder %v567_v53, 512  ;;  %v1384_v49 = vpack.c.bf16 %v468_v24, %v467_v13  ;;  %v568_v52 = vadd.s32 %v1605_v5, %v519_v28  ;;  %v569_v31 = vadd.s32 %v1605_v5, %v520_v29  ;;  %v321_v13 = vld [vmem:[%s1617_s12 + $0x160] sm:$0xff]  ;;  %v322_v24 = vld [vmem:[%s1617_s12 + $0x168] sm:$0xff] }
  0x44   : > { %vm1383_vm7 = vmpackc.low %vm615_vm12, %vm614_vm11  ;;  %v469_v9 = vmax.f32 %v421_v27, 0.0  ;;  %v470_v59 = vmax.f32 %v422_v45, 0.0  ;;  %v369_v32 = vmul.f32 %v1627_v12, %v314_v63  ;;  %v423_v33 = vadd.f32 %v1634_v15, %v368_v30  ;;  %v323_v63 = vld [vmem:[%s1617_s12 + $0x170] sm:$0xff] }
  0x45   : > { %v521_v34 = vadd.s32 288, %v1598_v3  ;;  %1489 = vmatprep.mubr.msk.bf16.mxu1 %vm1383_vm7, %v1384_v49  ;;  %vm616_vm14 = vcmp.lt.s32.totalorder %v568_v52, 512  ;;  %vm617_vm15 = vcmp.lt.s32.totalorder %v569_v31, 512  ;;  %v522_v36 = vadd.s32 296, %v1598_v3  ;;  %v324_v49 = vld [vmem:[%s1617_s12 + $0x178] sm:$0xff]  ;;  %s275_s12 = scalar_lea.vmem %s2252_s6, %s1323_s25 }
  0x46   : > { %1474 = vmatmul.mubr.msk.bf16.gmra.mrb[16].mxu0 %vm1990_vm1, %v1860_v38  ;;  %v370_v39 = vmul.f32 %v1627_v12, %v315_v8  ;;  %v1387_v43 = vpack.c.bf16 %v470_v59, %v469_v9  ;;  %v424_v44 = vadd.f32 %v1634_v15, %v369_v32  ;;  %v471_v46 = vmax.f32 %v423_v33, 0.0  ;;  %vm2034_vm8 = vmpackc.low %vm617_vm15, %vm616_vm14 }
  0x47   : > { %1477 = vmatprep.mubr.msk.bf16.mxu0 %vm2002_vm2, %v1871_v55  ;;  %v570_v26 = vadd.s32 %v1605_v5, %v521_v34  ;;  %v571_v38 = vadd.s32 %v1605_v5, %v522_v36  ;;  %v371_v47 = vmul.f32 %v1627_v12, %v316_v21  ;;  %v523_v50 = vadd.s32 304, %v1598_v3 }
  0x48   : > { %v425_v48 = vadd.f32 %v1634_v15, %v370_v39  ;;  %v472_v55 = vmax.f32 %v424_v44, 0.0  ;;  %v524_v18 = vadd.s32 312, %v1598_v3  ;;  %v372_v56 = vmul.f32 %v1627_v12, %v317_v42 }
  0x49   : > { %vm618_vm3 = vcmp.lt.s32.totalorder %v570_v26, 512  ;;  %vm619_vm5 = vcmp.lt.s32.totalorder %v571_v38, 512  ;;  %v426_v58 = vadd.f32 %v1634_v15, %v371_v47  ;;  %v572_v20 = vadd.s32 %v1605_v5, %v523_v50 }
  0x4a   : > { %v473_v60 = vmax.f32 %v425_v48, 0.0  ;;  %vm1389_vm10 = vmpackc.low %vm619_vm5, %vm618_vm3  ;;  %v1390_v35 = vpack.c.bf16 %v472_v55, %v471_v46  ;;  %v573_v62 = vadd.s32 %v1605_v5, %v524_v18  ;;  %v373_v2 = vmul.f32 %v1627_v12, %v318_v51  ;;  %1490 = vmatmul.mubr.msk.bf16.gmra.mrb[8].mxu1 %vm2034_vm8, %v1387_v43 }
  0x4b   : > { %v427_v4 = vadd.f32 %v1634_v15, %v372_v56  ;;  %v474_v1 = vmax.f32 %v426_v58, 0.0  ;;  %vm620_vm6 = vcmp.lt.s32.totalorder %v572_v20, 512  ;;  %v525_v7 = vadd.s32 320, %v1598_v3 }
  0x4c   : > { %v526_v10 = vadd.s32 328, %v1598_v3  ;;  %1493 = vmatprep.mubr.msk.bf16.mxu1 %vm1389_vm10, %v1390_v35  ;;  %vm621_vm9 = vcmp.lt.s32.totalorder %v573_v62, 512  ;;  %v428_v25 = vadd.f32 %v1634_v15, %v373_v2  ;;  %v374_v40 = vmul.f32 %v1627_v12, %v319_v61 }
  0x4d   : > { %v475_v11 = vmax.f32 %v427_v4, 0.0  ;;  %v1393_v14 = vpack.c.bf16 %v474_v1, %v473_v60  ;;  %v574_v16 = vadd.s32 %v1605_v5, %v525_v7  ;;  %v375_v17 = vmul.f32 %v1627_v12, %v320_v0  ;;  %vm1392_vm1 = vmpackc.low %vm621_vm9, %vm620_vm6 }
  0x4e   : > { %1478 = vmatmul.mubr.msk.bf16.gmra.mrb[20].mxu0 %vm2044_vm4, %v1903_v41  ;;  %v575_v19 = vadd.s32 %v1605_v5, %v526_v10  ;;  %v476_v22 = vmax.f32 %v428_v25, 0.0  ;;  %v429_v53 = vadd.f32 %v1634_v15, %v374_v40  ;;  %v527_v54 = vadd.s32 336, %v1598_v3 }
  0x4f   : > { %v528_v23 = vadd.s32 344, %v1598_v3  ;;  %vm622_vm13 = vcmp.lt.s32.totalorder %v574_v16, 512  ;;  %v430_v41 = vadd.f32 %v1634_v15, %v375_v17  ;;  %v376_v27 = vmul.f32 %v1627_v12, %v321_v13 }
  0x50   : > { %vm623_vm0 = vcmp.lt.s32.totalorder %v575_v19, 512  ;;  %v1396_v28 = vpack.c.bf16 %v476_v22, %v475_v11  ;;  %v576_v29 = vadd.s32 %v1605_v5, %v527_v54  ;;  %v377_v45 = vmul.f32 %v1627_v12, %v322_v24 }
  0x51   : > { %vm1395_vm2 = vmpackc.low %vm623_vm0, %vm622_vm13  ;;  %v577_v37 = vadd.s32 %v1605_v5, %v528_v23  ;;  %v431_v30 = vadd.f32 %v1634_v15, %v376_v27  ;;  %v529_v8 = vadd.s32 352, %v1598_v3  ;;  %v477_v9 = vmax.f32 %v429_v53, 0.0 }
  0x52   : > { %v530_v52 = vadd.s32 360, %v1598_v3  ;;  %1494 = vmatmul.mubr.msk.bf16.gmra.mrb[12].mxu1 %vm1392_vm1, %v1393_v14  ;;  %v478_v31 = vmax.f32 %v430_v41, 0.0  ;;  %v432_v59 = vadd.f32 %v1634_v15, %v377_v45  ;;  %v378_v33 = vmul.f32 %v1627_v12, %v323_v63 }
  0x53   : > { %v578_v32 = vadd.s32 %v1605_v5, %v529_v8  ;;  %1497 = vmatprep.mubr.msk.bf16.mxu1 %vm1395_vm2, %v1396_v28  ;;  %vm624_vm11 = vcmp.lt.s32.totalorder %v576_v29, 512  ;;  %v479_v34 = vmax.f32 %v431_v30, 0.0  ;;  %v379_v36 = vmul.f32 %v1627_v12, %v324_v49 }
  0x54   : > { %v579_v21 = vadd.s32 %v1605_v5, %v530_v52  ;;  %vm625_vm12 = vcmp.lt.s32.totalorder %v577_v37, 512  ;;  %v480_v39 = vmax.f32 %v432_v59, 0.0  ;;  %v531_v42 = vadd.s32 368, %v1598_v3 }
  0x55   : > { %v532_v43 = vadd.s32 376, %v1598_v3  ;;  %vm626_vm7 = vcmp.lt.s32.totalorder %v578_v32, 512  ;;  %v1399_v44 = vpack.c.bf16 %v478_v31, %v477_v9  ;;  %v433_v46 = vadd.f32 %v1634_v15, %v378_v33  ;;  %vm1398_vm15 = vmpackc.low %vm625_vm12, %vm624_vm11 }
  0x56   : > { %vm627_vm14 = vcmp.lt.s32.totalorder %v579_v21, 512  ;;  %v434_v26 = vadd.f32 %v1634_v15, %v379_v36  ;;  %v1402_v38 = vpack.c.bf16 %v480_v39, %v479_v34  ;;  %v580_v47 = vadd.s32 %v1605_v5, %v531_v42 }
  0x57   : > { %vm1401_vm8 = vmpackc.low %vm627_vm14, %vm626_vm7  ;;  %v581_v12 = vadd.s32 %v1605_v5, %v532_v43  ;;  %v481_v48 = vmax.f32 %v433_v46, 0.0  ;;  %vm1039_vm10 = vcmp.eq.s32.totalorder %v1598_v3, 0 }
  0x58   : > { %v482_v50 = vmax.f32 %v434_v26, 0.0  ;;  %vm628_vm3 = vcmp.lt.s32.totalorder %v580_v47, 512 }
  0x59   : > { %vm629_vm4 = vcmp.lt.s32.totalorder %v581_v12, 512 }
  0x5a   : > { %1498 = vmatmul.mubr.msk.bf16.gmra.mrb[16].mxu1 %vm1398_vm15, %v1399_v44  ;;  %v1405_v51 = vpack.c.bf16 %v482_v50, %v481_v48  ;;  %vm1404_vm5 = vmpackc.low %vm629_vm4, %vm628_vm3 }
  0x5b   : > { %1501 = vmatprep.mubr.msk.bf16.mxu1 %vm1401_vm8, %v1402_v38 }
  0x62   : > { %1502 = vmatmul.mubr.msk.bf16.gmra.mrb[20].mxu1 %vm1404_vm5, %v1405_v51 }
  0xf9   : > { %v1459_v5 = vpop.f32.mrb[0].mxu0 }
  0xfa   : > { %993 = vst [vmem:[%s2100_s30 + $0x10] sm:$0xff] %v1459_v5  ;;  %v800_v15 = vpop.f32.mrb[1].mxu0  ;;  %v1097_v58 = vmul.f32 %v1459_v5, %v1459_v5 }
  0xfb   : > { %991 = vst [vmem:[%s2100_s30] sm:$0xff] %v800_v15  ;;  %v1460_v6 = vpop.f32.mrb[2].mxu0  ;;  %v1095_v18 = vmul.f32 %v800_v15, %v800_v15 }
  0xfc   : > { %994 = vst [vmem:[%s2100_s30 + $0x18] sm:$0xff] %v1460_v6  ;;  %v803_v55 = vpop.f32.mrb[3].mxu0  ;;  %v1098_v61 = vmul.f32 %v1460_v6, %v1460_v6 }
  0xfd   : > { %992 = vst [vmem:[%s2100_s30 + $0x8] sm:$0xff] %v803_v55  ;;  %v1040_v56 = vadd.f32 %v803_v55, %v800_v15  ;;  %v1096_v57 = vmul.f32 %v803_v55, %v803_v55 }
  0xff   : > { %v1041_v60 = vadd.f32 %v1459_v5, %v1040_v56  ;;  %v1143_v20 = vadd.f32 %v1096_v57, %v1095_v18 }
 0x101   : > { %v1144_v35 = vadd.f32 %v1143_v20, %v1097_v58  ;;  %v1463_v62 = vpop.f32.mrb[4].mxu0  ;;  %v1042_v2 = vadd.f32 %v1460_v6, %v1041_v60 }
 0x102   : > { %997 = vst [vmem:[%s2100_s30 + $0x30] sm:$0xff] %v1463_v62  ;;  %v816_v4 = vpop.f32.mrb[5].mxu0  ;;  %v1101_v14 = vmul.f32 %v1463_v62, %v1463_v62 }
 0x103   : > { %995 = vst [vmem:[%s2100_s30 + $0x20] sm:$0xff] %v816_v4  ;;  %v1043_v0 = vadd.f32 %v1042_v2, %v816_v4  ;;  %v1099_v1 = vmul.f32 %v816_v4, %v816_v4  ;;  %v1145_v7 = vadd.f32 %v1144_v35, %v1098_v61  ;;  %v1464_v10 = vpop.f32.mrb[6].mxu0 }
 0x104   : > { %998 = vst [vmem:[%s2100_s30 + $0x38] sm:$0xff] %v1464_v10  ;;  %v819_v25 = vpop.f32.mrb[7].mxu0  ;;  %v1102_v17 = vmul.f32 %v1464_v10, %v1464_v10 }
 0x105   : > { %v1146_v11 = vadd.f32 %v1145_v7, %v1099_v1  ;;  %996 = vst [vmem:[%s2100_s30 + $0x28] sm:$0xff] %v819_v25  ;;  %v1044_v40 = vadd.f32 %v1043_v0, %v819_v25  ;;  %v1100_v13 = vmul.f32 %v819_v25, %v819_v25 }
 0x107   : > { %v1045_v16 = vadd.f32 %v1463_v62, %v1044_v40  ;;  %v1147_v19 = vadd.f32 %v1146_v11, %v1100_v13 }
 0x109   : > { %v1148_v22 = vadd.f32 %v1147_v19, %v1101_v14  ;;  %v1467_v53 = vpop.f32.mrb[8].mxu0  ;;  %v1046_v54 = vadd.f32 %v1464_v10, %v1045_v16 }
 0x10a   : > { %1001 = vst [vmem:[%s2100_s30 + $0x50] sm:$0xff] %v1467_v53  ;;  %v832_v23 = vpop.f32.mrb[9].mxu0  ;;  %v1105_v30 = vmul.f32 %v1467_v53, %v1467_v53 }
 0x10b   : > { %999 = vst [vmem:[%s2100_s30 + $0x40] sm:$0xff] %v832_v23  ;;  %v1047_v24 = vadd.f32 %v1046_v54, %v832_v23  ;;  %v1103_v41 = vmul.f32 %v832_v23, %v832_v23  ;;  %v1149_v27 = vadd.f32 %v1148_v22, %v1102_v17  ;;  %v1468_v28 = vpop.f32.mrb[10].mxu0 }
 0x10c   : > { %1002 = vst [vmem:[%s2100_s30 + $0x58] sm:$0xff] %v1468_v28  ;;  %v835_v29 = vpop.f32.mrb[11].mxu0  ;;  %v1106_v31 = vmul.f32 %v1468_v28, %v1468_v28 }
 0x10d   : > { %v1150_v63 = vadd.f32 %v1149_v27, %v1103_v41  ;;  %1000 = vst [vmem:[%s2100_s30 + $0x48] sm:$0xff] %v835_v29  ;;  %v1048_v37 = vadd.f32 %v1047_v24, %v835_v29  ;;  %v1104_v45 = vmul.f32 %v835_v29, %v835_v29  ;;  %v2114_v9 = vpop.f32.mrb[0].mxu1 }
 0x10e   : > { %1017 = vst [vmem:[%s2100_s30 + $0xd0] sm:$0xff] %v2114_v9  ;;  %v2118_v52 = vpop.f32.mrb[1].mxu1 }
 0x10f   : > { %v1049_v8 = vadd.f32 %v1467_v53, %v1048_v37  ;;  %v1151_v49 = vadd.f32 %v1150_v63, %v1104_v45  ;;  %1015 = vst [vmem:[%s2100_s30 + $0xc0] sm:$0xff] %v2118_v52  ;;  %v2122_v34 = vpop.f32.mrb[2].mxu1 }
 0x110   : > { %1018 = vst [vmem:[%s2100_s30 + $0xd8] sm:$0xff] %v2122_v34  ;;  %v2127_v36 = vpop.f32.mrb[3].mxu1 }
 0x111   : > { %v1152_v59 = vadd.f32 %v1151_v49, %v1105_v30  ;;  %v1471_v32 = vpop.f32.mrb[12].mxu0  ;;  %v1050_v33 = vadd.f32 %v1468_v28, %v1049_v8  ;;  %1016 = vst [vmem:[%s2100_s30 + $0xc8] sm:$0xff] %v2127_v36 }
 0x112   : > { %1005 = vst [vmem:[%s2100_s30 + $0x70] sm:$0xff] %v1471_v32  ;;  %v848_v21 = vpop.f32.mrb[13].mxu0  ;;  %v1109_v12 = vmul.f32 %v1471_v32, %v1471_v32 }
 0x113   : > { %1003 = vst [vmem:[%s2100_s30 + $0x60] sm:$0xff] %v848_v21  ;;  %v1051_v39 = vadd.f32 %v1050_v33, %v848_v21  ;;  %v1107_v42 = vmul.f32 %v848_v21, %v848_v21  ;;  %v1153_v43 = vadd.f32 %v1152_v59, %v1106_v31  ;;  %v1472_v44 = vpop.f32.mrb[14].mxu0 }
 0x114   : > { %1006 = vst [vmem:[%s2100_s30 + $0x78] sm:$0xff] %v1472_v44  ;;  %v851_v46 = vpop.f32.mrb[15].mxu0  ;;  %v1110_v15 = vmul.f32 %v1472_v44, %v1472_v44 }
 0x115   : > { %v1154_v26 = vadd.f32 %v1153_v43, %v1107_v42  ;;  %1004 = vst [vmem:[%s2100_s30 + $0x68] sm:$0xff] %v851_v46  ;;  %v1052_v38 = vadd.f32 %v1051_v39, %v851_v46  ;;  %v1108_v47 = vmul.f32 %v851_v46, %v851_v46  ;;  %v2134_v51 = vpop.f32.mrb[4].mxu1  ;;  %v1120_v46 = vmul.f32 %v2127_v36, %v2127_v36 }
 0x116   : > { %1021 = vst [vmem:[%s2100_s30 + $0xf0] sm:$0xff] %v2134_v51  ;;  %v2138_v5 = vpop.f32.mrb[5].mxu1 }
 0x117   : > { %v1053_v48 = vadd.f32 %v1471_v32, %v1052_v38  ;;  %v1155_v50 = vadd.f32 %v1154_v26, %v1108_v47  ;;  %1019 = vst [vmem:[%s2100_s30 + $0xe0] sm:$0xff] %v2138_v5  ;;  %v2142_v56 = vpop.f32.mrb[6].mxu1  ;;  %v1119_v32 = vmul.f32 %v2118_v52, %v2118_v52  ;;  %v1121_v26 = vmul.f32 %v2114_v9, %v2114_v9 }
 0x118   : > { %1022 = vst [vmem:[%s2100_s30 + $0xf8] sm:$0xff] %v2142_v56  ;;  %v2147_v58 = vpop.f32.mrb[7].mxu1 }
 0x119   : > { %v1156_v6 = vadd.f32 %v1155_v50, %v1109_v12  ;;  %v1475_v55 = vpop.f32.mrb[16].mxu0  ;;  %v1054_v18 = vadd.f32 %v1472_v44, %v1053_v48  ;;  %1020 = vst [vmem:[%s2100_s30 + $0xe8] sm:$0xff] %v2147_v58  ;;  %v1122_v48 = vmul.f32 %v2122_v34, %v2122_v34 }
 0x11a   : > { %1009 = vst [vmem:[%s2100_s30 + $0x90] sm:$0xff] %v1475_v55  ;;  %v864_v57 = vpop.f32.mrb[17].mxu0  ;;  %v1113_v1 = vmul.f32 %v1475_v55, %v1475_v55 }
 0x11b   : > { %1007 = vst [vmem:[%s2100_s30 + $0x80] sm:$0xff] %v864_v57  ;;  %v1055_v60 = vadd.f32 %v1054_v18, %v864_v57  ;;  %v1111_v20 = vmul.f32 %v864_v57, %v864_v57  ;;  %v1157_v61 = vadd.f32 %v1156_v6, %v1110_v15  ;;  %v1476_v35 = vpop.f32.mrb[18].mxu0 }
 0x11c   : > { %1010 = vst [vmem:[%s2100_s30 + $0x98] sm:$0xff] %v1476_v35  ;;  %v867_v62 = vpop.f32.mrb[19].mxu0  ;;  %v1114_v40 = vmul.f32 %v1476_v35, %v1476_v35 }
 0x11d   : > { %v1158_v2 = vadd.f32 %v1157_v61, %v1111_v20  ;;  %1008 = vst [vmem:[%s2100_s30 + $0x88] sm:$0xff] %v867_v62  ;;  %v1056_v4 = vadd.f32 %v1055_v60, %v867_v62  ;;  %v1112_v0 = vmul.f32 %v867_v62, %v867_v62  ;;  %v2154_v25 = vpop.f32.mrb[8].mxu1  ;;  %v1125_v20 = vmul.f32 %v2134_v51, %v2134_v51 }
 0x11e   : > { %1025 = vst [vmem:[%s2100_s30 + $0x110] sm:$0xff] %v2154_v25  ;;  %v2158_v11 = vpop.f32.mrb[9].mxu1 }
 0x11f   : > { %v1057_v7 = vadd.f32 %v1475_v55, %v1056_v4  ;;  %v1159_v10 = vadd.f32 %v1158_v2, %v1112_v0  ;;  %1023 = vst [vmem:[%s2100_s30 + $0x100] sm:$0xff] %v2158_v11  ;;  %v2162_v19 = vpop.f32.mrb[10].mxu1  ;;  %v1126_v2 = vmul.f32 %v2142_v56, %v2142_v56 }
 0x120   : > { %1026 = vst [vmem:[%s2100_s30 + $0x118] sm:$0xff] %v2162_v19  ;;  %v2167_v22 = vpop.f32.mrb[11].mxu1 }
 0x121   : > { %v1160_v13 = vadd.f32 %v1159_v10, %v1113_v1  ;;  %v1479_v14 = vpop.f32.mrb[20].mxu0  ;;  %v1058_v16 = vadd.f32 %v1476_v35, %v1057_v7  ;;  %1024 = vst [vmem:[%s2100_s30 + $0x108] sm:$0xff] %v2167_v22  ;;  %v1127_v1 = vmul.f32 %v2158_v11, %v2158_v11 }
 0x122   : > { %1013 = vst [vmem:[%s2100_s30 + $0xb0] sm:$0xff] %v1479_v14  ;;  %v880_v17 = vpop.f32.mrb[21].mxu0  ;;  %v1117_v63 = vmul.f32 %v1479_v14, %v1479_v14 }
 0x123   : > { %1011 = vst [vmem:[%s2100_s30 + $0xa0] sm:$0xff] %v880_v17  ;;  %v1059_v53 = vadd.f32 %v1058_v16, %v880_v17  ;;  %v1115_v54 = vmul.f32 %v880_v17, %v880_v17  ;;  %v1161_v23 = vadd.f32 %v1160_v13, %v1114_v40  ;;  %v1480_v24 = vpop.f32.mrb[22].mxu0 }
 0x124   : > { %1014 = vst [vmem:[%s2100_s30 + $0xb8] sm:$0xff] %v1480_v24  ;;  %v883_v41 = vpop.f32.mrb[23].mxu0  ;;  %v1118_v49 = vmul.f32 %v1480_v24, %v1480_v24 }
 0x125   : > { %v1162_v27 = vadd.f32 %v1161_v23, %v1115_v54  ;;  %1012 = vst [vmem:[%s2100_s30 + $0xa8] sm:$0xff] %v883_v41  ;;  %v1060_v28 = vadd.f32 %v1059_v53, %v883_v41  ;;  %v1116_v29 = vmul.f32 %v883_v41, %v883_v41  ;;  %v2174_v30 = vpop.f32.mrb[12].mxu1  ;;  %v1130_v53 = vmul.f32 %v2162_v19, %v2162_v19 }
 0x126   : > { %1029 = vst [vmem:[%s2100_s30 + $0x130] sm:$0xff] %v2174_v30  ;;  %v944_v8 = vpop.f32.mrb[13].mxu1 }
 0x127   : > { %v1061_v37 = vadd.f32 %v1479_v14, %v1060_v28  ;;  %v1163_v45 = vadd.f32 %v1162_v27, %v1116_v29  ;;  %1027 = vst [vmem:[%s2100_s30 + $0x120] sm:$0xff] %v944_v8  ;;  %v2181_v33 = vpop.f32.mrb[14].mxu1  ;;  %v1128_v14 = vmul.f32 %v2167_v22, %v2167_v22  ;;  %v1131_v23 = vmul.f32 %v944_v8, %v944_v8 }
 0x128   : > { %1030 = vst [vmem:[%s2100_s30 + $0x138] sm:$0xff] %v2181_v33  ;;  %v947_v21 = vpop.f32.mrb[15].mxu1 }
 0x129   : > { %v1164_v31 = vadd.f32 %v1163_v45, %v1117_v63  ;;  %v1062_v59 = vadd.f32 %v1480_v24, %v1061_v37  ;;  %1028 = vst [vmem:[%s2100_s30 + $0x128] sm:$0xff] %v947_v21  ;;  %v1132_v29 = vmul.f32 %v947_v21, %v947_v21 }
 0x12b   : > { %v1063_v39 = vadd.f32 %v1062_v59, %v2118_v52  ;;  %v1165_v42 = vadd.f32 %v1164_v31, %v1118_v49 }
 0x12d   : > { %v1166_v43 = vadd.f32 %v1165_v42, %v1119_v32  ;;  %v1064_v44 = vadd.f32 %v1063_v39, %v2127_v36  ;;  %v1499_v12 = vpop.f32.mrb[16].mxu1  ;;  %v1123_v36 = vmul.f32 %v2138_v5, %v2138_v5 }
 0x12e   : > { %1033 = vst [vmem:[%s2100_s30 + $0x150] sm:$0xff] %v1499_v12  ;;  %v960_v52 = vpop.f32.mrb[17].mxu1  ;;  %v1137_v42 = vmul.f32 %v1499_v12, %v1499_v12 }
 0x12f   : > { %v1065_v38 = vadd.f32 %v2114_v9, %v1064_v44  ;;  %v1167_v47 = vadd.f32 %v1166_v43, %v1120_v46  ;;  %1031 = vst [vmem:[%s2100_s30 + $0x140] sm:$0xff] %v960_v52  ;;  %v1500_v6 = vpop.f32.mrb[18].mxu1  ;;  %v1135_v31 = vmul.f32 %v960_v52, %v960_v52 }
 0x130   : > { %1034 = vst [vmem:[%s2100_s30 + $0x158] sm:$0xff] %v1500_v6  ;;  %v963_v55 = vpop.f32.mrb[19].mxu1  ;;  %v1138_v44 = vmul.f32 %v1500_v6, %v1500_v6 }
 0x131   : > { %v1168_v50 = vadd.f32 %v1167_v47, %v1121_v26  ;;  %v1066_v15 = vadd.f32 %v2122_v34, %v1065_v38  ;;  %1032 = vst [vmem:[%s2100_s30 + $0x148] sm:$0xff] %v963_v55  ;;  %v1124_v34 = vmul.f32 %v2147_v58, %v2147_v58  ;;  %v1136_v39 = vmul.f32 %v963_v55, %v963_v55 }
 0x133   : > { %v1067_v9 = vadd.f32 %v1066_v15, %v2138_v5  ;;  %v1169_v18 = vadd.f32 %v1168_v50, %v1122_v48 }
 0x135   : > { %v1170_v57 = vadd.f32 %v1169_v18, %v1123_v36  ;;  %v1068_v60 = vadd.f32 %v1067_v9, %v2147_v58  ;;  %v1503_v62 = vpop.f32.mrb[20].mxu1 }
 0x136   : > { %1037 = vst [vmem:[%s2100_s30 + $0x170] sm:$0xff] %v1503_v62  ;;  %v976_v5 = vpop.f32.mrb[21].mxu1  ;;  %v1141_v15 = vmul.f32 %v1503_v62, %v1503_v62 }
 0x137   : > { %v1069_v61 = vadd.f32 %v2134_v51, %v1068_v60  ;;  %v1171_v35 = vadd.f32 %v1170_v57, %v1124_v34  ;;  %1035 = vst [vmem:[%s2100_s30 + $0x160] sm:$0xff] %v976_v5  ;;  %v1504_v58 = vpop.f32.mrb[22].mxu1  ;;  %v1139_v26 = vmul.f32 %v976_v5, %v976_v5 }
 0x138   : > { %1038 = vst [vmem:[%s2100_s30 + $0x178] sm:$0xff] %v1504_v58  ;;  %v979_v7 = vpop.f32.mrb[23].mxu1  ;;  %v1142_v9 = vmul.f32 %v1504_v58, %v1504_v58 }
 0x139   : > { %v1172_v4 = vadd.f32 %v1171_v35, %v1125_v20  ;;  %v1070_v0 = vadd.f32 %v2142_v56, %v1069_v61  ;;  %1036 = vst [vmem:[%s2100_s30 + $0x168] sm:$0xff] %v979_v7  ;;  %v1129_v56 = vmul.f32 %v2154_v25, %v2154_v25 }
 0x13b   : > { %v1071_v10 = vadd.f32 %v1070_v0, %v2158_v11  ;;  %v1173_v51 = vadd.f32 %v1172_v4, %v1126_v2 }
 0x13d   : > { %v1174_v40 = vadd.f32 %v1173_v51, %v1127_v1  ;;  %v1072_v13 = vadd.f32 %v1071_v10, %v2167_v22  ;;  %v1133_v22 = vmul.f32 %v2174_v30, %v2174_v30 }
 0x13f   : > { %v1073_v16 = vadd.f32 %v2154_v25, %v1072_v13  ;;  %v1175_v17 = vadd.f32 %v1174_v40, %v1128_v14  ;;  %v1134_v25 = vmul.f32 %v2181_v33, %v2181_v33 }
 0x141   : > { %v1176_v54 = vadd.f32 %v1175_v17, %v1129_v56  ;;  %v1074_v11 = vadd.f32 %v2162_v19, %v1073_v16 }
 0x143   : > { %v1075_v24 = vadd.f32 %v1074_v11, %v944_v8  ;;  %v1177_v41 = vadd.f32 %v1176_v54, %v1130_v53 }
 0x145   : > { %v1178_v27 = vadd.f32 %v1177_v41, %v1131_v23  ;;  %v1076_v28 = vadd.f32 %v1075_v24, %v947_v21 }
 0x147   : > { %v1077_v63 = vadd.f32 %v2174_v30, %v1076_v28  ;;  %v1179_v37 = vadd.f32 %v1178_v27, %v1132_v29 }
 0x149   : > { %v1180_v45 = vadd.f32 %v1179_v37, %v1133_v22  ;;  %v1078_v49 = vadd.f32 %v2181_v33, %v1077_v63  ;;  %v1140_v33 = vmul.f32 %v979_v7, %v979_v7 }
 0x14b   : > { %v1079_v19 = vadd.f32 %v1078_v49, %v960_v52  ;;  %v1181_v59 = vadd.f32 %v1180_v45, %v1134_v25 }
 0x14d   : > { %v1182_v8 = vadd.f32 %v1181_v59, %v1135_v31  ;;  %v1080_v32 = vadd.f32 %v1079_v19, %v963_v55 }
 0x14f   : > { %v1081_v21 = vadd.f32 %v1499_v12, %v1080_v32  ;;  %v1183_v43 = vadd.f32 %v1182_v8, %v1136_v39 }
 0x151   : > { %v1184_v46 = vadd.f32 %v1183_v43, %v1137_v42  ;;  %v1082_v30 = vadd.f32 %v1500_v6, %v1081_v21 }
 0x153   : > { %v1083_v38 = vadd.f32 %v1082_v30, %v976_v5  ;;  %v1185_v47 = vadd.f32 %v1184_v46, %v1138_v44 }
 0x155   : > { %v1186_v48 = vadd.f32 %v1185_v47, %v1139_v26  ;;  %v1084_v50 = vadd.f32 %v1083_v38, %v979_v7 }
 0x157   : > { %v1085_v52 = vadd.f32 %v1503_v62, %v1084_v50  ;;  %v1187_v36 = vadd.f32 %v1186_v48, %v1140_v33 }
 0x159   : > { %v1086_v18 = vadd.f32 %v1504_v58, %v1085_v52  ;;  %v1188_v55 = vadd.f32 %v1187_v36, %v1141_v15 }
 0x15b   : > { %v1087_v12 = vrot.slane %v1086_v18, 4  ;;  %v1189_v57 = vadd.f32 %v1188_v55, %v1142_v9 }
 0x15d   : > { %v1088_v60 = vadd.f32 %v1087_v12, %v1086_v18  ;;  %v1190_v34 = vrot.slane %v1189_v57, 4 }
 0x15f   : > { %v1089_v6 = vrot.slane %v1088_v60, 2  ;;  %v1191_v20 = vadd.f32 %v1190_v34, %v1189_v57 }
 0x161   : > { %v1090_v61 = vadd.f32 %v1089_v6, %v1088_v60  ;;  %v1192_v35 = vrot.slane %v1191_v20, 2 }
 0x163   : > { %v1091_v5 = vrot.slane %v1090_v61, 1  ;;  %v1193_v2 = vadd.f32 %v1192_v35, %v1191_v20 }
 0x165   : > { %v1092_v62 = vadd.f32 %v1091_v5, %v1090_v61  ;;  %v1194_v4 = vrot.slane %v1193_v2, 1 }
 0x167   : > { %v1093_v0 = vsel %vm1039_vm10, %v1092_v62, 0.0  ;;  %v1195_v1 = vadd.f32 %v1194_v4, %v1193_v2 }
 0x168   : > { %1094 = vst [vmem:[%s271_s9] sm:$0xff] %v1093_v0 }
 0x169   : > { %v1196_v58 = vsel %vm1039_vm10, %v1195_v1, 0.0 }
 0x16a   : > { %1197 = vst [vmem:[%s275_s12] sm:$0xff] %v1196_v58 }
 0x16b PF: > { %s17_s21 = sadd.s32 1, %s1543_s21  }
 0x16c   : > { %p14_p5 = scmp.ge.s32.totalorder %s17_s21, 4  }
 0x16e   :  { %16 = sbr.rel (!%p14_p5) target bundleno = 1 (0x1), region = 90 }

// kernel: bottleneck_forward.5
= control target key start
LH: loop header
LB: loop body
LE: loop exit
PB: predicated region body
PF: predicated region fallthrough
CT: control target
= control target key end

     0   :  { %s7722_s21 = smov 0   ;;  %s9608_s0 = inlined_call_operand.vmem [shape: f32[2,16,16,128], index: 0, kind: input, shape index: {}]   ;;  %s9609_s1 = inlined_call_operand.vmem [shape: bf16[9,128,128], index: 1, kind: input, shape index: {}]   ;;  %s9610_s2 = inlined_call_operand.vmem [shape: f32[1,128], index: 2, kind: input, shape index: {}]   ;;  %s9611_s3 = inlined_call_operand.vmem [shape: f32[1,128], index: 3, kind: input, shape index: {}]   ;;  %s9612_s4 = inlined_call_operand.vmem [shape: f32[2,256,128], index: 4, kind: output, shape index: {0}]   ;;  %s9613_s5 = inlined_call_operand.vmem [shape: f32[16,128], index: 5, kind: output, shape index: {1}]   ;;  %s9614_s6 = inlined_call_operand.vmem [shape: f32[16,128], index: 6, kind: output, shape index: {2}]  }
   0x1 LB: > { %s6077_s22 = sadd.s32 4294967295, %s7684_s21   ;;  %p6081_p0 = scmp.ge.s32.totalorder %s7684_s21, 1  ;;  %s7684_s21 = sphi %s7722_s21, %s17_s21  }
   0x2   : > { %p217_p1 = scmp.lt.s32.totalorder %s7684_s21, 3 }
   0x4   : > { %p218_p2 = pnand %p6081_p0, %p217_p1 }
   0x6   : > { %221 = sbr.rel (%p218_p2) target bundleno = 706 (0x2c2), region = 36 }
   0xd   : > { %v7479_v0 = vld [vmem:[%s9609_s1 + $0x40] sm:$0xff]   ;;  %v7686_v2 = vmov 0   ;;  %v7481_v3 = vld [vmem:[%s9609_s1 + $0x48] sm:$0xff]   ;;  %v7483_v5 = vld [vmem:[%s9609_s1 + $0x50] sm:$0xff]   ;;  %p255_p3 = scmp.lt.s32.totalorder %s6077_s22, 1  ;;  %vm890_vm3 = vcmask 1043456  }
   0xe   : > { %v7480_v1 = vld [vmem:[%s9609_s1 + $0x100] sm:$0xff]   ;;  %432 = vst [vmem:[#allocation2] sm:$0xf] %v7686_v2  ;;  %433 = vst [vmem:[#allocation2 + $0x4] sm:$0xf] %v7686_v2  ;;  %6766 = vmatprep.subr.bf16.mxu1 %v7479_v0  ;;  %v7482_v4 = vld [vmem:[%s9609_s1 + $0x108] sm:$0xff]  }
   0xf   : > { %434 = vst [vmem:[#allocation2 + $0x8] sm:$0x1] %v7686_v2  ;;  %435 = vst [vmem:[#allocation2 + $0xc] sm:$0xf] %v7686_v2  ;;  %6958 = vmatprep.subr.bf16.mxu0 %v7480_v1  ;;  %6767 = vmatpush3.bf16.msra.mxu1 %v7479_v0  ;;  %v7484_v6 = vld [vmem:[%s9609_s1 + $0x110] sm:$0xff]   ;;  %v7485_v7 = vld [vmem:[%s9609_s1 + $0x58] sm:$0xff]  }
  0x10   : > { %436 = vst [vmem:[#allocation2 + $0x10] sm:$0xf] %v7686_v2  ;;  %437 = vst [vmem:[#allocation2 + $0x14] sm:$0x1] %v7686_v2  ;;  %6959 = vmatpush3.bf16.msra.mxu0 %v7480_v1  ;;  %6768 = vmatprep.subr.bf16.mxu1 %v7481_v3  ;;  %s9675_s22 = smov (!%p255_p3, %s6077_s22), 1  ;;  %v7486_v8 = vld [vmem:[%s9609_s1 + $0x118] sm:$0xff]  }
  0x11   : > { %438 = vst [vmem:[#allocation2 + $0x18] sm:$0xf] %v7686_v2  ;;  %439 = vst [vmem:[#allocation2 + $0x1c] sm:$0xf] %v7686_v2  ;;  %6960 = vmatprep.subr.bf16.mxu0 %v7482_v4  ;;  %v7487_v9 = vld [vmem:[%s9609_s1 + $0x60] sm:$0xff]   ;;  %s6516_s17 = sshll.u32 %s9675_s22, 8 }
  0x12   : > { %440 = vst [vmem:[#allocation2 + $0x20] sm:$0x1] %v7686_v2  ;;  %441 = vst [vmem:[#allocation2 + $0x24] sm:$0xf] %v7686_v2  ;;  %v7488_v10 = vld [vmem:[%s9609_s1 + $0x120] sm:$0xff]   ;;  %v7489_v11 = vld [vmem:[%s9609_s1 + $0x68] sm:$0xff]   ;;  %s7778_s28 = scalar_lea.vmem %s9608_s0, %s6516_s17  ;;  %s9559_s13 = scalar_lea.vmem %s9612_s4, %s6516_s17 }
  0x13   : > { %442 = vst [vmem:[#allocation2 + $0x28] sm:$0xf] %v7686_v2  ;;  %443 = vst [vmem:[#allocation2 + $0x2c] sm:$0x1] %v7686_v2  ;;  %6769 = vmatpush3.bf16.msra.mxu1 %v7481_v3  ;;  %v7490_v12 = vld [vmem:[%s9609_s1 + $0x128] sm:$0xff]   ;;  %v274_v21 = vld [vmem:[%s7778_s28] sm:$0xff] }
  0x14   : > { %444 = vst [vmem:[#allocation2 + $0x30] sm:$0xf] %v7686_v2  ;;  %445 = vst [vmem:[#allocation2 + $0x34] sm:$0xf] %v7686_v2  ;;  %6961 = vmatpush3.bf16.msra.mxu0 %v7482_v4  ;;  %6770 = vmatprep.subr.bf16.mxu1 %v7483_v5  ;;  %vm1071_vm0 = vsmask.f32 3328 }
  0x15   : > { %446 = vst [vmem:[#allocation2 + $0x38] sm:$0x1] %v7686_v2  ;;  %447 = vst [vmem:[#allocation2 + $0x3c] sm:$0xf] %v7686_v2  ;;  %6962 = vmatprep.subr.bf16.mxu0 %v7484_v6  ;;  %v1007_v13 = vld [vmem:[#allocation2] sm:$0xf] }
  0x16   : > { %448 = vst [vmem:[#allocation2 + $0x40] sm:$0xf] %v7686_v2  ;;  %449 = vst [vmem:[#allocation2 + $0x44] sm:$0x1] %v7686_v2  ;;  %v1008_v14 = vld [vmem:[#allocation2 + $0x4] sm:$0xf] }
  0x17   : > { %450 = vst [vmem:[#allocation2 + $0x48] sm:$0xf] %v7686_v2  ;;  %451 = vst [vmem:[#allocation2 + $0x4c] sm:$0xf] %v7686_v2  ;;  %6771 = vmatpush3.bf16.msra.mxu1 %v7483_v5  ;;  %v1055_v15 = vld [vmem:[#allocation2 + $0x8] sm:$0x1] }
  0x18   : > { %452 = vst [vmem:[#allocation2 + $0x50] sm:$0x1] %v7686_v2  ;;  %453 = vst [vmem:[#allocation2 + $0x54] sm:$0xf] %v7686_v2  ;;  %6963 = vmatpush3.bf16.msra.mxu0 %v7484_v6  ;;  %6772 = vmatprep.subr.bf16.mxu1 %v7485_v7  ;;  %vm1072_vm1 = vsmask.f32 7440 }
  0x19   : > { %454 = vst [vmem:[#allocation2 + $0x58] sm:$0xf] %v7686_v2  ;;  %455 = vst [vmem:[#allocation2 + $0x5c] sm:$0x1] %v7686_v2  ;;  %6964 = vmatprep.subr.bf16.mxu0 %v7486_v8  ;;  %v1075_v16 = vshrl.u32 %v1007_v13, 16  ;;  %v1078_v17 = vshll.u32 %v1007_v13, 16 }
  0x1a   : > { %456 = vst [vmem:[#allocation2 + $0x60] sm:$0xf] %v7686_v2  ;;  %457 = vst [vmem:[#allocation2 + $0x64] sm:$0xf] %v7686_v2  ;;  %v1084_v18 = vshll.u32 %v1008_v14, 16  ;;  %v1088_v19 = vshrl.u32 %v1008_v14, 16 }
  0x1b   : > { %458 = vst [vmem:[#allocation2 + $0x68] sm:$0x1] %v7686_v2  ;;  %459 = vst [vmem:[#allocation2 + $0x6c] sm:$0xf] %v7686_v2  ;;  %6773 = vmatpush3.bf16.msra.mxu1 %v7485_v7  ;;  %v1094_v20 = vshll.u32 %v1055_v15, 16  ;;  %v275_v22 = vld [vmem:[%s7778_s28 + $0x8] sm:$0xff] }
  0x1c   : > { %460 = vst [vmem:[#allocation2 + $0x70] sm:$0xf] %v7686_v2  ;;  %461 = vst [vmem:[#allocation2 + $0x74] sm:$0x1] %v7686_v2  ;;  %6965 = vmatpush3.bf16.msra.mxu0 %v7486_v8  ;;  %6774 = vmatprep.subr.bf16.mxu1 %v7487_v9  ;;  %v1077_v23 = vrot.slane %v1075_v16, 4  ;;  %v1080_v24 = vrot.slane %v1078_v17, 5 }
  0x1d   : > { %462 = vst [vmem:[#allocation2 + $0x78] sm:$0xf] %v7686_v2  ;;  %463 = vst [vmem:[#allocation2 + $0x7c] sm:$0xf] %v7686_v2  ;;  %6966 = vmatprep.subr.bf16.mxu0 %v7488_v10  ;;  %v7785_v25 = vld [vmem:[%s9610_s2] ss:$0 sm:$0xff] }
  0x1e   : > { %464 = vst [vmem:[#allocation2 + $0x80] sm:$0x1] %v7686_v2  ;;  %465 = vst [vmem:[#allocation2 + $0x84] sm:$0xf] %v7686_v2  ;;  %v7790_v26 = vld [vmem:[%s9611_s3] ss:$0 sm:$0xff]  ;;  %v313_v30 = vmul.f32 %v7785_v25, %v274_v21  ;;  %v1081_v32 = vor.u32 %v1080_v24, %v1077_v23  ;;  %v314_v33 = vmul.f32 %v7785_v25, %v275_v22 }
  0x1f   : > { %466 = vst [vmem:[#allocation2 + $0x88] sm:$0xf] %v7686_v2  ;;  %467 = vst [vmem:[#allocation2 + $0x8c] sm:$0x1] %v7686_v2  ;;  %6775 = vmatpush3.bf16.msra.mxu1 %v7487_v9  ;;  %v7491_v27 = vld [vmem:[%s9609_s1 + $0x70] sm:$0xff]   ;;  %v1086_v28 = vrot.slane %v1084_v18, 5 }
  0x20   : > { %468 = vst [vmem:[#allocation2 + $0x90] sm:$0xf] %v7686_v2  ;;  %469 = vst [vmem:[#allocation2 + $0x94] sm:$0xf] %v7686_v2  ;;  %6967 = vmatpush3.bf16.msra.mxu0 %v7488_v10  ;;  %6776 = vmatprep.subr.bf16.mxu1 %v7489_v11  ;;  %v1090_v29 = vrot.slane %v1088_v19, 4  ;;  %v7492_v31 = vld [vmem:[%s9609_s1 + $0x130] sm:$0xff]   ;;  %v352_v37 = vadd.f32 %v7790_v26, %v313_v30  ;;  %v353_v39 = vadd.f32 %v7790_v26, %v314_v33 }
  0x21   : > { %470 = vst [vmem:[#allocation2 + $0x98] sm:$0x1] %v7686_v2  ;;  %471 = vst [vmem:[#allocation2 + $0x9c] sm:$0xf] %v7686_v2  ;;  %6968 = vmatprep.subr.bf16.mxu0 %v7490_v12  ;;  %v1096_v36 = vrot.slane %v1094_v20, 5  ;;  %v1082_v38 = vrot.slane %v1081_v32, 4 }
  0x22   : > { %472 = vst [vmem:[#allocation2 + $0xa0] sm:$0xf] %v7686_v2  ;;  %473 = vst [vmem:[#allocation2 + $0xa4] sm:$0x1] %v7686_v2  ;;  %v1091_v35 = vor.u32 %v1090_v29, %v1086_v28  ;;  %v7493_v40 = vld [vmem:[%s9609_s1 + $0x78] sm:$0xff]   ;;  %v384_v42 = vmax.f32 %v352_v37, 0.0 }
  0x23   : > { %474 = vst [vmem:[#allocation2 + $0xa8] sm:$0xf] %v7686_v2  ;;  %475 = vst [vmem:[#allocation2 + $0xac] sm:$0xf] %v7686_v2  ;;  %6777 = vmatpush3.bf16.msra.mxu1 %v7489_v11  ;;  %vm897_vm4 = vcmask 1040384   ;;  %v276_v43 = vld [vmem:[%s7778_s28 + $0x10] sm:$0xff] }
  0x24   : > { %476 = vst [vmem:[#allocation2 + $0xb0] sm:$0x1] %v7686_v2  ;;  %477 = vst [vmem:[#allocation2 + $0xb4] sm:$0xf] %v7686_v2  ;;  %6969 = vmatpush3.bf16.msra.mxu0 %v7490_v12  ;;  %6778 = vmatprep.subr.bf16.mxu1 %v7491_v27  ;;  %v1092_v41 = vrot.slane %v1091_v35, 4  ;;  %v7494_v44 = vld [vmem:[%s9609_s1 + $0x138] sm:$0xff]   ;;  %v315_v48 = vmul.f32 %v7785_v25, %v276_v43  ;;  %v6518_v50 = vpack.c.bf16 %v384_v42, %v384_v42 }
  0x25   : > { %478 = vst [vmem:[#allocation2 + $0xb8] sm:$0xf] %v7686_v2  ;;  %479 = vst [vmem:[#allocation2 + $0xbc] sm:$0x1] %v7686_v2  ;;  %6970 = vmatprep.subr.bf16.mxu0 %v7492_v31  ;;  %v385_v46 = vmax.f32 %v353_v39, 0.0  ;;  %v277_v47 = vld [vmem:[%s7778_s28 + $0x18] sm:$0xff] }
  0x26   : > { %480 = vst [vmem:[#allocation2 + $0xc0] sm:$0xf] %v7686_v2  ;;  %481 = vst [vmem:[#allocation2 + $0xc4] sm:$0xf] %v7686_v2  ;;  %vm566_vm5 = vsmask.f32 256  ;;  %v316_v51 = vmul.f32 %v7785_v25, %v277_v47  ;;  %v354_v54 = vadd.f32 %v7790_v26, %v315_v48 }
  0x27   : > { %482 = vst [vmem:[#allocation2 + $0xc8] sm:$0x1] %v7686_v2  ;;  %483 = vst [vmem:[#allocation2 + $0xcc] sm:$0xf] %v7686_v2  ;;  %vm567_vm6 = vsmask.f32 4368  ;;  %6779 = vmatpush3.bf16.msra.mxu1 %v7491_v27  ;;  %v6519_v53 = vpack.c.bf16 %v385_v46, %v385_v46 }
  0x28   : > { %484 = vst [vmem:[#allocation2 + $0xd0] sm:$0xf] %v7686_v2  ;;  %485 = vst [vmem:[#allocation2 + $0xd4] sm:$0x1] %v7686_v2  ;;  %vm891_vm7 = vsmask.f32 7938  ;;  %6971 = vmatpush3.bf16.msra.mxu0 %v7492_v31  ;;  %6780 = vmatprep.subr.bf16.mxu1 %v7493_v40  ;;  %v355_v60 = vadd.f32 %v7790_v26, %v316_v51 }
  0x29   : > { %vm7802_vm2 = vmor %vm1071_vm0, %vm1072_vm1  ;;  %v278_v55 = vld [vmem:[%s7778_s28 + $0x20] sm:$0xff]  ;;  %v279_v56 = vld [vmem:[%s7778_s28 + $0x28] sm:$0xff]  ;;  %v570_v57 = vshrl.u32 %v6518_v50, 16  ;;  %v573_v58 = vshll.u32 %v6518_v50, 16  ;;  %6972 = vmatprep.subr.bf16.mxu0 %v7494_v44  ;;  %v578_v62 = vshrl.u32 %v6519_v53, 16  ;;  %v581_v63 = vshll.u32 %v6519_v53, 16 }
  0x2a   : > { %v1087_v45 = vsel %vm7802_vm2, %v1082_v38, %v1086_v28  ;;  %v1097_v49 = vsel %vm7802_vm2, %v1092_v41, %v1096_v36  ;;  %v7828_v59 = vld [vmem:[%s9609_s1] sm:$0xff]   ;;  %v317_v61 = vmul.f32 %v7785_v25, %v278_v55  ;;  %v386_v1 = vmax.f32 %v354_v54, 0.0  ;;  %vm7840_vm8 = vmor %vm566_vm5, %vm567_vm6  ;;  %v893_v9 = vld [vmem:[#allocation2 + $0xc] sm:$0xf]  ;;  %s6086_s17 = sshll.u32 %s9675_s22, 3 }
  0x2b   : > { %v6138_v52 = vcombine.low %v1087_v45, %v1097_v49  ;;  %v7835_v0 = vld [vmem:[%s9609_s1 + $0x140] sm:$0xff]   ;;  %v318_v2 = vmul.f32 %v7785_v25, %v279_v56  ;;  %v572_v4 = vrot.slane %v570_v57, 7  ;;  %v387_v5 = vmax.f32 %v355_v60, 0.0  ;;  %6781 = vmatpush3.bf16.msra.mxu1 %v7493_v40  ;;  %vm7847_vm9 = vmand %vm890_vm3, %vm891_vm7  ;;  %v899_v15 = vld [vmem:[#allocation2 + $0x14] sm:$0x1]  ;;  %s268_s15 = scalar_lea.vmem %s9613_s5, %s6086_s17  ;;  %s272_s19 = scalar_lea.vmem %s9614_s6, %s6086_s17 }
  0x2c   : > { %v356_v6 = vadd.f32 %v7790_v26, %v317_v61  ;;  %v580_v7 = vrot.slane %v578_v62, 7  ;;  %v6520_v10 = vpack.c.bf16 %v386_v1, %v386_v1  ;;  %6973 = vmatpush3.bf16.msra.mxu0 %v7494_v44  ;;  %vm7854_vm10 = vmand %vm897_vm4, %vm566_vm5  ;;  %6814 = vmatprep.subr.bf16.mxu1 %v7828_v59  ;;  %v280_v18 = vld [vmem:[%s7778_s28 + $0x30] sm:$0xff]  ;;  %v281_v23 = vld [vmem:[%s7778_s28 + $0x38] sm:$0xff]  ;;  %vm2101_vm11 = vcmask 1042432  }
  0x2d   : > { %6782 = vmatprep.mubr.bf16.mxu1 %v6138_v52  ;;  %v357_v11 = vadd.f32 %v7790_v26, %v318_v2  ;;  %v575_v12 = vor.u32 %v573_v58, %v572_v4  ;;  %v576_v13 = vrot.slane %v572_v4, 4  ;;  %v6521_v16 = vpack.c.bf16 %v387_v5, %v387_v5  ;;  %7006 = vmatprep.subr.bf16.mxu0 %v7835_v0  ;;  %v902_v33 = vld [vmem:[#allocation2 + $0x18] sm:$0xf]  ;;  %v906_v35 = vld [vmem:[#allocation2 + $0x20] sm:$0x1]  ;;  %v283_v55 = vld [vmem:[%s7778_s28 + $0x48] sm:$0xff] }
  0x2e   : > { %v388_v17 = vmax.f32 %v356_v6, 0.0  ;;  %v583_v19 = vor.u32 %v581_v63, %v580_v7  ;;  %v585_v20 = vrot.slane %v580_v7, 4  ;;  %v587_v21 = vshrl.u32 %v6520_v10, 16  ;;  %v282_v45 = vld [vmem:[%s7778_s28 + $0x40] sm:$0xff]  ;;  %v7539_v14 = vld [vmem:[%s9609_s1 + $0xa8] sm:$0xff]  }
  0x2f   : > { %v590_v22 = vshll.u32 %v6520_v10, 16  ;;  %v894_v24 = vsel %vm7847_vm9, %v575_v12, %v893_v9  ;;  %v595_v27 = vshrl.u32 %v6521_v16, 16  ;;  %v598_v28 = vshll.u32 %v6521_v16, 16  ;;  %v909_v52 = vld [vmem:[#allocation2 + $0x24] sm:$0xf] }
  0x30   : > { %v389_v29 = vmax.f32 %v357_v11, 0.0  ;;  %v584_v30 = vsel %vm7840_vm8, %v576_v13, %v583_v19  ;;  %895 = vst [vmem:[#allocation2 + $0xc] sm:$0xf] %v894_v24  ;;  %v900_v31 = vsel %vm7854_vm10, %v585_v20, %v899_v15  ;;  %v589_v32 = vrot.slane %v587_v21, 7 }
  0x31   : > { %v6522_v36 = vpack.c.bf16 %v388_v17, %v388_v17  ;;  %896 = vst [vmem:[#allocation2 + $0x10] sm:$0xf] %v584_v30  ;;  %901 = vst [vmem:[#allocation2 + $0x14] sm:$0x1] %v900_v31  ;;  %v597_v37 = vrot.slane %v595_v27, 7  ;;  %v319_v39 = vmul.f32 %v7785_v25, %v280_v18  ;;  %v320_v40 = vmul.f32 %v7785_v25, %v281_v23 }
  0x32   : > { %v6523_v38 = vpack.c.bf16 %v389_v29, %v389_v29  ;;  %v592_v41 = vor.u32 %v590_v22, %v589_v32  ;;  %v593_v42 = vrot.slane %v589_v32, 4  ;;  %v321_v60 = vmul.f32 %v7785_v25, %v282_v45 }
  0x33   : > { %v604_v43 = vshrl.u32 %v6522_v36, 16  ;;  %v607_v44 = vshll.u32 %v6522_v36, 16  ;;  %v600_v46 = vor.u32 %v598_v28, %v597_v37  ;;  %v602_v47 = vrot.slane %v597_v37, 4 }
  0x34   : > { %v612_v48 = vshrl.u32 %v6523_v38, 16  ;;  %v615_v49 = vshll.u32 %v6523_v38, 16  ;;  %v903_v50 = vsel %vm7847_vm9, %v592_v41, %v902_v33  ;;  %v358_v53 = vadd.f32 %v7790_v26, %v319_v39 }
  0x35   : > { %v7873_v51 = vrot.slane %v604_v43, 7  ;;  %v7877_v54 = vadd.f32 %v7790_v26, %v320_v40  ;;  %v601_v56 = vsel %vm7840_vm8, %v593_v42, %v600_v46  ;;  %904 = vst [vmem:[#allocation2 + $0x18] sm:$0xf] %v903_v50  ;;  %v907_v57 = vsel %vm7854_vm10, %v602_v47, %v906_v35 }
  0x36   : > { %v7884_v58 = vrot.slane %v612_v48, 7  ;;  %905 = vst [vmem:[#allocation2 + $0x1c] sm:$0xf] %v601_v56  ;;  %908 = vst [vmem:[#allocation2 + $0x20] sm:$0x1] %v907_v57  ;;  %v390_v63 = vmax.f32 %v358_v53, 0.0  ;;  %v7895_v7 = vmul.f32 %v7785_v25, %v283_v55  ;;  %v7900_v15 = vadd.f32 %v7790_v26, %v321_v60 }
  0x37   : > { %v609_v61 = vor.u32 %v607_v44, %v7873_v51  ;;  %v610_v62 = vrot.slane %v7873_v51, 4  ;;  %v1009_v1 = vld [vmem:[#allocation2 + $0xc] sm:$0xf]  ;;  %v391_v6 = vmax.f32 %v7877_v54, 0.0  ;;  %vm2102_vm12 = vcmask 1046532  }
  0x38   : > { %v2924_v2 = vld [vmem:[#allocation2 + $0xc] sm:$0xf]  ;;  %v7890_v4 = vor.u32 %v615_v49, %v7884_v58  ;;  %v619_v5 = vrot.slane %v7884_v58, 4  ;;  %v1010_v9 = vld [vmem:[#allocation2 + $0x10] sm:$0xf]  ;;  %v1099_v11 = vshrl.u32 %v1009_v1, 16  ;;  %v7904_v20 = vpack.c.bf16 %v390_v63, %v390_v63  ;;  %vm8107_vm13 = vmor %vm2101_vm11, %vm2102_vm12 }
  0x39   : > { %v1056_v10 = vld [vmem:[#allocation2 + $0x14] sm:$0x1]  ;;  %v1102_v12 = vshll.u32 %v1009_v1, 16  ;;  %v910_v13 = vsel %vm7847_vm9, %v609_v61, %v909_v52  ;;  %v1108_v16 = vshll.u32 %v1010_v9, 16  ;;  %v1112_v17 = vshrl.u32 %v1010_v9, 16  ;;  %v7498_v9 = vld [vmem:[%s9609_s1 + $0x8] sm:$0xff]  }
  0x3a   : > { %v1118_v18 = vshll.u32 %v1056_v10, 16  ;;  %v7902_v19 = vld [vmem:[#allocation2 + $0x10] sm:$0xf]  ;;  %911 = vst [vmem:[#allocation2 + $0x24] sm:$0xf] %v910_v13  ;;  %v1101_v21 = vrot.slane %v1099_v11, 4 }
  0x3b   : > { %v1104_v22 = vrot.slane %v1102_v12, 5  ;;  %v7906_v23 = vld [vmem:[#allocation2 + $0x14] sm:$0x1]  ;;  %v2973_v24 = vshrl.u32 %v2924_v2, 16  ;;  %v2976_v27 = vshll.u32 %v2924_v2, 16  ;;  %v1110_v28 = vrot.slane %v1108_v16, 5 }
  0x3c   : > { %v1114_v29 = vrot.slane %v1112_v17, 4  ;;  %v1120_v30 = vrot.slane %v1118_v18, 5  ;;  %v2982_v31 = vshll.u32 %v7902_v19, 16  ;;  %v2986_v36 = vshrl.u32 %v7902_v19, 16  ;;  %v2927_v37 = vld [vmem:[#allocation2 + $0x18] sm:$0xf] }
  0x3d   : > { %v1105_v32 = vor.u32 %v1104_v22, %v1101_v21  ;;  %v2975_v33 = vrot.slane %v2973_v24, 4  ;;  %v2978_v35 = vrot.slane %v2976_v27, 5  ;;  %v2992_v40 = vshll.u32 %v7906_v23, 16  ;;  %v7912_v42 = vld [vmem:[#allocation2 + $0x1c] sm:$0xf]  ;;  %v7497_v51 = vld [vmem:[%s9609_s1 + $0x148] sm:$0xff]  }
  0x3e   : > { %v1115_v38 = vor.u32 %v1114_v29, %v1110_v28  ;;  %v2984_v39 = vrot.slane %v2982_v31, 5  ;;  %v3747_v41 = vrot.slane %v7906_v23, 5  ;;  %v2988_v45 = vrot.slane %v2986_v36, 4  ;;  %v7914_v49 = vld [vmem:[#allocation2 + $0x20] sm:$0x1] }
  0x3f   : > { %v1106_v43 = vrot.slane %v1105_v32, 4  ;;  %v2979_v44 = vor.u32 %v2978_v35, %v2975_v33  ;;  %v2997_v46 = vshrl.u32 %v2927_v37, 16  ;;  %v2994_v48 = vrot.slane %v2992_v40, 5  ;;  %v1011_v2 = vld [vmem:[#allocation2 + $0x18] sm:$0xf]  ;;  %v7501_v32 = vld [vmem:[%s9609_s1 + $0x10] sm:$0xff]  }
  0x40   : > { %v1116_v47 = vrot.slane %v1115_v38, 4  ;;  %v3000_v50 = vshll.u32 %v2927_v37, 16  ;;  %v3006_v52 = vshll.u32 %v7912_v42, 16  ;;  %v2989_v56 = vor.u32 %v2988_v45, %v2984_v39  ;;  %v1012_v16 = vld [vmem:[#allocation2 + $0x1c] sm:$0xf] }
  0x41   : > { %v1111_v53 = vsel %vm7802_vm2, %v1106_v43, %v1110_v28  ;;  %v2980_v55 = vrot.slane %v2979_v44, 4  ;;  %v2999_v57 = vrot.slane %v2997_v46, 4  ;;  %v3010_v1 = vshrl.u32 %v7912_v42, 16  ;;  %v1057_v17 = vld [vmem:[#allocation2 + $0x20] sm:$0x1] }
  0x42   : > { %v1121_v60 = vsel %vm7802_vm2, %v1116_v47, %v1120_v30  ;;  %v3002_v61 = vrot.slane %v3000_v50, 5  ;;  %v3008_v63 = vrot.slane %v3006_v52, 5  ;;  %v2990_v12 = vrot.slane %v2989_v56, 4  ;;  %v913_v27 = vld [vmem:[#allocation2 + $0x2c] sm:$0x1] }
  0x43   : > { %v6139_v10 = vcombine.low %v1111_v53, %v1121_v60  ;;  %v2985_v11 = vsel %vm7802_vm2, %v2980_v55, %v2984_v39  ;;  %v3016_v13 = vshll.u32 %v7914_v49, 16  ;;  %v3012_v21 = vrot.slane %v3010_v1, 4  ;;  %v1013_v44 = vld [vmem:[#allocation2 + $0x24] sm:$0xf]  ;;  %v7504_v60 = vld [vmem:[%s9609_s1 + $0x18] sm:$0xff]  }
  0x44   : > { %v3003_v18 = vor.u32 %v3002_v61, %v2999_v57  ;;  %v3751_v22 = vrot.slane %v7912_v42, 5  ;;  %v3754_v24 = vrot.slane %v7914_v49, 5  ;;  %v2995_v28 = vsel %vm7802_vm2, %v2990_v12, %v2994_v48  ;;  %v2930_v48 = vld [vmem:[#allocation2 + $0x24] sm:$0xf]  ;;  %v8264_v23 = vld [vmem:[%s9611_s3] ss:$0 sm:$0xff] }
  0x45   : > { %6783 = vmatmul.mubr.bf16.vlgmr.msra.gmra.mrb[0].mxu1 %v6139_v10  ;;  %v3018_v29 = vrot.slane %v3016_v13, 5  ;;  %v1123_v30 = vshrl.u32 %v1011_v2, 16  ;;  %v1126_v31 = vshll.u32 %v1011_v2, 16  ;;  %v6298_v33 = vcombine.low %v2985_v11, %v2995_v28  ;;  %v284_v28 = vld [vmem:[%s7778_s28 + $0x50] sm:$0xff] }
  0x46   : > { %6815 = vmatpush3.bf16.msra.mxu1 %v7828_v59  ;;  %v3004_v35 = vrot.slane %v3003_v18, 4  ;;  %v3013_v36 = vor.u32 %v3012_v21, %v3008_v63  ;;  %v7938_v37 = vrot.slane %v3751_v22, 4  ;;  %v1132_v40 = vshll.u32 %v1012_v16, 16 }
  0x47   : > { %v1125_v38 = vrot.slane %v1123_v30, 4  ;;  %v1128_v39 = vrot.slane %v1126_v31, 5  ;;  %v1136_v43 = vshrl.u32 %v1012_v16, 16  ;;  %6816 = vmatprep.subr.bf16.mxu1 %v7498_v9  ;;  %6974 = vmatprep.mubr.bf16.mxu0 %v6298_v33  ;;  %v1142_v47 = vshll.u32 %v1057_v17, 16 }
  0x48   : > { %v3009_v45 = vsel %vm7802_vm2, %v3004_v35, %v3008_v63  ;;  %v3014_v46 = vrot.slane %v3013_v36, 4  ;;  %v618_v59 = vsel %vm7840_vm8, %v610_v62, %v7890_v4  ;;  %v1134_v52 = vrot.slane %v1132_v40, 5 }
  0x49   : > { %v1129_v50 = vor.u32 %v1128_v39, %v1125_v38  ;;  %v1138_v53 = vrot.slane %v1136_v43, 4  ;;  %912 = vst [vmem:[#allocation2 + $0x28] sm:$0xf] %v618_v59  ;;  %v914_v55 = vsel %vm7854_vm10, %v619_v5, %v913_v27  ;;  %v1144_v57 = vrot.slane %v1142_v47, 5 }
  0x4a   : > { %v3019_v56 = vsel %vm7802_vm2, %v3014_v46, %v3018_v29  ;;  %915 = vst [vmem:[#allocation2 + $0x2c] sm:$0x1] %v914_v55  ;;  %v1147_v62 = vshrl.u32 %v1013_v44, 16  ;;  %v1150_v4 = vshll.u32 %v1013_v44, 16  ;;  %6817 = vmatpush3.bf16.msra.mxu1 %v7498_v9  ;;  %v3021_v5 = vshrl.u32 %v2930_v48, 16 }
  0x4b   : > { %v6299_v58 = vcombine.low %v3009_v45, %v3019_v56  ;;  %v1130_v61 = vrot.slane %v1129_v50, 4  ;;  %v1139_v63 = vor.u32 %v1138_v53, %v1134_v52  ;;  %6818 = vmatprep.subr.bf16.mxu1 %v7501_v32  ;;  %v3024_v10 = vshll.u32 %v2930_v48, 16  ;;  %v916_v50 = vld [vmem:[#allocation2 + $0x30] sm:$0xf] }
  0x4c   : > { %v1149_v1 = vrot.slane %v1147_v62, 4  ;;  %v1152_v2 = vrot.slane %v1150_v4, 5  ;;  %v6525_v11 = vpack.c.bf16 %v391_v6, %v391_v6  ;;  %v3023_v13 = vrot.slane %v3021_v5, 4  ;;  %v7499_v6 = vld [vmem:[%s9609_s1 + $0x150] sm:$0xff]  }
  0x4d   : > { %6975 = vmatmul.mubr.bf16.vlgmr.msra.gmra.mrb[0].mxu0 %v6299_v58  ;;  %v1135_v9 = vsel %vm7802_vm2, %v1130_v61, %v1134_v52  ;;  %v1140_v12 = vrot.slane %v1139_v63, 4  ;;  %v621_v16 = vshrl.u32 %v7904_v20, 16  ;;  %v3026_v18 = vrot.slane %v3024_v10, 5  ;;  %v920_v61 = vld [vmem:[#allocation2 + $0x38] sm:$0x1]  ;;  %v7509_v63 = vld [vmem:[%s9609_s1 + $0x28] sm:$0xff]  }
  0x4e   : > { %7007 = vmatpush3.bf16.msra.mxu0 %v7835_v0  ;;  %v1153_v17 = vor.u32 %v1152_v2, %v1149_v1  ;;  %v624_v21 = vshll.u32 %v7904_v20, 16  ;;  %v629_v27 = vshrl.u32 %v6525_v11, 16  ;;  %6819 = vmatpush3.bf16.msra.mxu1 %v7501_v32  ;;  %v632_v30 = vshll.u32 %v6525_v11, 16  ;;  %v7507_v20 = vld [vmem:[%s9609_s1 + $0x20] sm:$0xff]   ;;  %v285_v11 = vld [vmem:[%s7778_s28 + $0x58] sm:$0xff] }
  0x4f   : > { %7008 = vmatprep.subr.bf16.mxu0 %v7497_v51  ;;  %v1145_v54 = vsel %vm7802_vm2, %v1140_v12, %v1144_v57  ;;  %v623_v29 = vrot.slane %v621_v16, 7  ;;  %v7975_v0 = vadd.f32 %v7790_v26, %v7895_v7  ;;  %6820 = vmatprep.subr.bf16.mxu1 %v7504_v60  ;;  %v3027_v36 = vor.u32 %v3026_v18, %v3023_v13  ;;  %v7500_v57 = vld [vmem:[%s9609_s1 + $0x158] sm:$0xff]  }
  0x50   : > { %v6140_v31 = vcombine.low %v1135_v9, %v1145_v54  ;;  %v1014_v32 = vld [vmem:[#allocation2 + $0x28] sm:$0xf]  ;;  %v7980_v33 = vrot.slane %v1153_v17, 4  ;;  %v631_v38 = vrot.slane %v629_v27, 7  ;;  %v323_v7 = vmul.f32 %v7785_v25, %v284_v28  ;;  %v7502_v54 = vld [vmem:[%s9609_s1 + $0x160] sm:$0xff]  }
  0x51   : > { %v2931_v35 = vld [vmem:[#allocation2 + $0x28] sm:$0xf]  ;;  %v1058_v39 = vld [vmem:[#allocation2 + $0x2c] sm:$0x1]  ;;  %v1156_v40 = vshll.u32 %v1014_v32, 16  ;;  %v1160_v43 = vshrl.u32 %v1014_v32, 16  ;;  %v626_v45 = vor.u32 %v624_v21, %v623_v29 }
  0x52   : > { %v2932_v44 = vld [vmem:[#allocation2 + $0x2c] sm:$0x1]  ;;  %7009 = vmatpush3.bf16.msra.mxu0 %v7497_v51  ;;  %6786 = vmatprep.mubr.bf16.mxu1 %v6140_v31  ;;  %v1166_v46 = vshll.u32 %v1058_v39, 16  ;;  %v3028_v47 = vrot.slane %v3027_v36, 4  ;;  %v3030_v59 = vshll.u32 %v2931_v35, 16  ;;  %v3034_v48 = vshrl.u32 %v2931_v35, 16 }
  0x53   : > { %v1158_v52 = vrot.slane %v1156_v40, 5  ;;  %v1162_v53 = vrot.slane %v1160_v43, 4  ;;  %v3040_v55 = vshll.u32 %v2932_v44, 16  ;;  %7010 = vmatprep.subr.bf16.mxu0 %v7499_v6  ;;  %v627_v56 = vrot.slane %v623_v29, 4  ;;  %6821 = vmatpush3.bf16.msra.mxu1 %v7504_v60  ;;  %v286_v60 = vld [vmem:[%s7778_s28 + $0x60] sm:$0xff]  ;;  %v287_v17 = vld [vmem:[%s7778_s28 + $0x68] sm:$0xff] }
  0x54   : > { %v1168_v62 = vrot.slane %v1166_v46, 5  ;;  %v3032_v51 = vrot.slane %v3030_v59, 5  ;;  %v3036_v4 = vrot.slane %v3034_v48, 4  ;;  %v634_v58 = vor.u32 %v632_v30, %v631_v38  ;;  %6822 = vmatprep.subr.bf16.mxu1 %v7507_v20  ;;  %v288_v35 = vld [vmem:[%s7778_s28 + $0x70] sm:$0xff]  ;;  %v289_v43 = vld [vmem:[%s7778_s28 + $0x78] sm:$0xff]  ;;  %v290_v44 = vld [vmem:[%s7778_s28 + $0x80] sm:$0xff] }
  0x55   : > { %v1159_v5 = vsel %vm7802_vm2, %v7980_v33, %v1158_v52  ;;  %v1163_v1 = vor.u32 %v1162_v53, %v1158_v52  ;;  %v3042_v2 = vrot.slane %v3040_v55, 5  ;;  %v636_v10 = vrot.slane %v631_v38, 4  ;;  %v291_v59 = vld [vmem:[%s7778_s28 + $0x88] sm:$0xff]  ;;  %v7511_v55 = vld [vmem:[%s9609_s1 + $0x30] sm:$0xff]  }
  0x56   : > { %v3033_v9 = vsel %vm7802_vm2, %v3028_v47, %v3032_v51  ;;  %v3037_v12 = vor.u32 %v3036_v4, %v3032_v51  ;;  %v635_v13 = vsel %vm7840_vm8, %v627_v56, %v634_v58  ;;  %v917_v16 = vsel %vm7847_vm9, %v626_v45, %v916_v50  ;;  %7011 = vmatpush3.bf16.msra.mxu0 %v7499_v6  ;;  %v7505_v51 = vld [vmem:[%s9609_s1 + $0x170] sm:$0xff]  }
  0x57   : > { %v1164_v18 = vrot.slane %v1163_v1, 4  ;;  %918 = vst [vmem:[#allocation2 + $0x30] sm:$0xf] %v917_v16  ;;  %919 = vst [vmem:[#allocation2 + $0x34] sm:$0xf] %v635_v13  ;;  %v921_v21 = vsel %vm7854_vm10, %v636_v10, %v920_v61  ;;  %7012 = vmatprep.subr.bf16.mxu0 %v7500_v57  ;;  %v392_v27 = vmax.f32 %v7900_v15, 0.0  ;;  %6823 = vmatpush3.bf16.msra.mxu1 %v7507_v20 }
  0x58   : > { %v393_v28 = vmax.f32 %v7975_v0, 0.0  ;;  %v3038_v29 = vrot.slane %v3037_v12, 4  ;;  %922 = vst [vmem:[#allocation2 + $0x38] sm:$0x1] %v921_v21  ;;  %v324_v6 = vmul.f32 %v7785_v25, %v285_v11  ;;  %v362_v30 = vadd.f32 %v7790_v26, %v323_v7  ;;  %6824 = vmatprep.subr.bf16.mxu1 %v7509_v63  ;;  %v7503_v20 = vld [vmem:[%s9609_s1 + $0x168] sm:$0xff]  }
  0x59   : > { %v325_v31 = vmul.f32 %v7785_v25, %v286_v60  ;;  %v1169_v15 = vsel %vm7802_vm2, %v1164_v18, %v1168_v62  ;;  %v6526_v0 = vpack.c.bf16 %v392_v27, %v392_v27  ;;  %v326_v33 = vmul.f32 %v7785_v25, %v287_v17 }
  0x5a   : > { %v6527_v32 = vpack.c.bf16 %v393_v28, %v393_v28  ;;  %v6141_v36 = vcombine.low %v1159_v5, %v1169_v15  ;;  %v3043_v38 = vsel %vm7802_vm2, %v3038_v29, %v3042_v2  ;;  %7013 = vmatpush3.bf16.msra.mxu0 %v7500_v57  ;;  %v363_v39 = vadd.f32 %v7790_v26, %v324_v6 }
  0x5b   : > { %v394_v40 = vmax.f32 %v362_v30, 0.0  ;;  %v6300_v45 = vcombine.low %v3033_v9, %v3043_v38  ;;  %v638_v7 = vshrl.u32 %v6526_v0, 16  ;;  %v641_v46 = vshll.u32 %v6526_v0, 16  ;;  %7014 = vmatprep.subr.bf16.mxu0 %v7502_v54  ;;  %6825 = vmatpush3.bf16.msra.mxu1 %v7509_v63 }
  0x5c   : > { %v646_v47 = vshrl.u32 %v6527_v32, 16  ;;  %6787 = vmatmul.mubr.bf16.gmra.mrb[4].mxu1 %v6141_v36  ;;  %v649_v48 = vshll.u32 %v6527_v32, 16  ;;  %v395_v50 = vmax.f32 %v363_v39, 0.0  ;;  %v8027_v53 = vadd.f32 %v7790_v26, %v325_v31  ;;  %6826 = vmatprep.subr.bf16.mxu1 %v7511_v55  ;;  %v923_v32 = vld [vmem:[#allocation2 + $0x3c] sm:$0xf] }
  0x5d   : > { %v8024_v52 = vpack.c.bf16 %v394_v40, %v394_v40  ;;  %6978 = vmatprep.mubr.bf16.mxu0 %v6300_v45  ;;  %v640_v56 = vrot.slane %v638_v7, 7  ;;  %v8033_v62 = vadd.f32 %v7790_v26, %v326_v33  ;;  %v8039_v4 = vmul.f32 %v7785_v25, %v288_v35  ;;  %v927_v39 = vld [vmem:[#allocation2 + $0x44] sm:$0x1]  ;;  %v7506_v40 = vld [vmem:[%s9609_s1 + $0x178] sm:$0xff]  }
  0x5e   : > { %v648_v57 = vrot.slane %v646_v47, 7  ;;  %v2933_v58 = vld [vmem:[#allocation2 + $0x30] sm:$0xf]  ;;  %v8041_v61 = vld [vmem:[#allocation2 + $0x34] sm:$0xf]  ;;  %v8043_v5 = vpack.c.bf16 %v395_v50, %v395_v50  ;;  %7015 = vmatpush3.bf16.msra.mxu0 %v7502_v54  ;;  %v8046_v1 = vmul.f32 %v7785_v25, %v289_v43  ;;  %v8049_v2 = vmul.f32 %v7785_v25, %v290_v44 }
  0x5f   : > { %v1015_v63 = vld [vmem:[#allocation2 + $0x30] sm:$0xf]  ;;  %v8052_v10 = vmul.f32 %v7785_v25, %v291_v59  ;;  %v8054_v11 = vld [vmem:[#allocation2 + $0x38] sm:$0x1]  ;;  %v3045_v60 = vshrl.u32 %v2933_v58, 16  ;;  %v3048_v9 = vshll.u32 %v2933_v58, 16  ;;  %7016 = vmatprep.subr.bf16.mxu0 %v7503_v20  ;;  %v643_v27 = vor.u32 %v641_v46, %v640_v56  ;;  %6827 = vmatpush3.bf16.msra.mxu1 %v7511_v55 }
  0x60   : > { %v3054_v12 = vshll.u32 %v8041_v61, 16  ;;  %v3058_v13 = vshrl.u32 %v8041_v61, 16  ;;  %v3064_v16 = vshll.u32 %v8054_v11, 16  ;;  %v1016_v17 = vld [vmem:[#allocation2 + $0x34] sm:$0xf]  ;;  %v1171_v21 = vshrl.u32 %v1015_v63, 16 }
  0x61   : > { %v1059_v18 = vld [vmem:[#allocation2 + $0x38] sm:$0x1]  ;;  %v651_v28 = vor.u32 %v649_v48, %v648_v57  ;;  %v3047_v25 = vrot.slane %v3045_v60, 4  ;;  %v3050_v54 = vrot.slane %v3048_v9, 5  ;;  %v1174_v15 = vshll.u32 %v1015_v63, 16 }
  0x62   : > { %v3056_v29 = vrot.slane %v3054_v12, 5  ;;  %v3060_v6 = vrot.slane %v3058_v13, 4  ;;  %v3066_v30 = vrot.slane %v3064_v16, 5  ;;  %v1173_v31 = vrot.slane %v1171_v21, 4  ;;  %7017 = vmatpush3.bf16.msra.mxu0 %v7503_v20 }
  0x63   : > { %v1180_v0 = vshll.u32 %v1016_v17, 16  ;;  %v3051_v33 = vor.u32 %v3050_v54, %v3047_v25  ;;  %v1184_v36 = vshrl.u32 %v1016_v17, 16  ;;  %v1190_v38 = vshll.u32 %v1059_v18, 16  ;;  %7018 = vmatprep.subr.bf16.mxu0 %v7505_v51  ;;  %v8078_v17 = vld [vmem:[%s9609_s1 + $0x180] sm:$0xff]  }
  0x64   : > { %v3061_v35 = vor.u32 %v3060_v6, %v3056_v29  ;;  %v1176_v43 = vrot.slane %v1174_v15, 5  ;;  %v644_v45 = vrot.slane %v640_v56, 4  ;;  %v653_v7 = vrot.slane %v648_v57, 4 }
  0x65   : > { %v1182_v44 = vrot.slane %v1180_v0, 5  ;;  %v3052_v46 = vrot.slane %v3051_v33, 4  ;;  %v1186_v59 = vrot.slane %v1184_v36, 4  ;;  %v1192_v20 = vrot.slane %v1190_v38, 5 }
  0x66   : > { %v3062_v47 = vrot.slane %v3061_v35, 4  ;;  %v1177_v48 = vor.u32 %v1176_v43, %v1173_v31  ;;  %v652_v50 = vsel %vm7840_vm8, %v644_v45, %v651_v28  ;;  %v924_v55 = vsel %vm7847_vm9, %v643_v27, %v923_v32  ;;  %7019 = vmatpush3.bf16.msra.mxu0 %v7505_v51  ;;  %v930_v51 = vld [vmem:[#allocation2 + $0x48] sm:$0xf]  ;;  %v934_v28 = vld [vmem:[#allocation2 + $0x50] sm:$0x1] }
  0x67   : > { %v928_v58 = vsel %vm7854_vm10, %v653_v7, %v927_v39  ;;  %v3057_v63 = vsel %vm7802_vm2, %v3052_v46, %v3056_v29  ;;  %v1187_v57 = vor.u32 %v1186_v59, %v1182_v44  ;;  %925 = vst [vmem:[#allocation2 + $0x3c] sm:$0xf] %v924_v55  ;;  %926 = vst [vmem:[#allocation2 + $0x40] sm:$0xf] %v652_v50  ;;  %v655_v60 = vshrl.u32 %v8024_v52, 16 }
  0x68   : > { %v3067_v56 = vsel %vm7802_vm2, %v3062_v47, %v3066_v30  ;;  %929 = vst [vmem:[#allocation2 + $0x44] sm:$0x1] %v928_v58  ;;  %7020 = vmatprep.subr.bf16.mxu0 %v7506_v40  ;;  %v1178_v12 = vrot.slane %v1177_v48, 4  ;;  %v658_v13 = vshll.u32 %v8024_v52, 16  ;;  %v663_v16 = vshrl.u32 %v8043_v5, 16 }
  0x69   : > { %v6301_v9 = vcombine.low %v3057_v63, %v3067_v56  ;;  %v1188_v18 = vrot.slane %v1187_v57, 4  ;;  %v657_v21 = vrot.slane %v655_v60, 7  ;;  %v666_v27 = vshll.u32 %v8043_v5, 16 }
  0x6a   : > { %v396_v25 = vmax.f32 %v8027_v53, 0.0  ;;  %v1183_v52 = vsel %vm7802_vm2, %v1178_v12, %v1182_v44  ;;  %v665_v54 = vrot.slane %v663_v16, 7  ;;  %v397_v29 = vmax.f32 %v8033_v62, 0.0  ;;  %7021 = vmatpush3.bf16.msra.mxu0 %v7506_v40  ;;  %v292_v62 = vld [vmem:[%s7778_s28 + $0x90] sm:$0xff] }
  0x6b   : > { %6979 = vmatmul.mubr.bf16.gmra.mrb[4].mxu0 %v6301_v9  ;;  %v8087_v6 = vadd.f32 %v7790_v26, %v8039_v4  ;;  %v1193_v30 = vsel %vm7802_vm2, %v1188_v18, %v1192_v20  ;;  %v660_v31 = vor.u32 %v658_v13, %v657_v21  ;;  %v661_v5 = vrot.slane %v657_v21, 4  ;;  %7054 = vmatprep.subr.bf16.mxu0 %v8078_v17 }
  0x6c   : > { %v8091_v15 = vpack.c.bf16 %v396_v25, %v396_v25  ;;  %v6142_v53 = vcombine.low %v1183_v52, %v1193_v30  ;;  %v668_v0 = vor.u32 %v666_v27, %v665_v54  ;;  %v670_v32 = vrot.slane %v665_v54, 4 }
  0x6d   : > { %v8093_v33 = vpack.c.bf16 %v397_v29, %v397_v29  ;;  %v931_v4 = vsel %vm7847_vm9, %v660_v31, %v930_v51  ;;  %v8103_v38 = vadd.f32 %v7790_v26, %v8046_v1  ;;  %v8117_v1 = vadd.f32 %v7790_v26, %v8049_v2  ;;  %v8137_v2 = vld [vmem:[%s9610_s2] ss:$0 sm:$0xff] }
  0x6e   : > { %v672_v35 = vshrl.u32 %v8091_v15, 16  ;;  %v675_v36 = vshll.u32 %v8091_v15, 16  ;;  %6790 = vmatprep.mubr.bf16.mxu1 %v6142_v53  ;;  %v1017_v40 = vld [vmem:[#allocation2 + $0x3c] sm:$0xf]  ;;  %v1018_v43 = vld [vmem:[#allocation2 + $0x40] sm:$0xf]  ;;  %v669_v45 = vsel %vm7840_vm8, %v661_v5, %v668_v0  ;;  %v935_v7 = vsel %vm7854_vm10, %v670_v32, %v934_v28 }
  0x6f   : > { %v1060_v44 = vld [vmem:[#allocation2 + $0x44] sm:$0x1]  ;;  %932 = vst [vmem:[#allocation2 + $0x48] sm:$0xf] %v931_v4  ;;  %v8121_v46 = vadd.f32 %v7790_v26, %v8052_v10  ;;  %v1195_v47 = vshrl.u32 %v1017_v40, 16  ;;  %v1198_v59 = vshll.u32 %v1017_v40, 16  ;;  %v8132_v26 = vsel %vm8107_vm13, %v7938_v37, %v3754_v24 }
  0x70   : > { %v1204_v20 = vshll.u32 %v1018_v43, 16  ;;  %v1208_v48 = vshrl.u32 %v1018_v43, 16  ;;  %v2936_v50 = vld [vmem:[#allocation2 + $0x3c] sm:$0xf]  ;;  %933 = vst [vmem:[#allocation2 + $0x4c] sm:$0xf] %v669_v45  ;;  %v8140_v10 = vmul.f32 %v8137_v2, %v292_v62 }
  0x71   : > { %936 = vst [vmem:[#allocation2 + $0x50] sm:$0x1] %v935_v7  ;;  %v1214_v55 = vshll.u32 %v1060_v44, 16  ;;  %v8123_v58 = vld [vmem:[#allocation2 + $0x40] sm:$0xf]  ;;  %v3069_v56 = vshrl.u32 %v2936_v50, 16 }
  0x72   : > { %v8125_v63 = vld [vmem:[#allocation2 + $0x44] sm:$0x1]  ;;  %v1197_v57 = vrot.slane %v1195_v47, 4  ;;  %v1200_v60 = vrot.slane %v1198_v59, 5  ;;  %v1206_v9 = vrot.slane %v1204_v20, 5  ;;  %v1210_v12 = vrot.slane %v1208_v48, 4 }
  0x73   : > { %v1216_v13 = vrot.slane %v1214_v55, 5  ;;  %v3071_v16 = vrot.slane %v3069_v56, 4  ;;  %v3072_v49 = vshll.u32 %v2936_v50, 16  ;;  %v3078_v51 = vshll.u32 %v8123_v58, 16  ;;  %v7513_v24 = vld [vmem:[%s9609_s1 + $0x38] sm:$0xff]  }
  0x74   : > { %v1201_v37 = vor.u32 %v1200_v60, %v1197_v57  ;;  %v1211_v18 = vor.u32 %v1210_v12, %v1206_v9  ;;  %v3082_v21 = vshrl.u32 %v8123_v58, 16  ;;  %v3088_v27 = vshll.u32 %v8125_v63, 16  ;;  %6828 = vmatprep.subr.bf16.mxu1 %v7513_v24 }
  0x75   : > { %v3074_v28 = vrot.slane %v3072_v49, 5  ;;  %v3080_v25 = vrot.slane %v3078_v51, 5  ;;  %v8148_v52 = vrot.slane %v672_v35, 7  ;;  %v680_v54 = vshrl.u32 %v8093_v33, 16  ;;  %6829 = vmatpush3.bf16.msra.mxu1 %v7513_v24  ;;  %v7517_v49 = vld [vmem:[%s9609_s1 + $0x80] sm:$0xff]  }
  0x76   : > { %v1202_v29 = vrot.slane %v1201_v37, 4  ;;  %v1212_v30 = vrot.slane %v1211_v18, 4  ;;  %v3084_v31 = vrot.slane %v3082_v21, 4  ;;  %v3090_v5 = vrot.slane %v3088_v27, 5  ;;  %v2939_v15 = vld [vmem:[#allocation2 + $0x48] sm:$0xf]  ;;  %6862 = vmatprep.subr.bf16.mxu1 %v7517_v49 }
  0x77   : > { %v3075_v53 = vor.u32 %v3074_v28, %v3071_v16  ;;  %v8151_v0 = vld [vmem:[#allocation2 + $0x4c] sm:$0xf]  ;;  %v3093_v62 = vshrl.u32 %v2939_v15, 16  ;;  %v3096_v4 = vshll.u32 %v2939_v15, 16  ;;  %v677_v40 = vor.u32 %v675_v36, %v8148_v52  ;;  %v1019_v7 = vld [vmem:[#allocation2 + $0x48] sm:$0xf] }
  0x78   : > { %v8153_v32 = vld [vmem:[#allocation2 + $0x50] sm:$0x1]  ;;  %v1207_v35 = vsel %vm7802_vm2, %v1202_v29, %v1206_v9  ;;  %v1217_v43 = vsel %vm7802_vm2, %v1212_v30, %v1216_v13  ;;  %v3085_v44 = vor.u32 %v3084_v31, %v3080_v25  ;;  %v3102_v45 = vshll.u32 %v8151_v0, 16  ;;  %v1020_v50 = vld [vmem:[#allocation2 + $0x4c] sm:$0xf] }
  0x79   : > { %v6143_v47 = vcombine.low %v1207_v35, %v1217_v43  ;;  %v3076_v59 = vrot.slane %v3075_v53, 4  ;;  %v3095_v20 = vrot.slane %v3093_v62, 4  ;;  %v3098_v48 = vrot.slane %v3096_v4, 5  ;;  %v1061_v60 = vld [vmem:[#allocation2 + $0x50] sm:$0x1] }
  0x7a   : > { %v3086_v55 = vrot.slane %v3085_v44, 4  ;;  %v3104_v56 = vrot.slane %v3102_v45, 5  ;;  %v3106_v57 = vshrl.u32 %v8151_v0, 16  ;;  %v3112_v36 = vshll.u32 %v8153_v32, 16  ;;  %v937_v21 = vld [vmem:[#allocation2 + $0x54] sm:$0xf] }
  0x7b   : > { %6791 = vmatmul.mubr.bf16.gmra.mrb[8].mxu1 %v6143_v47  ;;  %v3081_v9 = vsel %vm7802_vm2, %v3076_v59, %v3080_v25  ;;  %v3099_v12 = vor.u32 %v3098_v48, %v3095_v20  ;;  %v1219_v13 = vshrl.u32 %v1019_v7, 16  ;;  %v1222_v16 = vshll.u32 %v1019_v7, 16  ;;  %v941_v62 = vld [vmem:[#allocation2 + $0x5c] sm:$0x1]  ;;  %v3678_v59 = vld [vmem:[#allocation2 + $0xc] sm:$0xe] }
  0x7c   : > { %v3091_v51 = vsel %vm7802_vm2, %v3086_v55, %v3090_v5  ;;  %v3108_v24 = vrot.slane %v3106_v57, 4  ;;  %v3114_v37 = vrot.slane %v3112_v36, 5  ;;  %v1228_v18 = vshll.u32 %v1020_v50, 16 }
  0x7d   : > { %v6302_v27 = vcombine.low %v3081_v9, %v3091_v51  ;;  %v3100_v28 = vrot.slane %v3099_v12, 4  ;;  %v1221_v29 = vrot.slane %v1219_v13, 4  ;;  %v1224_v30 = vrot.slane %v1222_v16, 5 }
  0x7e   : > { %v3109_v25 = vor.u32 %v3108_v24, %v3104_v56  ;;  %v1230_v31 = vrot.slane %v1228_v18, 5  ;;  %v1232_v15 = vshrl.u32 %v1020_v50, 16  ;;  %v1238_v53 = vshll.u32 %v1061_v60, 16  ;;  %v8188_v24 = vld [vmem:[#allocation2 + $0x18] sm:$0xe] }
  0x7f   : > { %6982 = vmatprep.mubr.bf16.mxu0 %v6302_v27  ;;  %v3105_v4 = vsel %vm7802_vm2, %v3100_v28, %v3104_v56  ;;  %v1225_v35 = vor.u32 %v1224_v30, %v1221_v29  ;;  %v678_v5 = vrot.slane %v8148_v52, 4  ;;  %v682_v43 = vrot.slane %v680_v54, 7  ;;  %v944_v27 = vld [vmem:[#allocation2 + $0x60] sm:$0xf] }
  0x80   : > { %v3110_v44 = vrot.slane %v3109_v25, 4  ;;  %v1234_v45 = vrot.slane %v1232_v15, 4  ;;  %v1240_v7 = vrot.slane %v1238_v53, 5  ;;  %v683_v47 = vshll.u32 %v8093_v33, 16 }
  0x81   : > { %v1226_v20 = vrot.slane %v1225_v35, 4  ;;  %v687_v48 = vrot.slane %v682_v43, 4  ;;  %v938_v50 = vsel %vm7847_vm9, %v677_v40, %v937_v21  ;;  %v398_v55 = vmax.f32 %v8087_v6, 0.0 }
  0x82   : > { %v3115_v56 = vsel %vm7802_vm2, %v3110_v44, %v3114_v37  ;;  %v1235_v57 = vor.u32 %v1234_v45, %v1230_v31  ;;  %v685_v36 = vor.u32 %v683_v47, %v682_v43  ;;  %939 = vst [vmem:[#allocation2 + $0x54] sm:$0xf] %v938_v50  ;;  %v399_v52 = vmax.f32 %v8103_v38, 0.0 }
  0x83   : > { %v6303_v54 = vcombine.low %v3105_v4, %v3115_v56  ;;  %v1231_v33 = vsel %vm7802_vm2, %v1226_v20, %v1230_v31  ;;  %v942_v60 = vsel %vm7854_vm10, %v687_v48, %v941_v62  ;;  %v6532_v9 = vpack.c.bf16 %v398_v55, %v398_v55 }
  0x84   : > { %v1236_v12 = vrot.slane %v1235_v57, 4  ;;  %v686_v6 = vsel %vm7840_vm8, %v678_v5, %v685_v36  ;;  %943 = vst [vmem:[#allocation2 + $0x5c] sm:$0x1] %v942_v60  ;;  %v6533_v40 = vpack.c.bf16 %v399_v52, %v399_v52  ;;  %v400_v13 = vmax.f32 %v8117_v1, 0.0 }
  0x85   : > { %6983 = vmatmul.mubr.bf16.gmra.mrb[8].mxu0 %v6303_v54  ;;  %940 = vst [vmem:[#allocation2 + $0x58] sm:$0xf] %v686_v6  ;;  %v689_v16 = vshrl.u32 %v6532_v9, 16  ;;  %v692_v38 = vshll.u32 %v6532_v9, 16  ;;  %v401_v49 = vmax.f32 %v8121_v46, 0.0  ;;  %v6322_v51 = vrot.slane %v3678_v59, 9 }
  0x86   : > { %v1241_v37 = vsel %vm7802_vm2, %v1236_v12, %v1240_v7  ;;  %v697_v18 = vshrl.u32 %v6533_v40, 16  ;;  %v700_v21 = vshll.u32 %v6533_v40, 16  ;;  %v6534_v28 = vpack.c.bf16 %v400_v13, %v400_v13  ;;  %v948_v9 = vld [vmem:[#allocation2 + $0x68] sm:$0x1] }
  0x87   : > { %v6144_v29 = vcombine.low %v1231_v33, %v1241_v37  ;;  %v691_v30 = vrot.slane %v689_v16, 7  ;;  %v8192_v25 = vpack.c.bf16 %v401_v49, %v401_v49  ;;  %v3744_v1 = vrot.slane %v7902_v19, 5 }
  0x88   : > { %v699_v31 = vrot.slane %v697_v18, 7  ;;  %v706_v15 = vshrl.u32 %v6534_v28, 16  ;;  %v709_v53 = vshll.u32 %v6534_v28, 16  ;;  %v6323_v46 = vrot.slane %v8188_v24, 9  ;;  %v951_v18 = vld [vmem:[#allocation2 + $0x6c] sm:$0xf] }
  0x89   : > { %6794 = vmatprep.mubr.bf16.mxu1 %v6144_v29  ;;  %v1021_v62 = vld [vmem:[#allocation2 + $0x54] sm:$0xf]  ;;  %v694_v35 = vor.u32 %v692_v38, %v691_v30  ;;  %v695_v5 = vrot.slane %v691_v30, 4  ;;  %v714_v43 = vshrl.u32 %v8192_v25, 16  ;;  %v8201_v44 = vsel %vm8107_vm13, %v6322_v51, %v3744_v1 }
  0x8a   : > { %v2942_v4 = vld [vmem:[#allocation2 + $0x54] sm:$0xf]  ;;  %v1243_v45 = vshrl.u32 %v1021_v62, 16  ;;  %v1246_v7 = vshll.u32 %v1021_v62, 16  ;;  %v702_v50 = vor.u32 %v700_v21, %v699_v31  ;;  %v704_v55 = vrot.slane %v699_v31, 4 }
  0x8b   : > { %v3117_v47 = vshrl.u32 %v2942_v4, 16  ;;  %v3120_v59 = vshll.u32 %v2942_v4, 16  ;;  %v1062_v20 = vld [vmem:[#allocation2 + $0x5c] sm:$0x1]  ;;  %v945_v56 = vsel %vm7847_vm9, %v694_v35, %v944_v27  ;;  %v708_v57 = vrot.slane %v706_v15, 7 }
  0x8c   : > { %v8203_v48 = vld [vmem:[#allocation2 + $0x5c] sm:$0x1]  ;;  %v1022_v36 = vld [vmem:[#allocation2 + $0x58] sm:$0xf]  ;;  %v1245_v52 = vrot.slane %v1243_v45, 4  ;;  %v1248_v54 = vrot.slane %v1246_v7, 5  ;;  %v703_v62 = vsel %vm7840_vm8, %v695_v5, %v702_v50  ;;  %v949_v45 = vsel %vm7854_vm10, %v704_v55, %v948_v9 }
  0x8d   : > { %v1262_v33 = vshll.u32 %v1062_v20, 16  ;;  %v3119_v60 = vrot.slane %v3117_v47, 4  ;;  %946 = vst [vmem:[#allocation2 + $0x60] sm:$0xf] %v945_v56  ;;  %v1252_v12 = vshll.u32 %v1022_v36, 16  ;;  %v1256_v6 = vshrl.u32 %v1022_v36, 16 }
  0x8e   : > { %v8207_v40 = vld [vmem:[#allocation2 + $0x58] sm:$0xf]  ;;  %v3122_v13 = vrot.slane %v3120_v59, 5  ;;  %v3136_v16 = vshll.u32 %v8203_v48, 16  ;;  %v1249_v38 = vor.u32 %v1248_v54, %v1245_v52  ;;  %947 = vst [vmem:[#allocation2 + $0x64] sm:$0xf] %v703_v62  ;;  %v711_v7 = vor.u32 %v709_v53, %v708_v57 }
  0x8f   : > { %v1264_v49 = vrot.slane %v1262_v33, 5  ;;  %v3126_v51 = vshll.u32 %v8207_v40, 16  ;;  %v3130_v37 = vshrl.u32 %v8207_v40, 16  ;;  %v1254_v21 = vrot.slane %v1252_v12, 5  ;;  %950 = vst [vmem:[#allocation2 + $0x68] sm:$0x1] %v949_v45 }
  0x90   : > { %v1258_v27 = vrot.slane %v1256_v6, 4  ;;  %v3123_v28 = vor.u32 %v3122_v13, %v3119_v60  ;;  %v3138_v29 = vrot.slane %v3136_v16, 5  ;;  %v1250_v30 = vrot.slane %v1249_v38, 4  ;;  %v955_v13 = vld [vmem:[#allocation2 + $0x74] sm:$0x1] }
  0x91   : > { %v3128_v31 = vrot.slane %v3126_v51, 5  ;;  %v3132_v15 = vrot.slane %v3130_v37, 4  ;;  %v712_v20 = vrot.slane %v708_v57, 4  ;;  %v716_v56 = vrot.slane %v714_v43, 7 }
  0x92   : > { %v1259_v4 = vor.u32 %v1258_v27, %v1254_v21  ;;  %v3124_v35 = vrot.slane %v3123_v28, 4  ;;  %v1255_v47 = vsel %vm7802_vm2, %v1250_v30, %v1254_v21  ;;  %v717_v50 = vshll.u32 %v8192_v25, 16 }
  0x93   : > { %v3133_v59 = vor.u32 %v3132_v15, %v3128_v31  ;;  %v952_v33 = vsel %vm7847_vm9, %v711_v7, %v951_v18  ;;  %v721_v6 = vrot.slane %v716_v56, 4  ;;  %v8241_v15 = vsel %vm8107_vm13, %v6323_v46, %v3751_v22 }
  0x94   : > { %v1260_v36 = vrot.slane %v1259_v4, 4  ;;  %v3129_v52 = vsel %vm7802_vm2, %v3124_v35, %v3128_v31  ;;  %v2945_v54 = vld [vmem:[#allocation2 + $0x60] sm:$0xf]  ;;  %953 = vst [vmem:[#allocation2 + $0x6c] sm:$0xf] %v952_v33  ;;  %v719_v12 = vor.u32 %v717_v50, %v716_v56  ;;  %v6355_v19 = vcombine.low %v8241_v15, %v8132_v26  ;;  %v293_v50 = vld [vmem:[%s7778_s28 + $0x98] sm:$0xff] }
  0x95   : > { %v1023_v5 = vld [vmem:[#allocation2 + $0x60] sm:$0xf]  ;;  %v3134_v55 = vrot.slane %v3133_v59, 4  ;;  %v3141_v53 = vshrl.u32 %v2945_v54, 16  ;;  %v3144_v60 = vshll.u32 %v2945_v54, 16  ;;  %v956_v31 = vsel %vm7854_vm10, %v721_v6, %v955_v13 }
  0x96   : > { %v1267_v9 = vshrl.u32 %v1023_v5, 16  ;;  %v1265_v57 = vsel %vm7802_vm2, %v1260_v36, %v1264_v49  ;;  %v1270_v43 = vshll.u32 %v1023_v5, 16  ;;  %v720_v27 = vsel %vm7840_vm8, %v712_v20, %v719_v12  ;;  %v8229_v28 = vld [vmem:[#allocation2 + $0x64] sm:$0xf]  ;;  %v8243_v62 = vld [vmem:[#allocation2 + $0x68] sm:$0x1] }
  0x97   : > { %v6145_v16 = vcombine.low %v1255_v47, %v1265_v57  ;;  %v3139_v38 = vsel %vm7802_vm2, %v3134_v55, %v3138_v29  ;;  %v3143_v25 = vrot.slane %v3141_v53, 4  ;;  %v3146_v51 = vrot.slane %v3144_v60, 5  ;;  %v1024_v30 = vld [vmem:[#allocation2 + $0x64] sm:$0xf]  ;;  %954 = vst [vmem:[#allocation2 + $0x70] sm:$0xf] %v720_v27 }
  0x98   : > { %v6304_v37 = vcombine.low %v3129_v52, %v3139_v38  ;;  %v1269_v18 = vrot.slane %v1267_v9, 4  ;;  %v1272_v21 = vrot.slane %v1270_v43, 5  ;;  %v3746_v29 = vrot.slane %v3744_v1, 4  ;;  %v1063_v45 = vld [vmem:[#allocation2 + $0x68] sm:$0x1] }
  0x99   : > { %6795 = vmatmul.mubr.bf16.gmra.mrb[12].mxu1 %v6145_v16  ;;  %v3147_v49 = vor.u32 %v3146_v51, %v3143_v25  ;;  %v3150_v4 = vshll.u32 %v8229_v28, 16  ;;  %v3154_v35 = vshrl.u32 %v8229_v28, 16  ;;  %957 = vst [vmem:[#allocation2 + $0x74] sm:$0x1] %v956_v31  ;;  %v3160_v24 = vshll.u32 %v8243_v62, 16  ;;  %v294_v31 = vld [vmem:[%s7778_s28 + $0xa0] sm:$0xff] }
  0x9a   : > { %6986 = vmatprep.mubr.bf16.mxu0 %v6304_v37  ;;  %v1273_v7 = vor.u32 %v1272_v21, %v1269_v18  ;;  %v1276_v1 = vshll.u32 %v1024_v30, 16  ;;  %v1280_v22 = vshrl.u32 %v1024_v30, 16  ;;  %v1286_v20 = vshll.u32 %v1063_v45, 16 }
  0x9b   : > { %v3148_v42 = vrot.slane %v3147_v49, 4  ;;  %v3152_v46 = vrot.slane %v3150_v4, 5  ;;  %v3156_v47 = vrot.slane %v3154_v35, 4  ;;  %v1025_v56 = vld [vmem:[#allocation2 + $0x6c] sm:$0xf]  ;;  %v3162_v36 = vrot.slane %v3160_v24, 5 }
  0x9c   : > { %v1274_v59 = vrot.slane %v1273_v7, 4  ;;  %v1278_v52 = vrot.slane %v1276_v1, 5  ;;  %v1282_v54 = vrot.slane %v1280_v22, 4  ;;  %v1291_v5 = vshrl.u32 %v1025_v56, 16 }
  0x9d   : > { %v3153_v33 = vsel %vm7802_vm2, %v3148_v42, %v3152_v46  ;;  %v3157_v55 = vor.u32 %v3156_v47, %v3152_v46  ;;  %v1288_v53 = vrot.slane %v1286_v20, 5  ;;  %v1294_v60 = vshll.u32 %v1025_v56, 16  ;;  %v3680_v42 = vld [vmem:[#allocation2 + $0x24] sm:$0xe] }
  0x9e   : > { %v1279_v9 = vsel %vm7802_vm2, %v1274_v59, %v1278_v52  ;;  %v1283_v57 = vor.u32 %v1282_v54, %v1278_v52  ;;  %v1293_v43 = vrot.slane %v1291_v5, 4  ;;  %v3748_v12 = vsel %vm8107_vm13, %v3746_v29, %v3747_v41  ;;  %v1026_v13 = vld [vmem:[#allocation2 + $0x70] sm:$0xf]  ;;  %v295_v29 = vld [vmem:[%s7778_s28 + $0xa8] sm:$0xff] }
  0x9f   : > { %v3158_v6 = vrot.slane %v3157_v55, 4  ;;  %v1296_v16 = vrot.slane %v1294_v60, 5  ;;  %v6354_v38 = vcombine.low %v8201_v44, %v3748_v12  ;;  %v332_v25 = vmul.f32 %v8137_v2, %v293_v50  ;;  %v7601_v54 = vld [vmem:[#allocation2 + $0x28] sm:$0xf]  ;;  %v3681_v50 = vld [vmem:[#allocation2 + $0x30] sm:$0xe] }
  0xa0   : > { %v1284_v51 = vrot.slane %v1283_v57, 4  ;;  %v1064_v37 = vld [vmem:[#allocation2 + $0x74] sm:$0x1]  ;;  %v1300_v18 = vshll.u32 %v1026_v13, 16  ;;  %v1304_v21 = vshrl.u32 %v1026_v13, 16  ;;  %v370_v41 = vadd.f32 %v8264_v23, %v8140_v10 }
  0xa1   : > { %v3163_v27 = vsel %vm7802_vm2, %v3158_v6, %v3162_v36  ;;  %v1297_v49 = vor.u32 %v1296_v16, %v1293_v43  ;;  %v1310_v30 = vshll.u32 %v1064_v37, 16  ;;  %v371_v44 = vadd.f32 %v8264_v23, %v332_v25 }
  0xa2   : > { %v6305_v4 = vcombine.low %v3153_v33, %v3163_v27  ;;  %v1289_v35 = vsel %vm7802_vm2, %v1284_v51, %v1288_v53  ;;  %v1302_v45 = vrot.slane %v1300_v18, 5  ;;  %v1306_v7 = vrot.slane %v1304_v21, 4  ;;  %v962_v18 = vld [vmem:[#allocation2 + $0x80] sm:$0x1] }
  0xa3   : > { %v6146_v24 = vcombine.low %v1279_v9, %v1289_v35  ;;  %v1298_v1 = vrot.slane %v1297_v49, 4  ;;  %v1312_v22 = vrot.slane %v1310_v30, 5  ;;  %v402_v10 = vmax.f32 %v370_v41, 0.0  ;;  %v7602_v41 = vld [vmem:[#allocation2 + $0x2c] sm:$0x1] }
  0xa4   : > { %6987 = vmatmul.mubr.bf16.gmra.mrb[12].mxu0 %v6305_v4  ;;  %v1307_v46 = vor.u32 %v1306_v7, %v1302_v45  ;;  %v403_v47 = vmax.f32 %v371_v44, 0.0  ;;  %v333_v59 = vmul.f32 %v8137_v2, %v294_v31  ;;  %v334_v20 = vmul.f32 %v8137_v2, %v295_v29  ;;  %v7510_v44 = vld [vmem:[%s9609_s1 + $0x188] sm:$0xff]  }
  0xa5   : > { %6798 = vmatprep.mubr.bf16.mxu1 %v6146_v24  ;;  %v1303_v56 = vsel %vm7802_vm2, %v1298_v1, %v1302_v45  ;;  %7022 = vmatprep.mubr.bf16.mxu0 %v6354_v38  ;;  %v6536_v36 = vpack.c.bf16 %v402_v10, %v402_v10  ;;  %v6324_v52 = vrot.slane %v3680_v42, 9  ;;  %v3758_v5 = vrot.slane %v7601_v54, 5  ;;  %v958_v38 = vld [vmem:[#allocation2 + $0x78] sm:$0xf]  ;;  %v296_v42 = vld [vmem:[%s7778_s28 + $0xb0] sm:$0xff] }
  0xa6   : > { %v1308_v33 = vrot.slane %v1307_v46, 4  ;;  %v6537_v55 = vpack.c.bf16 %v403_v47, %v403_v47  ;;  %v372_v53 = vadd.f32 %v8264_v23, %v333_v59  ;;  %v373_v60 = vadd.f32 %v8264_v23, %v334_v20  ;;  %v297_v24 = vld [vmem:[%s7778_s28 + $0xb8] sm:$0xff]  ;;  %v298_v47 = vld [vmem:[%s7778_s28 + $0xc0] sm:$0xff]  ;;  %v7512_v54 = vld [vmem:[%s9609_s1 + $0x190] sm:$0xff]  }
  0xa7   : > { %v723_v9 = vshrl.u32 %v6536_v36, 16  ;;  %v726_v57 = vshll.u32 %v6536_v36, 16  ;;  %v3759_v43 = vsel %vm8107_vm13, %v6324_v52, %v3758_v5  ;;  %v3760_v12 = vrot.slane %v3758_v5, 4 }
  0xa8   : > { %v1313_v6 = vsel %vm7802_vm2, %v1308_v33, %v1312_v22  ;;  %v731_v13 = vshrl.u32 %v6537_v55, 16  ;;  %v734_v16 = vshll.u32 %v6537_v55, 16  ;;  %v404_v25 = vmax.f32 %v372_v53, 0.0  ;;  %v299_v53 = vld [vmem:[%s7778_s28 + $0xc8] sm:$0xff] }
  0xa9   : > { %v6147_v51 = vcombine.low %v1303_v56, %v1313_v6  ;;  %v725_v37 = vrot.slane %v723_v9, 7  ;;  %v405_v21 = vmax.f32 %v373_v60, 0.0  ;;  %v3761_v27 = vrot.slane %v7602_v41, 5  ;;  %v965_v56 = vld [vmem:[#allocation2 + $0x84] sm:$0xf] }
  0xaa   : > { %v733_v49 = vrot.slane %v731_v13, 7  ;;  %v6538_v30 = vpack.c.bf16 %v404_v25, %v404_v25  ;;  %v6325_v31 = vrot.slane %v3681_v50, 9  ;;  %v3765_v29 = vrot.slane %v8041_v61, 5  ;;  %v3682_v60 = vld [vmem:[#allocation2 + $0x3c] sm:$0xe] }
  0xab   : > { %6799 = vmatmul.mubr.bf16.gmra.mrb[16].mxu1 %v6147_v51  ;;  %v728_v4 = vor.u32 %v726_v57, %v725_v37  ;;  %v729_v35 = vrot.slane %v725_v37, 4  ;;  %v6539_v45 = vpack.c.bf16 %v405_v21, %v405_v21  ;;  %v3762_v7 = vsel %vm8107_vm13, %v3760_v12, %v3761_v27  ;;  %v8324_v21 = vld [vmem:[#allocation2 + $0x48] sm:$0xe] }
  0xac   : > { %7023 = vmatmul.mubr.bf16.vlgmr.msra.gmra.mrb[0].mxu0 %v6355_v19  ;;  %v736_v1 = vor.u32 %v734_v16, %v733_v49  ;;  %v738_v22 = vrot.slane %v733_v49, 4  ;;  %v740_v10 = vshrl.u32 %v6538_v30, 16  ;;  %v743_v46 = vshll.u32 %v6538_v30, 16  ;;  %v969_v19 = vld [vmem:[#allocation2 + $0x8c] sm:$0x1] }
  0xad   : > { %7055 = vmatpush3.bf16.msra.mxu0 %v8078_v17  ;;  %v959_v61 = vsel %vm7847_vm9, %v728_v4, %v958_v38  ;;  %v748_v59 = vshrl.u32 %v6539_v45, 16  ;;  %v751_v20 = vshll.u32 %v6539_v45, 16  ;;  %v6356_v36 = vcombine.low %v3759_v43, %v3762_v7 }
  0xae   : > { %v737_v52 = vsel %vm7840_vm8, %v729_v35, %v736_v1  ;;  %960 = vst [vmem:[#allocation2 + $0x78] sm:$0xf] %v959_v61  ;;  %v963_v26 = vsel %vm7854_vm10, %v738_v22, %v962_v18  ;;  %v742_v15 = vrot.slane %v740_v10, 7  ;;  %7056 = vmatprep.subr.bf16.mxu0 %v7510_v44  ;;  %v3766_v17 = vsel %vm8107_vm13, %v6325_v31, %v3765_v29 }
  0xaf   : > { %961 = vst [vmem:[#allocation2 + $0x7c] sm:$0xf] %v737_v52  ;;  %964 = vst [vmem:[#allocation2 + $0x80] sm:$0x1] %v963_v26  ;;  %v750_v5 = vrot.slane %v748_v59, 7  ;;  %7026 = vmatprep.mubr.bf16.mxu0 %v6356_v36  ;;  %v3767_v50 = vrot.slane %v3765_v29, 4  ;;  %v335_v55 = vmul.f32 %v8137_v2, %v296_v42  ;;  %v336_v43 = vmul.f32 %v8137_v2, %v297_v24 }
  0xb0   : > { %v3768_v33 = vrot.slane %v8054_v11, 5  ;;  %v745_v9 = vor.u32 %v743_v46, %v742_v15  ;;  %v746_v57 = vrot.slane %v742_v15, 4  ;;  %v337_v12 = vmul.f32 %v8137_v2, %v298_v47  ;;  %v7514_v11 = vld [vmem:[%s9609_s1 + $0x198] sm:$0xff]   ;;  %v7518_v24 = vld [vmem:[%s9609_s1 + $0x1a0] sm:$0xff]  }
  0xb1   : > { %v753_v6 = vor.u32 %v751_v20, %v750_v5  ;;  %v755_v13 = vrot.slane %v750_v5, 4  ;;  %7057 = vmatpush3.bf16.msra.mxu0 %v7510_v44  ;;  %v374_v38 = vadd.f32 %v8264_v23, %v335_v55  ;;  %v375_v37 = vadd.f32 %v8264_v23, %v336_v43 }
  0xb2   : > { %v3769_v16 = vsel %vm8107_vm13, %v3767_v50, %v3768_v33  ;;  %v966_v25 = vsel %vm7847_vm9, %v745_v9, %v965_v56  ;;  %v338_v18 = vmul.f32 %v8137_v2, %v299_v53  ;;  %7058 = vmatprep.subr.bf16.mxu0 %v7512_v54  ;;  %v8331_v30 = vadd.f32 %v8264_v23, %v337_v12 }
  0xb3   : > { %v6357_v51 = vcombine.low %v3766_v17, %v3769_v16  ;;  %v754_v41 = vsel %vm7840_vm8, %v746_v57, %v753_v6  ;;  %967 = vst [vmem:[#allocation2 + $0x84] sm:$0xf] %v966_v25  ;;  %v970_v27 = vsel %vm7854_vm10, %v755_v13, %v969_v19  ;;  %v406_v49 = vmax.f32 %v374_v38, 0.0  ;;  %v7522_v57 = vld [vmem:[%s9609_s1 + $0x1a8] sm:$0xff]  }
  0xb4   : > { %968 = vst [vmem:[#allocation2 + $0x88] sm:$0xf] %v754_v41  ;;  %971 = vst [vmem:[#allocation2 + $0x8c] sm:$0x1] %v970_v27  ;;  %v407_v44 = vmax.f32 %v375_v37, 0.0  ;;  %v8334_v2 = vadd.f32 %v8264_v23, %v338_v18  ;;  %v6326_v31 = vrot.slane %v3682_v60, 9 }
  0xb5   : > { %7027 = vmatmul.mubr.bf16.gmra.mrb[4].mxu0 %v6357_v51  ;;  %v3772_v29 = vrot.slane %v8123_v58, 5  ;;  %v8337_v4 = vld [vmem:[#allocation2 + $0x78] sm:$0xf]  ;;  %v6540_v35 = vpack.c.bf16 %v406_v49, %v406_v49  ;;  %v408_v45 = vmax.f32 %v8331_v30, 0.0  ;;  %v3775_v7 = vrot.slane %v8125_v63, 5  ;;  %v8412_v63 = vld [vmem:[%s9609_s1 + $0x1c0] sm:$0xff]  }
  0xb6   : > { %v6327_v42 = vrot.slane %v8324_v21, 9  ;;  %7059 = vmatpush3.bf16.msra.mxu0 %v7512_v54  ;;  %v8345_v1 = vld [vmem:[#allocation2 + $0x7c] sm:$0xf]  ;;  %v1065_v22 = vld [vmem:[#allocation2 + $0x80] sm:$0x1]  ;;  %v1315_v10 = vshrl.u32 %v8337_v4, 16  ;;  %v6541_v47 = vpack.c.bf16 %v407_v44, %v407_v44 }
  0xb7   : > { %v1318_v46 = vshll.u32 %v8337_v4, 16  ;;  %v8353_v61 = vsel %vm8107_vm13, %v6326_v31, %v3772_v29  ;;  %7060 = vmatprep.subr.bf16.mxu0 %v7514_v11  ;;  %v1324_v59 = vshll.u32 %v8345_v1, 16  ;;  %v1328_v20 = vshrl.u32 %v8345_v1, 16  ;;  %v972_v44 = vld [vmem:[#allocation2 + $0x90] sm:$0xf] }
  0xb8   : > { %v1334_v56 = vshll.u32 %v1065_v22, 16  ;;  %v757_v36 = vshrl.u32 %v6540_v35, 16  ;;  %v1317_v52 = vrot.slane %v1315_v10, 4  ;;  %v760_v15 = vshll.u32 %v6540_v35, 16  ;;  %v976_v10 = vld [vmem:[#allocation2 + $0x98] sm:$0x1] }
  0xb9   : > { %v1320_v26 = vrot.slane %v1318_v46, 5  ;;  %v765_v19 = vshrl.u32 %v6541_v47, 16  ;;  %v1326_v17 = vrot.slane %v1324_v59, 5  ;;  %v1330_v54 = vrot.slane %v1328_v20, 4  ;;  %v7526_v46 = vld [vmem:[%s9609_s1 + $0x1b0] sm:$0xff]  }
  0xba   : > { %v1336_v5 = vrot.slane %v1334_v56, 5  ;;  %v759_v50 = vrot.slane %v757_v36, 7  ;;  %7061 = vmatpush3.bf16.msra.mxu0 %v7514_v11  ;;  %v8357_v55 = vld [vmem:[#allocation2 + $0x84] sm:$0xf]  ;;  %v768_v60 = vshll.u32 %v6541_v47, 16  ;;  %v409_v9 = vmax.f32 %v8334_v2, 0.0 }
  0xbb   : > { %v1321_v33 = vor.u32 %v1320_v26, %v1317_v52  ;;  %v767_v53 = vrot.slane %v765_v19, 7  ;;  %7062 = vmatprep.subr.bf16.mxu0 %v7518_v24  ;;  %v1331_v43 = vor.u32 %v1330_v54, %v1326_v17  ;;  %v8363_v12 = vld [vmem:[#allocation2 + $0x88] sm:$0xf]  ;;  %v1066_v6 = vld [vmem:[#allocation2 + $0x8c] sm:$0x1]  ;;  %v1339_v13 = vshrl.u32 %v8357_v55, 16 }
  0xbc   : > { %v1342_v16 = vshll.u32 %v8357_v55, 16  ;;  %v762_v38 = vor.u32 %v760_v15, %v759_v50  ;;  %v1348_v25 = vshll.u32 %v8363_v12, 16  ;;  %v1352_v51 = vshrl.u32 %v8363_v12, 16  ;;  %v7666_v39 = vld [vmem:[#allocation2 + $0x88] sm:$0xf] }
  0xbd   : > { %v1322_v11 = vrot.slane %v1321_v33, 4  ;;  %v1358_v37 = vshll.u32 %v1066_v6, 16  ;;  %v1332_v18 = vrot.slane %v1331_v43, 4  ;;  %v1341_v41 = vrot.slane %v1339_v13, 4  ;;  %v300_v6 = vld [vmem:[%s7778_s28 + $0xd0] sm:$0xff] }
  0xbe   : > { %v1344_v27 = vrot.slane %v1342_v16, 5  ;;  %v763_v49 = vrot.slane %v759_v50, 4  ;;  %7063 = vmatpush3.bf16.msra.mxu0 %v7518_v24  ;;  %v1350_v31 = vrot.slane %v1348_v25, 5  ;;  %v1354_v35 = vrot.slane %v1352_v51, 4  ;;  %v302_v25 = vld [vmem:[%s7778_s28 + $0xe0] sm:$0xff]  ;;  %v303_v51 = vld [vmem:[%s7778_s28 + $0xe8] sm:$0xff] }
  0xbf   : > { %v1327_v2 = vsel %vm7802_vm2, %v1322_v11, %v1326_v17  ;;  %v1360_v22 = vrot.slane %v1358_v37, 5  ;;  %7064 = vmatprep.subr.bf16.mxu0 %v7522_v57  ;;  %v1337_v47 = vsel %vm7802_vm2, %v1332_v18, %v1336_v5  ;;  %v770_v20 = vor.u32 %v768_v60, %v767_v53  ;;  %v7530_v5 = vld [vmem:[%s9609_s1 + $0x1b8] sm:$0xff]  }
  0xc0   : > { %v1345_v59 = vor.u32 %v1344_v27, %v1341_v41  ;;  %v772_v56 = vrot.slane %v767_v53, 4  ;;  %v6148_v36 = vcombine.low %v1327_v2, %v1337_v47  ;;  %v1355_v24 = vor.u32 %v1354_v35, %v1350_v31  ;;  %v301_v11 = vld [vmem:[%s7778_s28 + $0xd8] sm:$0xff] }
  0xc1   : > { %v973_v52 = vsel %vm7847_vm9, %v762_v38, %v972_v44  ;;  %v6542_v26 = vpack.c.bf16 %v408_v45, %v408_v45  ;;  %v771_v19 = vsel %vm7840_vm8, %v763_v49, %v770_v20  ;;  %v6543_v54 = vpack.c.bf16 %v409_v9, %v409_v9  ;;  %v983_v38 = vld [vmem:[#allocation2 + $0xa4] sm:$0x1]  ;;  %v8417_v49 = vld [vmem:[%s9610_s2] ss:$0 sm:$0xff] }
  0xc2   : > { %v1346_v15 = vrot.slane %v1345_v59, 4  ;;  %974 = vst [vmem:[#allocation2 + $0x90] sm:$0xf] %v973_v52  ;;  %v977_v17 = vsel %vm7854_vm10, %v772_v56, %v976_v10  ;;  %7065 = vmatpush3.bf16.msra.mxu0 %v7522_v57  ;;  %6802 = vmatprep.mubr.bf16.mxu1 %v6148_v36  ;;  %v1356_v50 = vrot.slane %v1355_v24, 4  ;;  %975 = vst [vmem:[#allocation2 + $0x94] sm:$0xf] %v771_v19 }
  0xc3   : > { %978 = vst [vmem:[#allocation2 + $0x98] sm:$0x1] %v977_v17  ;;  %v774_v30 = vshrl.u32 %v6542_v26, 16  ;;  %v777_v45 = vshll.u32 %v6542_v26, 16  ;;  %v3774_v33 = vrot.slane %v3772_v29, 4  ;;  %7066 = vmatprep.subr.bf16.mxu0 %v7526_v46  ;;  %v782_v60 = vshrl.u32 %v6543_v54, 16 }
  0xc4   : > { %v1351_v53 = vsel %vm7802_vm2, %v1346_v15, %v1350_v31  ;;  %v785_v9 = vshll.u32 %v6543_v54, 16  ;;  %v979_v57 = vld [vmem:[#allocation2 + $0x9c] sm:$0xf]  ;;  %v3779_v43 = vrot.slane %v8151_v0, 5  ;;  %v1361_v13 = vsel %vm7802_vm2, %v1356_v50, %v1360_v22 }
  0xc5   : > { %v776_v16 = vrot.slane %v774_v30, 7  ;;  %v3776_v58 = vsel %vm8107_vm13, %v3774_v33, %v3775_v7  ;;  %v3782_v29 = vrot.slane %v8153_v32, 5  ;;  %v6149_v37 = vcombine.low %v1351_v53, %v1361_v13 }
  0xc6   : > { %v784_v18 = vrot.slane %v782_v60, 7  ;;  %v6358_v0 = vcombine.low %v8353_v61, %v3776_v58  ;;  %v3780_v41 = vsel %vm8107_vm13, %v6327_v42, %v3779_v43  ;;  %7067 = vmatpush3.bf16.msra.mxu0 %v7526_v46  ;;  %v3781_v27 = vrot.slane %v3779_v43, 4 }
  0xc7   : > { %v779_v7 = vor.u32 %v777_v45, %v776_v16  ;;  %v780_v32 = vrot.slane %v776_v16, 4  ;;  %v339_v61 = vmul.f32 %v8417_v49, %v300_v6  ;;  %7068 = vmatprep.subr.bf16.mxu0 %v7530_v5  ;;  %6803 = vmatmul.mubr.bf16.gmra.mrb[20].mxu1 %v6149_v37  ;;  %v340_v44 = vmul.f32 %v8417_v49, %v301_v11  ;;  %v3684_v45 = vld [vmem:[#allocation2 + $0x54] sm:$0xe] }
  0xc8   : > { %v787_v21 = vor.u32 %v785_v9, %v784_v18  ;;  %v789_v42 = vrot.slane %v784_v18, 4  ;;  %7030 = vmatprep.mubr.bf16.mxu0 %v6358_v0  ;;  %v341_v2 = vmul.f32 %v8417_v49, %v302_v25  ;;  %v3783_v22 = vsel %vm8107_vm13, %v3781_v27, %v3782_v29 }
  0xc9   : > { %v8422_v31 = vld [vmem:[#allocation2 + $0x90] sm:$0xf]  ;;  %v980_v35 = vsel %vm7847_vm9, %v779_v7, %v979_v57  ;;  %v378_v10 = vadd.f32 %v8264_v23, %v339_v61  ;;  %v342_v46 = vmul.f32 %v8417_v49, %v303_v51  ;;  %v8430_v47 = vld [vmem:[#allocation2 + $0x94] sm:$0xf]  ;;  %v6359_v19 = vcombine.low %v3780_v41, %v3783_v22 }
  0xca   : > { %v1067_v59 = vld [vmem:[#allocation2 + $0x98] sm:$0x1]  ;;  %v1363_v20 = vshrl.u32 %v8422_v31, 16  ;;  %v1366_v56 = vshll.u32 %v8422_v31, 16  ;;  %v788_v36 = vsel %vm7840_vm8, %v780_v32, %v787_v21  ;;  %981 = vst [vmem:[#allocation2 + $0x9c] sm:$0xf] %v980_v35  ;;  %v984_v24 = vsel %vm7854_vm10, %v789_v42, %v983_v38  ;;  %7069 = vmatpush3.bf16.msra.mxu0 %v7530_v5 }
  0xcb   : > { %v1372_v52 = vshll.u32 %v8430_v47, 16  ;;  %v1376_v26 = vshrl.u32 %v8430_v47, 16  ;;  %v1382_v15 = vshll.u32 %v1067_v59, 16  ;;  %982 = vst [vmem:[#allocation2 + $0xa0] sm:$0xf] %v788_v36  ;;  %7102 = vmatprep.subr.bf16.mxu0 %v8412_v63  ;;  %v379_v50 = vadd.f32 %v8264_v23, %v340_v44  ;;  %7031 = vmatmul.mubr.bf16.gmra.mrb[8].mxu0 %v6359_v19 }
  0xcc   : > { %985 = vst [vmem:[#allocation2 + $0xa4] sm:$0x1] %v984_v24  ;;  %v1365_v17 = vrot.slane %v1363_v20, 4  ;;  %v1368_v54 = vrot.slane %v1366_v56, 5  ;;  %v410_v30 = vmax.f32 %v378_v10, 0.0  ;;  %v380_v5 = vadd.f32 %v8264_v23, %v341_v2 }
  0xcd   : > { %v1374_v33 = vrot.slane %v1372_v52, 5  ;;  %v1378_v53 = vrot.slane %v1376_v26, 4  ;;  %v411_v9 = vmax.f32 %v379_v50, 0.0  ;;  %v381_v43 = vadd.f32 %v8264_v23, %v342_v46  ;;  %v986_v59 = vld [vmem:[#allocation2 + $0xa8] sm:$0xf] }
  0xce   : > { %v1369_v60 = vor.u32 %v1368_v54, %v1365_v17  ;;  %v6544_v57 = vpack.c.bf16 %v410_v30, %v410_v30  ;;  %v1384_v13 = vrot.slane %v1382_v15, 5  ;;  %v412_v16 = vmax.f32 %v380_v5, 0.0 }
  0xcf   : > { %v1379_v6 = vor.u32 %v1378_v53, %v1374_v33  ;;  %v6328_v38 = vrot.slane %v3684_v45, 9  ;;  %v6545_v29 = vpack.c.bf16 %v411_v9, %v411_v9  ;;  %v3786_v25 = vrot.slane %v8207_v40, 5  ;;  %v990_v53 = vld [vmem:[#allocation2 + $0xb0] sm:$0x1] }
  0xd0   : > { %v1370_v58 = vrot.slane %v1369_v60, 4  ;;  %v791_v11 = vshrl.u32 %v6544_v57, 16  ;;  %v794_v18 = vshll.u32 %v6544_v57, 16  ;;  %v413_v0 = vmax.f32 %v381_v43, 0.0 }
  0xd1   : > { %v1380_v51 = vrot.slane %v1379_v6, 4  ;;  %v8445_v37 = vld [vmem:[#allocation2 + $0x9c] sm:$0xf]  ;;  %v6546_v41 = vpack.c.bf16 %v412_v16, %v412_v16  ;;  %v3787_v21 = vsel %vm8107_vm13, %v6328_v38, %v3786_v25  ;;  %v799_v24 = vshrl.u32 %v6545_v29, 16 }
  0xd2   : > { %v1375_v7 = vsel %vm7802_vm2, %v1370_v58, %v1374_v33  ;;  %v8449_v32 = vld [vmem:[#allocation2 + $0xa0] sm:$0xf]  ;;  %v1387_v27 = vshrl.u32 %v8445_v37, 16  ;;  %v1390_v61 = vshll.u32 %v8445_v37, 16  ;;  %v793_v46 = vrot.slane %v791_v11, 7 }
  0xd3   : > { %v1068_v23 = vld [vmem:[#allocation2 + $0xa4] sm:$0x1]  ;;  %v1385_v40 = vsel %vm7802_vm2, %v1380_v51, %v1384_v13  ;;  %v1396_v42 = vshll.u32 %v8449_v32, 16  ;;  %v1400_v44 = vshrl.u32 %v8449_v32, 16  ;;  %v802_v19 = vshll.u32 %v6545_v29, 16 }
  0xd4   : > { %v1406_v2 = vshll.u32 %v1068_v23, 16  ;;  %v6150_v35 = vcombine.low %v1375_v7, %v1385_v40  ;;  %v1389_v22 = vrot.slane %v1387_v27, 4  ;;  %v1392_v10 = vrot.slane %v1390_v61, 5  ;;  %v993_v13 = vld [vmem:[#allocation2 + $0xb4] sm:$0xf] }
  0xd5   : > { %v1398_v20 = vrot.slane %v1396_v42, 5  ;;  %v1402_v56 = vrot.slane %v1400_v44, 4  ;;  %v796_v26 = vor.u32 %v794_v18, %v793_v46  ;;  %v797_v15 = vrot.slane %v793_v46, 4  ;;  %v3685_v11 = vld [vmem:[#allocation2 + $0x60] sm:$0xe] }
  0xd6   : > { %v1408_v36 = vrot.slane %v1406_v2, 5  ;;  %6806 = vmatprep.mubr.bf16.mxu1 %v6150_v35  ;;  %v1393_v52 = vor.u32 %v1392_v10, %v1389_v22  ;;  %v801_v54 = vrot.slane %v799_v24, 7  ;;  %v6547_v50 = vpack.c.bf16 %v413_v0, %v413_v0  ;;  %v3686_v61 = vld [vmem:[#allocation2 + $0x6c] sm:$0xe]  ;;  %v997_v42 = vld [vmem:[#allocation2 + $0xbc] sm:$0x1] }
  0xd7   : > { %v1403_v17 = vor.u32 %v1402_v56, %v1398_v20  ;;  %v808_v30 = vshrl.u32 %v6546_v41, 16  ;;  %v987_v33 = vsel %vm7847_vm9, %v796_v26, %v986_v59  ;;  %v811_v5 = vshll.u32 %v6546_v41, 16  ;;  %v2950_v22 = vld [vmem:[#allocation2 + $0x74] sm:$0x1] }
  0xd8   : > { %v1394_v45 = vrot.slane %v1393_v52, 4  ;;  %v3788_v60 = vrot.slane %v3786_v25, 4  ;;  %v804_v57 = vor.u32 %v802_v19, %v801_v54  ;;  %v806_v43 = vrot.slane %v801_v54, 4  ;;  %988 = vst [vmem:[#allocation2 + $0xa8] sm:$0xf] %v987_v33 }
  0xd9   : > { %v1404_v9 = vrot.slane %v1403_v17, 4  ;;  %v810_v6 = vrot.slane %v808_v30, 7  ;;  %v816_v38 = vshrl.u32 %v6547_v50, 16  ;;  %v819_v58 = vshll.u32 %v6547_v50, 16 }
  0xda   : > { %v1399_v16 = vsel %vm7802_vm2, %v1394_v45, %v1398_v20  ;;  %v3789_v29 = vrot.slane %v8203_v48, 5  ;;  %v805_v25 = vsel %vm7840_vm8, %v797_v15, %v804_v57  ;;  %v991_v18 = vsel %vm7854_vm10, %v806_v43, %v990_v53  ;;  %v2949_v48 = vld [vmem:[#allocation2 + $0x70] sm:$0xf] }
  0xdb   : > { %v1409_v51 = vsel %vm7802_vm2, %v1404_v9, %v1408_v36  ;;  %v813_v0 = vor.u32 %v811_v5, %v810_v6  ;;  %989 = vst [vmem:[#allocation2 + $0xac] sm:$0xf] %v805_v25  ;;  %992 = vst [vmem:[#allocation2 + $0xb0] sm:$0x1] %v991_v18  ;;  %v814_v7 = vrot.slane %v810_v6, 4  ;;  %v818_v23 = vrot.slane %v816_v38, 7 }
  0xdc   : > { %v6151_v41 = vcombine.low %v1399_v16, %v1409_v51  ;;  %v3790_v27 = vsel %vm8107_vm13, %v3788_v60, %v3789_v29  ;;  %v6329_v2 = vrot.slane %v3685_v11, 9  ;;  %v3793_v35 = vrot.slane %v8229_v28, 5  ;;  %v8498_v16 = vld [vmem:[#allocation2 + $0x7c] sm:$0xf]  ;;  %v3687_v38 = vld [vmem:[#allocation2 + $0x78] sm:$0xe] }
  0xdd   : > { %v994_v40 = vsel %vm7847_vm9, %v813_v0, %v993_v13  ;;  %v6360_v44 = vcombine.low %v3787_v21, %v3790_v27  ;;  %v821_v10 = vor.u32 %v819_v58, %v818_v23  ;;  %v823_v46 = vrot.slane %v818_v23, 4  ;;  %v8501_v51 = vld [vmem:[#allocation2 + $0x80] sm:$0x1] }
  0xde   : > { %6807 = vmatmul.mubr.bf16.gmra.mrb[24].mxu1 %v6151_v41  ;;  %995 = vst [vmem:[#allocation2 + $0xb4] sm:$0xf] %v994_v40  ;;  %v3796_v59 = vrot.slane %v8243_v62, 5  ;;  %v3794_v20 = vsel %vm8107_vm13, %v6329_v2, %v3793_v35  ;;  %v3795_v56 = vrot.slane %v3793_v35, 4  ;;  %v6330_v36 = vrot.slane %v3686_v61, 9 }
  0xdf   : > { %7034 = vmatprep.mubr.bf16.mxu0 %v6360_v44  ;;  %v3800_v24 = vrot.slane %v2949_v48, 5  ;;  %v8478_v52 = vld [vmem:[#allocation2 + $0xa8] sm:$0xf]  ;;  %v822_v21 = vsel %vm7840_vm8, %v814_v7, %v821_v10  ;;  %v998_v28 = vsel %vm7854_vm10, %v823_v46, %v997_v42  ;;  %v3803_v26 = vrot.slane %v2950_v22, 5  ;;  %v2956_v2 = vld [vmem:[#allocation2 + $0x8c] sm:$0x1] }
  0xe0   : > { %v1411_v15 = vshrl.u32 %v8478_v52, 16  ;;  %v1414_v62 = vshll.u32 %v8478_v52, 16  ;;  %996 = vst [vmem:[#allocation2 + $0xb8] sm:$0xf] %v822_v21  ;;  %999 = vst [vmem:[#allocation2 + $0xbc] sm:$0x1] %v998_v28  ;;  %v3797_v19 = vsel %vm8107_vm13, %v3795_v56, %v3796_v59 }
  0xe1   : > { %v6361_v17 = vcombine.low %v3794_v20, %v3797_v19  ;;  %v3801_v54 = vsel %vm8107_vm13, %v6330_v36, %v3800_v24  ;;  %v3802_v50 = vrot.slane %v3800_v24, 4  ;;  %v6331_v48 = vrot.slane %v3687_v38, 9  ;;  %v2955_v44 = vld [vmem:[#allocation2 + $0x88] sm:$0xf]  ;;  %v3688_v35 = vld [vmem:[#allocation2 + $0x84] sm:$0xe] }
  0xe2   : > { %v8490_v30 = vld [vmem:[#allocation2 + $0xac] sm:$0xf]  ;;  %v1069_v45 = vld [vmem:[#allocation2 + $0xb0] sm:$0x1]  ;;  %v1413_v33 = vrot.slane %v1411_v15, 4  ;;  %v1416_v53 = vrot.slane %v1414_v62, 5 }
  0xe3   : > { %v1420_v5 = vshll.u32 %v8490_v30, 16  ;;  %v1424_v60 = vshrl.u32 %v8490_v30, 16  ;;  %v1430_v9 = vshll.u32 %v1069_v45, 16  ;;  %7035 = vmatmul.mubr.bf16.gmra.mrb[12].mxu0 %v6361_v17  ;;  %v3804_v57 = vsel %vm8107_vm13, %v3802_v50, %v3803_v26  ;;  %v3689_v20 = vld [vmem:[#allocation2 + $0x90] sm:$0xe] }
  0xe4   : > { %v1417_v43 = vor.u32 %v1416_v53, %v1413_v33  ;;  %v6362_v13 = vcombine.low %v3801_v54, %v3804_v57  ;;  %v3807_v59 = vrot.slane %v8498_v16, 5  ;;  %v3810_v21 = vrot.slane %v8501_v51, 5  ;;  %v2958_v19 = vld [vmem:[#allocation2 + $0x94] sm:$0xf]  ;;  %v2959_v33 = vld [vmem:[#allocation2 + $0x98] sm:$0x1] }
  0xe5   : > { %v8496_v6 = vld [vmem:[#allocation2 + $0xb4] sm:$0xf]  ;;  %v1422_v58 = vrot.slane %v1420_v5, 5  ;;  %v1426_v29 = vrot.slane %v1424_v60, 4  ;;  %v1432_v18 = vrot.slane %v1430_v9, 5  ;;  %v6332_v45 = vrot.slane %v3688_v35, 9 }
  0xe6   : > { %v1435_v11 = vshrl.u32 %v8496_v6, 16  ;;  %v1418_v25 = vrot.slane %v1417_v43, 4  ;;  %v1438_v0 = vshll.u32 %v8496_v6, 16  ;;  %7038 = vmatprep.mubr.bf16.mxu0 %v6362_v13  ;;  %v3808_v15 = vsel %vm8107_vm13, %v6331_v48, %v3807_v59  ;;  %v3690_v57 = vld [vmem:[#allocation2 + $0x9c] sm:$0xe] }
  0xe7   : > { %v1427_v41 = vor.u32 %v1426_v29, %v1422_v58  ;;  %v8504_v7 = vld [vmem:[#allocation2 + $0xb8] sm:$0xf]  ;;  %v1070_v23 = vld [vmem:[#allocation2 + $0xbc] sm:$0x1]  ;;  %v3809_v62 = vrot.slane %v3807_v59, 4  ;;  %v3814_v5 = vrot.slane %v2955_v44, 5 }
  0xe8   : > { %v1437_v27 = vrot.slane %v1435_v11, 4  ;;  %v1440_v61 = vrot.slane %v1438_v0, 5  ;;  %v1444_v40 = vshll.u32 %v8504_v7, 16  ;;  %v1448_v42 = vshrl.u32 %v8504_v7, 16  ;;  %v2961_v29 = vld [vmem:[#allocation2 + $0xa0] sm:$0xf] }
  0xe9   : > { %v1423_v22 = vsel %vm7802_vm2, %v1418_v25, %v1422_v58  ;;  %v1428_v10 = vrot.slane %v1427_v41, 4  ;;  %v1454_v46 = vshll.u32 %v1070_v23, 16  ;;  %v3811_v53 = vsel %vm8107_vm13, %v3809_v62, %v3810_v21  ;;  %v2962_v11 = vld [vmem:[#allocation2 + $0xa4] sm:$0x1]  ;;  %v7604_v25 = vld [vmem:[#allocation2] sm:$0xf] }
  0xea   : > { %v1441_v56 = vor.u32 %v1440_v61, %v1437_v27  ;;  %v1446_v36 = vrot.slane %v1444_v40, 5  ;;  %v1450_v24 = vrot.slane %v1448_v42, 4  ;;  %v3817_v60 = vrot.slane %v2956_v2, 5  ;;  %v2964_v48 = vld [vmem:[#allocation2 + $0xac] sm:$0xf]  ;;  %v304_v62 = vld [vmem:[%s7778_s28 + $0xf0] sm:$0xff] }
  0xeb   : > { %v1433_v28 = vsel %vm7802_vm2, %v1428_v10, %v1432_v18  ;;  %v1456_v26 = vrot.slane %v1454_v46, 5  ;;  %v6333_v9 = vrot.slane %v3689_v20, 9  ;;  %v6363_v38 = vcombine.low %v3808_v15, %v3811_v53  ;;  %v8520_v18 = vld [vmem:[#allocation2 + $0x4] sm:$0xf]  ;;  %v2965_v2 = vld [vmem:[#allocation2 + $0xb0] sm:$0x1] }
  0xec   : > { %v6152_v17 = vcombine.low %v1423_v22, %v1433_v28  ;;  %v1442_v54 = vrot.slane %v1441_v56, 4  ;;  %v1451_v50 = vor.u32 %v1450_v24, %v1446_v36  ;;  %v3821_v58 = vrot.slane %v2958_v19, 5  ;;  %v3691_v35 = vld [vmem:[#allocation2 + $0xa8] sm:$0xe]  ;;  %v2967_v20 = vld [vmem:[#allocation2 + $0xb8] sm:$0xf] }
  0xed   : > { %v6162_v0 = vcombine.low %v7604_v25, %v8520_v18  ;;  %v3815_v41 = vsel %vm8107_vm13, %v6332_v45, %v3814_v5  ;;  %v3816_v23 = vrot.slane %v3814_v5, 4  ;;  %v3824_v27 = vrot.slane %v2959_v33, 5  ;;  %7039 = vmatmul.mubr.bf16.gmra.mrb[16].mxu0 %v6363_v38  ;;  %v3692_v56 = vld [vmem:[#allocation2 + $0xb4] sm:$0xe]  ;;  %v2968_v28 = vld [vmem:[#allocation2 + $0xbc] sm:$0x1] }
  0xee   : > { %6810 = vmatprep.mubr.bf16.mxu1 %v6152_v17  ;;  %v1447_v43 = vsel %vm7802_vm2, %v1442_v54, %v1446_v36  ;;  %v1452_v13 = vrot.slane %v1451_v50, 4  ;;  %v3822_v40 = vsel %vm8107_vm13, %v6333_v9, %v3821_v58  ;;  %v3823_v42 = vrot.slane %v3821_v58, 4  ;;  %v305_v19 = vld [vmem:[%s7778_s28 + $0xf8] sm:$0xff]  ;;  %v8541_v38 = vld [vmem:[#allocation2 + $0x10] sm:$0xf] }
  0xef   : > { %v6334_v44 = vrot.slane %v3690_v57, 9  ;;  %v3818_v10 = vsel %vm8107_vm13, %v3816_v23, %v3817_v60  ;;  %v3828_v46 = vrot.slane %v2961_v29, 5  ;;  %v3831_v59 = vrot.slane %v2962_v11, 5  ;;  %v7608_v11 = vld [vmem:[#allocation2 + $0x18] sm:$0xf] }
  0xf0   : > { %v1457_v61 = vsel %vm7802_vm2, %v1452_v13, %v1456_v26  ;;  %v6364_v36 = vcombine.low %v3815_v41, %v3818_v10  ;;  %v3825_v24 = vsel %vm8107_vm13, %v3823_v42, %v3824_v27  ;;  %v3835_v21 = vrot.slane %v2964_v48, 5  ;;  %v7606_v13 = vld [vmem:[#allocation2 + $0xc] sm:$0xf]  ;;  %v8544_v25 = vld [vmem:[#allocation2 + $0x1c] sm:$0xf] }
  0xf1   : > { %v6153_v22 = vcombine.low %v1447_v43, %v1457_v61  ;;  %v3829_v26 = vsel %vm8107_vm13, %v6334_v44, %v3828_v46  ;;  %v3830_v15 = vrot.slane %v3828_v46, 4  ;;  %v6365_v17 = vcombine.low %v3822_v40, %v3825_v24  ;;  %v7610_v41 = vld [vmem:[%s9611_s3] ss:$0 sm:$0xff] }
  0xf2   : > { %7042 = vmatprep.mubr.bf16.mxu0 %v6364_v36  ;;  %v6335_v54 = vrot.slane %v3691_v35, 9  ;;  %v3837_v50 = vrot.slane %v3835_v21, 4  ;;  %v3838_v45 = vrot.slane %v2965_v2, 5  ;;  %v6336_v53 = vrot.slane %v3692_v56, 9  ;;  %v7611_v35 = vld [vmem:[%s9609_s1 + $0x80] sm:$0xff]  }
  0xf3   : > { %6811 = vmatmul.mubr.bf16.gmra.mrb[28].mxu1 %v6153_v22  ;;  %v3832_v33 = vsel %vm8107_vm13, %v3830_v15, %v3831_v59  ;;  %v3842_v5 = vrot.slane %v2967_v20, 5  ;;  %v3845_v60 = vrot.slane %v2968_v28, 5  ;;  %v343_v57 = vmul.f32 %v8417_v49, %v304_v62  ;;  %v7525_v59 = vld [vmem:[%s9609_s1 + $0x90] sm:$0xff]   ;;  %v7612_v28 = vld [vmem:[#allocation2 + $0x24] sm:$0xf] }
  0xf4   : > { %6830 = vmatprep.mubr.bf16.mxu1 %v6162_v0  ;;  %v6366_v9 = vcombine.low %v3829_v26, %v3832_v33  ;;  %v344_v43 = vmul.f32 %v8417_v49, %v305_v19  ;;  %v6163_v58 = vcombine.low %v7606_v13, %v8541_v38  ;;  %v6164_v0 = vcombine.low %v7608_v11, %v8544_v25  ;;  %v7521_v49 = vld [vmem:[%s9609_s1 + $0x88] sm:$0xff]   ;;  %v7614_v62 = vld [vmem:[#allocation2 + $0x30] sm:$0xf]  ;;  %v8570_v19 = vld [vmem:[#allocation2 + $0x34] sm:$0xf] }
  0xf5   : > { %v3844_v29 = vrot.slane %v3842_v5, 4  ;;  %7043 = vmatmul.mubr.bf16.gmra.mrb[20].mxu0 %v6365_v17  ;;  %v382_v23 = vadd.f32 %v7610_v41, %v343_v57  ;;  %v3836_v48 = vsel %vm8107_vm13, %v6335_v54, %v3835_v21  ;;  %v3839_v61 = vsel %vm8107_vm13, %v3837_v50, %v3838_v45  ;;  %v8567_v26 = vld [vmem:[#allocation2 + $0x28] sm:$0xf]  ;;  %v1000_v45 = vld [vmem:[#allocation2 + $0xc0] sm:$0xf]  ;;  %v7529_v33 = vld [vmem:[%s9609_s1 + $0x98] sm:$0xff]  }
  0xf6   : > { %v383_v27 = vadd.f32 %v7610_v41, %v344_v43  ;;  %7046 = vmatprep.mubr.bf16.mxu0 %v6366_v9  ;;  %v3843_v40 = vsel %vm8107_vm13, %v6336_v53, %v3842_v5  ;;  %v6367_v22 = vcombine.low %v3836_v48, %v3839_v61  ;;  %v6165_v15 = vcombine.low %v7612_v28, %v8567_v26  ;;  %v1004_v53 = vld [vmem:[#allocation2 + $0xc8] sm:$0x1]  ;;  %v7616_v11 = vld [vmem:[#allocation2 + $0x3c] sm:$0xf] }
  0xf7   : > { %v3846_v42 = vsel %vm8107_vm13, %v3844_v29, %v3845_v60  ;;  %v414_v44 = vmax.f32 %v382_v23, 0.0  ;;  %v6166_v17 = vcombine.low %v7614_v62, %v8570_v19  ;;  %v7533_v29 = vld [vmem:[%s9609_s1 + $0xa0] sm:$0xff]   ;;  %v7618_v41 = vld [vmem:[#allocation2 + $0x48] sm:$0xf]  ;;  %v8588_v23 = vld [vmem:[#allocation2 + $0x4c] sm:$0xf] }
  0xf8   : > { %v415_v2 = vmax.f32 %v383_v27, 0.0  ;;  %v6368_v20 = vcombine.low %v3843_v40, %v3846_v42  ;;  %v6168_v8 = vcombine.low %v7618_v41, %v8588_v23  ;;  %v3202_v28 = vshrl.u32 %v8498_v16, 16  ;;  %v2053_v62 = vld [vmem:[#allocation2] sm:$0xe]  ;;  %v7626_v41 = vld [vmem:[#allocation2 + $0x20] sm:$0x1] }
  0xf9   : > { %v6548_v10 = vpack.c.bf16 %v414_v44, %v414_v44  ;;  %v7545_v44 = vld [vmem:[%s9609_s1 + $0xb0] sm:$0xff]  }
  0xfa   : > { %v6549_v46 = vpack.c.bf16 %v415_v2, %v415_v2  ;;  %v7620_v2 = vld [vmem:[#allocation2 + $0x54] sm:$0xf] }
  0xfb   : > { %6831 = vmatmul.mubr.bf16.vlgmr.msra.gmra.mrb[0].mxu1 %v6163_v58  ;;  %v825_v56 = vshrl.u32 %v6548_v10, 16  ;;  %v828_v36 = vshll.u32 %v6548_v10, 16 }
  0xfc   : > { %6863 = vmatpush3.bf16.msra.mxu1 %v7611_v35  ;;  %6834 = vmatprep.mubr.bf16.mxu1 %v6164_v0  ;;  %v833_v24 = vshrl.u32 %v6549_v46, 16  ;;  %v836_v21 = vshll.u32 %v6549_v46, 16  ;;  %v8585_v0 = vld [vmem:[#allocation2 + $0x40] sm:$0xf]  ;;  %v8597_v35 = vld [vmem:[#allocation2 + $0x58] sm:$0xf] }
  0xfd   : > { %6864 = vmatprep.subr.bf16.mxu1 %v7521_v49  ;;  %7047 = vmatmul.mubr.bf16.gmra.mrb[24].mxu0 %v6367_v22  ;;  %v827_v54 = vrot.slane %v825_v56, 7  ;;  %v6167_v3 = vcombine.low %v7616_v11, %v8585_v0  ;;  %v6169_v22 = vcombine.low %v7620_v2, %v8597_v35  ;;  %v8603_v56 = vld [vmem:[#allocation2 + $0x64] sm:$0xf]  ;;  %v6172_v2 = vcombine.low %v8337_v4, %v8345_v1  ;;  %v7541_v4 = vld [vmem:[%s9609_s1 + $0x1c8] sm:$0xff]  }
  0xfe   : > { %v835_v50 = vrot.slane %v833_v24, 7  ;;  %7050 = vmatprep.mubr.bf16.mxu0 %v6368_v20  ;;  %v7622_v20 = vld [vmem:[#allocation2 + $0x60] sm:$0xf]  ;;  %v7534_v24 = vld [vmem:[#allocation2 + $0x18] sm:$0xff]  }
  0xff   : > { %v830_v5 = vor.u32 %v828_v36, %v827_v54  ;;  %v831_v60 = vrot.slane %v827_v54, 4  ;;  %v6170_v36 = vcombine.low %v7622_v20, %v8603_v56 }
 0x100   : > { %6865 = vmatpush3.bf16.msra.mxu1 %v7521_v49  ;;  %v838_v9 = vor.u32 %v836_v21, %v835_v50  ;;  %v840_v57 = vrot.slane %v835_v50, 4  ;;  %v7551_v21 = vld [vmem:[%s9609_s1 + $0xb8] sm:$0xff]   ;;  %v2054_v50 = vld [vmem:[#allocation2 + $0xc] sm:$0xe] }
 0x101   : > { %6866 = vmatprep.subr.bf16.mxu1 %v7525_v59  ;;  %v1001_v13 = vsel %vm7847_vm9, %v830_v5, %v1000_v45  ;;  %v2113_v45 = vrot.slane %v8541_v38, 5  ;;  %v2127_v5 = vrot.slane %v8567_v26, 5  ;;  %v6186_v38 = vrot.slane %v2053_v62, 9  ;;  %v8623_v26 = vld [vmem:[%s9609_s1 + $0xc0] sm:$0xff]  }
 0x102   : > { %v839_v43 = vsel %vm7840_vm8, %v831_v60, %v838_v9  ;;  %v1005_v58 = vsel %vm7854_vm10, %v840_v57, %v1004_v53  ;;  %1002 = vst [vmem:[#allocation2 + $0xc0] sm:$0xf] %v1001_v13  ;;  %v2120_v53 = vrot.slane %v8544_v25, 5  ;;  %v7624_v60 = vld [vmem:[#allocation2 + $0x8] sm:$0x1] }
 0x103   : > { %6835 = vmatmul.mubr.bf16.gmra.mrb[4].mxu1 %v6165_v15  ;;  %1003 = vst [vmem:[#allocation2 + $0xc4] sm:$0xf] %v839_v43  ;;  %1006 = vst [vmem:[#allocation2 + $0xc8] sm:$0x1] %v1005_v58  ;;  %v2109_v9 = vrot.slane %v7624_v60, 5  ;;  %v2115_v25 = vrot.slane %v2113_v45, 4 }
 0x104   : > { %6838 = vmatprep.mubr.bf16.mxu1 %v6166_v17  ;;  %6867 = vmatpush3.bf16.msra.mxu1 %v7525_v59  ;;  %v3198_v59 = vshll.u32 %v8498_v16, 16  ;;  %v2106_v17 = vrot.slane %v8520_v18, 5  ;;  %v7625_v16 = vld [vmem:[#allocation2 + $0x14] sm:$0x1]  ;;  %v2056_v13 = vld [vmem:[#allocation2 + $0x24] sm:$0xe] }
 0x105   : > { %6868 = vmatprep.subr.bf16.mxu1 %v7529_v33  ;;  %v2116_v57 = vrot.slane %v7625_v16, 5  ;;  %v8618_v18 = vrot.slane %v3202_v28, 4  ;;  %v2141_v16 = vrot.slane %v8585_v0, 5  ;;  %v4567_v0 = vld [vmem:[#allocation2 + $0x28] sm:$0xf] }
 0x106   : > { %v8616_v43 = vrot.slane %v3198_v59, 5  ;;  %v2108_v58 = vrot.slane %v2106_v17, 4  ;;  %v7540_v59 = vld [vmem:[#allocation2 + $0x30] sm:$0xff]   ;;  %v8636_v20 = vsel %vm8107_vm13, %v6186_v38, %v2106_v17  ;;  %v2134_v17 = vrot.slane %v8570_v19, 5  ;;  %v7630_v38 = vld [vmem:[#allocation2 + $0x38] sm:$0x1] }
 0x107   : > { %9637 = vst [vmem:[#allocation4_spill] sm:$0xff] %v8618_v18  ;;  %v6177_v19 = vcombine.low %v8496_v6, %v8504_v7  ;;  %v4575_v7 = vld [vmem:[#allocation2 + $0x48] sm:$0xf]  ;;  %v9645_v18 = vshll.u32 %v8501_v51, 16  ;;  %v7571_v51 = vld [vmem:[%s9609_s1 + $0xe0] sm:$0xff]  }
 0x108   : > { %6869 = vmatpush3.bf16.msra.mxu1 %v7529_v33  ;;  %v2055_v33 = vld [vmem:[#allocation2 + $0x18] sm:$0xe]  ;;  %9636 = vst [vmem:[#allocation3_spill] sm:$0xff] %v8616_v43 }
 0x109   : > { %6870 = vmatprep.subr.bf16.mxu1 %v7533_v29  ;;  %v3693_v48 = vld [vmem:[#allocation2 + $0xc0] sm:$0xe]  ;;  %v6188_v11 = vrot.slane %v2055_v33, 9  ;;  %v6175_v33 = vcombine.low %v8445_v37, %v8449_v32  ;;  %v7565_v37 = vld [vmem:[%s9609_s1 + $0x1f0] sm:$0xff]  }
 0x10a   : > { %v2970_v27 = vld [vmem:[#allocation2 + $0xc4] sm:$0xf]  ;;  %v2971_v49 = vld [vmem:[#allocation2 + $0xc8] sm:$0x1]  ;;  %v6337_v61 = vrot.slane %v3693_v48, 9  ;;  %v6189_v48 = vrot.slane %v2056_v13, 9 }
 0x10b   : > { %6839 = vmatmul.mubr.bf16.gmra.mrb[8].mxu1 %v6167_v3  ;;  %v3849_v40 = vrot.slane %v2970_v27, 5  ;;  %v3852_v42 = vrot.slane %v2971_v49, 5  ;;  %v2122_v3 = vrot.slane %v2120_v53, 4  ;;  %v8625_v27 = vld [vmem:[#allocation2 + $0x70] sm:$0xf] }
 0x10c   : > { %6842 = vmatprep.mubr.bf16.mxu1 %v6168_v8  ;;  %6871 = vmatpush3.bf16.msra.mxu1 %v7533_v29  ;;  %v6187_v29 = vrot.slane %v2054_v50, 9  ;;  %v2123_v8 = vrot.slane %v7626_v41, 5  ;;  %v8664_v28 = vsel %vm8107_vm13, %v6189_v48, %v2127_v5  ;;  %v4563_v50 = vld [vmem:[#allocation2 + $0x18] sm:$0xf]  ;;  %v2136_v41 = vrot.slane %v2134_v17, 4 }
 0x10d   : > { %6872 = vmatprep.subr.bf16.mxu1 %v7539_v14  ;;  %v3850_v10 = vsel %vm8107_vm13, %v6337_v61, %v3849_v40  ;;  %v3851_v46 = vrot.slane %v3849_v40, 4  ;;  %v2129_v61 = vrot.slane %v2127_v5, 4  ;;  %v7629_v40 = vld [vmem:[#allocation2 + $0x2c] sm:$0x1]  ;;  %v4564_v5 = vld [vmem:[#allocation2 + $0x1c] sm:$0xf] }
 0x10e   : > { %v8647_v1 = vsel %vm8107_vm13, %v6187_v29, %v2113_v45  ;;  %v6174_v45 = vcombine.low %v8422_v31, %v8430_v47  ;;  %v7542_v31 = vld [vmem:[#allocation2 + $0x3c] sm:$0xff]   ;;  %v7547_v47 = vld [vmem:[%s9609_s1 + $0x1d0] sm:$0xff]  }
 0x10f   : > { %v3853_v15 = vsel %vm8107_vm13, %v3851_v46, %v3852_v42  ;;  %v2130_v42 = vrot.slane %v7629_v40, 5  ;;  %v6173_v46 = vcombine.low %v8357_v55, %v8363_v12  ;;  %v8651_v55 = vsel %vm8107_vm13, %v2115_v25, %v2116_v57  ;;  %v2060_v29 = vld [vmem:[#allocation2 + $0x54] sm:$0xe]  ;;  %v4566_v25 = vld [vmem:[#allocation2 + $0x24] sm:$0xf] }
 0x110   : > { %6873 = vmatpush3.bf16.msra.mxu1 %v7539_v14  ;;  %v6369_v54 = vcombine.low %v3850_v10, %v3853_v15  ;;  %v7627_v14 = vld [vmem:[#allocation2 + $0x6c] sm:$0xf]  ;;  %v8656_v12 = vsel %vm8107_vm13, %v6188_v11, %v2120_v53  ;;  %v6176_v53 = vcombine.low %v8478_v52, %v8490_v30  ;;  %v6219_v57 = vcombine.low %v8647_v1, %v8651_v55  ;;  %v7563_v55 = vld [vmem:[%s9609_s1 + $0xd0] sm:$0xff]  }
 0x111   : > { %6874 = vmatprep.subr.bf16.mxu1 %v7545_v44  ;;  %v6171_v49 = vcombine.low %v7627_v14, %v8625_v27  ;;  %v8668_v15 = vsel %vm8107_vm13, %v2129_v61, %v2130_v42  ;;  %v7546_v11 = vld [vmem:[#allocation2 + $0x48] sm:$0xff]   ;;  %v2155_v61 = vrot.slane %v8597_v35, 5  ;;  %v4612_v40 = vshrl.u32 %v4563_v50, 16 }
 0x112   : > { %7051 = vmatmul.mubr.bf16.gmra.mrb[28].mxu0 %v6369_v54  ;;  %v8671_v54 = vld [vmem:[#allocation2 + $0x48] sm:$0xe]  ;;  %v4615_v42 = vshll.u32 %v4563_v50, 16  ;;  %v7632_v50 = vld [vmem:[#allocation2 + $0x50] sm:$0x1] }
 0x113   : > { %6843 = vmatmul.mubr.bf16.gmra.mrb[12].mxu1 %v6169_v22  ;;  %7070 = vmatprep.mubr.bf16.mxu0 %v7534_v24  ;;  %v2057_v22 = vld [vmem:[#allocation2 + $0x30] sm:$0xe]  ;;  %v8660_v24 = vsel %vm8107_vm13, %v2122_v3, %v2123_v8  ;;  %v7631_v8 = vld [vmem:[#allocation2 + $0x44] sm:$0x1]  ;;  %v6192_v48 = vrot.slane %v8671_v54, 9  ;;  %v4649_v54 = vshrl.u32 %v4567_v0, 16 }
 0x114   : > { %6846 = vmatprep.mubr.bf16.mxu1 %v6170_v36  ;;  %6875 = vmatpush3.bf16.msra.mxu1 %v7545_v44  ;;  %v7536_v44 = vld [vmem:[#allocation2 + $0x24] sm:$0xff]   ;;  %v8640_v36 = vsel %vm8107_vm13, %v2108_v58, %v2109_v9  ;;  %v6190_v62 = vrot.slane %v2057_v22, 9  ;;  %v2137_v58 = vrot.slane %v7630_v38, 5  ;;  %v2144_v14 = vrot.slane %v7631_v8, 5 }
 0x115   : > { %6876 = vmatprep.subr.bf16.mxu1 %v7551_v21  ;;  %v6218_v60 = vcombine.low %v8636_v20, %v8640_v36  ;;  %v2143_v22 = vrot.slane %v2141_v16, 4  ;;  %v2151_v38 = vrot.slane %v7632_v50, 5  ;;  %v6193_v8 = vrot.slane %v2060_v29, 9  ;;  %v7554_v50 = vld [vmem:[#allocation2 + $0x6c] sm:$0xff]   ;;  %v8825_v36 = vld [vmem:[%s9609_s1 + $0x200] sm:$0xff]  }
 0x116   : > { %v8696_v3 = vsel %vm8107_vm13, %v6190_v62, %v2134_v17  ;;  %v4639_v62 = vshll.u32 %v4566_v25, 16  ;;  %v4645_v17 = vshll.u32 %v4567_v0, 16  ;;  %v8710_v35 = vsel %vm8107_vm13, %v2136_v41, %v2137_v58  ;;  %v8820_v20 = vld [vmem:[#allocation2 + $0x4c] sm:$0xf] }
 0x117   : > { %v4614_v13 = vrot.slane %v4612_v40, 4  ;;  %v8719_v58 = vsel %vm8107_vm13, %v2143_v22, %v2144_v14  ;;  %v4651_v40 = vrot.slane %v4649_v54, 4  ;;  %v4568_v22 = vld [vmem:[#allocation2 + $0x2c] sm:$0x1]  ;;  %v7552_v54 = vld [vmem:[#allocation2 + $0x60] sm:$0xff]   ;;  %9638 = vst [vmem:[#allocation5_spill] sm:$0xff] %v8820_v20  ;;  %v9641_v1 = vcombine.low %v8656_v12, %v8660_v24 }
 0x118   : > { %6877 = vmatpush3.bf16.msra.mxu1 %v7551_v21  ;;  %v2058_v21 = vld [vmem:[#allocation2 + $0x3c] sm:$0xe] }
 0x119   : > { %6910 = vmatprep.subr.bf16.mxu1 %v8623_v26  ;;  %v6191_v9 = vrot.slane %v2058_v21, 9  ;;  %v4625_v21 = vshrl.u32 %v4564_v5, 16 }
 0x11a   : > { %7071 = vmatmul.mubr.bf16.vlgmr.msra.gmra.mrb[0].mxu0 %v7536_v44  ;;  %v7553_v44 = vld [vmem:[%s9609_s1 + $0x1d8] sm:$0xff]  }
 0x11b   : > { %6847 = vmatmul.mubr.bf16.gmra.mrb[16].mxu1 %v6171_v49  ;;  %7103 = vmatpush3.bf16.msra.mxu0 %v8412_v63  ;;  %v2148_v49 = vrot.slane %v8588_v23, 5  ;;  %v4636_v23 = vshrl.u32 %v4566_v25, 16  ;;  %v4617_v25 = vrot.slane %v4615_v42, 5  ;;  %v4627_v0 = vrot.slane %v4625_v21, 4  ;;  %v7548_v42 = vld [vmem:[#allocation2 + $0x54] sm:$0xff]  }
 0x11c   : > { %6850 = vmatprep.mubr.bf16.mxu1 %v6172_v2  ;;  %7074 = vmatprep.mubr.bf16.mxu0 %v7540_v59  ;;  %v8706_v2 = vsel %vm8107_vm13, %v6191_v9, %v2141_v16  ;;  %v4621_v59 = vshll.u32 %v4564_v5, 16  ;;  %v2157_v9 = vrot.slane %v2155_v61, 4  ;;  %v7633_v16 = vld [vmem:[#allocation2 + $0x5c] sm:$0x1]  ;;  %v8712_v5 = vld [vmem:[#allocation2 + $0x60] sm:$0xe] }
 0x11d   : > { %7104 = vmatprep.subr.bf16.mxu0 %v7541_v4  ;;  %v2158_v10 = vrot.slane %v7633_v16, 5  ;;  %v4638_v41 = vrot.slane %v4636_v23, 4  ;;  %v2162_v21 = vrot.slane %v8603_v56, 5  ;;  %v2062_v23 = vld [vmem:[#allocation2 + $0x6c] sm:$0xe] }
 0x11e   : > { %v8725_v29 = vrot.slane %v4621_v59, 5  ;;  %v7634_v16 = vld [vmem:[#allocation2 + $0x7c] sm:$0xf]  ;;  %v7561_v56 = vld [vmem:[%s9609_s1 + $0x1e8] sm:$0xff]  }
 0x11f   : > { %7105 = vmatpush3.bf16.msra.mxu0 %v7541_v4  ;;  %v2150_v4 = vrot.slane %v2148_v49, 4  ;;  %v8742_v59 = vsel %vm8107_vm13, %v2157_v9, %v2158_v10  ;;  %v7638_v9 = vld [vmem:[#allocation2 + $0x88] sm:$0xf] }
 0x120   : > { %7106 = vmatprep.subr.bf16.mxu0 %v7547_v47 }
 0x121   : > { %v8733_v14 = vsel %vm8107_vm13, %v2150_v4, %v2151_v38 }
 0x122   : > { %7075 = vmatmul.mubr.bf16.gmra.mrb[4].mxu0 %v7542_v31  ;;  %v4565_v31 = vld [vmem:[#allocation2 + $0x20] sm:$0x1] }
 0x123   : > { %6851 = vmatmul.mubr.bf16.gmra.mrb[20].mxu1 %v6173_v46  ;;  %7078 = vmatprep.mubr.bf16.mxu0 %v7546_v11  ;;  %v7557_v46 = vld [vmem:[%s9609_s1 + $0x1e0] sm:$0xff]   ;;  %v4641_v11 = vrot.slane %v4639_v62, 5  ;;  %v2169_v62 = vrot.slane %v8625_v27, 5  ;;  %v4631_v38 = vshll.u32 %v4565_v31, 16  ;;  %v4569_v27 = vld [vmem:[#allocation2 + $0x30] sm:$0xf] }
 0x124   : > { %6854 = vmatprep.mubr.bf16.mxu1 %v6174_v45  ;;  %7107 = vmatpush3.bf16.msra.mxu0 %v7547_v47  ;;  %v8723_v45 = vsel %vm8107_vm13, %v6192_v48, %v2148_v49  ;;  %v8727_v47 = vrot.slane %v4645_v17, 5  ;;  %v8737_v49 = vsel %vm8107_vm13, %v6193_v8, %v2155_v61  ;;  %v6194_v48 = vrot.slane %v8712_v5, 9  ;;  %v2063_v8 = vld [vmem:[#allocation2 + $0x78] sm:$0xe] }
 0x125   : > { %7108 = vmatprep.subr.bf16.mxu0 %v7553_v44  ;;  %v4618_v17 = vor.u32 %v4617_v25, %v4614_v13  ;;  %v4628_v61 = vor.u32 %v4627_v0, %v8725_v29  ;;  %v2176_v5 = vrot.slane %v7634_v16, 5  ;;  %v4642_v10 = vor.u32 %v4641_v11, %v4638_v41  ;;  %v7635_v25 = vld [vmem:[#allocation2 + $0x68] sm:$0x1]  ;;  %v7636_v16 = vld [vmem:[#allocation2 + $0x74] sm:$0x1] }
 0x126   : > { %v4652_v13 = vor.u32 %v4651_v40, %v8727_v47  ;;  %v2165_v31 = vrot.slane %v7635_v25, 5  ;;  %v6195_v0 = vrot.slane %v2062_v23, 9  ;;  %v2172_v4 = vrot.slane %v7636_v16, 5  ;;  %v7637_v25 = vld [vmem:[#allocation2 + $0x80] sm:$0x1] }
 0x127   : > { %v2164_v41 = vrot.slane %v2162_v21, 4  ;;  %v2171_v11 = vrot.slane %v2169_v62, 4  ;;  %v4619_v40 = vrot.slane %v4618_v17, 4  ;;  %v4629_v32 = vrot.slane %v4628_v61, 4  ;;  %v4570_v61 = vld [vmem:[#allocation2 + $0x34] sm:$0xf] }
 0x128   : > { %7109 = vmatpush3.bf16.msra.mxu0 %v7553_v44  ;;  %v4655_v44 = vshll.u32 %v4568_v22, 16  ;;  %v6196_v22 = vrot.slane %v2063_v8, 9  ;;  %v2178_v23 = vrot.slane %v2176_v5, 4  ;;  %v4643_v16 = vrot.slane %v4642_v10, 4 }
 0x129   : > { %7110 = vmatprep.subr.bf16.mxu0 %v7557_v46  ;;  %v4653_v52 = vrot.slane %v4652_v13, 4  ;;  %v2183_v17 = vrot.slane %v7638_v9, 5  ;;  %v4663_v8 = vshll.u32 %v4569_v27, 16  ;;  %v8776_v10 = vsel %vm8107_vm13, %v2164_v41, %v2165_v31  ;;  %v7639_v31 = vld [vmem:[#allocation2 + $0x8c] sm:$0x1] }
 0x12a   : > { %7079 = vmatmul.mubr.bf16.gmra.mrb[8].mxu0 %v7548_v42  ;;  %v2179_v42 = vrot.slane %v7637_v25, 5  ;;  %v4657_v30 = vrot.slane %v4655_v44, 5  ;;  %v8780_v13 = vsel %vm8107_vm13, %v2171_v11, %v2172_v4  ;;  %v7556_v44 = vld [vmem:[#allocation2 + $0x78] sm:$0xff]   ;;  %v4669_v11 = vshll.u32 %v4570_v61, 16 }
 0x12b   : > { %6855 = vmatmul.mubr.bf16.gmra.mrb[24].mxu1 %v6175_v33  ;;  %7082 = vmatprep.mubr.bf16.mxu0 %v7552_v54  ;;  %v4633_v33 = vrot.slane %v4631_v38, 5  ;;  %v8768_v54 = vsel %vm8107_vm13, %v6194_v48, %v2162_v21  ;;  %v4660_v38 = vshrl.u32 %v4569_v27, 16  ;;  %v4624_v48 = vsel %vm7802_vm2, %v4619_v40, %v8725_v29  ;;  %v7569_v29 = vld [vmem:[%s9609_s1 + $0x1f8] sm:$0xff]   ;;  %v4573_v40 = vld [vmem:[#allocation2 + $0x40] sm:$0xf] }
 0x12c   : > { %6858 = vmatprep.mubr.bf16.mxu1 %v6176_v53  ;;  %7111 = vmatpush3.bf16.msra.mxu0 %v7557_v46  ;;  %v2064_v53 = vld [vmem:[#allocation2 + $0x84] sm:$0xe]  ;;  %v8772_v46 = vsel %vm8107_vm13, %v6195_v0, %v2169_v62  ;;  %v8787_v21 = vsel %vm8107_vm13, %v6196_v22, %v2176_v5  ;;  %v4572_v62 = vld [vmem:[#allocation2 + $0x3c] sm:$0xf]  ;;  %v8793_v9 = vsel %vm8107_vm13, %v2178_v23, %v2179_v42  ;;  %v2186_v0 = vrot.slane %v7639_v31, 5 }
 0x12d   : > { %7112 = vmatprep.subr.bf16.mxu0 %v7561_v56  ;;  %v4634_v27 = vsel %vm7802_vm2, %v4629_v32, %v4633_v33  ;;  %v6197_v4 = vrot.slane %v2064_v53, 9  ;;  %v4648_v5 = vsel %vm7802_vm2, %v4643_v16, %v8727_v47  ;;  %v2185_v41 = vrot.slane %v2183_v17, 4  ;;  %v4571_v22 = vld [vmem:[#allocation2 + $0x38] sm:$0x1]  ;;  %v8841_v31 = vld [vmem:[#allocation2 + $0x90] sm:$0xe] }
 0x12e   : > { %v4662_v32 = vrot.slane %v4660_v38, 4  ;;  %v4665_v33 = vrot.slane %v4663_v8, 5  ;;  %v4673_v23 = vshrl.u32 %v4570_v61, 16  ;;  %v4684_v25 = vshrl.u32 %v4572_v62, 16  ;;  %v4574_v61 = vld [vmem:[#allocation2 + $0x44] sm:$0x1] }
 0x12f   : > { %v8814_v6 = vcombine.low %v4624_v48, %v4634_v27  ;;  %v8833_v53 = vsel %vm8107_vm13, %v2185_v41, %v2186_v0  ;;  %v4578_v38 = vld [vmem:[#allocation2 + $0x54] sm:$0xf]  ;;  %v7558_v8 = vld [vmem:[#allocation2 + $0x84] sm:$0xff]   ;;  %v4721_v0 = vshrl.u32 %v8820_v20, 16 }
 0x130   : > { %7113 = vmatpush3.bf16.msra.mxu0 %v7561_v56  ;;  %v4658_v56 = vsel %vm7802_vm2, %v4653_v52, %v4657_v30  ;;  %v4693_v52 = vshll.u32 %v4573_v40, 16  ;;  %v4697_v30 = vshrl.u32 %v4573_v40, 16  ;;  %v4666_v48 = vor.u32 %v4665_v33, %v4662_v32  ;;  %v7559_v41 = vld [vmem:[%s9609_s1 + $0xc8] sm:$0xff]  }
 0x131   : > { %7114 = vmatprep.subr.bf16.mxu0 %v7565_v37  ;;  %v8837_v27 = vrot.slane %v4684_v25, 4  ;;  %v4717_v40 = vshll.u32 %v8820_v20, 16  ;;  %v4703_v33 = vshll.u32 %v4574_v61, 16  ;;  %v4732_v25 = vshrl.u32 %v4578_v38, 16 }
 0x132   : > { %7083 = vmatmul.mubr.bf16.gmra.mrb[12].mxu0 %v7554_v50  ;;  %v4687_v50 = vshll.u32 %v4572_v62, 16  ;;  %v8835_v62 = vrot.slane %v4669_v11, 5  ;;  %v4699_v32 = vrot.slane %v4697_v30, 4  ;;  %v8856_v47 = vrot.slane %v4666_v48, 4  ;;  %v8863_v30 = vld [vmem:[#allocation2 + $0x50] sm:$0x1] }
 0x133   : > { %6859 = vmatmul.mubr.bf16.gmra.mrb[28].mxu1 %v6177_v19  ;;  %7086 = vmatprep.mubr.bf16.mxu0 %v7556_v44  ;;  %v8818_v19 = vsel %vm8107_vm13, %v6197_v4, %v2183_v17  ;;  %v4679_v17 = vshll.u32 %v4571_v22, 16  ;;  %v4675_v44 = vrot.slane %v4673_v23, 4  ;;  %v8839_v4 = vld [vmem:[#allocation2 + $0x58] sm:$0xf]  ;;  %v8848_v22 = vrot.slane %v4693_v52, 5  ;;  %v7560_v23 = vld [vmem:[#allocation2 + $0x90] sm:$0xff]  }
 0x134   : > { %6878 = vmatprep.mubr.bf16.mxu1 %v6218_v60  ;;  %7115 = vmatpush3.bf16.msra.mxu0 %v7565_v37  ;;  %v8827_v60 = vcombine.low %v4648_v5, %v4658_v56  ;;  %9639 = vst [vmem:[#allocation6_spill] sm:$0xff] %v8839_v4  ;;  %v4708_v5 = vshrl.u32 %v4575_v7, 16  ;;  %v4711_v56 = vshll.u32 %v4575_v7, 16  ;;  %v4689_v11 = vrot.slane %v4687_v50, 5  ;;  %9640 = vst [vmem:[#allocation7_spill] sm:$0xff] %v8863_v30 }
 0x135   : > { %7116 = vmatprep.subr.bf16.mxu0 %v7569_v29  ;;  %v4735_v37 = vshll.u32 %v4578_v38, 16  ;;  %v4741_v7 = vshll.u32 %v8839_v4, 16  ;;  %v4745_v16 = vshrl.u32 %v8839_v4, 16  ;;  %v8859_v50 = vrot.slane %v4679_v17, 5 }
 0x136   : > { %v6198_v52 = vrot.slane %v8841_v31, 9  ;;  %v4710_v61 = vrot.slane %v4708_v5, 4  ;;  %v4713_v38 = vrot.slane %v4711_v56, 5  ;;  %v8865_v42 = vrot.slane %v4717_v40, 5  ;;  %v7641_v40 = vld [vmem:[#allocation2 + $0x98] sm:$0x1] }
 0x137   : > { %v4723_v63 = vrot.slane %v4721_v0, 4  ;;  %v8875_v17 = vrot.slane %v4703_v33, 5  ;;  %v4734_v31 = vrot.slane %v4732_v25, 4  ;;  %v4737_v5 = vrot.slane %v4735_v37, 5  ;;  %v2067_v37 = vld [vmem:[#allocation2 + $0xa8] sm:$0xe] }
 0x138   : > { %7117 = vmatpush3.bf16.msra.mxu0 %v7569_v29  ;;  %v4676_v29 = vor.u32 %v4675_v44, %v8835_v62  ;;  %v2066_v44 = vld [vmem:[#allocation2 + $0x9c] sm:$0xe]  ;;  %v8877_v56 = vrot.slane %v4741_v7, 5  ;;  %v4747_v12 = vrot.slane %v4745_v16, 4  ;;  %v2193_v0 = vrot.slane %v7641_v40, 5  ;;  %v7564_v16 = vld [vmem:[#allocation2 + $0xa8] sm:$0xff]  }
 0x139   : > { %7150 = vmatprep.subr.bf16.mxu0 %v8825_v36  ;;  %v6199_v33 = vrot.slane %v2066_v44, 9  ;;  %v7643_v25 = vld [vmem:[#allocation2 + $0xac] sm:$0xf]  ;;  %v6200_v20 = vrot.slane %v2067_v37, 9 }
 0x13a   : > { %7087 = vmatmul.mubr.bf16.gmra.mrb[16].mxu0 %v7558_v8  ;;  %v7640_v8 = vld [vmem:[#allocation2 + $0x94] sm:$0xf]  ;;  %v8879_v24 = vrot.slane %v4676_v29, 4  ;;  %v2204_v7 = vrot.slane %v7643_v25, 5  ;;  %v4672_v29 = vsel %vm7802_vm2, %v8856_v47, %v8835_v62  ;;  %v4748_v44 = vor.u32 %v4747_v12, %v8877_v56  ;;  %v7644_v62 = vld [vmem:[#allocation2 + $0xa4] sm:$0x1] }
 0x13b   : > { %6879 = vmatmul.mubr.bf16.vlgmr.msra.gmra.mrb[0].mxu1 %v6219_v57  ;;  %v4690_v57 = vor.u32 %v4689_v11, %v8837_v27  ;;  %v2190_v48 = vrot.slane %v7640_v8, 5  ;;  %7090 = vmatprep.mubr.bf16.mxu0 %v7560_v23  ;;  %v4727_v27 = vshll.u32 %v8863_v30, 16  ;;  %v8882_v11 = vld [vmem:[#allocation2 + $0x5c] sm:$0x1]  ;;  %v4714_v8 = vor.u32 %v4713_v38, %v4710_v61  ;;  %v7645_v12 = vld [vmem:[#allocation2 + $0xb0] sm:$0x1] }
 0x13c   : > { %6911 = vmatpush3.bf16.msra.mxu1 %v8623_v26  ;;  %6882 = vmatprep.mubr.bf16.mxu1 %v9641_v1  ;;  %v4700_v26 = vor.u32 %v4699_v32, %v8848_v22  ;;  %v7642_v1 = vld [vmem:[#allocation2 + $0xa0] sm:$0xf]  ;;  %9642 = vst [vmem:[#allocation8_spill] sm:$0xff] %v8882_v11  ;;  %v4724_v23 = vor.u32 %v4723_v63, %v8865_v42  ;;  %v7567_v63 = vld [vmem:[%s9609_s1 + $0xd8] sm:$0xff]   ;;  %v4751_v25 = vshll.u32 %v8882_v11, 16  ;;  %v2207_v43 = vrot.slane %v7645_v12, 5 }
 0x13d   : > { %6912 = vmatprep.subr.bf16.mxu1 %v7559_v41  ;;  %v2197_v4 = vrot.slane %v7642_v1, 5  ;;  %v7562_v32 = vld [vmem:[#allocation2 + $0x9c] sm:$0xff]   ;;  %v4691_v40 = vrot.slane %v4690_v57, 4  ;;  %v8891_v1 = vsel %vm8107_vm13, %v6198_v52, %v2190_v48  ;;  %v4738_v38 = vor.u32 %v4737_v5, %v4734_v31  ;;  %v2068_v11 = vld [vmem:[#allocation2 + $0xb4] sm:$0xe] }
 0x13e   : > { %v4701_v61 = vrot.slane %v4700_v26, 4  ;;  %v9643_v30 = vcombine.low %v8664_v28, %v8668_v15  ;;  %v2200_v57 = vrot.slane %v7644_v62, 5  ;;  %v4729_v52 = vrot.slane %v4727_v27, 5  ;;  %v7646_v27 = vld [vmem:[#allocation2 + $0xb8] sm:$0xf] }
 0x13f   : > { %v2199_v47 = vrot.slane %v2197_v4, 4  ;;  %v4715_v26 = vrot.slane %v4714_v8, 4  ;;  %v4725_v31 = vrot.slane %v4724_v23, 4  ;;  %v2206_v5 = vrot.slane %v2204_v7, 4  ;;  %v7566_v8 = vld [vmem:[#allocation2 + $0xb4] sm:$0xff]  }
 0x140   : > { %6913 = vmatpush3.bf16.msra.mxu1 %v7559_v41  ;;  %v2192_v41 = vrot.slane %v2190_v48, 4  ;;  %v9644_v48 = vcombine.low %v8696_v3, %v8710_v35  ;;  %v8906_v28 = vrot.slane %v9645_v18, 5  ;;  %v4682_v15 = vsel %vm7802_vm2, %v8879_v24, %v8859_v50 }
 0x141   : > { %6914 = vmatprep.subr.bf16.mxu1 %v7563_v55  ;;  %v4696_v3 = vsel %vm7802_vm2, %v4691_v40, %v8848_v22  ;;  %v4706_v18 = vsel %vm7802_vm2, %v4701_v61, %v8875_v17  ;;  %v4753_v50 = vrot.slane %v4751_v25, 5  ;;  %v8927_v24 = vsel %vm8107_vm13, %v6199_v33, %v2197_v4  ;;  %v4581_v33 = vld [vmem:[#allocation2 + $0x60] sm:$0xf]  ;;  %v8954_v61 = vld [vmem:[#allocation2 + $0x64] sm:$0xf] }
 0x142   : > { %7091 = vmatmul.mubr.bf16.gmra.mrb[20].mxu0 %v7562_v32  ;;  %9646 = vst [vmem:[#allocation9_spill] sm:$0xff] %v8906_v28  ;;  %v8917_v35 = vsel %vm8107_vm13, %v2192_v41, %v2193_v0  ;;  %v8931_v22 = vsel %vm8107_vm13, %v2199_v47, %v2200_v57  ;;  %v6201_v0 = vrot.slane %v2068_v11, 9  ;;  %v2211_v32 = vrot.slane %v7646_v27, 5  ;;  %v7568_v11 = vld [vmem:[#allocation2 + $0xc0] sm:$0xff]   ;;  %v4584_v25 = vld [vmem:[#allocation2 + $0x6c] sm:$0xf] }
 0x143   : > { %6883 = vmatmul.mubr.bf16.gmra.mrb[4].mxu1 %v9643_v30  ;;  %7094 = vmatprep.mubr.bf16.mxu0 %v7564_v16  ;;  %v4739_v30 = vrot.slane %v4738_v38, 4  ;;  %v4720_v23 = vsel %vm7802_vm2, %v4715_v26, %v8865_v42  ;;  %v4730_v17 = vsel %vm7802_vm2, %v4725_v31, %v4729_v52  ;;  %v8940_v37 = vsel %vm8107_vm13, %v6200_v20, %v2204_v7  ;;  %v8956_v20 = vld [vmem:[#allocation2 + $0x68] sm:$0x1]  ;;  %v8968_v38 = vld [vmem:[#allocation2 + $0xbc] sm:$0x1] }
 0x144   : > { %6886 = vmatprep.mubr.bf16.mxu1 %v9644_v48  ;;  %6915 = vmatpush3.bf16.msra.mxu1 %v7563_v55  ;;  %v4749_v55 = vrot.slane %v4748_v44, 4  ;;  %v8944_v4 = vsel %vm8107_vm13, %v2206_v5, %v2207_v43  ;;  %v8948_v40 = vcombine.low %v4672_v29, %v4682_v15  ;;  %v8950_v42 = vcombine.low %v4696_v3, %v4706_v18  ;;  %v7573_v43 = vld [vmem:[%s9609_s1 + $0xe8] sm:$0xff]   ;;  %v8971_v47 = vld [vmem:[#allocation2 + $0x70] sm:$0xf]  ;;  %v4587_v26 = vld [vmem:[#allocation2 + $0x78] sm:$0xf] }
 0x145   : > { %6916 = vmatprep.subr.bf16.mxu1 %v7567_v63  ;;  %9647 = vst [vmem:[#allocation10_spill] sm:$0xff] %v8944_v4  ;;  %v4744_v29 = vsel %vm7802_vm2, %v4739_v30, %v8877_v56  ;;  %v9648_v62 = vcombine.low %v8706_v2, %v8719_v58  ;;  %v8976_v57 = vcombine.low %v4720_v23, %v4730_v17  ;;  %v8984_v48 = vrot.slane %v2211_v32, 4  ;;  %v8986_v31 = vld [vmem:[#allocation2 + $0x7c] sm:$0xf]  ;;  %v4590_v3 = vld [vmem:[#allocation2 + $0x84] sm:$0xf] }
 0x146   : > { %v8982_v56 = vsel %vm8107_vm13, %v6201_v0, %v2211_v32  ;;  %9649 = vst [vmem:[#allocation11_spill] sm:$0xff] %v8986_v31  ;;  %v9650_v5 = vcombine.low %v8723_v45, %v8733_v14  ;;  %v4756_v2 = vshrl.u32 %v4581_v33, 16  ;;  %v4759_v58 = vshll.u32 %v4581_v33, 16  ;;  %v8996_v0 = vld [vmem:[#allocation2 + $0x88] sm:$0xf]  ;;  %v7575_v45 = vld [vmem:[%s9609_s1 + $0xf0] sm:$0xff]  }
 0x147   : > { %v4765_v12 = vshll.u32 %v8954_v61, 16  ;;  %v4769_v15 = vshrl.u32 %v8954_v61, 16  ;;  %v4775_v30 = vshll.u32 %v8956_v20, 16  ;;  %9651 = vst [vmem:[#allocation12_spill] sm:$0xff] %v8996_v0  ;;  %v4789_v14 = vshll.u32 %v8971_v47, 16 }
 0x148   : > { %6917 = vmatpush3.bf16.msra.mxu1 %v7567_v63  ;;  %v4754_v63 = vsel %vm7802_vm2, %v4749_v55, %v4753_v50  ;;  %v4780_v55 = vshrl.u32 %v4584_v25, 16  ;;  %v4783_v50 = vshll.u32 %v4584_v25, 16  ;;  %v4793_v27 = vshrl.u32 %v8971_v47, 16  ;;  %v4593_v44 = vld [vmem:[#allocation2 + $0x90] sm:$0xf] }
 0x149   : > { %6918 = vmatprep.subr.bf16.mxu1 %v7571_v51  ;;  %v8993_v18 = vcombine.low %v4744_v29, %v4754_v63  ;;  %v4804_v32 = vshrl.u32 %v4587_v26, 16  ;;  %v4813_v23 = vshll.u32 %v8986_v31, 16  ;;  %v4817_v17 = vshrl.u32 %v8986_v31, 16  ;;  %v7577_v29 = vld [vmem:[%s9609_s1 + $0xf8] sm:$0xff]   ;;  %v9016_v28 = vld [vmem:[#allocation2 + $0x80] sm:$0x1] }
 0x14a   : > { %7095 = vmatmul.mubr.bf16.gmra.mrb[24].mxu0 %v7566_v8  ;;  %v4807_v8 = vshll.u32 %v4587_v26, 16  ;;  %v4828_v33 = vshrl.u32 %v4590_v3, 16  ;;  %v4758_v63 = vrot.slane %v4756_v2, 4  ;;  %v4761_v25 = vrot.slane %v4759_v58, 5 }
 0x14b   : > { %6887 = vmatmul.mubr.bf16.gmra.mrb[8].mxu1 %v9648_v62  ;;  %7098 = vmatprep.mubr.bf16.mxu0 %v7568_v11  ;;  %v4831_v11 = vshll.u32 %v4590_v3, 16  ;;  %v9008_v62 = vld [vmem:[#allocation2 + $0x74] sm:$0x1]  ;;  %v4841_v52 = vshrl.u32 %v8996_v0, 16  ;;  %v9012_v26 = vrot.slane %v4765_v12, 5  ;;  %v4771_v7 = vrot.slane %v4769_v15, 4 }
 0x14c   : > { %6890 = vmatprep.mubr.bf16.mxu1 %v9650_v5  ;;  %6919 = vmatpush3.bf16.msra.mxu1 %v7571_v51  ;;  %v7570_v51 = vld [vmem:[#allocation2 + $0xcc] sm:$0xff]   ;;  %v4837_v5 = vshll.u32 %v8996_v0, 16  ;;  %v4782_v41 = vrot.slane %v4780_v55, 4  ;;  %v4785_v16 = vrot.slane %v4783_v50, 5  ;;  %v9014_v3 = vrot.slane %v4789_v14, 5 }
 0x14d   : > { %6920 = vmatprep.subr.bf16.mxu1 %v7573_v43  ;;  %v4795_v31 = vrot.slane %v4793_v27, 4  ;;  %v4806_v2 = vrot.slane %v4804_v32, 4  ;;  %v4809_v58 = vrot.slane %v4807_v8, 5  ;;  %v9652_v4 = vcombine.low %v8737_v49, %v8742_v59  ;;  %v9023_v55 = vld [vmem:[#allocation2 + $0x94] sm:$0xf] }
 0x14e   : > { %v9021_v0 = vrot.slane %v4813_v23, 5  ;;  %v4830_v12 = vrot.slane %v4828_v33, 4  ;;  %v4833_v15 = vrot.slane %v4831_v11, 5  ;;  %9653 = vst [vmem:[#allocation13_spill] sm:$0xff] %v9023_v55  ;;  %v9654_v50 = vcombine.low %v8768_v54, %v8776_v10  ;;  %v9028_v14 = vld [vmem:[#allocation2 + $0x8c] sm:$0x1] }
 0x14f   : > { %v9030_v27 = vrot.slane %v4837_v5, 5  ;;  %v4843_v32 = vrot.slane %v4841_v52, 4  ;;  %v4852_v8 = vshrl.u32 %v4593_v44, 16  ;;  %v4855_v49 = vshll.u32 %v4593_v44, 16  ;;  %v4596_v33 = vld [vmem:[#allocation2 + $0x9c] sm:$0xf] }
 0x150   : > { %6921 = vmatpush3.bf16.msra.mxu1 %v7573_v43  ;;  %v4819_v43 = vrot.slane %v4817_v17, 4  ;;  %v4762_v59 = vor.u32 %v4761_v25, %v4758_v63  ;;  %v9034_v23 = vrot.slane %v4775_v30, 5  ;;  %v4786_v54 = vor.u32 %v4785_v16, %v4782_v41 }
 0x151   : > { %6922 = vmatprep.subr.bf16.mxu1 %v7575_v45  ;;  %v4796_v10 = vor.u32 %v4795_v31, %v9014_v3  ;;  %v4861_v17 = vshll.u32 %v9023_v55, 16  ;;  %v4865_v52 = vshrl.u32 %v9023_v55, 16  ;;  %v4810_v44 = vor.u32 %v4809_v58, %v4806_v2  ;;  %v7574_v2 = vld [vmem:[%s9609_s1 + $0x208] sm:$0xff]   ;;  %v9064_v55 = vld [vmem:[#allocation2 + $0xa0] sm:$0xf] }
 0x152   : > { %7099 = vmatmul.mubr.bf16.gmra.mrb[28].mxu0 %v7570_v51  ;;  %v4799_v51 = vshll.u32 %v9008_v62, 16  ;;  %v4834_v30 = vor.u32 %v4833_v15, %v4830_v12  ;;  %v4844_v11 = vor.u32 %v4843_v32, %v9030_v27  ;;  %v4854_v63 = vrot.slane %v4852_v8, 4 }
 0x153   : > { %6891 = vmatmul.mubr.bf16.gmra.mrb[12].mxu1 %v9652_v4  ;;  %7118 = vmatprep.mubr.bf16.mxu0 %v8814_v6  ;;  %v4772_v4 = vor.u32 %v4771_v7, %v9012_v26  ;;  %v4820_v6 = vor.u32 %v4819_v43, %v9021_v0  ;;  %v4847_v7 = vshll.u32 %v9028_v14, 16  ;;  %v4857_v25 = vrot.slane %v4855_v49, 5 }
 0x154   : > { %6894 = vmatprep.mubr.bf16.mxu1 %v9654_v50  ;;  %6923 = vmatpush3.bf16.msra.mxu1 %v7575_v45  ;;  %v4823_v45 = vshll.u32 %v9016_v28, 16  ;;  %v4763_v16 = vrot.slane %v4762_v59, 4  ;;  %v4876_v31 = vshrl.u32 %v4596_v33, 16  ;;  %v4879_v5 = vshll.u32 %v4596_v33, 16  ;;  %v9050_v50 = vld [vmem:[%s9609_s1 + $0x100] sm:$0xff]  }
 0x155   : > { %6924 = vmatprep.subr.bf16.mxu1 %v7577_v29  ;;  %v4773_v41 = vrot.slane %v4772_v4, 4  ;;  %v4787_v58 = vrot.slane %v4786_v54, 4  ;;  %v4801_v43 = vrot.slane %v4799_v51, 5  ;;  %v9053_v12 = vrot.slane %v4861_v17, 5  ;;  %v9058_v4 = vld [vmem:[#allocation2 + $0x98] sm:$0x1] }
 0x156   : > { %v4867_v15 = vrot.slane %v4865_v52, 4  ;;  %v4797_v32 = vrot.slane %v4796_v10, 4  ;;  %v4811_v8 = vrot.slane %v4810_v44, 4  ;;  %v4821_v49 = vrot.slane %v4820_v6, 4  ;;  %v4599_v44 = vld [vmem:[#allocation2 + $0xa8] sm:$0xf] }
 0x157   : > { %v4825_v59 = vrot.slane %v4823_v45, 5  ;;  %v9656_v51 = vcombine.low %v8787_v21, %v8793_v9  ;;  %v4835_v54 = vrot.slane %v4834_v30, 4  ;;  %v4845_v17 = vrot.slane %v4844_v11, 4  ;;  %v9098_v30 = vld [vmem:[#allocation2 + $0xac] sm:$0xf] }
 0x158   : > { %6925 = vmatpush3.bf16.msra.mxu1 %v7577_v29  ;;  %v9655_v29 = vcombine.low %v8772_v46, %v8780_v13  ;;  %v4849_v33 = vrot.slane %v4847_v7, 5  ;;  %v4858_v52 = vor.u32 %v4857_v25, %v4854_v63  ;;  %v9657_v46 = vrot.slane %v8968_v38, 5 }
 0x159   : > { %7198 = vmatprep.subr.bf16.mxu1 %v9050_v50  ;;  %v4768_v21 = vsel %vm7802_vm2, %v4763_v16, %v9012_v26  ;;  %v4878_v9 = vrot.slane %v4876_v31, 4  ;;  %v4792_v38 = vsel %vm7802_vm2, %v4787_v58, %v9014_v3  ;;  %v4871_v10 = vshll.u32 %v9058_v4, 16  ;;  %v9089_v26 = vld [vmem:[#allocation2 + $0xa4] sm:$0x1]  ;;  %v7578_v58 = vld [vmem:[%s9609_s1 + $0x218] sm:$0xff]  }
 0x15a   : > { %7119 = vmatmul.mubr.bf16.vlgmr.msra.gmra.mrb[0].mxu0 %v8827_v60  ;;  %v9073_v13 = vsel %vm8107_vm13, %v8984_v48, %v9657_v46  ;;  %v4881_v60 = vrot.slane %v4879_v5, 5  ;;  %v4868_v48 = vor.u32 %v4867_v15, %v9053_v12  ;;  %v4802_v6 = vsel %vm7802_vm2, %v4797_v32, %v4801_v43 }
 0x15b   : > { %6895 = vmatmul.mubr.bf16.gmra.mrb[16].mxu1 %v9655_v29  ;;  %7151 = vmatpush3.bf16.msra.mxu0 %v8825_v36  ;;  %v7576_v36 = vld [vmem:[%s9609_s1 + $0x210] sm:$0xff]   ;;  %v4816_v45 = vsel %vm7802_vm2, %v4811_v8, %v9021_v0  ;;  %v4889_v7 = vshrl.u32 %v9064_v55, 16  ;;  %v4826_v3 = vsel %vm7802_vm2, %v4821_v49, %v4825_v59  ;;  %v4840_v11 = vsel %vm7802_vm2, %v4835_v54, %v9030_v27  ;;  %v5321_v59 = vld [vmem:[#allocation2 + $0x48] sm:$0xe]  ;;  %v9660_v54 = vld [vmem:[#allocation3_spill] sm:$0xff] }
 0x15c   : > { %6898 = vmatprep.mubr.bf16.mxu1 %v9656_v51  ;;  %7122 = vmatprep.mubr.bf16.mxu0 %v8948_v40  ;;  %v4778_v40 = vsel %vm7802_vm2, %v4773_v41, %v9034_v23  ;;  %v4885_v23 = vshll.u32 %v9064_v55, 16  ;;  %v4850_v63 = vsel %vm7802_vm2, %v4845_v17, %v4849_v33  ;;  %v9107_v25 = vrot.slane %v4858_v52, 4  ;;  %v9659_v51 = vld [vmem:[#allocation4_spill] sm:$0xff] }
 0x15d   : > { %7152 = vmatprep.subr.bf16.mxu0 %v7574_v2  ;;  %v4882_v0 = vor.u32 %v4881_v60, %v4878_v9  ;;  %v4895_v16 = vshll.u32 %v9089_v26, 16  ;;  %v4900_v41 = vshrl.u32 %v4599_v44, 16  ;;  %v4903_v31 = vshll.u32 %v4599_v44, 16  ;;  %v9148_v9 = vld [vmem:[#allocation2 + $0xb4] sm:$0xf] }
 0x15e   : > { %v6233_v5 = vcombine.low %v8982_v56, %v9073_v13  ;;  %v9115_v27 = vrot.slane %v4868_v48, 4  ;;  %v9117_v43 = vrot.slane %v4871_v10, 5  ;;  %v4909_v15 = vshll.u32 %v9098_v30, 16  ;;  %v5323_v10 = vld [vmem:[#allocation2 + $0x60] sm:$0xe] }
 0x15f   : > { %7153 = vmatpush3.bf16.msra.mxu0 %v7574_v2  ;;  %v9658_v2 = vcombine.low %v8818_v19, %v8833_v53  ;;  %v6440_v29 = vcombine.low %v4768_v21, %v4778_v40  ;;  %v9123_v32 = vcombine.low %v4792_v38, %v4802_v6  ;;  %v9125_v8 = vrot.slane %v4885_v23, 5  ;;  %v9146_v21 = vld [vmem:[#allocation2 + $0xb0] sm:$0x1]  ;;  %v5322_v40 = vld [vmem:[#allocation2 + $0x54] sm:$0xe]  ;;  %v7581_v38 = vld [vmem:[%s9609_s1 + $0x220] sm:$0xff]  }
 0x160   : > { %7154 = vmatprep.subr.bf16.mxu0 %v7576_v36  ;;  %v9127_v49 = vrot.slane %v4889_v7, 4  ;;  %v9661_v17 = vor.u32 %v9659_v51, %v9660_v54  ;;  %v9662_v52 = vcombine.low %v8891_v1, %v8917_v35  ;;  %v9138_v19 = vcombine.low %v4816_v45, %v4826_v3  ;;  %v9663_v23 = vld [vmem:[#allocation5_spill] sm:$0xff]  ;;  %v9664_v3 = vld [vmem:[#allocation7_spill] sm:$0xff] }
 0x161   : > { %v9140_v53 = vcombine.low %v4840_v11, %v4850_v63  ;;  %v4864_v46 = vsel %vm7802_vm2, %v9107_v25, %v9053_v12  ;;  %v9153_v1 = vrot.slane %v4895_v16, 5  ;;  %v4902_v35 = vrot.slane %v4900_v41, 4  ;;  %v9665_v25 = vld [vmem:[#allocation6_spill] sm:$0xff]  ;;  %v9666_v16 = vld [vmem:[#allocation8_spill] sm:$0xff]  ;;  %v9279_v13 = vld [vmem:[#allocation2 + $0xbc] sm:$0x1] }
 0x162   : > { %v9132_v33 = vrot.slane %v9661_v17, 4  ;;  %7123 = vmatmul.mubr.bf16.gmra.mrb[4].mxu0 %v8950_v42  ;;  %v9151_v42 = vrot.slane %v4882_v0, 4  ;;  %v4905_v60 = vrot.slane %v4903_v31, 5  ;;  %v4874_v12 = vsel %vm7802_vm2, %v9115_v27, %v9117_v43  ;;  %v5324_v31 = vld [vmem:[#allocation2 + $0x6c] sm:$0xe] }
 0x163   : > { %6899 = vmatmul.mubr.bf16.gmra.mrb[20].mxu1 %v9658_v2  ;;  %7126 = vmatprep.mubr.bf16.mxu0 %v8976_v57  ;;  %v9162_v48 = vrot.slane %v4909_v15, 5  ;;  %v4913_v57 = vshrl.u32 %v9098_v30, 16  ;;  %v4892_v44 = vor.u32 %v9127_v49, %v9125_v8  ;;  %v4919_v6 = vshll.u32 %v9146_v21, 16  ;;  %v7584_v49 = vld [vmem:[%s9609_s1 + $0x228] sm:$0xff]  }
 0x164   : > { %6902 = vmatprep.mubr.bf16.mxu1 %v9662_v52  ;;  %7155 = vmatpush3.bf16.msra.mxu0 %v7576_v36  ;;  %v6462_v36 = vrot.slane %v5321_v59, 9  ;;  %v4924_v45 = vshrl.u32 %v9148_v9, 16  ;;  %v5411_v7 = vrot.slane %v9663_v23, 5  ;;  %v5414_v11 = vrot.slane %v9664_v3, 5 }
 0x165   : > { %7156 = vmatprep.subr.bf16.mxu0 %v7578_v58  ;;  %v6463_v63 = vrot.slane %v5322_v40, 9  ;;  %v5418_v0 = vrot.slane %v9665_v25, 5  ;;  %v5421_v41 = vrot.slane %v9666_v16, 5  ;;  %v4906_v27 = vor.u32 %v4905_v60, %v4902_v35  ;;  %v7579_v16 = vld [vmem:[#allocation2 + $0xc] sm:$0xff]  }
 0x166   : > { %v9175_v43 = vsel %vm8107_vm13, %v6462_v36, %v5411_v7  ;;  %v5413_v15 = vrot.slane %v5411_v7, 4  ;;  %v6464_v2 = vrot.slane %v5323_v10, 9  ;;  %v9180_v59 = vrot.slane %v4913_v57, 4  ;;  %v9668_v36 = vld [vmem:[#allocation10_spill] sm:$0xff] }
 0x167   : > { %v9184_v51 = vsel %vm8107_vm13, %v6463_v63, %v5418_v0  ;;  %v5420_v17 = vrot.slane %v5418_v0, 4  ;;  %v9667_v52 = vcombine.low %v8927_v24, %v8931_v22  ;;  %v5428_v60 = vrot.slane %v8956_v20, 5  ;;  %v5325_v0 = vld [vmem:[#allocation2 + $0x78] sm:$0xe] }
 0x168   : > { %7157 = vmatpush3.bf16.msra.mxu0 %v7578_v58  ;;  %v5425_v58 = vrot.slane %v8954_v61, 5  ;;  %v9192_v35 = vsel %vm8107_vm13, %v5413_v15, %v5414_v11  ;;  %v6465_v40 = vrot.slane %v5324_v31, 9  ;;  %v5432_v57 = vrot.slane %v8971_v47, 5  ;;  %v9228_v11 = vld [vmem:[#allocation2 + $0xb8] sm:$0xf] }
 0x169   : > { %7158 = vmatprep.subr.bf16.mxu0 %v7581_v38  ;;  %v9669_v10 = vcombine.low %v8940_v37, %v9668_v36  ;;  %v6494_v61 = vcombine.low %v9175_v43, %v9192_v35  ;;  %v9204_v24 = vsel %vm8107_vm13, %v5420_v17, %v5421_v41  ;;  %v5435_v23 = vrot.slane %v9008_v62, 5  ;;  %v2951_v62 = vld [vmem:[#allocation2 + $0x78] sm:$0xf]  ;;  %v7667_v35 = vld [vmem:[#allocation2 + $0x8c] sm:$0x1] }
 0x16a   : > { %7127 = vmatmul.mubr.bf16.gmra.mrb[8].mxu0 %v8993_v18  ;;  %v9208_v22 = vsel %vm8107_vm13, %v6464_v2, %v5425_v58  ;;  %v5427_v20 = vrot.slane %v5425_v58, 4  ;;  %v6495_v47 = vcombine.low %v9184_v51, %v9204_v24  ;;  %v9214_v37 = vsel %vm8107_vm13, %v6465_v40, %v5432_v57 }
 0x16b   : > { %6903 = vmatmul.mubr.bf16.gmra.mrb[24].mxu1 %v9667_v52  ;;  %7130 = vmatprep.mubr.bf16.mxu0 %v6440_v29  ;;  %v5434_v18 = vrot.slane %v5432_v57, 4  ;;  %v9217_v7 = vcombine.low %v4864_v46, %v4874_v12  ;;  %v4888_v3 = vsel %vm7802_vm2, %v9151_v42, %v9125_v8  ;;  %v9223_v29 = vrot.slane %v4892_v44, 4  ;;  %v9671_v57 = vld [vmem:[#allocation11_spill] sm:$0xff] }
 0x16c   : > { %6906 = vmatprep.mubr.bf16.mxu1 %v9669_v10  ;;  %7159 = vmatpush3.bf16.msra.mxu0 %v7581_v38  ;;  %v7587_v38 = vld [vmem:[%s9609_s1 + $0x230] sm:$0xff]   ;;  %v9232_v63 = vsel %vm8107_vm13, %v5427_v20, %v5428_v60  ;;  %v9234_v46 = vrot.slane %v4919_v6, 5  ;;  %v4927_v12 = vshll.u32 %v9148_v9, 16  ;;  %v9243_v41 = vrot.slane %v4906_v27, 4  ;;  %v4605_v6 = vld [vmem:[#allocation2 + $0xc0] sm:$0xf] }
 0x16d   : > { %7160 = vmatprep.subr.bf16.mxu0 %v7584_v49  ;;  %v6496_v25 = vcombine.low %v9208_v22, %v9232_v63  ;;  %v9241_v44 = vsel %vm8107_vm13, %v5434_v18, %v5435_v23  ;;  %v4916_v31 = vor.u32 %v9180_v59, %v9162_v48  ;;  %v9247_v15 = vrot.slane %v4924_v45, 4  ;;  %v5326_v60 = vld [vmem:[#allocation2 + $0x84] sm:$0xe]  ;;  %v7590_v45 = vld [vmem:[%s9609_s1 + $0x238] sm:$0xff]   ;;  %v9670_v59 = vld [vmem:[#allocation9_spill] sm:$0xff] }
 0x16e   : > { %v6497_v9 = vcombine.low %v9214_v37, %v9241_v44  ;;  %v4933_v2 = vshll.u32 %v9228_v11, 16  ;;  %v4937_v17 = vshrl.u32 %v9228_v11, 16  ;;  %v3189_v58 = vshrl.u32 %v2951_v62, 16  ;;  %v7671_v63 = vld [vmem:[#allocation2 + $0xa4] sm:$0x1] }
 0x16f   : > { %v3192_v52 = vshll.u32 %v2951_v62, 16  ;;  %v4898_v27 = vsel %vm7802_vm2, %v9223_v29, %v9153_v1  ;;  %v6466_v40 = vrot.slane %v5325_v0, 9  ;;  %v5439_v36 = vrot.slane %v9671_v57, 5  ;;  %v9270_v1 = vld [vmem:[#allocation2 + $0xc4] sm:$0xf] }
 0x170   : > { %7161 = vmatpush3.bf16.msra.mxu0 %v7584_v49  ;;  %v3211_v49 = vsel %vm7802_vm2, %v9132_v33, %v9670_v59  ;;  %v9268_v10 = vrot.slane %v4927_v12, 5  ;;  %v3191_v20 = vrot.slane %v3189_v58, 4  ;;  %v5442_v23 = vrot.slane %v9016_v28, 5  ;;  %v9672_v58 = vld [vmem:[#allocation12_spill] sm:$0xff] }
 0x171   : > { %7162 = vmatprep.subr.bf16.mxu0 %v7587_v38  ;;  %v3194_v18 = vrot.slane %v3192_v52, 5  ;;  %v4948_v29 = vshrl.u32 %v4605_v6, 16  ;;  %v9276_v33 = vsel %vm8107_vm13, %v6466_v40, %v5439_v36  ;;  %v5441_v62 = vrot.slane %v5439_v36, 4  ;;  %v4608_v36 = vld [vmem:[#allocation2 + $0xcc] sm:$0xf] }
 0x172   : > { %7131 = vmatmul.mubr.bf16.gmra.mrb[12].mxu0 %v9123_v32  ;;  %v6467_v0 = vrot.slane %v5326_v60, 9  ;;  %v4917_v56 = vrot.slane %v4916_v31, 4  ;;  %v5446_v28 = vrot.slane %v9672_v58, 5  ;;  %v4957_v32 = vshll.u32 %v9270_v1, 16 }
 0x173   : > { %6907 = vmatmul.mubr.bf16.gmra.mrb[28].mxu1 %v6233_v5  ;;  %7134 = vmatprep.mubr.bf16.mxu0 %v9138_v19  ;;  %v4951_v5 = vshll.u32 %v4605_v6, 16  ;;  %v3195_v12 = vor.u32 %v3194_v18, %v3191_v20  ;;  %v9286_v52 = vsel %vm8107_vm13, %v5441_v62, %v5442_v23  ;;  %v5449_v60 = vrot.slane %v9028_v14, 5  ;;  %v7580_v19 = vld [vmem:[#allocation2 + $0x18] sm:$0xff]  }
 0x174   : > { %6926 = vmatprep.mubr.bf16.mxu1 %v7579_v16  ;;  %7163 = vmatpush3.bf16.msra.mxu0 %v7587_v38  ;;  %v4961_v16 = vshrl.u32 %v9270_v1, 16  ;;  %v9289_v31 = vrot.slane %v4933_v2, 5  ;;  %v4939_v59 = vrot.slane %v4937_v17, 4  ;;  %v6498_v6 = vcombine.low %v9276_v33, %v9286_v52  ;;  %v7582_v2 = vld [vmem:[#allocation2 + $0x24] sm:$0xff]   ;;  %v2969_v33 = vld [vmem:[#allocation2 + $0xc0] sm:$0xf] }
 0x175   : > { %7164 = vmatprep.subr.bf16.mxu0 %v7590_v45  ;;  %v3196_v38 = vrot.slane %v3195_v12, 4  ;;  %v4912_v40 = vsel %vm7802_vm2, %v9243_v41, %v9162_v48  ;;  %v4943_v57 = vshll.u32 %v9279_v13, 16  ;;  %v9300_v20 = vsel %vm8107_vm13, %v6467_v0, %v5446_v28  ;;  %v9310_v12 = vld [vmem:[#allocation2 + $0xd0] sm:$0xf] }
 0x176   : > { %v5448_v14 = vrot.slane %v5446_v28, 4  ;;  %v4922_v17 = vsel %vm7802_vm2, %v4917_v56, %v9234_v46  ;;  %v4950_v18 = vrot.slane %v4948_v29, 4  ;;  %v4953_v23 = vrot.slane %v4951_v5, 5  ;;  %v5327_v28 = vld [vmem:[#allocation2 + $0x90] sm:$0xe] }
 0x177   : > { %v3201_v48 = vsel %vm7802_vm2, %v3196_v38, %v9660_v54  ;;  %v9308_v41 = vrot.slane %v4957_v32, 5  ;;  %v4963_v62 = vrot.slane %v4961_v16, 4  ;;  %v4930_v46 = vor.u32 %v9268_v10, %v9247_v15  ;;  %v9321_v29 = vld [vmem:[#allocation2 + $0xc8] sm:$0x1] }
 0x178   : > { %7165 = vmatpush3.bf16.msra.mxu0 %v7590_v45  ;;  %v9312_v0 = vcombine.low %v3201_v48, %v3211_v49  ;;  %v9316_v58 = vsel %vm8107_vm13, %v5448_v14, %v5449_v60  ;;  %v4940_v45 = vor.u32 %v4939_v59, %v9289_v31  ;;  %v4972_v54 = vshrl.u32 %v4608_v36, 16  ;;  %v7649_v10 = vld [vmem:[%s9609_s1 + $0x108] sm:$0xff]   ;;  %v5328_v60 = vld [vmem:[#allocation2 + $0x9c] sm:$0xe]  ;;  %v7583_v59 = vld [vmem:[#allocation2 + $0x30] sm:$0xff]  }
 0x179   : > { %v6499_v56 = vcombine.low %v9300_v20, %v9316_v58  ;;  %v6445_v49 = vcombine.low %v4888_v3, %v4898_v27  ;;  %v4945_v5 = vrot.slane %v4943_v57, 5  ;;  %v4975_v15 = vshll.u32 %v4608_v36, 16  ;;  %v9673_v3 = vld [vmem:[#allocation13_spill] sm:$0xff]  ;;  %v7585_v14 = vld [vmem:[#allocation2 + $0x3c] sm:$0xff]  }
 0x17a   : > { %7135 = vmatmul.mubr.bf16.gmra.mrb[16].mxu0 %v9140_v53  ;;  %v6446_v32 = vcombine.low %v4912_v40, %v4922_v17  ;;  %v4981_v16 = vshll.u32 %v9310_v12, 16  ;;  %v6468_v53 = vrot.slane %v5327_v28, 9  ;;  %v4964_v8 = vor.u32 %v4963_v62, %v9308_v41 }
 0x17b   : > { %6927 = vmatmul.mubr.bf16.vlgmr.msra.gmra.mrb[0].mxu1 %v7580_v19  ;;  %7138 = vmatprep.mubr.bf16.mxu0 %v9217_v7  ;;  %v4954_v19 = vor.u32 %v4953_v23, %v4950_v18  ;;  %v4967_v42 = vshll.u32 %v9321_v29, 16  ;;  %v5453_v27 = vrot.slane %v9673_v3, 5  ;;  %v4931_v38 = vrot.slane %v4930_v46, 4  ;;  %v7650_v23 = vld [vmem:[%s9609_s1 + $0x110] sm:$0xff]  }
 0x17c   : > { %7206 = vmatpush3.bf16.msra.mxu1 %v9050_v50  ;;  %6930 = vmatprep.mubr.bf16.mxu1 %v7582_v2  ;;  %v4985_v50 = vshrl.u32 %v9310_v12, 16  ;;  %v4941_v57 = vrot.slane %v4940_v45, 4  ;;  %v4974_v36 = vrot.slane %v4972_v54, 4  ;;  %v5456_v40 = vrot.slane %v9058_v4, 5 }
 0x17d   : > { %7199 = vmatprep.subr.bf16.mxu1 %v7649_v10  ;;  %v4977_v2 = vrot.slane %v4975_v15, 5  ;;  %v9344_v17 = vsel %vm8107_vm13, %v6468_v53, %v5453_v27  ;;  %v5455_v7 = vrot.slane %v5453_v27, 4  ;;  %v6469_v18 = vrot.slane %v5328_v60, 9  ;;  %v9353_v15 = vld [vmem:[#allocation2 + $0xd4] sm:$0x1] }
 0x17e   : > { %v9349_v48 = vrot.slane %v4981_v16, 5  ;;  %v4987_v62 = vrot.slane %v4985_v50, 4  ;;  %v5460_v28 = vrot.slane %v9064_v55, 5  ;;  %v5463_v4 = vrot.slane %v9089_v26, 5 }
 0x17f   : > { %v4955_v46 = vrot.slane %v4954_v19, 4  ;;  %v4965_v45 = vrot.slane %v4964_v8, 4  ;;  %v4969_v54 = vrot.slane %v4967_v42, 5  ;;  %v4936_v26 = vsel %vm7802_vm2, %v4931_v38, %v9289_v31  ;;  %v7586_v38 = vld [vmem:[#allocation2 + $0x48] sm:$0xff]  }
 0x180   : > { %7207 = vmatpush3.bf16.msra.mxu1 %v7649_v10  ;;  %v9357_v10 = vsel %vm8107_vm13, %v5455_v7, %v5456_v40  ;;  %v9363_v16 = vsel %vm8107_vm13, %v6469_v18, %v5460_v28  ;;  %v5462_v55 = vrot.slane %v5460_v28, 4  ;;  %v4978_v50 = vor.u32 %v4977_v2, %v4974_v36  ;;  %v7588_v40 = vld [vmem:[#allocation2 + $0x54] sm:$0xff]  }
 0x181   : > { %7200 = vmatprep.subr.bf16.mxu1 %v7650_v23  ;;  %v6500_v53 = vcombine.low %v9344_v17, %v9357_v10  ;;  %v4946_v60 = vsel %vm7802_vm2, %v4941_v57, %v4945_v5  ;;  %v4988_v19 = vor.u32 %v4987_v62, %v9349_v48  ;;  %v4991_v8 = vshll.u32 %v9353_v15, 16  ;;  %v5317_v57 = vld [vmem:[#allocation2 + $0x18] sm:$0xe]  ;;  %v7653_v62 = vld [vmem:[%s9609_s1 + $0x120] sm:$0xff]  }
 0x182   : > { %7139 = vmatmul.mubr.bf16.gmra.mrb[20].mxu0 %v6445_v49  ;;  %v9374_v42 = vsel %vm8107_vm13, %v5462_v55, %v5463_v4  ;;  %v7651_v49 = vld [vmem:[%s9609_s1 + $0x118] sm:$0xff]   ;;  %v4960_v31 = vsel %vm7802_vm2, %v4955_v46, %v9308_v41  ;;  %v4970_v5 = vsel %vm7802_vm2, %v4965_v45, %v4969_v54  ;;  %v6447_v36 = vcombine.low %v4936_v26, %v4946_v60  ;;  %v5330_v41 = vld [vmem:[#allocation2 + $0xb4] sm:$0xe]  ;;  %v7654_v46 = vld [vmem:[#allocation2 + $0x20] sm:$0x1] }
 0x183   : > { %6931 = vmatmul.mubr.bf16.gmra.mrb[4].mxu1 %v7583_v59  ;;  %7142 = vmatprep.mubr.bf16.mxu0 %v6446_v32  ;;  %v7652_v32 = vld [vmem:[#allocation2 + $0x1c] sm:$0xf]  ;;  %v6501_v27 = vcombine.low %v9363_v16, %v9374_v42  ;;  %v5329_v59 = vld [vmem:[#allocation2 + $0xa8] sm:$0xe]  ;;  %v6448_v2 = vcombine.low %v4960_v31, %v4970_v5  ;;  %v4989_v7 = vrot.slane %v4988_v19, 4  ;;  %v4993_v18 = vrot.slane %v4991_v8, 5 }
 0x184   : > { %6934 = vmatprep.mubr.bf16.mxu1 %v7585_v14  ;;  %7208 = vmatpush3.bf16.msra.mxu1 %v7650_v23  ;;  %v5383_v3 = vrot.slane %v7652_v32, 5  ;;  %v4979_v14 = vrot.slane %v4978_v50, 4  ;;  %v6470_v23 = vrot.slane %v5329_v59, 9  ;;  %v6458_v28 = vrot.slane %v5317_v57, 9  ;;  %v5318_v54 = vld [vmem:[#allocation2 + $0x24] sm:$0xe] }
 0x185   : > { %7201 = vmatprep.subr.bf16.mxu1 %v7651_v49  ;;  %v5386_v45 = vrot.slane %v7654_v46, 5  ;;  %v5467_v55 = vrot.slane %v9098_v30, 5  ;;  %v5470_v26 = vrot.slane %v9146_v21, 5  ;;  %v7655_v60 = vld [vmem:[#allocation2 + $0x28] sm:$0xf]  ;;  %v6471_v8 = vrot.slane %v5330_v41, 9 }
 0x186   : > { %v5385_v4 = vrot.slane %v5383_v3, 4  ;;  %v4984_v50 = vsel %vm7802_vm2, %v4979_v14, %v9349_v48  ;;  %v5390_v19 = vrot.slane %v7655_v60, 5  ;;  %v4994_v31 = vsel %vm7802_vm2, %v4989_v7, %v4993_v18  ;;  %v5319_v5 = vld [vmem:[#allocation2 + $0x30] sm:$0xe]  ;;  %v7656_v30 = vld [vmem:[#allocation2 + $0x34] sm:$0xf] }
 0x187   : > { %v5397_v32 = vrot.slane %v7656_v30, 5  ;;  %v9399_v21 = vsel %vm8107_vm13, %v6470_v23, %v5467_v55  ;;  %v5469_v59 = vrot.slane %v5467_v55, 4  ;;  %v5384_v48 = vsel %vm8107_vm13, %v6458_v28, %v5383_v3  ;;  %v7657_v57 = vld [vmem:[%s9609_s1 + $0x128] sm:$0xff]   ;;  %v5320_v60 = vld [vmem:[#allocation2 + $0x3c] sm:$0xe] }
 0x188   : > { %7209 = vmatpush3.bf16.msra.mxu1 %v7651_v49  ;;  %v5474_v49 = vrot.slane %v9228_v11, 5  ;;  %v6459_v11 = vrot.slane %v5318_v54, 9  ;;  %v7658_v14 = vld [vmem:[#allocation2 + $0x2c] sm:$0x1]  ;;  %v5477_v18 = vrot.slane %v9279_v13, 5  ;;  %v6449_v23 = vcombine.low %v4984_v50, %v4994_v31  ;;  %v7660_v13 = vld [vmem:[%s9609_s1 + $0x130] sm:$0xff]  }
 0x189   : > { %7202 = vmatprep.subr.bf16.mxu1 %v7653_v62  ;;  %v9410_v7 = vsel %vm8107_vm13, %v5469_v59, %v5470_v26  ;;  %v7591_v41 = vld [vmem:[#allocation2 + $0x6c] sm:$0xff]   ;;  %v6460_v28 = vrot.slane %v5319_v5, 9  ;;  %v7659_v54 = vld [vmem:[#allocation2 + $0x38] sm:$0x1]  ;;  %v7661_v5 = vld [vmem:[#allocation2 + $0x40] sm:$0xf] }
 0x18a   : > { %7143 = vmatmul.mubr.bf16.gmra.mrb[24].mxu0 %v6447_v36  ;;  %v5476_v36 = vrot.slane %v5474_v49, 4  ;;  %v9414_v3 = vsel %vm8107_vm13, %v6471_v8, %v5474_v49  ;;  %v5400_v55 = vrot.slane %v7659_v54, 5  ;;  %v5331_v8 = vld [vmem:[#allocation2 + $0xc0] sm:$0xe]  ;;  %v5391_v49 = vsel %vm8107_vm13, %v6459_v11, %v5390_v19 }
 0x18b   : > { %6935 = vmatmul.mubr.bf16.gmra.mrb[8].mxu1 %v7586_v38  ;;  %7146 = vmatprep.mubr.bf16.mxu0 %v6448_v2  ;;  %v5387_v38 = vsel %vm8107_vm13, %v5385_v4, %v5386_v45  ;;  %v5393_v2 = vrot.slane %v7658_v14, 5  ;;  %v6502_v4 = vcombine.low %v9399_v21, %v9410_v7  ;;  %v5399_v45 = vrot.slane %v5397_v32, 4 }
 0x18c   : > { %6938 = vmatprep.mubr.bf16.mxu1 %v7588_v40  ;;  %7210 = vmatpush3.bf16.msra.mxu1 %v7653_v62  ;;  %v7589_v40 = vld [vmem:[#allocation2 + $0x60] sm:$0xff]   ;;  %v5392_v62 = vrot.slane %v5390_v19, 4  ;;  %v6490_v46 = vcombine.low %v5384_v48, %v5387_v38  ;;  %v9421_v26 = vsel %vm8107_vm13, %v5476_v36, %v5477_v18  ;;  %v5404_v30 = vrot.slane %v7661_v5, 5  ;;  %v5332_v38 = vld [vmem:[#allocation2 + $0xcc] sm:$0xe]  ;;  %v7662_v36 = vld [vmem:[%s9609_s1 + $0x138] sm:$0xff]  }
 0x18d   : > { %7203 = vmatprep.subr.bf16.mxu1 %v7657_v57  ;;  %v6503_v50 = vcombine.low %v9414_v3, %v9421_v26  ;;  %v5398_v59 = vsel %vm8107_vm13, %v6460_v28, %v5397_v32  ;;  %v5401_v48 = vsel %vm8107_vm13, %v5399_v45, %v5400_v55  ;;  %v2948_v19 = vld [vmem:[#allocation2 + $0x6c] sm:$0xf]  ;;  %v6472_v11 = vrot.slane %v5331_v8, 9  ;;  %v7664_v8 = vld [vmem:[#allocation2 + $0x70] sm:$0xf] }
 0x18e   : > { %v5394_v31 = vsel %vm8107_vm13, %v5392_v62, %v5393_v2  ;;  %v7663_v2 = vld [vmem:[#allocation2 + $0x44] sm:$0x1]  ;;  %v5484_v32 = vrot.slane %v9321_v29, 5  ;;  %v6492_v62 = vcombine.low %v5398_v59, %v5401_v48  ;;  %v5406_v28 = vrot.slane %v5404_v30, 4 }
 0x18f   : > { %v6491_v14 = vcombine.low %v5391_v49, %v5394_v31  ;;  %v5407_v18 = vrot.slane %v7663_v2, 5  ;;  %v5488_v45 = vrot.slane %v9310_v12, 5  ;;  %v3165_v54 = vshrl.u32 %v2948_v19, 16  ;;  %v7594_v2 = vld [vmem:[#allocation2 + $0x90] sm:$0xff]  }
 0x190   : > { %7211 = vmatpush3.bf16.msra.mxu1 %v7657_v57  ;;  %v6461_v57 = vrot.slane %v5320_v60, 9  ;;  %v3168_v55 = vshll.u32 %v2948_v19, 16  ;;  %v3174_v49 = vshll.u32 %v7664_v8, 16  ;;  %v3178_v31 = vshrl.u32 %v7664_v8, 16 }
 0x191   : > { %7204 = vmatprep.subr.bf16.mxu1 %v7660_v13  ;;  %v5491_v5 = vrot.slane %v9353_v15, 5 }
 0x192   : > { %7147 = vmatmul.mubr.bf16.gmra.mrb[28].mxu0 %v6449_v23  ;;  %v5481_v23 = vrot.slane %v9270_v1, 5  ;;  %v5490_v1 = vrot.slane %v5488_v45, 4  ;;  %v5405_v59 = vsel %vm8107_vm13, %v6461_v57, %v5404_v30  ;;  %v3170_v19 = vrot.slane %v3168_v55, 5  ;;  %v7595_v57 = vld [vmem:[#allocation2 + $0x9c] sm:$0xff]  }
 0x193   : > { %6939 = vmatmul.mubr.bf16.gmra.mrb[12].mxu1 %v7589_v40  ;;  %7166 = vmatprep.mubr.bf16.mxu0 %v6490_v46  ;;  %v7592_v40 = vld [vmem:[#allocation2 + $0x78] sm:$0xff]   ;;  %v6473_v46 = vrot.slane %v5332_v38, 9  ;;  %v5408_v38 = vsel %vm8107_vm13, %v5406_v28, %v5407_v18  ;;  %v3180_v15 = vrot.slane %v3178_v31, 4  ;;  %v7596_v31 = vld [vmem:[#allocation2 + $0xa8] sm:$0xff]  }
 0x194   : > { %6942 = vmatprep.mubr.bf16.mxu1 %v7591_v41  ;;  %7212 = vmatpush3.bf16.msra.mxu1 %v7660_v13  ;;  %v7593_v41 = vld [vmem:[#allocation2 + $0x84] sm:$0xff]   ;;  %v9444_v13 = vsel %vm8107_vm13, %v6472_v11, %v5481_v23  ;;  %v5483_v60 = vrot.slane %v5481_v23, 4  ;;  %v9463_v11 = vsel %vm8107_vm13, %v5490_v1, %v5491_v5  ;;  %v6493_v30 = vcombine.low %v5405_v59, %v5408_v38  ;;  %v7597_v1 = vld [vmem:[#allocation2 + $0xb4] sm:$0xff]  }
 0x195   : > { %7205 = vmatprep.subr.bf16.mxu1 %v7662_v36  ;;  %v9452_v12 = vsel %vm8107_vm13, %v6473_v46, %v5488_v45  ;;  %v2954_v23 = vld [vmem:[#allocation2 + $0x84] sm:$0xf]  ;;  %v3222_v45 = vshll.u32 %v7666_v39, 16 }
 0x196   : > { %v9448_v29 = vsel %vm8107_vm13, %v5483_v60, %v5484_v32  ;;  %v3213_v18 = vshrl.u32 %v2954_v23, 16  ;;  %v3216_v28 = vshll.u32 %v2954_v23, 16  ;;  %v2957_v60 = vld [vmem:[#allocation2 + $0x90] sm:$0xf] }
 0x197   : > { %v6504_v48 = vcombine.low %v9444_v13, %v9448_v29  ;;  %v9470_v38 = vrot.slane %v3222_v45, 5 }
 0x198   : > { %7213 = vmatpush3.bf16.msra.mxu1 %v7662_v36  ;;  %v3167_v36 = vrot.slane %v3165_v54, 4  ;;  %v3226_v54 = vshrl.u32 %v7666_v39, 16  ;;  %v3215_v5 = vrot.slane %v3213_v18, 4  ;;  %v3218_v59 = vrot.slane %v3216_v28, 5 }
 0x19a   : > { %7167 = vmatmul.mubr.bf16.vlgmr.msra.gmra.mrb[0].mxu0 %v6491_v14  ;;  %v6505_v14 = vcombine.low %v9452_v12, %v9463_v11  ;;  %v3171_v32 = vor.u32 %v3170_v19, %v3167_v36  ;;  %v3228_v36 = vrot.slane %v3226_v54, 4  ;;  %v3237_v19 = vshrl.u32 %v2957_v60, 16 }
 0x19b   : > { %6943 = vmatmul.mubr.bf16.gmra.mrb[16].mxu1 %v7592_v40  ;;  %7170 = vmatprep.mubr.bf16.mxu0 %v6492_v62  ;;  %v3176_v40 = vrot.slane %v3174_v49, 5  ;;  %v7665_v62 = vld [vmem:[#allocation2 + $0x74] sm:$0x1] }
 0x19c   : > { %6946 = vmatprep.mubr.bf16.mxu1 %v7593_v41  ;;  %v3184_v46 = vshll.u32 %v7665_v62, 16  ;;  %v3172_v55 = vrot.slane %v3171_v32, 4  ;;  %v3229_v39 = vor.u32 %v3228_v36, %v9470_v38  ;;  %v3239_v45 = vrot.slane %v3237_v19, 4  ;;  %v7670_v36 = vld [vmem:[#allocation2 + $0x98] sm:$0x1] }
 0x19d   : > { %v3181_v41 = vor.u32 %v3180_v15, %v3176_v40  ;;  %v3240_v15 = vshll.u32 %v2957_v60, 16  ;;  %v3256_v19 = vshll.u32 %v7670_v36, 16 }
 0x19e   : > { %v3186_v49 = vrot.slane %v3184_v46, 5  ;;  %v7669_v46 = vld [vmem:[#allocation2 + $0xa0] sm:$0xf] }
 0x19f   : > { %v3182_v8 = vrot.slane %v3181_v41, 4  ;;  %v3270_v18 = vshll.u32 %v7669_v46, 16  ;;  %v3274_v28 = vshrl.u32 %v7669_v46, 16  ;;  %v3242_v54 = vrot.slane %v3240_v15, 5 }
 0x1a1   : > { %v3187_v43 = vsel %vm7802_vm2, %v3182_v8, %v3186_v49  ;;  %v9485_v51 = vrot.slane %v3270_v18, 5  ;;  %v3276_v24 = vrot.slane %v3274_v28, 4  ;;  %v3258_v28 = vrot.slane %v3256_v19, 5 }
 0x1a2   : > { %7171 = vmatmul.mubr.bf16.gmra.mrb[4].mxu0 %v6493_v30  ;;  %v3177_v30 = vsel %vm7802_vm2, %v3172_v55, %v3176_v40  ;;  %v3219_v40 = vor.u32 %v3218_v59, %v3215_v5  ;;  %v7598_v55 = vld [vmem:[#allocation2 + $0xc0] sm:$0xff]   ;;  %v3230_v5 = vrot.slane %v3229_v39, 4  ;;  %v3243_v59 = vor.u32 %v3242_v54, %v3239_v45  ;;  %v7673_v45 = vld [vmem:[#allocation2 + $0xb8] sm:$0xf] }
 0x1a3   : > { %6947 = vmatmul.mubr.bf16.gmra.mrb[20].mxu1 %v7594_v2  ;;  %7174 = vmatprep.mubr.bf16.mxu0 %v6494_v61  ;;  %v2960_v2 = vld [vmem:[#allocation2 + $0x9c] sm:$0xf]  ;;  %v3232_v61 = vshll.u32 %v7667_v35, 16  ;;  %v6306_v60 = vcombine.low %v3177_v30, %v3187_v43  ;;  %v2966_v43 = vld [vmem:[#allocation2 + $0xb4] sm:$0xf]  ;;  %v3318_v54 = vshll.u32 %v7673_v45, 16 }
 0x1a4   : > { %6950 = vmatprep.mubr.bf16.mxu1 %v7595_v57  ;;  %v7668_v57 = vld [vmem:[#allocation2 + $0x94] sm:$0xf]  ;;  %v3261_v41 = vshrl.u32 %v2960_v2, 16  ;;  %v3264_v62 = vshll.u32 %v2960_v2, 16  ;;  %v3244_v18 = vrot.slane %v3243_v59, 4  ;;  %v3312_v39 = vshll.u32 %v2966_v43, 16 }
 0x1a5   : > { %v3246_v23 = vshll.u32 %v7668_v57, 16  ;;  %v3250_v32 = vshrl.u32 %v7668_v57, 16  ;;  %v3234_v8 = vrot.slane %v3232_v61, 5  ;;  %v3277_v57 = vor.u32 %v3276_v24, %v9485_v51  ;;  %v7674_v59 = vld [vmem:[#allocation2 + $0xb0] sm:$0x1] }
 0x1a6   : > { %v3263_v2 = vrot.slane %v3261_v41, 4  ;;  %v3266_v35 = vrot.slane %v3264_v62, 5  ;;  %v3322_v37 = vshrl.u32 %v7673_v45, 16  ;;  %v3304_v36 = vshll.u32 %v7674_v59, 16 }
 0x1a7   : > { %v9483_v49 = vrot.slane %v3246_v23, 5  ;;  %v7672_v23 = vld [vmem:[#allocation2 + $0xac] sm:$0xf]  ;;  %v3235_v46 = vsel %vm7802_vm2, %v3230_v5, %v3234_v8 }
 0x1a8   : > { %v3267_v61 = vor.u32 %v3266_v35, %v3263_v2  ;;  %v3298_v41 = vshrl.u32 %v7672_v23, 16  ;;  %v3324_v5 = vrot.slane %v3322_v37, 4  ;;  %v3306_v20 = vrot.slane %v3304_v36, 5  ;;  %v7677_v37 = vld [vmem:[#allocation2 + $0xc8] sm:$0x1] }
 0x1a9   : > { %v3249_v52 = vsel %vm7802_vm2, %v3244_v18, %v9483_v49 }
 0x1aa   : > { %7175 = vmatmul.mubr.bf16.gmra.mrb[8].mxu0 %v6495_v47  ;;  %v2963_v47 = vld [vmem:[#allocation2 + $0xa8] sm:$0xf]  ;;  %v3300_v35 = vrot.slane %v3298_v41, 4 }
 0x1ab   : > { %6951 = vmatmul.mubr.bf16.gmra.mrb[24].mxu1 %v7596_v31  ;;  %7178 = vmatprep.mubr.bf16.mxu0 %v6496_v25  ;;  %v3252_v31 = vrot.slane %v3250_v32, 4  ;;  %v3280_v25 = vshll.u32 %v7671_v63, 16  ;;  %v3285_v15 = vshrl.u32 %v2963_v47, 16  ;;  %v3288_v30 = vshll.u32 %v2963_v47, 16 }
 0x1ac   : > { %6954 = vmatprep.mubr.bf16.mxu1 %v7597_v1  ;;  %v3220_v1 = vrot.slane %v3219_v40, 4  ;;  %v3294_v32 = vshll.u32 %v7672_v23, 16  ;;  %v3309_v40 = vshrl.u32 %v2966_v43, 16  ;;  %v3314_v47 = vrot.slane %v3312_v39, 5 }
 0x1ad   : > { %v3253_v22 = vor.u32 %v3252_v31, %v9483_v49  ;;  %v3268_v31 = vrot.slane %v3267_v61, 4  ;;  %v3333_v49 = vshrl.u32 %v2969_v33, 16 }
 0x1ae   : > { %v3225_v62 = vsel %vm7802_vm2, %v3220_v1, %v9470_v38  ;;  %v3278_v38 = vrot.slane %v3277_v57, 4  ;;  %v3296_v2 = vrot.slane %v3294_v32, 5  ;;  %v3311_v24 = vrot.slane %v3309_v40, 4  ;;  %v7676_v57 = vld [vmem:[#allocation2 + $0xbc] sm:$0x1] }
 0x1af   : > { %v3254_v44 = vrot.slane %v3253_v22, 4  ;;  %v6308_v8 = vcombine.low %v3225_v62, %v3235_v46  ;;  %v3320_v1 = vrot.slane %v3318_v54, 5  ;;  %v3273_v19 = vsel %vm7802_vm2, %v3268_v31, %v9485_v51 }
 0x1b0   : > { %v3328_v23 = vshll.u32 %v7676_v57, 16  ;;  %v3335_v58 = vrot.slane %v3333_v49, 4 }
 0x1b1   : > { %v3325_v51 = vor.u32 %v3324_v5, %v3320_v1 }
 0x1b2   : > { %7179 = vmatmul.mubr.bf16.gmra.mrb[12].mxu0 %v6497_v9  ;;  %v3282_v9 = vrot.slane %v3280_v25, 5  ;;  %v3301_v25 = vor.u32 %v3300_v35, %v3296_v2  ;;  %v3330_v45 = vrot.slane %v3328_v23, 5 }
 0x1b3   : > { %6955 = vmatmul.mubr.bf16.gmra.mrb[28].mxu1 %v7598_v55  ;;  %7182 = vmatprep.mubr.bf16.mxu0 %v6498_v6  ;;  %v3287_v55 = vrot.slane %v3285_v15, 4  ;;  %v3259_v6 = vsel %vm7802_vm2, %v3254_v44, %v3258_v28  ;;  %v3336_v15 = vshll.u32 %v2969_v33, 16  ;;  %v3326_v39 = vrot.slane %v3325_v51, 4 }
 0x1b4   : > { %6990 = vmatprep.mubr.bf16.mxu1 %v6306_v60  ;;  %v3290_v60 = vrot.slane %v3288_v30, 5  ;;  %v3283_v22 = vsel %vm7802_vm2, %v3278_v38, %v3282_v9  ;;  %v7675_v30 = vld [vmem:[#allocation2 + $0xc4] sm:$0xf]  ;;  %v6309_v32 = vcombine.low %v3249_v52, %v3259_v6  ;;  %v3302_v46 = vrot.slane %v3301_v25, 4 }
 0x1b5   : > { %v3342_v43 = vshll.u32 %v7675_v30, 16  ;;  %v3346_v61 = vshrl.u32 %v7675_v30, 16  ;;  %v6310_v41 = vcombine.low %v3273_v19, %v3283_v22  ;;  %v3352_v44 = vshll.u32 %v7677_v37, 16 }
 0x1b6   : > { %v3291_v63 = vor.u32 %v3290_v60, %v3287_v55  ;;  %v3307_v10 = vsel %vm7802_vm2, %v3302_v46, %v3306_v20  ;;  %v3331_v55 = vsel %vm7802_vm2, %v3326_v39, %v3330_v45 }
 0x1b7   : > { %v3344_v18 = vrot.slane %v3342_v43, 5  ;;  %v3348_v28 = vrot.slane %v3346_v61, 4  ;;  %v3354_v31 = vrot.slane %v3352_v44, 5 }
 0x1b8   : > { %v3292_v62 = vrot.slane %v3291_v63, 4 }
 0x1b9   : > { %v3349_v54 = vor.u32 %v3348_v28, %v3344_v18 }
 0x1ba   : > { %7183 = vmatmul.mubr.bf16.gmra.mrb[16].mxu0 %v6499_v56  ;;  %v3338_v56 = vrot.slane %v3336_v15, 5  ;;  %v3297_v17 = vsel %vm7802_vm2, %v3292_v62, %v3296_v2 }
 0x1bb   : > { %6991 = vmatmul.mubr.bf16.vlgmr.msra.gmra.mrb[16].mxu1 %v9312_v0  ;;  %7186 = vmatprep.mubr.bf16.mxu0 %v6500_v53  ;;  %v3315_v0 = vor.u32 %v3314_v47, %v3311_v24  ;;  %v6311_v16 = vcombine.low %v3297_v17, %v3307_v10  ;;  %v3350_v60 = vrot.slane %v3349_v54, 4 }
 0x1bc   : > { %6994 = vmatprep.mubr.bf16.mxu1 %v6308_v8  ;;  %v3339_v53 = vor.u32 %v3338_v56, %v3335_v58 }
 0x1bd   : > { %v3316_v40 = vrot.slane %v3315_v0, 4  ;;  %v3355_v7 = vsel %vm7802_vm2, %v3350_v60, %v3354_v31 }
 0x1bf   : > { %v3321_v9 = vsel %vm7802_vm2, %v3316_v40, %v3320_v1 }
 0x1c0   : > { %v6312_v42 = vcombine.low %v3321_v9, %v3331_v55 }
 0x1c2   : > { %7187 = vmatmul.mubr.bf16.gmra.mrb[20].mxu0 %v6501_v27  ;;  %v3340_v27 = vrot.slane %v3339_v53, 4 }
 0x1c3   : > { %6995 = vmatmul.mubr.bf16.gmra.mrb[20].mxu1 %v6309_v32  ;;  %7190 = vmatprep.mubr.bf16.mxu0 %v6502_v4 }
 0x1c4   : > { %6998 = vmatprep.mubr.bf16.mxu1 %v6310_v41  ;;  %v3345_v21 = vsel %vm7802_vm2, %v3340_v27, %v3344_v18 }
 0x1c5   : > { %v6313_v4 = vcombine.low %v3345_v21, %v3355_v7 }
 0x1ca   : > { %7191 = vmatmul.mubr.bf16.gmra.mrb[24].mxu0 %v6503_v50 }
 0x1cb   : > { %6999 = vmatmul.mubr.bf16.gmra.mrb[24].mxu1 %v6311_v16  ;;  %7194 = vmatprep.mubr.bf16.mxu0 %v6504_v48 }
 0x1cc   : > { %7002 = vmatprep.mubr.bf16.mxu1 %v6312_v42 }
 0x1d2   : > { %7195 = vmatmul.mubr.bf16.gmra.mrb[28].mxu0 %v6505_v14 }
 0x1d3   : > { %7003 = vmatmul.mubr.bf16.gmra.mrb[28].mxu1 %v6313_v4 }
 0x24e   : > { %v6928_v38 = vpop.f32.mrb[0].mxu1 }
 0x24f   : > { %v2765_v3 = vpop.f32.mrb[1].mxu1 }
 0x250   : > { %v6929_v26 = vpop.f32.mrb[2].mxu1 }
 0x251   : > { %v2768_v50 = vpop.f32.mrb[3].mxu1 }
 0x256   : > { %v6932_v2 = vpop.f32.mrb[4].mxu1 }
 0x257   : > { %v2781_v35 = vpop.f32.mrb[5].mxu1 }
 0x258   : > { %v6933_v8 = vpop.f32.mrb[6].mxu1 }
 0x259   : > { %v2784_v34 = vpop.f32.mrb[7].mxu1 }
 0x25e   : > { %v6936_v24 = vpop.f32.mrb[8].mxu1 }
 0x25f   : > { %v2797_v47 = vpop.f32.mrb[9].mxu1 }
 0x260   : > { %v6937_v1 = vpop.f32.mrb[10].mxu1 }
 0x261   : > { %v9544_v13 = vpop.f32.mrb[11].mxu1 }
 0x266   : > { %v9546_v29 = vpop.f32.mrb[12].mxu1 }
 0x267   : > { %v9548_v48 = vpop.f32.mrb[13].mxu1 }
 0x268   : > { %v9550_v12 = vpop.f32.mrb[14].mxu1 }
 0x269   : > { %v9552_v11 = vpop.f32.mrb[15].mxu1 }
 0x26d   : > { %v7168_v14 = vpop.f32.mrb[0].mxu0 }
 0x26e   : > { %v7214_v5 = vadd.f32 %v7168_v14, %v6928_v38  ;;  %v5656_v33 = vpop.f32.mrb[1].mxu0 }
 0x26f   : > { %v7215_v52 = vadd.f32 %v5656_v33, %v2765_v3  ;;  %v7169_v6 = vpop.f32.mrb[2].mxu0 }
 0x270   : > { %5817 = vst [vmem:[%s9559_s13 + $0x10] sm:$0xff] %v7214_v5  ;;  %v7216_v59 = vadd.f32 %v7169_v6, %v6929_v26  ;;  %v5659_v36 = vpop.f32.mrb[3].mxu0  ;;  %v5891_v49 = vmul.f32 %v7214_v5, %v7214_v5 }
 0x271   : > { %5815 = vst [vmem:[%s9559_s13] sm:$0xff] %v7215_v52  ;;  %v7217_v19 = vadd.f32 %v5659_v36, %v2768_v50  ;;  %v5889_v22 = vmul.f32 %v7215_v52, %v7215_v52 }
 0x272   : > { %5818 = vst [vmem:[%s9559_s13 + $0x18] sm:$0xff] %v7216_v59  ;;  %v5892_v51 = vmul.f32 %v7216_v59, %v7216_v59 }
 0x273   : > { %5816 = vst [vmem:[%s9559_s13 + $0x8] sm:$0xff] %v7217_v19  ;;  %v5850_v63 = vadd.f32 %v7217_v19, %v7215_v52  ;;  %v5890_v25 = vmul.f32 %v7217_v19, %v7217_v19 }
 0x275   : > { %v5851_v15 = vadd.f32 %v7214_v5, %v5850_v63  ;;  %v5921_v30 = vadd.f32 %v5890_v25, %v5889_v22  ;;  %v7172_v43 = vpop.f32.mrb[4].mxu0 }
 0x276   : > { %v7218_v61 = vadd.f32 %v7172_v43, %v6932_v2  ;;  %v5672_v0 = vpop.f32.mrb[5].mxu0 }
 0x277   : > { %v5922_v57 = vadd.f32 %v5921_v30, %v5891_v49  ;;  %v7219_v23 = vadd.f32 %v5672_v0, %v2781_v35  ;;  %v5852_v32 = vadd.f32 %v7216_v59, %v5851_v15  ;;  %v7173_v41 = vpop.f32.mrb[6].mxu0 }
 0x278   : > { %5821 = vst [vmem:[%s9559_s13 + $0x30] sm:$0xff] %v7218_v61  ;;  %v7220_v62 = vadd.f32 %v7173_v41, %v6933_v8  ;;  %v5675_v46 = vpop.f32.mrb[7].mxu0  ;;  %v5895_v45 = vmul.f32 %v7218_v61, %v7218_v61 }
 0x279   : > { %5819 = vst [vmem:[%s9559_s13 + $0x20] sm:$0xff] %v7219_v23  ;;  %v5853_v20 = vadd.f32 %v7219_v23, %v5852_v32  ;;  %v5893_v58 = vmul.f32 %v7219_v23, %v7219_v23  ;;  %v5923_v56 = vadd.f32 %v5922_v57, %v5892_v51  ;;  %v7221_v18 = vadd.f32 %v5675_v46, %v2784_v34 }
 0x27a   : > { %5822 = vst [vmem:[%s9559_s13 + $0x38] sm:$0xff] %v7220_v62  ;;  %v5896_v44 = vmul.f32 %v7220_v62, %v7220_v62 }
 0x27b   : > { %v5924_v28 = vadd.f32 %v5923_v56, %v5893_v58  ;;  %5820 = vst [vmem:[%s9559_s13 + $0x28] sm:$0xff] %v7221_v18  ;;  %v5854_v40 = vadd.f32 %v7221_v18, %v5853_v20  ;;  %v5894_v39 = vmul.f32 %v7221_v18, %v7221_v18 }
 0x27d   : > { %v5855_v17 = vadd.f32 %v7218_v61, %v5854_v40  ;;  %v5925_v10 = vadd.f32 %v5924_v28, %v5894_v39  ;;  %v7176_v53 = vpop.f32.mrb[8].mxu0 }
 0x27e   : > { %v7222_v54 = vadd.f32 %v7176_v53, %v6936_v24  ;;  %v5688_v37 = vpop.f32.mrb[9].mxu0 }
 0x27f   : > { %v5926_v9 = vadd.f32 %v5925_v10, %v5895_v45  ;;  %v7223_v55 = vadd.f32 %v5688_v37, %v2797_v47  ;;  %v5856_v16 = vadd.f32 %v7220_v62, %v5855_v17  ;;  %v7177_v42 = vpop.f32.mrb[10].mxu0 }
 0x280   : > { %5825 = vst [vmem:[%s9559_s13 + $0x50] sm:$0xff] %v7222_v54  ;;  %v7224_v27 = vadd.f32 %v7177_v42, %v6937_v1  ;;  %v5691_v60 = vpop.f32.mrb[11].mxu0  ;;  %v5899_v50 = vmul.f32 %v7222_v54, %v7222_v54 }
 0x281   : > { %5823 = vst [vmem:[%s9559_s13 + $0x40] sm:$0xff] %v7223_v55  ;;  %v5857_v31 = vadd.f32 %v7223_v55, %v5856_v16  ;;  %v5897_v21 = vmul.f32 %v7223_v55, %v7223_v55  ;;  %v5927_v7 = vadd.f32 %v5926_v9, %v5896_v44  ;;  %v7225_v4 = vadd.f32 %v5691_v60, %v9544_v13 }
 0x282   : > { %5826 = vst [vmem:[%s9559_s13 + $0x58] sm:$0xff] %v7224_v27  ;;  %v5900_v47 = vmul.f32 %v7224_v27, %v7224_v27 }
 0x283   : > { %v5928_v38 = vadd.f32 %v5927_v7, %v5897_v21  ;;  %5824 = vst [vmem:[%s9559_s13 + $0x48] sm:$0xff] %v7225_v4  ;;  %v5858_v3 = vadd.f32 %v7225_v4, %v5857_v31  ;;  %v5898_v26 = vmul.f32 %v7225_v4, %v7225_v4 }
 0x285   : > { %v5859_v2 = vadd.f32 %v7222_v54, %v5858_v3  ;;  %v5929_v35 = vadd.f32 %v5928_v38, %v5898_v26  ;;  %v7180_v8 = vpop.f32.mrb[12].mxu0 }
 0x286   : > { %v7226_v34 = vadd.f32 %v7180_v8, %v9546_v29  ;;  %v5704_v24 = vpop.f32.mrb[13].mxu0 }
 0x287   : > { %v5930_v1 = vadd.f32 %v5929_v35, %v5899_v50  ;;  %v7227_v13 = vadd.f32 %v5704_v24, %v9548_v48  ;;  %v5860_v14 = vadd.f32 %v7224_v27, %v5859_v2  ;;  %v7181_v5 = vpop.f32.mrb[14].mxu0 }
 0x288   : > { %5829 = vst [vmem:[%s9559_s13 + $0x70] sm:$0xff] %v7226_v34  ;;  %v7228_v33 = vadd.f32 %v7181_v5, %v9550_v12  ;;  %v5707_v52 = vpop.f32.mrb[15].mxu0  ;;  %v5903_v48 = vmul.f32 %v7226_v34, %v7226_v34 }
 0x289   : > { %5827 = vst [vmem:[%s9559_s13 + $0x60] sm:$0xff] %v7227_v13  ;;  %v5861_v6 = vadd.f32 %v7227_v13, %v5860_v14  ;;  %v5901_v59 = vmul.f32 %v7227_v13, %v7227_v13  ;;  %v5931_v36 = vadd.f32 %v5930_v1, %v5900_v47  ;;  %v7229_v19 = vadd.f32 %v5707_v52, %v9552_v11 }
 0x28a   : > { %5830 = vst [vmem:[%s9559_s13 + $0x78] sm:$0xff] %v7228_v33  ;;  %v5904_v51 = vmul.f32 %v7228_v33, %v7228_v33 }
 0x28b   : > { %v5932_v29 = vadd.f32 %v5931_v36, %v5901_v59  ;;  %5828 = vst [vmem:[%s9559_s13 + $0x68] sm:$0xff] %v7229_v19  ;;  %v5862_v22 = vadd.f32 %v7229_v19, %v5861_v6  ;;  %v5902_v63 = vmul.f32 %v7229_v19, %v7229_v19 }
 0x28d   : > { %v5863_v49 = vadd.f32 %v7226_v34, %v5862_v22  ;;  %v5933_v15 = vadd.f32 %v5932_v29, %v5902_v63  ;;  %v7184_v12 = vpop.f32.mrb[16].mxu0 }
 0x28e   : > { %v6992_v25 = vpop.f32.mrb[16].mxu1  ;;  %v5720_v0 = vpop.f32.mrb[17].mxu0 }
 0x28f   : > { %v3583_v30 = vpop.f32.mrb[17].mxu1  ;;  %v7230_v43 = vadd.f32 %v7184_v12, %v6992_v25  ;;  %v5934_v11 = vadd.f32 %v5933_v15, %v5903_v48  ;;  %v5864_v23 = vadd.f32 %v7228_v33, %v5863_v49  ;;  %v7185_v41 = vpop.f32.mrb[18].mxu0 }
 0x290   : > { %v6993_v61 = vpop.f32.mrb[18].mxu1  ;;  %v7231_v57 = vadd.f32 %v5720_v0, %v3583_v30  ;;  %v5723_v46 = vpop.f32.mrb[19].mxu0 }
 0x291   : > { %v3586_v32 = vpop.f32.mrb[19].mxu1  ;;  %5833 = vst [vmem:[%s9559_s13 + $0x90] sm:$0xff] %v7230_v43  ;;  %v7232_v62 = vadd.f32 %v7185_v41, %v6993_v61  ;;  %v5935_v56 = vadd.f32 %v5934_v11, %v5904_v51  ;;  %v5907_v17 = vmul.f32 %v7230_v43, %v7230_v43 }
 0x292   : > { %5831 = vst [vmem:[%s9559_s13 + $0x80] sm:$0xff] %v7231_v57  ;;  %v5865_v20 = vadd.f32 %v7231_v57, %v5864_v23  ;;  %v5905_v58 = vmul.f32 %v7231_v57, %v7231_v57  ;;  %v7233_v18 = vadd.f32 %v5723_v46, %v3586_v32 }
 0x293   : > { %5834 = vst [vmem:[%s9559_s13 + $0x98] sm:$0xff] %v7232_v62  ;;  %v5908_v16 = vmul.f32 %v7232_v62, %v7232_v62 }
 0x294   : > { %v5936_v28 = vadd.f32 %v5935_v56, %v5905_v58  ;;  %5832 = vst [vmem:[%s9559_s13 + $0x88] sm:$0xff] %v7233_v18  ;;  %v5866_v40 = vadd.f32 %v7233_v18, %v5865_v20  ;;  %v5906_v39 = vmul.f32 %v7233_v18, %v7233_v18 }
 0x295   : > { %v7188_v37 = vpop.f32.mrb[20].mxu0 }
 0x296   : > { %v6996_v45 = vpop.f32.mrb[20].mxu1  ;;  %v5867_v10 = vadd.f32 %v7230_v43, %v5866_v40  ;;  %v5937_v53 = vadd.f32 %v5936_v28, %v5906_v39  ;;  %v5736_v55 = vpop.f32.mrb[21].mxu0 }
 0x297   : > { %v3599_v54 = vpop.f32.mrb[21].mxu1  ;;  %v7234_v44 = vadd.f32 %v7188_v37, %v6996_v45  ;;  %v7189_v21 = vpop.f32.mrb[22].mxu0 }
 0x298   : > { %v6997_v9 = vpop.f32.mrb[22].mxu1  ;;  %v5938_v42 = vadd.f32 %v5937_v53, %v5907_v17  ;;  %v7235_v27 = vadd.f32 %v5736_v55, %v3599_v54  ;;  %v5868_v60 = vadd.f32 %v7232_v62, %v5867_v10  ;;  %v5739_v4 = vpop.f32.mrb[23].mxu0 }
 0x299   : > { %v3602_v31 = vpop.f32.mrb[23].mxu1  ;;  %5837 = vst [vmem:[%s9559_s13 + $0xb0] sm:$0xff] %v7234_v44  ;;  %v7236_v7 = vadd.f32 %v7189_v21, %v6997_v9  ;;  %v5911_v24 = vmul.f32 %v7234_v44, %v7234_v44 }
 0x29a   : > { %5835 = vst [vmem:[%s9559_s13 + $0xa0] sm:$0xff] %v7235_v27  ;;  %v5869_v38 = vadd.f32 %v7235_v27, %v5868_v60  ;;  %v5909_v3 = vmul.f32 %v7235_v27, %v7235_v27  ;;  %v5939_v26 = vadd.f32 %v5938_v42, %v5908_v16  ;;  %v7237_v50 = vadd.f32 %v5739_v4, %v3602_v31 }
 0x29b   : > { %5838 = vst [vmem:[%s9559_s13 + $0xb8] sm:$0xff] %v7236_v7  ;;  %v5912_v6 = vmul.f32 %v7236_v7, %v7236_v7  ;;  %v5847_v4 = vlaneseq }
 0x29c   : > { %v5940_v2 = vadd.f32 %v5939_v26, %v5909_v3  ;;  %5836 = vst [vmem:[%s9559_s13 + $0xa8] sm:$0xff] %v7237_v50  ;;  %v5870_v35 = vadd.f32 %v7237_v50, %v5869_v38  ;;  %v5910_v8 = vmul.f32 %v7237_v50, %v7237_v50 }
 0x29d   : > { %v7192_v14 = vpop.f32.mrb[24].mxu0 }
 0x29e   : > { %v7000_v34 = vpop.f32.mrb[24].mxu1  ;;  %v5871_v47 = vadd.f32 %v7234_v44, %v5870_v35  ;;  %v5941_v1 = vadd.f32 %v5940_v2, %v5910_v8  ;;  %v5752_v52 = vpop.f32.mrb[25].mxu0  ;;  %v5848_v2 = vshrl.u32 %v5847_v4, 7 }
 0x29f   : > { %v3615_v13 = vpop.f32.mrb[25].mxu1  ;;  %v7238_v5 = vadd.f32 %v7192_v14, %v7000_v34  ;;  %v7193_v22 = vpop.f32.mrb[26].mxu0 }
 0x2a0   : > { %v7001_v33 = vpop.f32.mrb[26].mxu1  ;;  %v5942_v59 = vadd.f32 %v5941_v1, %v5911_v24  ;;  %v7239_v36 = vadd.f32 %v5752_v52, %v3615_v13  ;;  %v5872_v19 = vadd.f32 %v7236_v7, %v5871_v47  ;;  %v5755_v25 = vpop.f32.mrb[27].mxu0  ;;  %vm5849_vm14 = vcmp.eq.s32.totalorder %v5848_v2, 0 }
 0x2a1   : > { %v3618_v29 = vpop.f32.mrb[27].mxu1  ;;  %5841 = vst [vmem:[%s9559_s13 + $0xd0] sm:$0xff] %v7238_v5  ;;  %v7240_v63 = vadd.f32 %v7193_v22, %v7001_v33  ;;  %v5915_v51 = vmul.f32 %v7238_v5, %v7238_v5 }
 0x2a2   : > { %5839 = vst [vmem:[%s9559_s13 + $0xc0] sm:$0xff] %v7239_v36  ;;  %v5873_v48 = vadd.f32 %v7239_v36, %v5872_v19  ;;  %v5913_v49 = vmul.f32 %v7239_v36, %v7239_v36  ;;  %v5943_v15 = vadd.f32 %v5942_v59, %v5912_v6  ;;  %v7241_v30 = vadd.f32 %v5755_v25, %v3618_v29 }
 0x2a3   : > { %5842 = vst [vmem:[%s9559_s13 + $0xd8] sm:$0xff] %v7240_v63  ;;  %v5916_v20 = vmul.f32 %v7240_v63, %v7240_v63 }
 0x2a4   : > { %v5944_v12 = vadd.f32 %v5943_v15, %v5913_v49  ;;  %5840 = vst [vmem:[%s9559_s13 + $0xc8] sm:$0xff] %v7241_v30  ;;  %v5874_v43 = vadd.f32 %v7241_v30, %v5873_v48  ;;  %v5914_v61 = vmul.f32 %v7241_v30, %v7241_v30 }
 0x2a5   : > { %v7196_v32 = vpop.f32.mrb[28].mxu0 }
 0x2a6   : > { %v7004_v0 = vpop.f32.mrb[28].mxu1  ;;  %v5875_v11 = vadd.f32 %v7238_v5, %v5874_v43  ;;  %v5945_v57 = vadd.f32 %v5944_v12, %v5914_v61  ;;  %v5768_v46 = vpop.f32.mrb[29].mxu0 }
 0x2a7   : > { %v3631_v23 = vpop.f32.mrb[29].mxu1  ;;  %v7242_v41 = vadd.f32 %v7196_v32, %v7004_v0  ;;  %v7197_v40 = vpop.f32.mrb[30].mxu0 }
 0x2a8   : > { %v7005_v62 = vpop.f32.mrb[30].mxu1  ;;  %v5946_v58 = vadd.f32 %v5945_v57, %v5915_v51  ;;  %v7243_v56 = vadd.f32 %v5768_v46, %v3631_v23  ;;  %v5876_v18 = vadd.f32 %v7240_v63, %v5875_v11  ;;  %v5771_v45 = vpop.f32.mrb[31].mxu0 }
 0x2a9   : > { %v3634_v28 = vpop.f32.mrb[31].mxu1  ;;  %5845 = vst [vmem:[%s9559_s13 + $0xf0] sm:$0xff] %v7242_v41  ;;  %v7244_v39 = vadd.f32 %v7197_v40, %v7005_v62  ;;  %v5919_v55 = vmul.f32 %v7242_v41, %v7242_v41 }
 0x2aa   : > { %5843 = vst [vmem:[%s9559_s13 + $0xe0] sm:$0xff] %v7243_v56  ;;  %v5877_v17 = vadd.f32 %v7243_v56, %v5876_v18  ;;  %v5917_v10 = vmul.f32 %v7243_v56, %v7243_v56  ;;  %v5947_v53 = vadd.f32 %v5946_v58, %v5916_v20  ;;  %v7245_v54 = vadd.f32 %v5771_v45, %v3634_v28 }
 0x2ab   : > { %5846 = vst [vmem:[%s9559_s13 + $0xf8] sm:$0xff] %v7244_v39  ;;  %v5920_v27 = vmul.f32 %v7244_v39, %v7244_v39 }
 0x2ac   : > { %v5948_v37 = vadd.f32 %v5947_v53, %v5917_v10  ;;  %5844 = vst [vmem:[%s9559_s13 + $0xe8] sm:$0xff] %v7245_v54  ;;  %v5878_v44 = vadd.f32 %v7245_v54, %v5877_v17  ;;  %v5918_v9 = vmul.f32 %v7245_v54, %v7245_v54 }
 0x2ae   : > { %v5879_v16 = vadd.f32 %v7242_v41, %v5878_v44  ;;  %v5949_v42 = vadd.f32 %v5948_v37, %v5918_v9 }
 0x2b0   : > { %v5880_v60 = vadd.f32 %v7244_v39, %v5879_v16  ;;  %v5950_v31 = vadd.f32 %v5949_v42, %v5919_v55 }
 0x2b2   : > { %v5881_v21 = vrot.slane %v5880_v60, 4  ;;  %v5951_v7 = vadd.f32 %v5950_v31, %v5920_v27 }
 0x2b4   : > { %v5882_v38 = vadd.f32 %v5881_v21, %v5880_v60  ;;  %v5952_v3 = vrot.slane %v5951_v7, 4 }
 0x2b6   : > { %v5883_v26 = vrot.slane %v5882_v38, 2  ;;  %v5953_v50 = vadd.f32 %v5952_v3, %v5951_v7 }
 0x2b8   : > { %v5884_v35 = vadd.f32 %v5883_v26, %v5882_v38  ;;  %v5954_v8 = vrot.slane %v5953_v50, 2 }
 0x2ba   : > { %v5885_v34 = vrot.slane %v5884_v35, 1  ;;  %v5955_v24 = vadd.f32 %v5954_v8, %v5953_v50 }
 0x2bc   : > { %v5886_v47 = vadd.f32 %v5885_v34, %v5884_v35  ;;  %v5956_v1 = vrot.slane %v5955_v24, 1 }
 0x2be   : > { %v5887_v13 = vsel %vm5849_vm14, %v5886_v47, 0.0  ;;  %v5957_v14 = vadd.f32 %v5956_v1, %v5955_v24 }
 0x2bf   : > { %5888 = vst [vmem:[%s268_s15] sm:$0xff] %v5887_v13 }
 0x2c0   : > { %v5958_v5 = vsel %vm5849_vm14, %v5957_v14, 0.0 }
 0x2c1   : > { %5959 = vst [vmem:[%s272_s19] sm:$0xff] %v5958_v5 }
 0x2c2 PF: > { %s17_s21 = sadd.s32 1, %s7684_s21  }
 0x2c3   : > { %p14_p4 = scmp.ge.s32.totalorder %s17_s21, 4  }
 0x2c5   :  { %16 = sbr.rel (!%p14_p4) target bundleno = 1 (0x1), region = 100 }

</bundles_post_ra>
